<compile_context>
chip_gen: v7x
topology: tpu7x:2x2x1
jax: 0.10.0
libtpu: 0.0.40
codegen_flags: <defaults>
</compile_context>

<pallas_src>
import math
import numpy as np
import jax
import jax.numpy as jnp
from jax.experimental import pallas as pl
from jax.experimental.pallas import tpu as pltpu

EPS = 1e-5        # torch.nn.BatchNorm1d default eps
C_IN = 3
C_PAD = 8         # zero-pad input channels 3 -> 8 (sublane/DMA friendliness)
C1 = 128          # layer-1 output channels padded 64 -> 128 (lane-dense layers 1-2)
CH = 256          # output-channel chunk of the 128 -> 1024 layer
N_CHUNKS = 1024 // CH
OUT_PAD = 128     # fc3 output padded 9 -> 128 lanes (lane-dense store)


# ---------------------------------------------------------------------------
# Fused kernel: per-point MLP + max over points + FC head (+ identity)
# ---------------------------------------------------------------------------
def tnet_fused_kernel(x_ref, w1_ref, s1_ref, w2_ref, s2_ref, w3_ref, s3_ref,
                      w4_ref, s4_ref, w5_ref, s5_ref, w6_ref, b6_ref,
                      out_ref, acc_ref):
    """Grid = (B // bb, N // tile_n).

    acc_ref: (N_CHUNKS, bb, 8, CH) f32 running per-batch-element channel max.
    The 8 sublane rows are kept alive so the hot loop only does cross-vreg VPU
    maxes; the final 8 -> 1 sublane (XLU) reduce runs once per batch block in
    the head.
    """
    n = pl.program_id(1)
    n_last = pl.num_programs(1) - 1
    bb, tile_n, cpad = x_ref.shape

    @pl.when(n == 0)
    def _():
        acc_ref[...] = jnp.full_like(acc_ref, -jnp.inf)

    # ---- Per-point MLP, layers 1-2: 8(pad of 3) -> 128(pad of 64) -> 128 ----
    # Batch block flattened into the matmul M axis; bf16 operands, f32 acc;
    # BN scale/shift + ReLU in f32.
    x = x_ref[...].reshape(bb * tile_n, cpad)                     # bf16
    h = jnp.dot(x, w1_ref[...], preferred_element_type=jnp.float32)
    h = jnp.maximum(h * s1_ref[0:1, :] + s1_ref[1:2, :], 0.0)
    h = jnp.dot(h.astype(jnp.bfloat16), w2_ref[...],
                preferred_element_type=jnp.float32)
    h2 = jnp.maximum(h * s2_ref[0:1, :] + s2_ref[1:2, :],
                     0.0).astype(jnp.bfloat16)                    # (bb*tile_n, 128)

    # ---- Layer 3 (128 -> 1024) in CH-wide output chunks, statically unrolled.
    # Each chunk is immediately reduced to (bb, 8, CH) so vreg/VMEM live range
    # stays bounded while the scheduler overlaps MXU and VPU across chunks.
    for c in range(N_CHUNKS):
        h3 = jnp.dot(h2, w3_ref[c], preferred_element_type=jnp.float32)
        s3c = s3_ref[c]                                           # (2, CH) f32
        h3 = jnp.maximum(h3 * s3c[0:1, :] + s3c[1:2, :], 0.0)     # (bb*tile_n, CH)
        # Partial max per batch element: reduce only across vregs (pure VPU).
        pmax = jnp.max(h3.reshape(bb, tile_n // 8, 8, CH), axis=1)  # (bb, 8, CH)
        acc_ref[c] = jnp.maximum(acc_ref[c], pmax)

    # ---- Fused FC head: once per batch block, on the last point tile ----
    @pl.when(n == n_last)
    def _():
        # fc1 (1024 -> 512), K-chunked over the chunked accumulator, M = bb.
        h4 = jnp.zeros((bb, 512), jnp.float32)
        for c in range(N_CHUNKS):                                 # static unroll (4)
            g = jnp.max(acc_ref[c], axis=1).astype(jnp.bfloat16)  # (bb, CH)
            h4 = h4 + jnp.dot(g, w4_ref[c * CH:(c + 1) * CH, :],
                              preferred_element_type=jnp.float32)
        h4 = jnp.maximum(h4 * s4_ref[0:1, :] + s4_ref[1:2, :], 0.0)
        # fc2 (512 -> 256)
        h5 = jnp.dot(h4.astype(jnp.bfloat16), w5_ref[...],
                     preferred_element_type=jnp.float32)
        h5 = jnp.maximum(h5 * s5_ref[0:1, :] + s5_ref[1:2, :], 0.0)
        # fc3 (256 -> 9, padded to 128 lanes), kept f32; bias already includes
        # the flattened identity.
        out = jnp.dot(h5, w6_ref[...], preferred_element_type=jnp.float32)
        out_ref[0] = out + b6_ref[...]


# ---------------------------------------------------------------------------
# Wrapper
# ---------------------------------------------------------------------------
def _fold_bn(w, b, gamma, beta, mean, var, dtype=jnp.bfloat16):
    """relu(bn(x @ W.T + b)) == relu((x @ W_t) * scale + shift_eff)."""
    scale = gamma / jnp.sqrt(var + EPS)
    shift = beta - mean * scale
    return (w.T.astype(dtype),
            jnp.stack([scale, b * scale + shift], axis=0).astype(jnp.float32))


def input_transform_net_forward(x, p, *, tile_n=512, bb=8):
    B, C, N = x.shape
    assert C == C_IN
    tile_n = min(tile_n, N)
    assert N % tile_n == 0 and tile_n % 16 == 0, (N, tile_n)   # bf16 sublane packing
    bb = max(1, math.gcd(bb, B))                               # bb divides B

    # Channel-last, zero-pad channels 3 -> 8, bf16 for the MXU. The transpose +
    # cast + pad fuse into a single XLA copy pass; the kernel itself is
    # MXU-bound, so this prep pass is a small fraction of total time.
    x_pts = jnp.transpose(x, (0, 2, 1)).astype(jnp.bfloat16)          # (B, N, 3)
    x_pts = jnp.pad(x_pts, ((0, 0), (0, 0), (0, C_PAD - C)))          # (B, N, 8)

    w1t, s1 = _fold_bn(p["conv1_w"], p["conv1_b"], p["bn1_g"], p["bn1_b"],
                       p["bn1_m"], p["bn1_v"])
    # Pad layer-1 to 128 output channels: padded columns get scale=shift=0 so
    # they are exactly 0 after ReLU, and the matching zero rows of w2 make them
    # inert -> lane-dense layer-1/2 activations at zero numerical cost.
    w1t = jnp.pad(w1t, ((0, C_PAD - C_IN), (0, C1 - 64)))             # (8, 128)
    s1 = jnp.pad(s1, ((0, 0), (0, C1 - 64)))                          # (2, 128)
    w2t, s2 = _fold_bn(p["conv2_w"], p["conv2_b"], p["bn2_g"], p["bn2_b"],
                       p["bn2_m"], p["bn2_v"])
    w2t = jnp.pad(w2t, ((0, C1 - 64), (0, 0)))                        # (128, 128)
    w3t, s3 = _fold_bn(p["conv3_w"], p["conv3_b"], p["bn3_g"], p["bn3_b"],
                       p["bn3_m"], p["bn3_v"])
    w4t, s4 = _fold_bn(p["fc1_w"], p["fc1_b"], p["bn4_g"], p["bn4_b"],
                       p["bn4_m"], p["bn4_v"])
    w5t, s5 = _fold_bn(p["fc2_w"], p["fc2_b"], p["bn5_g"], p["bn5_b"],
                       p["bn5_m"], p["bn5_v"])
    # 1024-channel chunk axis leading so the kernel indexes chunks on the major
    # dim (no dynamic lane-dim slicing).
    w3c = w3t.reshape(128, N_CHUNKS, CH).transpose(1, 0, 2)           # (4, 128, 256)
    s3c = s3.reshape(2, N_CHUNKS, CH).transpose(1, 0, 2)              # (4, 2, 256)
    # fc3 kept f32; bias pre-folded with the flattened identity; output padded
    # to 128 lanes for an unmasked lane-dense store (sliced back outside).
    w6t = jnp.pad(p["fc3_w"].T.astype(jnp.float32),
                  ((0, 0), (0, OUT_PAD - 9)))                         # (256, 128)
    b6 = jnp.pad(p["fc3_b"].reshape(1, 9).astype(jnp.float32)
                 + jnp.eye(3, dtype=jnp.float32).reshape(1, 9),
                 ((0, 0), (0, OUT_PAD - 9)))                          # (1, 128)

    def const(*shape):
        return pl.BlockSpec(shape, lambda b, n: (0,) * len(shape))

    out = pl.pallas_call(
        tnet_fused_kernel,
        out_shape=jax.ShapeDtypeStruct((B // bb, bb, OUT_PAD), jnp.float32),
        grid_spec=pltpu.PrefetchScalarGridSpec(
            num_scalar_prefetch=0,
            grid=(B // bb, N // tile_n),
            in_specs=[
                pl.BlockSpec((bb, tile_n, C_PAD), lambda b, n: (b, n, 0)),
                const(C_PAD, C1), const(2, C1),
                const(C1, 128), const(2, 128),
                const(N_CHUNKS, 128, CH), const(N_CHUNKS, 2, CH),
                const(1024, 512), const(2, 512),
                const(512, 256), const(2, 256),
                const(256, OUT_PAD), const(1, OUT_PAD),
            ],
            out_specs=pl.BlockSpec((1, bb, OUT_PAD), lambda b, n: (b, 0, 0)),
            scratch_shapes=[pltpu.VMEM((N_CHUNKS, bb, 8, CH), jnp.float32)],
        ),
        # Batch-block axis megacore-parallel; point-tile axis is the reduction.
        # Explicit VMEM limit so larger tile_n/bb also fit under v5e's 16 MiB
        # default scoped limit (48 MiB is below v7x's 64 MiB physical VMEM).
        compiler_params=pltpu.CompilerParams(
            dimension_semantics=("parallel", "arbitrary"),
            vmem_limit_bytes=48 * 1024 * 1024),
    )(x_pts, w1t, s1, w2t, s2, w3c, s3c, w4t, s4, w5t, s5, w6t, b6)

    return out.reshape(B, OUT_PAD)[:, :9].reshape(B, 3, 3)


# ---------------------------------------------------------------------------
# Deterministic parameter initialization (shapes match the PyTorch module)
# ---------------------------------------------------------------------------
def init_params(key):
    ks = iter(jax.random.split(key, 64))
    nrm = lambda shape, s=0.1: jax.random.normal(next(ks), shape, jnp.float32) * s
    pos = lambda shape: jax.random.uniform(next(ks), shape, jnp.float32, 0.5, 1.5)

    p = {}
    # conv weights stored as (C_out, C_in); Conv1d kernel size 1 squeezed out.
    for name, (cin, cout) in [("conv1", (3, 64)), ("conv2", (64, 128)),
                              ("conv3", (128, 1024))]:
        p[f"{name}_w"] = nrm((cout, cin))
        p[f"{name}_b"] = nrm((cout,))
    for name, (cin, cout) in [("fc1", (1024, 512)), ("fc2", (512, 256)),
                              ("fc3", (256, 9))]:
        p[f"{name}_w"] = nrm((cout, cin))
        p[f"{name}_b"] = nrm((cout,))
    for name, c in [("bn1", 64), ("bn2", 128), ("bn3", 1024),
                    ("bn4", 512), ("bn5", 256)]:
        p[f"{name}_g"] = 1.0 + nrm((c,))
        p[f"{name}_b"] = nrm((c,))
        p[f"{name}_m"] = nrm((c,))
        p[f"{name}_v"] = pos((c,))
    return p


# ---------------------------------------------------------------------------
# Pure-JAX reference (eval-mode BN). With matmul_dtype=bfloat16 it rounds the
# matmul operands exactly like the kernel (f32 accumulation) for a tight check;
# with float32 it is the exact module semantics for a loose check.
# ---------------------------------------------------------------------------
def reference_forward(x, p, *, matmul_dtype=jnp.float32):
    def mm(a, w):
        return jnp.dot(a.astype(matmul_dtype), w.astype(matmul_dtype),
                       preferred_element_type=jnp.float32)

    def bn(h, g, b, m, v):
        return (h - m) / jnp.sqrt(v + EPS) * g + b

    B = x.shape[0]
    h = jnp.transpose(x, (0, 2, 1)).astype(jnp.float32)               # (B, N, 3)
    h = jnp.maximum(bn(mm(h, p["conv1_w"].T) + p["conv1_b"],
                       p["bn1_g"], p["bn1_b"], p["bn1_m"], p["bn1_v"]), 0.0)
    h = jnp.maximum(bn(mm(h, p["conv2_w"].T) + p["conv2_b"],
                       p["bn2_g"], p["bn2_b"], p["bn2_m"], p["bn2_v"]), 0.0)
    h = jnp.maximum(bn(mm(h, p["conv3_w"].T) + p["conv3_b"],
                       p["bn3_g"], p["bn3_b"], p["bn3_m"], p["bn3_v"]), 0.0)
    g = jnp.max(h, axis=1)                                            # (B, 1024)
    h = jnp.maximum(bn(mm(g, p["fc1_w"].T) + p["fc1_b"],
                       p["bn4_g"], p["bn4_b"], p["bn4_m"], p["bn4_v"]), 0.0)
    h = jnp.maximum(bn(mm(h, p["fc2_w"].T) + p["fc2_b"],
                       p["bn5_g"], p["bn5_b"], p["bn5_m"], p["bn5_v"]), 0.0)
    h = h @ p["fc3_w"].T + p["fc3_b"]                                 # fc3 stays f32
    iden = jnp.eye(3, dtype=jnp.float32).reshape(1, 9)
    return (h + iden).reshape(B, 3, 3)


if __name__ == "__main__":
    key = jax.random.PRNGKey(0)
    kp, kx = jax.random.split(key)
    params = init_params(kp)

    # Case 1: small shapes, single point tile / single batch block.
    B, N = 2, 256
    x = jax.random.normal(kx, (B, 3, N), jnp.float32)   # PyTorch NCW input
    out = jax.block_until_ready(input_transform_net_forward(x, params))
    assert out.shape == (B, 3, 3), out.shape

    # Strict check against a reference that rounds matmul operands to bf16
    # exactly like the kernel (validates BN fold / chunked max / fused head /
    # channel & output padding).
    ref_bf16 = jax.block_until_ready(
        reference_forward(x, params, matmul_dtype=jnp.bfloat16))
    np.testing.assert_allclose(np.asarray(out), np.asarray(ref_bf16),
                               rtol=2e-3, atol=2e-3)

    # Loose check against the exact f32 module semantics (bf16 MXU inputs,
    # f32 accumulation => small deviations are expected).
    ref_f32 = jax.block_until_ready(reference_forward(x, params))
    np.testing.assert_allclose(np.asarray(out), np.asarray(ref_f32),
                               rtol=5e-2, atol=5e-2)

    # Case 2: exercise the multi-point-tile accumulation path (acc -inf init,
    # cross-tile max, head gating on the last tile) and multiple batch blocks:
    # grid = (B2//bb, N2//tile_n) = (2, 4).
    B2, N2 = 4, 512
    x2 = jax.random.normal(jax.random.fold_in(kx, 1), (B2, 3, N2), jnp.float32)
    out2 = jax.block_until_ready(
        input_transform_net_forward(x2, params, tile_n=128, bb=2))
    assert out2.shape == (B2, 3, 3), out2.shape
    ref2 = jax.block_until_ready(
        reference_forward(x2, params, matmul_dtype=jnp.bfloat16))
    np.testing.assert_allclose(np.asarray(out2), np.asarray(ref2),
                               rtol=2e-3, atol=2e-3)

    print("KERNEL_OK")
</pallas_src>

<mosaic_0001>
module attributes {stable_mosaic.version = 11 : i64} {
  func.func @tnet_fused_kernel(%arg0: i32, %arg1: i32, %arg2: memref<2x256x8xbf16, #tpu.memory_space<vmem>>, %arg3: memref<8x128xbf16, #tpu.memory_space<vmem>>, %arg4: memref<2x128xf32, #tpu.memory_space<vmem>>, %arg5: memref<128x128xbf16, #tpu.memory_space<vmem>>, %arg6: memref<2x128xf32, #tpu.memory_space<vmem>>, %arg7: memref<4x128x256xbf16, #tpu.memory_space<vmem>>, %arg8: memref<4x2x256xf32, #tpu.memory_space<vmem>>, %arg9: memref<1024x512xbf16, #tpu.memory_space<vmem>>, %arg10: memref<2x512xf32, #tpu.memory_space<vmem>>, %arg11: memref<512x256xbf16, #tpu.memory_space<vmem>>, %arg12: memref<2x256xf32, #tpu.memory_space<vmem>>, %arg13: memref<256x128xf32, #tpu.memory_space<vmem>>, %arg14: memref<1x128xf32, #tpu.memory_space<vmem>>, %arg15: memref<1x2x128xf32, #tpu.memory_space<vmem>>, %arg16: memref<4x2x8x256xf32, #tpu.memory_space<vmem>>) attributes {dimension_semantics = [#tpu.dimension_semantics<parallel>, #tpu.dimension_semantics<arbitrary>], iteration_bounds = array<i64: 1, 1>, scalar_prefetch = 0 : i64, scratch_operands = 1 : i64, tpu.core_type = #tpu.core_type<tc>, window_params = [{transform_indices = @transform_0, window_bounds = array<i64: 2, 256, 8>}, {pipeline_mode = #tpu.pipeline_mode<synchronous>, transform_indices = @transform_1, window_bounds = array<i64: 8, 128>}, {pipeline_mode = #tpu.pipeline_mode<synchronous>, transform_indices = @transform_2, window_bounds = array<i64: 2, 128>}, {pipeline_mode = #tpu.pipeline_mode<synchronous>, transform_indices = @transform_3, window_bounds = array<i64: 128, 128>}, {pipeline_mode = #tpu.pipeline_mode<synchronous>, transform_indices = @transform_4, window_bounds = array<i64: 2, 128>}, {pipeline_mode = #tpu.pipeline_mode<synchronous>, transform_indices = @transform_5, window_bounds = array<i64: 4, 128, 256>}, {pipeline_mode = #tpu.pipeline_mode<synchronous>, transform_indices = @transform_6, window_bounds = array<i64: 4, 2, 256>}, {pipeline_mode = #tpu.pipeline_mode<synchronous>, transform_indices = @transform_7, window_bounds = array<i64: 1024, 512>}, {pipeline_mode = #tpu.pipeline_mode<synchronous>, transform_indices = @transform_8, window_bounds = array<i64: 2, 512>}, {pipeline_mode = #tpu.pipeline_mode<synchronous>, transform_indices = @transform_9, window_bounds = array<i64: 512, 256>}, {pipeline_mode = #tpu.pipeline_mode<synchronous>, transform_indices = @transform_10, window_bounds = array<i64: 2, 256>}, {pipeline_mode = #tpu.pipeline_mode<synchronous>, transform_indices = @transform_11, window_bounds = array<i64: 256, 128>}, {pipeline_mode = #tpu.pipeline_mode<synchronous>, transform_indices = @transform_12, window_bounds = array<i64: 1, 128>}, {transform_indices = @transform_13, window_bounds = array<i64: 1, 2, 128>}]} {
    %c0_i32 = arith.constant 0 : i32
    %0 = arith.cmpi eq, %arg1, %c0_i32 : i32
    %1 = arith.extui %0 : i1 to i32
    %c0_i32_0 = arith.constant 0 : i32
    %2 = arith.cmpi ne, %1, %c0_i32_0 : i32
    scf.if %2 {
      %cst_85 = arith.constant 0xFF800000 : f32
      %114 = vector.broadcast %cst_85 : f32 to vector<4x2x8x256xf32>
      %c0_86 = arith.constant 0 : index
      %c0_87 = arith.constant 0 : index
      %c0_88 = arith.constant 0 : index
      %c0_89 = arith.constant 0 : index
      %115 = vector.load %arg16[%c0_86, %c0_87, %c0_88, %c0_89] : memref<4x2x8x256xf32, #tpu.memory_space<vmem>>, vector<4x2x8x256xf32>
      tpu.vector_store %arg16[%c0_86, %c0_87, %c0_88, %c0_89], %114 {strides = array<i32>} : memref<4x2x8x256xf32, #tpu.memory_space<vmem>>, vector<4x2x8x256xf32>,
    } else {
    }
    %c0 = arith.constant 0 : index
    %c0_1 = arith.constant 0 : index
    %c0_2 = arith.constant 0 : index
    %3 = vector.load %arg2[%c0, %c0_1, %c0_2] : memref<2x256x8xbf16, #tpu.memory_space<vmem>>, vector<2x256x8xbf16>
    %4 = vector.shape_cast %3 : vector<2x256x8xbf16> to vector<512x8xbf16>
    %c0_3 = arith.constant 0 : index
    %c0_4 = arith.constant 0 : index
    %5 = vector.load %arg3[%c0_3, %c0_4] : memref<8x128xbf16, #tpu.memory_space<vmem>>, vector<8x128xbf16>
    %cst = arith.constant dense<0.000000e+00> : vector<512x128xf32>
    %6 = tpu.matmul %4, %5, %cst {dimension_numbers = #tpu.dot_dimension_numbers<[1], [0], [0], [1], [0, 0, 1, 1], [], []>} : vector<512x8xbf16>, vector<8x128xbf16>, vector<512x128xf32> -> vector<512x128xf32>
    %c0_5 = arith.constant 0 : index
    %c0_6 = arith.constant 0 : index
    %7 = vector.load %arg4[%c0_5, %c0_6] : memref<2x128xf32, #tpu.memory_space<vmem>>, vector<1x128xf32>
    %8 = vector.broadcast %7 : vector<1x128xf32> to vector<512x128xf32>
    %9 = arith.mulf %6, %8 : vector<512x128xf32>
    %c1 = arith.constant 1 : index
    %c0_7 = arith.constant 0 : index
    %10 = vector.load %arg4[%c1, %c0_7] : memref<2x128xf32, #tpu.memory_space<vmem>>, vector<1x128xf32>
    %11 = vector.broadcast %10 : vector<1x128xf32> to vector<512x128xf32>
    %12 = arith.addf %9, %11 : vector<512x128xf32>
    %cst_8 = arith.constant 0.000000e+00 : f32
    %13 = vector.broadcast %cst_8 : f32 to vector<512x128xf32>
    %14 = arith.maximumf %12, %13 : vector<512x128xf32>
    %15 = arith.truncf %14 : vector<512x128xf32> to vector<512x128xbf16>
    %c0_9 = arith.constant 0 : index
    %c0_10 = arith.constant 0 : index
    %16 = vector.load %arg5[%c0_9, %c0_10] : memref<128x128xbf16, #tpu.memory_space<vmem>>, vector<128x128xbf16>
    %cst_11 = arith.constant dense<0.000000e+00> : vector<512x128xf32>
    %17 = tpu.matmul %15, %16, %cst_11 {dimension_numbers = #tpu.dot_dimension_numbers<[1], [0], [0], [1], [0, 0, 1, 1], [], []>} : vector<512x128xbf16>, vector<128x128xbf16>, vector<512x128xf32> -> vector<512x128xf32>
    %c0_12 = arith.constant 0 : index
    %c0_13 = arith.constant 0 : index
    %18 = vector.load %arg6[%c0_12, %c0_13] : memref<2x128xf32, #tpu.memory_space<vmem>>, vector<1x128xf32>
    %19 = vector.broadcast %18 : vector<1x128xf32> to vector<512x128xf32>
    %20 = arith.mulf %17, %19 : vector<512x128xf32>
    %c1_14 = arith.constant 1 : index
    %c0_15 = arith.constant 0 : index
    %21 = vector.load %arg6[%c1_14, %c0_15] : memref<2x128xf32, #tpu.memory_space<vmem>>, vector<1x128xf32>
    %22 = vector.broadcast %21 : vector<1x128xf32> to vector<512x128xf32>
    %23 = arith.addf %20, %22 : vector<512x128xf32>
    %cst_16 = arith.constant 0.000000e+00 : f32
    %24 = vector.broadcast %cst_16 : f32 to vector<512x128xf32>
    %25 = arith.maximumf %23, %24 : vector<512x128xf32>
    %26 = arith.truncf %25 : vector<512x128xf32> to vector<512x128xbf16>
    %c0_17 = arith.constant 0 : index
    %c0_18 = arith.constant 0 : index
    %c0_19 = arith.constant 0 : index
    %27 = vector.load %arg7[%c0_17, %c0_18, %c0_19] : memref<4x128x256xbf16, #tpu.memory_space<vmem>>, vector<1x128x256xbf16>
    %28 = vector.shape_cast %27 : vector<1x128x256xbf16> to vector<128x256xbf16>
    %cst_20 = arith.constant dense<0.000000e+00> : vector<512x256xf32>
    %29 = tpu.matmul %26, %28, %cst_20 {dimension_numbers = #tpu.dot_dimension_numbers<[1], [0], [0], [1], [0, 0, 1, 1], [], []>} : vector<512x128xbf16>, vector<128x256xbf16>, vector<512x256xf32> -> vector<512x256xf32>
    %c0_21 = arith.constant 0 : index
    %c0_22 = arith.constant 0 : index
    %c0_23 = arith.constant 0 : index
    %30 = vector.load %arg8[%c0_21, %c0_22, %c0_23] : memref<4x2x256xf32, #tpu.memory_space<vmem>>, vector<1x2x256xf32>
    %31 = vector.shape_cast %30 : vector<1x2x256xf32> to vector<2x256xf32>
    %32 = vector.extract_strided_slice %31 {offsets = [0, 0], sizes = [1, 256], strides = [1, 1]} : vector<2x256xf32> to vector<1x256xf32>
    %33 = vector.broadcast %32 : vector<1x256xf32> to vector<512x256xf32>
    %34 = arith.mulf %29, %33 : vector<512x256xf32>
    %35 = vector.extract_strided_slice %31 {offsets = [1, 0], sizes = [1, 256], strides = [1, 1]} : vector<2x256xf32> to vector<1x256xf32>
    %36 = vector.broadcast %35 : vector<1x256xf32> to vector<512x256xf32>
    %37 = arith.addf %34, %36 : vector<512x256xf32>
    %cst_24 = arith.constant 0.000000e+00 : f32
    %38 = vector.broadcast %cst_24 : f32 to vector<512x256xf32>
    %39 = arith.maximumf %37, %38 : vector<512x256xf32>
    %40 = vector.shape_cast %39 : vector<512x256xf32> to vector<2x32x8x256xf32>
    %cst_25 = arith.constant dense<0xFF800000> : vector<2x8x256xf32>
    %41 = vector.multi_reduction <maximumf>, %40, %cst_25 [1] : vector<2x32x8x256xf32> to vector<2x8x256xf32>
    %c0_26 = arith.constant 0 : index
    %c0_27 = arith.constant 0 : index
    %c0_28 = arith.constant 0 : index
    %c0_29 = arith.constant 0 : index
    %42 = vector.load %arg16[%c0_26, %c0_27, %c0_28, %c0_29] : memref<4x2x8x256xf32, #tpu.memory_space<vmem>>, vector<1x2x8x256xf32>
    %43 = vector.shape_cast %42 : vector<1x2x8x256xf32> to vector<2x8x256xf32>
    %44 = arith.maximumf %43, %41 : vector<2x8x256xf32>
    %c0_30 = arith.constant 0 : index
    %c0_31 = arith.constant 0 : index
    %c0_32 = arith.constant 0 : index
    %c0_33 = arith.constant 0 : index
    %45 = vector.load %arg16[%c0_30, %c0_31, %c0_32, %c0_33] : memref<4x2x8x256xf32, #tpu.memory_space<vmem>>, vector<1x2x8x256xf32>
    %46 = vector.shape_cast %45 : vector<1x2x8x256xf32> to vector<2x8x256xf32>
    %47 = vector.shape_cast %44 : vector<2x8x256xf32> to vector<1x2x8x256xf32>
    tpu.vector_store %arg16[%c0_30, %c0_31, %c0_32, %c0_33], %47 {strides = array<i32>} : memref<4x2x8x256xf32, #tpu.memory_space<vmem>>, vector<1x2x8x256xf32>,
    %c1_34 = arith.constant 1 : index
    %c0_35 = arith.constant 0 : index
    %c0_36 = arith.constant 0 : index
    %48 = vector.load %arg7[%c1_34, %c0_35, %c0_36] : memref<4x128x256xbf16, #tpu.memory_space<vmem>>, vector<1x128x256xbf16>
    %49 = vector.shape_cast %48 : vector<1x128x256xbf16> to vector<128x256xbf16>
    %cst_37 = arith.constant dense<0.000000e+00> : vector<512x256xf32>
    %50 = tpu.matmul %26, %49, %cst_37 {dimension_numbers = #tpu.dot_dimension_numbers<[1], [0], [0], [1], [0, 0, 1, 1], [], []>} : vector<512x128xbf16>, vector<128x256xbf16>, vector<512x256xf32> -> vector<512x256xf32>
    %c1_38 = arith.constant 1 : index
    %c0_39 = arith.constant 0 : index
    %c0_40 = arith.constant 0 : index
    %51 = vector.load %arg8[%c1_38, %c0_39, %c0_40] : memref<4x2x256xf32, #tpu.memory_space<vmem>>, vector<1x2x256xf32>
    %52 = vector.shape_cast %51 : vector<1x2x256xf32> to vector<2x256xf32>
    %53 = vector.extract_strided_slice %52 {offsets = [0, 0], sizes = [1, 256], strides = [1, 1]} : vector<2x256xf32> to vector<1x256xf32>
    %54 = vector.broadcast %53 : vector<1x256xf32> to vector<512x256xf32>
    %55 = arith.mulf %50, %54 : vector<512x256xf32>
    %56 = vector.extract_strided_slice %52 {offsets = [1, 0], sizes = [1, 256], strides = [1, 1]} : vector<2x256xf32> to vector<1x256xf32>
    %57 = vector.broadcast %56 : vector<1x256xf32> to vector<512x256xf32>
    %58 = arith.addf %55, %57 : vector<512x256xf32>
    %cst_41 = arith.constant 0.000000e+00 : f32
    %59 = vector.broadcast %cst_41 : f32 to vector<512x256xf32>
    %60 = arith.maximumf %58, %59 : vector<512x256xf32>
    %61 = vector.shape_cast %60 : vector<512x256xf32> to vector<2x32x8x256xf32>
    %cst_42 = arith.constant dense<0xFF800000> : vector<2x8x256xf32>
    %62 = vector.multi_reduction <maximumf>, %61, %cst_42 [1] : vector<2x32x8x256xf32> to vector<2x8x256xf32>
    %c1_43 = arith.constant 1 : index
    %c0_44 = arith.constant 0 : index
    %c0_45 = arith.constant 0 : index
    %c0_46 = arith.constant 0 : index
    %63 = vector.load %arg16[%c1_43, %c0_44, %c0_45, %c0_46] : memref<4x2x8x256xf32, #tpu.memory_space<vmem>>, vector<1x2x8x256xf32>
    %64 = vector.shape_cast %63 : vector<1x2x8x256xf32> to vector<2x8x256xf32>
    %65 = arith.maximumf %64, %62 : vector<2x8x256xf32>
    %c1_47 = arith.constant 1 : index
    %c0_48 = arith.constant 0 : index
    %c0_49 = arith.constant 0 : index
    %c0_50 = arith.constant 0 : index
    %66 = vector.load %arg16[%c1_47, %c0_48, %c0_49, %c0_50] : memref<4x2x8x256xf32, #tpu.memory_space<vmem>>, vector<1x2x8x256xf32>
    %67 = vector.shape_cast %66 : vector<1x2x8x256xf32> to vector<2x8x256xf32>
    %68 = vector.shape_cast %65 : vector<2x8x256xf32> to vector<1x2x8x256xf32>
    tpu.vector_store %arg16[%c1_47, %c0_48, %c0_49, %c0_50], %68 {strides = array<i32>} : memref<4x2x8x256xf32, #tpu.memory_space<vmem>>, vector<1x2x8x256xf32>,
    %c2 = arith.constant 2 : index
    %c0_51 = arith.constant 0 : index
    %c0_52 = arith.constant 0 : index
    %69 = vector.load %arg7[%c2, %c0_51, %c0_52] : memref<4x128x256xbf16, #tpu.memory_space<vmem>>, vector<1x128x256xbf16>
    %70 = vector.shape_cast %69 : vector<1x128x256xbf16> to vector<128x256xbf16>
    %cst_53 = arith.constant dense<0.000000e+00> : vector<512x256xf32>
    %71 = tpu.matmul %26, %70, %cst_53 {dimension_numbers = #tpu.dot_dimension_numbers<[1], [0], [0], [1], [0, 0, 1, 1], [], []>} : vector<512x128xbf16>, vector<128x256xbf16>, vector<512x256xf32> -> vector<512x256xf32>
    %c2_54 = arith.constant 2 : index
    %c0_55 = arith.constant 0 : index
    %c0_56 = arith.constant 0 : index
    %72 = vector.load %arg8[%c2_54, %c0_55, %c0_56] : memref<4x2x256xf32, #tpu.memory_space<vmem>>, vector<1x2x256xf32>
    %73 = vector.shape_cast %72 : vector<1x2x256xf32> to vector<2x256xf32>
    %74 = vector.extract_strided_slice %73 {offsets = [0, 0], sizes = [1, 256], strides = [1, 1]} : vector<2x256xf32> to vector<1x256xf32>
    %75 = vector.broadcast %74 : vector<1x256xf32> to vector<512x256xf32>
    %76 = arith.mulf %71, %75 : vector<512x256xf32>
    %77 = vector.extract_strided_slice %73 {offsets = [1, 0], sizes = [1, 256], strides = [1, 1]} : vector<2x256xf32> to vector<1x256xf32>
    %78 = vector.broadcast %77 : vector<1x256xf32> to vector<512x256xf32>
    %79 = arith.addf %76, %78 : vector<512x256xf32>
    %cst_57 = arith.constant 0.000000e+00 : f32
    %80 = vector.broadcast %cst_57 : f32 to vector<512x256xf32>
    %81 = arith.maximumf %79, %80 : vector<512x256xf32>
    %82 = vector.shape_cast %81 : vector<512x256xf32> to vector<2x32x8x256xf32>
    %cst_58 = arith.constant dense<0xFF800000> : vector<2x8x256xf32>
    %83 = vector.multi_reduction <maximumf>, %82, %cst_58 [1] : vector<2x32x8x256xf32> to vector<2x8x256xf32>
    %c2_59 = arith.constant 2 : index
    %c0_60 = arith.constant 0 : index
    %c0_61 = arith.constant 0 : index
    %c0_62 = arith.constant 0 : index
    %84 = vector.load %arg16[%c2_59, %c0_60, %c0_61, %c0_62] : memref<4x2x8x256xf32, #tpu.memory_space<vmem>>, vector<1x2x8x256xf32>
    %85 = vector.shape_cast %84 : vector<1x2x8x256xf32> to vector<2x8x256xf32>
    %86 = arith.maximumf %85, %83 : vector<2x8x256xf32>
    %c2_63 = arith.constant 2 : index
    %c0_64 = arith.constant 0 : index
    %c0_65 = arith.constant 0 : index
    %c0_66 = arith.constant 0 : index
    %87 = vector.load %arg16[%c2_63, %c0_64, %c0_65, %c0_66] : memref<4x2x8x256xf32, #tpu.memory_space<vmem>>, vector<1x2x8x256xf32>
    %88 = vector.shape_cast %87 : vector<1x2x8x256xf32> to vector<2x8x256xf32>
    %89 = vector.shape_cast %86 : vector<2x8x256xf32> to vector<1x2x8x256xf32>
    tpu.vector_store %arg16[%c2_63, %c0_64, %c0_65, %c0_66], %89 {strides = array<i32>} : memref<4x2x8x256xf32, #tpu.memory_space<vmem>>, vector<1x2x8x256xf32>,
    %c3 = arith.constant 3 : index
    %c0_67 = arith.constant 0 : index
    %c0_68 = arith.constant 0 : index
    %90 = vector.load %arg7[%c3, %c0_67, %c0_68] : memref<4x128x256xbf16, #tpu.memory_space<vmem>>, vector<1x128x256xbf16>
    %91 = vector.shape_cast %90 : vector<1x128x256xbf16> to vector<128x256xbf16>
    %cst_69 = arith.constant dense<0.000000e+00> : vector<512x256xf32>
    %92 = tpu.matmul %26, %91, %cst_69 {dimension_numbers = #tpu.dot_dimension_numbers<[1], [0], [0], [1], [0, 0, 1, 1], [], []>} : vector<512x128xbf16>, vector<128x256xbf16>, vector<512x256xf32> -> vector<512x256xf32>
    %c3_70 = arith.constant 3 : index
    %c0_71 = arith.constant 0 : index
    %c0_72 = arith.constant 0 : index
    %93 = vector.load %arg8[%c3_70, %c0_71, %c0_72] : memref<4x2x256xf32, #tpu.memory_space<vmem>>, vector<1x2x256xf32>
    %94 = vector.shape_cast %93 : vector<1x2x256xf32> to vector<2x256xf32>
    %95 = vector.extract_strided_slice %94 {offsets = [0, 0], sizes = [1, 256], strides = [1, 1]} : vector<2x256xf32> to vector<1x256xf32>
    %96 = vector.broadcast %95 : vector<1x256xf32> to vector<512x256xf32>
    %97 = arith.mulf %92, %96 : vector<512x256xf32>
    %98 = vector.extract_strided_slice %94 {offsets = [1, 0], sizes = [1, 256], strides = [1, 1]} : vector<2x256xf32> to vector<1x256xf32>
    %99 = vector.broadcast %98 : vector<1x256xf32> to vector<512x256xf32>
    %100 = arith.addf %97, %99 : vector<512x256xf32>
    %cst_73 = arith.constant 0.000000e+00 : f32
    %101 = vector.broadcast %cst_73 : f32 to vector<512x256xf32>
    %102 = arith.maximumf %100, %101 : vector<512x256xf32>
    %103 = vector.shape_cast %102 : vector<512x256xf32> to vector<2x32x8x256xf32>
    %cst_74 = arith.constant dense<0xFF800000> : vector<2x8x256xf32>
    %104 = vector.multi_reduction <maximumf>, %103, %cst_74 [1] : vector<2x32x8x256xf32> to vector<2x8x256xf32>
    %c3_75 = arith.constant 3 : index
    %c0_76 = arith.constant 0 : index
    %c0_77 = arith.constant 0 : index
    %c0_78 = arith.constant 0 : index
    %105 = vector.load %arg16[%c3_75, %c0_76, %c0_77, %c0_78] : memref<4x2x8x256xf32, #tpu.memory_space<vmem>>, vector<1x2x8x256xf32>
    %106 = vector.shape_cast %105 : vector<1x2x8x256xf32> to vector<2x8x256xf32>
    %107 = arith.maximumf %106, %104 : vector<2x8x256xf32>
    %c3_79 = arith.constant 3 : index
    %c0_80 = arith.constant 0 : index
    %c0_81 = arith.constant 0 : index
    %c0_82 = arith.constant 0 : index
    %108 = vector.load %arg16[%c3_79, %c0_80, %c0_81, %c0_82] : memref<4x2x8x256xf32, #tpu.memory_space<vmem>>, vector<1x2x8x256xf32>
    %109 = vector.shape_cast %108 : vector<1x2x8x256xf32> to vector<2x8x256xf32>
    %110 = vector.shape_cast %107 : vector<2x8x256xf32> to vector<1x2x8x256xf32>
    tpu.vector_store %arg16[%c3_79, %c0_80, %c0_81, %c0_82], %110 {strides = array<i32>} : memref<4x2x8x256xf32, #tpu.memory_space<vmem>>, vector<1x2x8x256xf32>,
    %c0_i32_83 = arith.constant 0 : i32
    %111 = arith.cmpi eq, %arg1, %c0_i32_83 : i32
    %112 = arith.extui %111 : i1 to i32
    %c0_i32_84 = arith.constant 0 : i32
    %113 = arith.cmpi ne, %112, %c0_i32_84 : i32
    scf.if %113 {
      %cst_85 = arith.constant 0.000000e+00 : f32
      %114 = vector.broadcast %cst_85 : f32 to vector<2x512xf32>
      %c0_86 = arith.constant 0 : index
      %c0_87 = arith.constant 0 : index
      %c0_88 = arith.constant 0 : index
      %c0_89 = arith.constant 0 : index
      %115 = vector.load %arg16[%c0_86, %c0_87, %c0_88, %c0_89] : memref<4x2x8x256xf32, #tpu.memory_space<vmem>>, vector<1x2x8x256xf32>
      %116 = vector.shape_cast %115 : vector<1x2x8x256xf32> to vector<2x8x256xf32>
      %cst_90 = arith.constant dense<0xFF800000> : vector<2x256xf32>
      %117 = vector.multi_reduction <maximumf>, %116, %cst_90 [1] : vector<2x8x256xf32> to vector<2x256xf32>
      %118 = arith.truncf %117 : vector<2x256xf32> to vector<2x256xbf16>
      %c0_91 = arith.constant 0 : index
      %c0_92 = arith.constant 0 : index
      %119 = vector.load %arg9[%c0_91, %c0_92] : memref<1024x512xbf16, #tpu.memory_space<vmem>>, vector<256x512xbf16>
      %cst_93 = arith.constant dense<0.000000e+00> : vector<2x512xf32>
      %120 = tpu.matmul %118, %119, %cst_93 {dimension_numbers = #tpu.dot_dimension_numbers<[1], [0], [0], [1], [0, 0, 1, 1], [], []>} : vector<2x256xbf16>, vector<256x512xbf16>, vector<2x512xf32> -> vector<2x512xf32>
      %121 = arith.addf %114, %120 : vector<2x512xf32>
      %c1_94 = arith.constant 1 : index
      %c0_95 = arith.constant 0 : index
      %c0_96 = arith.constant 0 : index
      %c0_97 = arith.constant 0 : index
      %122 = vector.load %arg16[%c1_94, %c0_95, %c0_96, %c0_97] : memref<4x2x8x256xf32, #tpu.memory_space<vmem>>, vector<1x2x8x256xf32>
      %123 = vector.shape_cast %122 : vector<1x2x8x256xf32> to vector<2x8x256xf32>
      %cst_98 = arith.constant dense<0xFF800000> : vector<2x256xf32>
      %124 = vector.multi_reduction <maximumf>, %123, %cst_98 [1] : vector<2x8x256xf32> to vector<2x256xf32>
      %125 = arith.truncf %124 : vector<2x256xf32> to vector<2x256xbf16>
      %c256 = arith.constant 256 : index
      %c0_99 = arith.constant 0 : index
      %126 = vector.load %arg9[%c256, %c0_99] : memref<1024x512xbf16, #tpu.memory_space<vmem>>, vector<256x512xbf16>
      %cst_100 = arith.constant dense<0.000000e+00> : vector<2x512xf32>
      %127 = tpu.matmul %125, %126, %cst_100 {dimension_numbers = #tpu.dot_dimension_numbers<[1], [0], [0], [1], [0, 0, 1, 1], [], []>} : vector<2x256xbf16>, vector<256x512xbf16>, vector<2x512xf32> -> vector<2x512xf32>
      %128 = arith.addf %121, %127 : vector<2x512xf32>
      %c2_101 = arith.constant 2 : index
      %c0_102 = arith.constant 0 : index
      %c0_103 = arith.constant 0 : index
      %c0_104 = arith.constant 0 : index
      %129 = vector.load %arg16[%c2_101, %c0_102, %c0_103, %c0_104] : memref<4x2x8x256xf32, #tpu.memory_space<vmem>>, vector<1x2x8x256xf32>
      %130 = vector.shape_cast %129 : vector<1x2x8x256xf32> to vector<2x8x256xf32>
      %cst_105 = arith.constant dense<0xFF800000> : vector<2x256xf32>
      %131 = vector.multi_reduction <maximumf>, %130, %cst_105 [1] : vector<2x8x256xf32> to vector<2x256xf32>
      %132 = arith.truncf %131 : vector<2x256xf32> to vector<2x256xbf16>
      %c512 = arith.constant 512 : index
      %c0_106 = arith.constant 0 : index
      %133 = vector.load %arg9[%c512, %c0_106] : memref<1024x512xbf16, #tpu.memory_space<vmem>>, vector<256x512xbf16>
      %cst_107 = arith.constant dense<0.000000e+00> : vector<2x512xf32>
      %134 = tpu.matmul %132, %133, %cst_107 {dimension_numbers = #tpu.dot_dimension_numbers<[1], [0], [0], [1], [0, 0, 1, 1], [], []>} : vector<2x256xbf16>, vector<256x512xbf16>, vector<2x512xf32> -> vector<2x512xf32>
      %135 = arith.addf %128, %134 : vector<2x512xf32>
      %c3_108 = arith.constant 3 : index
      %c0_109 = arith.constant 0 : index
      %c0_110 = arith.constant 0 : index
      %c0_111 = arith.constant 0 : index
      %136 = vector.load %arg16[%c3_108, %c0_109, %c0_110, %c0_111] : memref<4x2x8x256xf32, #tpu.memory_space<vmem>>, vector<1x2x8x256xf32>
      %137 = vector.shape_cast %136 : vector<1x2x8x256xf32> to vector<2x8x256xf32>
      %cst_112 = arith.constant dense<0xFF800000> : vector<2x256xf32>
      %138 = vector.multi_reduction <maximumf>, %137, %cst_112 [1] : vector<2x8x256xf32> to vector<2x256xf32>
      %139 = arith.truncf %138 : vector<2x256xf32> to vector<2x256xbf16>
      %c768 = arith.constant 768 : index
      %c0_113 = arith.constant 0 : index
      %140 = vector.load %arg9[%c768, %c0_113] : memref<1024x512xbf16, #tpu.memory_space<vmem>>, vector<256x512xbf16>
      %cst_114 = arith.constant dense<0.000000e+00> : vector<2x512xf32>
      %141 = tpu.matmul %139, %140, %cst_114 {dimension_numbers = #tpu.dot_dimension_numbers<[1], [0], [0], [1], [0, 0, 1, 1], [], []>} : vector<2x256xbf16>, vector<256x512xbf16>, vector<2x512xf32> -> vector<2x512xf32>
      %142 = arith.addf %135, %141 : vector<2x512xf32>
      %c0_115 = arith.constant 0 : index
      %c0_116 = arith.constant 0 : index
      %143 = vector.load %arg10[%c0_115, %c0_116] : memref<2x512xf32, #tpu.memory_space<vmem>>, vector<1x512xf32>
      %144 = vector.broadcast %143 : vector<1x512xf32> to vector<2x512xf32>
      %145 = arith.mulf %142, %144 : vector<2x512xf32>
      %c1_117 = arith.constant 1 : index
      %c0_118 = arith.constant 0 : index
      %146 = vector.load %arg10[%c1_117, %c0_118] : memref<2x512xf32, #tpu.memory_space<vmem>>, vector<1x512xf32>
      %147 = vector.broadcast %146 : vector<1x512xf32> to vector<2x512xf32>
      %148 = arith.addf %145, %147 : vector<2x512xf32>
      %cst_119 = arith.constant 0.000000e+00 : f32
      %149 = vector.broadcast %cst_119 : f32 to vector<2x512xf32>
      %150 = arith.maximumf %148, %149 : vector<2x512xf32>
      %151 = arith.truncf %150 : vector<2x512xf32> to vector<2x512xbf16>
      %c0_120 = arith.constant 0 : index
      %c0_121 = arith.constant 0 : index
      %152 = vector.load %arg11[%c0_120, %c0_121] : memref<512x256xbf16, #tpu.memory_space<vmem>>, vector<512x256xbf16>
      %cst_122 = arith.constant dense<0.000000e+00> : vector<2x256xf32>
      %153 = tpu.matmul %151, %152, %cst_122 {dimension_numbers = #tpu.dot_dimension_numbers<[1], [0], [0], [1], [0, 0, 1, 1], [], []>} : vector<2x512xbf16>, vector<512x256xbf16>, vector<2x256xf32> -> vector<2x256xf32>
      %c0_123 = arith.constant 0 : index
      %c0_124 = arith.constant 0 : index
      %154 = vector.load %arg12[%c0_123, %c0_124] : memref<2x256xf32, #tpu.memory_space<vmem>>, vector<1x256xf32>
      %155 = vector.broadcast %154 : vector<1x256xf32> to vector<2x256xf32>
      %156 = arith.mulf %153, %155 : vector<2x256xf32>
      %c1_125 = arith.constant 1 : index
      %c0_126 = arith.constant 0 : index
      %157 = vector.load %arg12[%c1_125, %c0_126] : memref<2x256xf32, #tpu.memory_space<vmem>>, vector<1x256xf32>
      %158 = vector.broadcast %157 : vector<1x256xf32> to vector<2x256xf32>
      %159 = arith.addf %156, %158 : vector<2x256xf32>
      %cst_127 = arith.constant 0.000000e+00 : f32
      %160 = vector.broadcast %cst_127 : f32 to vector<2x256xf32>
      %161 = arith.maximumf %159, %160 : vector<2x256xf32>
      %c0_128 = arith.constant 0 : index
      %c0_129 = arith.constant 0 : index
      %162 = vector.load %arg13[%c0_128, %c0_129] : memref<256x128xf32, #tpu.memory_space<vmem>>, vector<256x128xf32>
      %cst_130 = arith.constant dense<0.000000e+00> : vector<2x128xf32>
      %163 = tpu.matmul %161, %162, %cst_130 {dimension_numbers = #tpu.dot_dimension_numbers<[1], [0], [0], [1], [0, 0, 1, 1], [], []>} : vector<2x256xf32>, vector<256x128xf32>, vector<2x128xf32> -> vector<2x128xf32>
      %c0_131 = arith.constant 0 : index
      %c0_132 = arith.constant 0 : index
      %164 = vector.load %arg14[%c0_131, %c0_132] : memref<1x128xf32, #tpu.memory_space<vmem>>, vector<1x128xf32>
      %165 = vector.broadcast %164 : vector<1x128xf32> to vector<2x128xf32>
      %166 = arith.addf %163, %165 : vector<2x128xf32>
      %c0_133 = arith.constant 0 : index
      %c0_134 = arith.constant 0 : index
      %c0_135 = arith.constant 0 : index
      %167 = vector.load %arg15[%c0_133, %c0_134, %c0_135] : memref<1x2x128xf32, #tpu.memory_space<vmem>>, vector<1x2x128xf32>
      %168 = vector.shape_cast %167 : vector<1x2x128xf32> to vector<2x128xf32>
      %169 = vector.shape_cast %166 : vector<2x128xf32> to vector<1x2x128xf32>
      tpu.vector_store %arg15[%c0_133, %c0_134, %c0_135], %169 {strides = array<i32>} : memref<1x2x128xf32, #tpu.memory_space<vmem>>, vector<1x2x128xf32>,
    } else {
    }
    return
  }
  func.func @transform_0(%arg0: i32, %arg1: i32) -> (i32, i32, i32) {
    %c0_i32 = arith.constant 0 : i32
    %c0_i32_0 = arith.constant 0 : i32
    return %arg0, %arg1, %c0_i32 : i32, i32, i32
  }
  func.func @transform_1(%arg0: i32, %arg1: i32) -> (i32, i32) {
    %c0_i32 = arith.constant 0 : i32
    %c0_i32_0 = arith.constant 0 : i32
    %c0_i32_1 = arith.constant 0 : i32
    return %c0_i32, %c0_i32_0 : i32, i32
  }
  func.func @transform_2(%arg0: i32, %arg1: i32) -> (i32, i32) {
    %c0_i32 = arith.constant 0 : i32
    %c0_i32_0 = arith.constant 0 : i32
    %c0_i32_1 = arith.constant 0 : i32
    return %c0_i32, %c0_i32_0 : i32, i32
  }
  func.func @transform_3(%arg0: i32, %arg1: i32) -> (i32, i32) {
    %c0_i32 = arith.constant 0 : i32
    %c0_i32_0 = arith.constant 0 : i32
    %c0_i32_1 = arith.constant 0 : i32
    return %c0_i32, %c0_i32_0 : i32, i32
  }
  func.func @transform_4(%arg0: i32, %arg1: i32) -> (i32, i32) {
    %c0_i32 = arith.constant 0 : i32
    %c0_i32_0 = arith.constant 0 : i32
    %c0_i32_1 = arith.constant 0 : i32
    return %c0_i32, %c0_i32_0 : i32, i32
  }
  func.func @transform_5(%arg0: i32, %arg1: i32) -> (i32, i32, i32) {
    %c0_i32 = arith.constant 0 : i32
    %c0_i32_0 = arith.constant 0 : i32
    %c0_i32_1 = arith.constant 0 : i32
    %c0_i32_2 = arith.constant 0 : i32
    return %c0_i32, %c0_i32_0, %c0_i32_1 : i32, i32, i32
  }
  func.func @transform_6(%arg0: i32, %arg1: i32) -> (i32, i32, i32) {
    %c0_i32 = arith.constant 0 : i32
    %c0_i32_0 = arith.constant 0 : i32
    %c0_i32_1 = arith.constant 0 : i32
    %c0_i32_2 = arith.constant 0 : i32
    return %c0_i32, %c0_i32_0, %c0_i32_1 : i32, i32, i32
  }
  func.func @transform_7(%arg0: i32, %arg1: i32) -> (i32, i32) {
    %c0_i32 = arith.constant 0 : i32
    %c0_i32_0 = arith.constant 0 : i32
    %c0_i32_1 = arith.constant 0 : i32
    return %c0_i32, %c0_i32_0 : i32, i32
  }
  func.func @transform_8(%arg0: i32, %arg1: i32) -> (i32, i32) {
    %c0_i32 = arith.constant 0 : i32
    %c0_i32_0 = arith.constant 0 : i32
    %c0_i32_1 = arith.constant 0 : i32
    return %c0_i32, %c0_i32_0 : i32, i32
  }
  func.func @transform_9(%arg0: i32, %arg1: i32) -> (i32, i32) {
    %c0_i32 = arith.constant 0 : i32
    %c0_i32_0 = arith.constant 0 : i32
    %c0_i32_1 = arith.constant 0 : i32
    return %c0_i32, %c0_i32_0 : i32, i32
  }
  func.func @transform_10(%arg0: i32, %arg1: i32) -> (i32, i32) {
    %c0_i32 = arith.constant 0 : i32
    %c0_i32_0 = arith.constant 0 : i32
    %c0_i32_1 = arith.constant 0 : i32
    return %c0_i32, %c0_i32_0 : i32, i32
  }
  func.func @transform_11(%arg0: i32, %arg1: i32) -> (i32, i32) {
    %c0_i32 = arith.constant 0 : i32
    %c0_i32_0 = arith.constant 0 : i32
    %c0_i32_1 = arith.constant 0 : i32
    return %c0_i32, %c0_i32_0 : i32, i32
  }
  func.func @transform_12(%arg0: i32, %arg1: i32) -> (i32, i32) {
    %c0_i32 = arith.constant 0 : i32
    %c0_i32_0 = arith.constant 0 : i32
    %c0_i32_1 = arith.constant 0 : i32
    return %c0_i32, %c0_i32_0 : i32, i32
  }
  func.func @transform_13(%arg0: i32, %arg1: i32) -> (i32, i32, i32) {
    %c0_i32 = arith.constant 0 : i32
    %c0_i32_0 = arith.constant 0 : i32
    %c0_i32_1 = arith.constant 0 : i32
    return %arg0, %c0_i32, %c0_i32_0 : i32, i32, i32
  }
}

</mosaic_0001>

<bundles_post_ra>
// kernel: tpu_custom_call.1
= control target key start
LH: loop header
LB: loop body
LE: loop exit
PB: predicated region body
PF: predicated region fallthrough
CT: control target
= control target key end

     0   :  { %18 = vsyncpa [#allocation4], 0  ;;  %s12871_s0 = inlined_call_operand.vmem [shape: bf16[2,256,8], index: 0, kind: input, shape index: {}]   ;;  %s12872_s1 = inlined_call_operand.vmem [shape: bf16[8,128], index: 1, kind: input, shape index: {}]   ;;  %s12873_s2 = inlined_call_operand.vmem [shape: f32[2,128], index: 2, kind: input, shape index: {}]   ;;  %s12874_s3 = inlined_call_operand.hbm [shape: bf16[128,128], index: 3, kind: input, shape index: {}]   ;;  %s12875_s4 = inlined_call_operand.vmem [shape: f32[2,128], index: 4, kind: input, shape index: {}]   ;;  %s12876_s5 = inlined_call_operand.hbm [shape: bf16[4,128,256], index: 5, kind: input, shape index: {}]   ;;  %s12877_s6 = inlined_call_operand.vmem [shape: f32[4,2,256], index: 6, kind: input, shape index: {}]   ;;  %s12878_s7 = inlined_call_operand.hbm [shape: bf16[1024,512], index: 7, kind: input, shape index: {}]   ;;  %s12879_s8 = inlined_call_operand.vmem [shape: f32[2,512], index: 8, kind: input, shape index: {}]   ;;  %s12880_s9 = inlined_call_operand.hbm [shape: bf16[512,256], index: 9, kind: input, shape index: {}]   ;;  %s12881_s10 = inlined_call_operand.vmem [shape: f32[2,256], index: 10, kind: input, shape index: {}]   ;;  %s12882_s11 = inlined_call_operand.vmem [shape: f32[256,128], index: 11, kind: input, shape index: {}]   ;;  %s12883_s12 = inlined_call_operand.vmem [shape: f32[1,128], index: 12, kind: input, shape index: {}]   ;;  %s12884_s13 = inlined_call_operand.hbm [shape: f32[1,2,128], index: 13, kind: output, shape index: {}]  }
   0x1   :  { %19 = vsyncpa [#allocation7], 0 }
   0x2   :  { %20 = vsyncpa [#allocation10], 0 }
   0x3   :  { %21 = vsyncpa [#allocation5], 0  ;;  %s9869_s25 = smov [#allocation6]   ;;  %s9751_s29 = scalar_lea.hbm %s12876_s5, 8192 }
   0x4   :  { %s47_s26 = sshll.u32 %s9869_s25, 4  ;;  %p9752_p0 = scmp.ne.s32.totalorder %s12876_s5, %s9751_s29  ;;  %s48_s26 = int_to_ptr.vmem [resolvable:$true] %s47_s26 }
   0x5   :  { %p9755_p1 = scmp.lt.u32.totalorder %s9751_s29, %s12876_s5 }
   0x7   :  { %p9757_p2 = pnand %p9755_p1, %p9752_p0 }
   0x9   :  { %9760 = shalt.err (!%p9757_p2)
}
   0xa   :  { %s9761_s17 = scalar_lea.vmem %s48_s26, 8192  ;;  %p9766_p4 = scmp.lt.s32.totalorder %s48_s26, %s48_s26 }
   0xb   :  { %p9762_p3 = scmp.ne.s32.totalorder %s48_s26, %s9761_s17  ;;  %p9767_p5 = scmp.lt.s32.totalorder %s9761_s17, %s9761_s17 }
   0xd   :  { %p9768_p6 = por %p9767_p5, %p9766_p4 }
   0xf   :  { %p9769_p7 = pnand %p9768_p6, %p9762_p3 }
  0x11   :  { %9772 = shalt.err (!%p9769_p7)
}
  0x12   :  { %s9870_s18 = smov 128   ;;  %s9871_s19 = smov 8  }
  0x13   :  { %53 = dma.hbm_to_vmem [thread:$0]  %s12876_s5, 8192, %s48_s26, [#allocation7], %s9870_s18, %s9870_s18, %s9871_s19  }
  0x14   :  { %s9872_s22 = smov [#allocation3]   ;;  %s9773_s27 = scalar_lea.hbm %s12874_s3, 1024 }
  0x15   :  { %s33_s23 = sshll.u32 %s9872_s22, 4  ;;  %p9774_p8 = scmp.ne.s32.totalorder %s12874_s3, %s9773_s27  ;;  %s34_s23 = int_to_ptr.vmem [resolvable:$true] %s33_s23 }
  0x16   :  { %p9777_p9 = scmp.lt.u32.totalorder %s9773_s27, %s12874_s3 }
  0x18   :  { %p9779_p10 = pnand %p9777_p9, %p9774_p8 }
  0x1a   :  { %9782 = shalt.err (!%p9779_p10)
}
  0x1b   :  { %s9783_s15 = scalar_lea.vmem %s34_s23, 1024  ;;  %p9788_p12 = scmp.lt.s32.totalorder %s34_s23, %s34_s23 }
  0x1c   :  { %p9784_p11 = scmp.ne.s32.totalorder %s34_s23, %s9783_s15  ;;  %p9789_p13 = scmp.lt.s32.totalorder %s9783_s15, %s9783_s15 }
  0x1e   :  { %p9790_p0 = por %p9789_p13, %p9788_p12 }
  0x20   :  { %p9791_p1 = pnand %p9790_p0, %p9784_p11 }
  0x22   :  { %9794 = shalt.err (!%p9791_p1)
}
  0x23   :  { %s9873_s5 = smov 64   ;;  %s9874_s26 = smov 4  }
  0x24   :  { %39 = dma.hbm_to_vmem [thread:$0]  %s12874_s3, 1024, %s34_s23, [#allocation4], %s9873_s5, %s9873_s5, %s9874_s26  }
  0x25   :  { %s9875_s20 = smov [#allocation8]   ;;  %s9795_s25 = scalar_lea.hbm %s12878_s7, 32768 }
  0x26   :  { %s61_s21 = sshll.u32 %s9875_s20, 4  ;;  %p9796_p2 = scmp.ne.s32.totalorder %s12878_s7, %s9795_s25  ;;  %s62_s21 = int_to_ptr.vmem [resolvable:$true] %s61_s21 }
  0x27   :  { %p9799_p3 = scmp.lt.u32.totalorder %s9795_s25, %s12878_s7 }
  0x29   :  { %p9801_p4 = pnand %p9799_p3, %p9796_p2 }
  0x2b   :  { %9804 = shalt.err (!%p9801_p4)
}
  0x2c   :  { %s9805_s14 = scalar_lea.vmem %s62_s21, 32768  ;;  %p9810_p6 = scmp.lt.s32.totalorder %s62_s21, %s62_s21 }
  0x2d   :  { %p9806_p5 = scmp.ne.s32.totalorder %s62_s21, %s9805_s14  ;;  %p9811_p7 = scmp.lt.s32.totalorder %s9805_s14, %s9805_s14 }
  0x2f   :  { %p9812_p8 = por %p9811_p7, %p9810_p6 }
  0x31   :  { %p9813_p9 = pnand %p9812_p8, %p9806_p5 }
  0x33   :  { %9816 = shalt.err (!%p9813_p9)
}
  0x34   :  { %s9876_s3 = smov 256   ;;  %s9877_s23 = smov 16  }
  0x35   :  { %67 = dma.hbm_to_vmem [thread:$0]  %s12878_s7, 32768, %s62_s21, [#allocation7], %s9876_s3, %s9876_s3, %s9877_s23  }
  0x36   :  { %s9878_s26 = smov [#allocation9]   ;;  %s9817_s22 = scalar_lea.hbm %s12880_s9, 8192 }
  0x37   :  { %s75_s16 = sshll.u32 %s9878_s26, 4  ;;  %p9818_p10 = scmp.ne.s32.totalorder %s12880_s9, %s9817_s22  ;;  %s76_s16 = int_to_ptr.vmem [resolvable:$true] %s75_s16 }
  0x38   :  { %p9821_p11 = scmp.lt.u32.totalorder %s9817_s22, %s12880_s9 }
  0x3a   :  { %p9823_p12 = pnand %p9821_p11, %p9818_p10 }
  0x3c   :  { %9826 = shalt.err (!%p9823_p12)
}
  0x3d   :  { %s9827_s29 = scalar_lea.vmem %s76_s16, 8192  ;;  %p9832_p0 = scmp.lt.s32.totalorder %s76_s16, %s76_s16 }
  0x3e   :  { %p9828_p13 = scmp.ne.s32.totalorder %s76_s16, %s9827_s29  ;;  %p9833_p1 = scmp.lt.s32.totalorder %s9827_s29, %s9827_s29 }
  0x40   :  { %p9834_p2 = por %p9833_p1, %p9832_p0 }
  0x42   :  { %p9835_p3 = pnand %p9834_p2, %p9828_p13 }
  0x44   :  { %9838 = shalt.err (!%p9835_p3)
}
  0x45   :  { %81 = dma.hbm_to_vmem [thread:$0]  %s12880_s9, 8192, %s76_s16, [#allocation10], %s9870_s18, %s9870_s18, %s9871_s19  }
  0x46   :  { %9861 = dma.done.wait [#allocation4], 1024  }
  0x47   :  { %9862 = vsyncadd [#allocation4], 4294966272 }
  0x48   :  { %9863 = dma.done.wait [#allocation7], 40960  }
  0x49   :  { %9864 = vsyncadd [#allocation7], 4294926336 }
  0x4a   :  { %9865 = dma.done.wait [#allocation10], 8192  }
  0x4b   :  { %9866 = vsyncadd [#allocation10], 4294959104  ;;  %vm443_vm0 = vcmask 1043456   ;;  %vm346_vm1 = vcmask 64512   ;;  %v185_v0 = vld [vmem:[%s12872_s1] sm:$0xf] }
  0x4c   :  { %9121 = vmatprep.subr.msk.bf16.mxu0 %vm443_vm0, %v185_v0  ;;  %v445_v1 = vsel %vm443_vm0, %v185_v0, 0  ;;  %v9135_v2 = vld [vmem:[%s12871_s0] sm:$0xff]   ;;  %9122 = vmatprep.subr.msk.bf16.mxu1 %vm443_vm0, %v185_v0  ;;  %v9136_v3 = vld [vmem:[%s12871_s0 + $0x8] sm:$0xff]   ;;  %v9137_v4 = vld [vmem:[%s12871_s0 + $0x10] sm:$0xff]   ;;  %vm5797_vm2 = vcmask 1041409   ;;  %s9880_s19 = smov [#allocation11]  }
  0x4d   :  { %8914 = vmatpush3.bf16.msra.mxu0 %v445_v1  ;;  %9092 = vmatpush3.bf16.msra.mxu1 %v445_v1  ;;  %v9138_v5 = vld [vmem:[%s12871_s0 + $0x18] sm:$0xff]   ;;  %v9139_v6 = vld [vmem:[%s12871_s0 + $0x20] sm:$0xff]   ;;  %v9140_v7 = vld [vmem:[%s12871_s0 + $0x28] sm:$0xff]   ;;  %s8328_s15 = sshll.u32 %s9880_s19, 4  ;;  %s8329_s15 = int_to_ptr.vmem [resolvable:$true] %s8328_s15 }
  0x4e   :  { %8915 = vmatprep.mubr.msk.bf16.mxu0 %vm346_vm1, %v9135_v2  ;;  %v9141_v8 = vld [vmem:[%s12871_s0 + $0x30] sm:$0xff]   ;;  %v9155_v9 = vld [vmem:[%s12871_s0 + $0xa0] sm:$0xff]   ;;  %v9156_v10 = vld [vmem:[%s12871_s0 + $0xa8] sm:$0xff]   ;;  %s9839_s1 = scalar_lea.vmem %s8329_s15, 32  ;;  %p9844_p5 = scmp.lt.s32.totalorder %s8329_s15, %s8329_s15 }
  0x4f   :  { %v9142_v11 = vld [vmem:[%s12871_s0 + $0x38] sm:$0xff]   ;;  %8955 = vmatprep.mubr.msk.bf16.mxu1 %vm346_vm1, %v9155_v9  ;;  %v9157_v12 = vld [vmem:[%s12871_s0 + $0xb0] sm:$0xff]   ;;  %v9143_v13 = vld [vmem:[%s12871_s0 + $0x40] sm:$0xff]   ;;  %p9840_p4 = scmp.ne.s32.totalorder %s8329_s15, %s9839_s1  ;;  %p9845_p6 = scmp.lt.s32.totalorder %s9839_s1, %s9839_s1 }
  0x50   :  { %8916 = vmatmul.mubr.msk.bf16.vlgmr.msra.gmra.mrb[0].mxu0 %vm346_vm1, %v9136_v3  ;;  %8956 = vmatmul.mubr.msk.bf16.vlgmr.msra.gmra.mrb[0].mxu1 %vm346_vm1, %v9156_v10  ;;  %v9159_v14 = vld [vmem:[#allocation3] sm:$0xff]   ;;  %v9160_v15 = vld [vmem:[#allocation3 + $0x8] sm:$0xff]   ;;  %v9158_v16 = vld [vmem:[%s12871_s0 + $0xb8] sm:$0xff]  }
  0x51   :  { %8919 = vmatprep.mubr.msk.bf16.mxu0 %vm346_vm1, %v9137_v4  ;;  %8959 = vmatprep.mubr.msk.bf16.mxu1 %vm346_vm1, %v9157_v12  ;;  %v9161_v17 = vld [vmem:[%s12871_s0 + $0xc0] sm:$0xff]   ;;  %v9163_v18 = vld [vmem:[#allocation3 + $0x10] sm:$0xff]   ;;  %v9144_v19 = vld [vmem:[%s12871_s0 + $0x48] sm:$0xff]   ;;  %p9846_p7 = por %p9845_p6, %p9844_p5 }
  0x52   :  { %8979 = vmatprep.subr.bf16.mxu1 %v9159_v14  ;;  %v9145_v20 = vld [vmem:[%s12871_s0 + $0x50] sm:$0xff]   ;;  %v9166_v21 = vld [vmem:[#allocation3 + $0x18] sm:$0xff]   ;;  %v9162_v22 = vld [vmem:[%s12871_s0 + $0xc8] sm:$0xff]  }
  0x53   :  { %8980 = vmatpush3.bf16.msra.mxu1 %v9159_v14  ;;  %v9164_v23 = vld [vmem:[%s12871_s0 + $0xd0] sm:$0xff]   ;;  %v9167_v24 = vld [vmem:[#allocation3 + $0x20] sm:$0xff]   ;;  %v9146_v25 = vld [vmem:[%s12871_s0 + $0x58] sm:$0xff]   ;;  %p9847_p8 = pnand %p9846_p7, %p9840_p4 }
  0x54   :  { %8981 = vmatprep.subr.bf16.mxu1 %v9160_v15  ;;  %v9147_v26 = vld [vmem:[%s12871_s0 + $0x60] sm:$0xff]   ;;  %v9170_v27 = vld [vmem:[#allocation3 + $0x28] sm:$0xff]   ;;  %v9165_v28 = vld [vmem:[%s12871_s0 + $0xd8] sm:$0xff]  }
  0x55   :  { %v9168_v29 = vld [vmem:[%s12871_s0 + $0xe0] sm:$0xff]   ;;  %v9148_v30 = vld [vmem:[%s12871_s0 + $0x68] sm:$0xff]   ;;  %v9149_v31 = vld [vmem:[%s12871_s0 + $0x70] sm:$0xff]  }
  0x56   :  { %v9169_v32 = vld [vmem:[%s12871_s0 + $0xe8] sm:$0xff]   ;;  %v9171_v33 = vld [vmem:[%s12871_s0 + $0xf0] sm:$0xff]   ;;  %v9150_v34 = vld [vmem:[%s12871_s0 + $0x78] sm:$0xff]  }
  0x57   :  { %8982 = vmatpush3.bf16.msra.mxu1 %v9160_v15  ;;  %v9151_v35 = vld [vmem:[%s12871_s0 + $0x80] sm:$0xff]   ;;  %v9172_v36 = vld [vmem:[%s12871_s0 + $0xf8] sm:$0xff]   ;;  %v9152_v37 = vld [vmem:[%s12871_s0 + $0x88] sm:$0xff]  }
  0x58   :  { %8920 = vmatmul.mubr.msk.bf16.gmra.mrb[4].mxu0 %vm346_vm1, %v9138_v5  ;;  %8960 = vmatmul.mubr.msk.bf16.gmra.mrb[4].mxu1 %vm346_vm1, %v9158_v16  ;;  %v9153_v38 = vld [vmem:[%s12871_s0 + $0x90] sm:$0xff]   ;;  %v9154_v39 = vld [vmem:[%s12871_s0 + $0x98] sm:$0xff]   ;;  %v9175_v42 = vld [vmem:[#allocation6] ss:$8 sps:$4 sm:$0xff]  }
  0x59   :  { %8923 = vmatprep.mubr.msk.bf16.mxu0 %vm346_vm1, %v9139_v6  ;;  %8963 = vmatprep.mubr.msk.bf16.mxu1 %vm346_vm1, %v9161_v17  ;;  %v9173_v40 = vld [vmem:[#allocation3 + $0x30] sm:$0xff]   ;;  %v9174_v41 = vld [vmem:[#allocation3 + $0x38] sm:$0xff]   ;;  %v9177_v43 = vld [vmem:[#allocation6 + $0x4] ss:$8 sps:$4 sm:$0xff]  }
  0x5a   :  { %8983 = vmatprep.subr.bf16.mxu1 %v9163_v18  ;;  %v9180_v44 = vld [vmem:[#allocation6 + $0x14] ss:$8 sps:$4 sm:$0xff]   ;;  %1653 = vmatprep.subr.bf16.mxu0 %v9177_v43  ;;  %v9178_v45 = vld [vmem:[#allocation6 + $0x10] ss:$8 sps:$4 sm:$0xff]   ;;  %v9183_v46 = vld [vmem:[#allocation6 + $0x84] ss:$8 sps:$4 sm:$0xff]  }
  0x5b   :  { %8984 = vmatpush3.bf16.msra.mxu1 %v9163_v18  ;;  %1654 = vmatpush1.bf16.msra.mxu0 %v9175_v42  ;;  %v9184_v47 = vld [vmem:[#allocation6 + $0x20] ss:$8 sps:$4 sm:$0xff]   ;;  %v9186_v48 = vld [vmem:[#allocation6 + $0x24] ss:$8 sps:$4 sm:$0xff]   ;;  %v9187_v49 = vld [vmem:[#allocation6 + $0x30] ss:$8 sps:$4 sm:$0xff]  }
  0x5c   :  { %8985 = vmatprep.subr.bf16.mxu1 %v9166_v21  ;;  %1655 = vmatprep.subr.bf16.mxu0 %v9180_v44  ;;  %v9189_v50 = vld [vmem:[#allocation6 + $0x34] ss:$8 sps:$4 sm:$0xff]   ;;  %v9195_v51 = vld [vmem:[#allocation6 + $0x44] ss:$8 sps:$4 sm:$0xff]   ;;  %v9193_v52 = vld [vmem:[#allocation6 + $0x40] ss:$8 sps:$4 sm:$0xff]  }
  0x5d   :  { %v9199_v53 = vld [vmem:[#allocation6 + $0x50] ss:$8 sps:$4 sm:$0xff]   ;;  %v9201_v54 = vld [vmem:[#allocation6 + $0x54] ss:$8 sps:$4 sm:$0xff]   ;;  %v9202_v55 = vld [vmem:[#allocation6 + $0x60] ss:$8 sps:$4 sm:$0xff]  }
  0x5e   :  { %v9204_v56 = vld [vmem:[#allocation6 + $0x64] ss:$8 sps:$4 sm:$0xff]   ;;  %v10139_v57 = vld [vmem:[%s12873_s2] ss:$0 sm:$0xff]  ;;  %v10144_v59 = vld [vmem:[%s12873_s2 + $0x1] ss:$0 sm:$0xff] }
  0x5f   :  { %8986 = vmatpush3.bf16.msra.mxu1 %v9166_v21  ;;  %1656 = vmatpush1.bf16.msra.mxu0 %v9178_v45  ;;  %v9181_v18 = vld [vmem:[#allocation6 + $0x80] ss:$8 sps:$4 sm:$0xff]   ;;  %v9207_v45 = vld [vmem:[#allocation6 + $0xb4] ss:$8 sps:$4 sm:$0xff]  }
  0x60   :  { %8924 = vmatmul.mubr.msk.bf16.gmra.mrb[8].mxu0 %vm346_vm1, %v9140_v7  ;;  %8964 = vmatmul.mubr.msk.bf16.gmra.mrb[8].mxu1 %vm346_vm1, %v9162_v22  ;;  %v9192_v22 = vld [vmem:[#allocation6 + $0x94] ss:$8 sps:$4 sm:$0xff]  }
  0x61   :  { %8927 = vmatprep.mubr.msk.bf16.mxu0 %vm346_vm1, %v9141_v8  ;;  %8967 = vmatprep.mubr.msk.bf16.mxu1 %vm346_vm1, %v9164_v23 }
  0x62   :  { %8987 = vmatprep.subr.bf16.mxu1 %v9167_v24  ;;  %1657 = vmatprep.subr.bf16.mxu0 %v9186_v48 }
  0x63   :  { %8988 = vmatpush3.bf16.msra.mxu1 %v9167_v24  ;;  %1658 = vmatpush1.bf16.msra.mxu0 %v9184_v47 }
  0x64   :  { %8989 = vmatprep.subr.bf16.mxu1 %v9170_v27  ;;  %1659 = vmatprep.subr.bf16.mxu0 %v9189_v50 }
  0x67   :  { %8990 = vmatpush3.bf16.msra.mxu1 %v9170_v27  ;;  %1660 = vmatpush1.bf16.msra.mxu0 %v9187_v49 }
  0x68   :  { %8928 = vmatmul.mubr.msk.bf16.gmra.mrb[12].mxu0 %vm346_vm1, %v9142_v11  ;;  %8968 = vmatmul.mubr.msk.bf16.gmra.mrb[12].mxu1 %vm346_vm1, %v9165_v28 }
  0x69   :  { %8931 = vmatprep.mubr.msk.bf16.mxu0 %vm346_vm1, %v9143_v13  ;;  %8971 = vmatprep.mubr.msk.bf16.mxu1 %vm346_vm1, %v9168_v29  ;;  %v9190_v29 = vld [vmem:[#allocation6 + $0x90] ss:$8 sps:$4 sm:$0xff]  }
  0x6a   :  { %8991 = vmatprep.subr.bf16.mxu1 %v9173_v40  ;;  %1661 = vmatprep.subr.bf16.mxu0 %v9195_v51 }
  0x6b   :  { %8992 = vmatpush3.bf16.msra.mxu1 %v9173_v40  ;;  %1662 = vmatpush1.bf16.msra.mxu0 %v9193_v52  ;;  %v9196_v40 = vld [vmem:[#allocation6 + $0xa0] ss:$8 sps:$4 sm:$0xff]  }
  0x6c   :  { %8993 = vmatprep.subr.bf16.mxu1 %v9174_v41  ;;  %1663 = vmatprep.subr.bf16.mxu0 %v9201_v54 }
  0x6f   :  { %8994 = vmatpush3.bf16.msra.mxu1 %v9174_v41  ;;  %1664 = vmatpush1.bf16.msra.mxu0 %v9199_v53 }
  0x70   :  { %8932 = vmatmul.mubr.msk.bf16.gmra.mrb[16].mxu0 %vm346_vm1, %v9144_v19  ;;  %8972 = vmatmul.mubr.msk.bf16.gmra.mrb[16].mxu1 %vm346_vm1, %v9169_v32 }
  0x71   :  { %8935 = vmatprep.mubr.msk.bf16.mxu0 %vm346_vm1, %v9145_v20  ;;  %8975 = vmatprep.mubr.msk.bf16.mxu1 %vm346_vm1, %v9171_v33 }
  0x72   :  { %2661 = vmatprep.subr.bf16.mxu1 %v9183_v46  ;;  %1665 = vmatprep.subr.bf16.mxu0 %v9204_v56 }
  0x73   :  { %1666 = vmatpush1.bf16.msra.mxu0 %v9202_v55 }
  0x78   :  { %8936 = vmatmul.mubr.msk.bf16.gmra.mrb[20].mxu0 %vm346_vm1, %v9146_v25  ;;  %8976 = vmatmul.mubr.msk.bf16.gmra.mrb[20].mxu1 %vm346_vm1, %v9172_v36 }
  0x79   :  { %8939 = vmatprep.mubr.msk.bf16.mxu0 %vm346_vm1, %v9147_v26 }
  0x80   :  { %8940 = vmatmul.mubr.msk.bf16.gmra.mrb[24].mxu0 %vm346_vm1, %v9148_v30 }
  0x81   :  { %8943 = vmatprep.mubr.msk.bf16.mxu0 %vm346_vm1, %v9149_v31  ;;  %v9198_v31 = vld [vmem:[#allocation6 + $0xa4] ss:$8 sps:$4 sm:$0xff]  }
  0x88   :  { %8944 = vmatmul.mubr.msk.bf16.gmra.mrb[28].mxu0 %vm346_vm1, %v9150_v34 }
  0x89   :  { %8947 = vmatprep.mubr.msk.bf16.mxu0 %vm346_vm1, %v9151_v35 }
  0x90   :  { %8948 = vmatmul.mubr.msk.bf16.gmra.mrb[32].mxu0 %vm346_vm1, %v9152_v37 }
  0x91   :  { %8951 = vmatprep.mubr.msk.bf16.mxu0 %vm346_vm1, %v9153_v38 }
  0x98   :  { %8952 = vmatmul.mubr.msk.bf16.gmra.mrb[36].mxu0 %vm346_vm1, %v9154_v39 }
 0x123   :  { %v8917_v58 = vpop.f32.mrb[0].mxu0  ;;  %v8957_v44 = vpop.f32.mrb[0].mxu1 }
 0x124   :  { %v743_v60 = vmul.f32 %v8917_v58, %v10139_v57  ;;  %v481_v61 = vpop.f32.mrb[1].mxu0  ;;  %v783_v48 = vmul.f32 %v8957_v44, %v10139_v57  ;;  %v641_v49 = vpop.f32.mrb[1].mxu1 }
 0x125   :  { %v741_v62 = vmul.f32 %v10139_v57, %v481_v61  ;;  %v8918_v63 = vpop.f32.mrb[2].mxu0  ;;  %v781_v52 = vmul.f32 %v10139_v57, %v641_v49  ;;  %v8958_v53 = vpop.f32.mrb[2].mxu1  ;;  %v9205_v61 = vld [vmem:[#allocation6 + $0xb0] ss:$8 sps:$4 sm:$0xff]  }
 0x126   :  { %v812_v0 = vadd.f32 %v10144_v59, %v743_v60  ;;  %v744_v1 = vmul.f32 %v8918_v63, %v10139_v57  ;;  %v484_v2 = vpop.f32.mrb[3].mxu0  ;;  %v852_v56 = vadd.f32 %v10144_v59, %v783_v48  ;;  %v784_v58 = vmul.f32 %v8958_v53, %v10139_v57  ;;  %v644_v60 = vpop.f32.mrb[3].mxu1 }
 0x127   :  { %v810_v3 = vadd.f32 %v10144_v59, %v741_v62  ;;  %v742_v4 = vmul.f32 %v10139_v57, %v484_v2  ;;  %v850_v63 = vadd.f32 %v10144_v59, %v781_v52 }
 0x128   :  { %v813_v5 = vadd.f32 %v10144_v59, %v744_v1  ;;  %v876_v7 = vmax.f32 %v812_v0, 0.0  ;;  %v782_v0 = vmul.f32 %v10139_v57, %v644_v60  ;;  %v9210_v1 = vld [vmem:[#allocation6 + $0xc4] ss:$8 sps:$4 sm:$0xff]  }
 0x129   :  { %v811_v6 = vadd.f32 %v10144_v59, %v742_v4  ;;  %v874_v10 = vmax.f32 %v810_v3, 0.0  ;;  %v853_v4 = vadd.f32 %v10144_v59, %v784_v58 }
 0x12a   :  { %v877_v8 = vmax.f32 %v813_v5, 0.0  ;;  %v916_v5 = vmax.f32 %v852_v56, 0.0 }
 0x12b   :  { %v8921_v9 = vpop.f32.mrb[4].mxu0  ;;  %v875_v11 = vmax.f32 %v811_v6, 0.0 }
 0x12c   :  { %v939_v12 = vpack.c.bf16 %v877_v8, %v876_v7  ;;  %v747_v13 = vmul.f32 %v8921_v9, %v10139_v57  ;;  %v497_v14 = vpop.f32.mrb[5].mxu0  ;;  %v851_v9 = vadd.f32 %v10144_v59, %v782_v0 }
 0x12d   :  { %v745_v15 = vmul.f32 %v10139_v57, %v497_v14  ;;  %v8922_v16 = vpop.f32.mrb[6].mxu0  ;;  %v938_v17 = vpack.c.bf16 %v875_v11, %v874_v10  ;;  %v914_v10 = vmax.f32 %v850_v63, 0.0  ;;  %v917_v14 = vmax.f32 %v853_v4, 0.0 }
 0x12e   :  { %v816_v19 = vadd.f32 %v10144_v59, %v747_v13  ;;  %v748_v20 = vmul.f32 %v8922_v16, %v10139_v57  ;;  %v500_v21 = vpop.f32.mrb[7].mxu0 }
 0x12f   :  { %v814_v23 = vadd.f32 %v10144_v59, %v745_v15  ;;  %v746_v24 = vmul.f32 %v10139_v57, %v500_v21  ;;  %8995 = vmatprep.mubr.bf16.mxu1 %v938_v17  ;;  %v9208_v15 = vld [vmem:[#allocation6 + $0xc0] ss:$8 sps:$4 sm:$0xff]  }
 0x130   :  { %v817_v25 = vadd.f32 %v10144_v59, %v748_v20  ;;  %8996 = vmatmul.mubr.bf16.vlgmr.msra.gmra.mrb[24].mxu1 %v939_v12  ;;  %v880_v26 = vmax.f32 %v816_v19, 0.0  ;;  %v915_v19 = vmax.f32 %v851_v9, 0.0  ;;  %v8961_v20 = vpop.f32.mrb[4].mxu1 }
 0x131   :  { %v815_v27 = vadd.f32 %v10144_v59, %v746_v24  ;;  %v878_v28 = vmax.f32 %v814_v23, 0.0  ;;  %2662 = vmatpush1.bf16.msra.mxu1 %v9181_v18  ;;  %v10184_v23 = vpack.c.bf16 %v917_v14, %v916_v5  ;;  %v787_v24 = vmul.f32 %v8961_v20, %v10139_v57 }
 0x132   :  { %v881_v30 = vmax.f32 %v817_v25, 0.0  ;;  %2663 = vmatprep.subr.bf16.mxu1 %v9192_v22  ;;  %v657_v25 = vpop.f32.mrb[5].mxu1 }
 0x133   :  { %v879_v32 = vmax.f32 %v815_v27, 0.0  ;;  %v8925_v33 = vpop.f32.mrb[8].mxu0 }
 0x134   :  { %v941_v34 = vpack.c.bf16 %v881_v30, %v880_v26  ;;  %v751_v35 = vmul.f32 %v8925_v33, %v10139_v57  ;;  %v513_v36 = vpop.f32.mrb[9].mxu0  ;;  %v8962_v30 = vpop.f32.mrb[6].mxu1  ;;  %v856_v33 = vadd.f32 %v10144_v59, %v787_v24 }
 0x135   :  { %v940_v37 = vpack.c.bf16 %v879_v32, %v878_v28  ;;  %v749_v38 = vmul.f32 %v10139_v57, %v513_v36  ;;  %v8926_v39 = vpop.f32.mrb[10].mxu0  ;;  %2664 = vmatpush1.bf16.msra.mxu1 %v9190_v29  ;;  %v10188_v28 = vpack.c.bf16 %v915_v19, %v914_v10  ;;  %v785_v29 = vmul.f32 %v10139_v57, %v657_v25 }
 0x136   :  { %v820_v41 = vadd.f32 %v10144_v59, %v751_v35  ;;  %v752_v42 = vmul.f32 %v8926_v39, %v10139_v57  ;;  %v516_v43 = vpop.f32.mrb[11].mxu0  ;;  %2665 = vmatprep.subr.bf16.mxu1 %v9198_v31  ;;  %v660_v35 = vpop.f32.mrb[7].mxu1 }
 0x137   :  { %8999 = vmatprep.mubr.bf16.mxu1 %v940_v37  ;;  %v818_v46 = vadd.f32 %v10144_v59, %v749_v38  ;;  %v750_v47 = vmul.f32 %v10139_v57, %v516_v43  ;;  %v854_v37 = vadd.f32 %v10144_v59, %v785_v29  ;;  %v786_v38 = vmul.f32 %v10139_v57, %v660_v35  ;;  %v8965_v56 = vpop.f32.mrb[8].mxu1 }
 0x138   :  { %9000 = vmatmul.mubr.bf16.gmra.mrb[28].mxu1 %v941_v34  ;;  %v821_v50 = vadd.f32 %v10144_v59, %v752_v42  ;;  %v884_v51 = vmax.f32 %v820_v41, 0.0  ;;  %v788_v34 = vmul.f32 %v8962_v30, %v10139_v57  ;;  %v920_v42 = vmax.f32 %v856_v33, 0.0  ;;  %v673_v63 = vpop.f32.mrb[9].mxu1 }
 0x139   :  { %v819_v54 = vadd.f32 %v10144_v59, %v750_v47  ;;  %v882_v55 = vmax.f32 %v818_v46, 0.0  ;;  %2666 = vmatpush1.bf16.msra.mxu1 %v9196_v40  ;;  %v855_v46 = vadd.f32 %v10144_v59, %v786_v38  ;;  %v918_v47 = vmax.f32 %v854_v37, 0.0  ;;  %v8966_v4 = vpop.f32.mrb[10].mxu1 }
 0x13a   :  { %v885_v62 = vmax.f32 %v821_v50, 0.0  ;;  %2667 = vmatprep.subr.bf16.mxu1 %v9207_v45  ;;  %v857_v41 = vadd.f32 %v10144_v59, %v788_v34  ;;  %v676_v9 = vpop.f32.mrb[11].mxu1 }
 0x13b   :  { %v883_v2 = vmax.f32 %v819_v54, 0.0  ;;  %v8929_v3 = vpop.f32.mrb[12].mxu0 }
 0x13c   :  { %v943_v6 = vpack.c.bf16 %v885_v62, %v884_v51  ;;  %v755_v7 = vmul.f32 %v8929_v3, %v10139_v57  ;;  %v529_v8 = vpop.f32.mrb[13].mxu0  ;;  %v921_v51 = vmax.f32 %v857_v41, 0.0  ;;  %v791_v62 = vmul.f32 %v8965_v56, %v10139_v57 }
 0x13d   :  { %v942_v11 = vpack.c.bf16 %v883_v2, %v882_v55  ;;  %v753_v12 = vmul.f32 %v10139_v57, %v529_v8  ;;  %v8930_v13 = vpop.f32.mrb[14].mxu0  ;;  %2668 = vmatpush1.bf16.msra.mxu1 %v9205_v61  ;;  %v919_v55 = vmax.f32 %v855_v46, 0.0  ;;  %v789_v3 = vmul.f32 %v10139_v57, %v673_v63 }
 0x13e   :  { %v824_v16 = vadd.f32 %v10144_v59, %v755_v7  ;;  %v756_v17 = vmul.f32 %v8930_v13, %v10139_v57  ;;  %v532_v18 = vpop.f32.mrb[15].mxu0  ;;  %2669 = vmatprep.subr.bf16.mxu1 %v9210_v1  ;;  %v10204_v61 = vpack.c.bf16 %v921_v51, %v920_v42  ;;  %v860_v7 = vadd.f32 %v10144_v59, %v791_v62 }
 0x13f   :  { %9003 = vmatprep.mubr.bf16.mxu1 %v942_v11  ;;  %v822_v21 = vadd.f32 %v10144_v59, %v753_v12  ;;  %v754_v22 = vmul.f32 %v10139_v57, %v532_v18  ;;  %v10208_v2 = vpack.c.bf16 %v919_v55, %v918_v47  ;;  %v792_v8 = vmul.f32 %v8966_v4, %v10139_v57 }
 0x140   :  { %9004 = vmatmul.mubr.bf16.gmra.mrb[32].mxu1 %v943_v6  ;;  %v825_v26 = vadd.f32 %v10144_v59, %v756_v17  ;;  %v888_v27 = vmax.f32 %v824_v16, 0.0  ;;  %v858_v11 = vadd.f32 %v10144_v59, %v789_v3  ;;  %v790_v12 = vmul.f32 %v10139_v57, %v676_v9 }
 0x141   :  { %v823_v31 = vadd.f32 %v10144_v59, %v754_v22  ;;  %v886_v32 = vmax.f32 %v822_v21, 0.0  ;;  %2670 = vmatpush1.bf16.msra.mxu1 %v9208_v15  ;;  %v861_v15 = vadd.f32 %v10144_v59, %v792_v8  ;;  %v924_v16 = vmax.f32 %v860_v7, 0.0 }
 0x142   :  { %v889_v36 = vmax.f32 %v825_v26, 0.0  ;;  %v859_v20 = vadd.f32 %v10144_v59, %v790_v12  ;;  %v922_v21 = vmax.f32 %v858_v11, 0.0 }
 0x143   :  { %v887_v39 = vmax.f32 %v823_v31, 0.0  ;;  %v8933_v40 = vpop.f32.mrb[16].mxu0  ;;  %v925_v26 = vmax.f32 %v861_v15, 0.0  ;;  %v8969_v31 = vpop.f32.mrb[12].mxu1 }
 0x144   :  { %v945_v43 = vpack.c.bf16 %v889_v36, %v888_v27  ;;  %v759_v44 = vmul.f32 %v8933_v40, %v10139_v57  ;;  %v545_v45 = vpop.f32.mrb[17].mxu0  ;;  %v795_v35 = vmul.f32 %v8969_v31, %v10139_v57  ;;  %v689_v36 = vpop.f32.mrb[13].mxu1 }
 0x145   :  { %v944_v48 = vpack.c.bf16 %v887_v39, %v886_v32  ;;  %v757_v49 = vmul.f32 %v10139_v57, %v545_v45  ;;  %v8934_v50 = vpop.f32.mrb[18].mxu0  ;;  %v923_v32 = vmax.f32 %v859_v20, 0.0  ;;  %v10225_v37 = vpack.c.bf16 %v925_v26, %v924_v16  ;;  %v8970_v41 = vpop.f32.mrb[14].mxu1 }
 0x146   :  { %v828_v52 = vadd.f32 %v10144_v59, %v759_v44  ;;  %v760_v53 = vmul.f32 %v8934_v50, %v10139_v57  ;;  %v548_v54 = vpop.f32.mrb[19].mxu0  ;;  %v793_v40 = vmul.f32 %v10139_v57, %v689_v36  ;;  %v864_v45 = vadd.f32 %v10144_v59, %v795_v35  ;;  %v692_v47 = vpop.f32.mrb[15].mxu1 }
 0x147   :  { %9007 = vmatprep.mubr.bf16.mxu1 %v944_v48  ;;  %v826_v58 = vadd.f32 %v10144_v59, %v757_v49  ;;  %v758_v60 = vmul.f32 %v10139_v57, %v548_v54  ;;  %v10229_v42 = vpack.c.bf16 %v923_v32, %v922_v21  ;;  %v796_v46 = vmul.f32 %v8970_v41, %v10139_v57  ;;  %v8973_v7 = vpop.f32.mrb[16].mxu1 }
 0x148   :  { %9008 = vmatmul.mubr.bf16.gmra.mrb[36].mxu1 %v945_v43  ;;  %v829_v0 = vadd.f32 %v10144_v59, %v760_v53  ;;  %v892_v1 = vmax.f32 %v828_v52, 0.0  ;;  %v862_v49 = vadd.f32 %v10144_v59, %v793_v40  ;;  %v794_v50 = vmul.f32 %v10139_v57, %v692_v47  ;;  %v705_v12 = vpop.f32.mrb[17].mxu1 }
 0x149   :  { %v827_v5 = vadd.f32 %v10144_v59, %v758_v60  ;;  %v890_v6 = vmax.f32 %v826_v58, 0.0  ;;  %v865_v53 = vadd.f32 %v10144_v59, %v796_v46  ;;  %v928_v54 = vmax.f32 %v864_v45, 0.0 }
 0x14a   :  { %v893_v10 = vmax.f32 %v829_v0, 0.0  ;;  %v863_v60 = vadd.f32 %v10144_v59, %v794_v50  ;;  %v926_v62 = vmax.f32 %v862_v49, 0.0  ;;  %v799_v11 = vmul.f32 %v8973_v7, %v10139_v57 }
 0x14b   :  { %v891_v13 = vmax.f32 %v827_v5, 0.0  ;;  %v8937_v14 = vpop.f32.mrb[20].mxu0  ;;  %v929_v3 = vmax.f32 %v865_v53, 0.0  ;;  %v797_v16 = vmul.f32 %v10139_v57, %v705_v12 }
 0x14c   :  { %v947_v17 = vpack.c.bf16 %v893_v10, %v892_v1  ;;  %v763_v18 = vmul.f32 %v8937_v14, %v10139_v57  ;;  %v561_v19 = vpop.f32.mrb[21].mxu0  ;;  %v927_v8 = vmax.f32 %v863_v60, 0.0  ;;  %v868_v21 = vadd.f32 %v10144_v59, %v799_v11 }
 0x14d   :  { %v946_v22 = vpack.c.bf16 %v891_v13, %v890_v6  ;;  %v761_v24 = vmul.f32 %v10139_v57, %v561_v19  ;;  %v8938_v25 = vpop.f32.mrb[22].mxu0  ;;  %v10245_v13 = vpack.c.bf16 %v929_v3, %v928_v54  ;;  %v866_v26 = vadd.f32 %v10144_v59, %v797_v16 }
 0x14e   :  { %v832_v27 = vadd.f32 %v10144_v59, %v763_v18  ;;  %v764_v29 = vmul.f32 %v8938_v25, %v10139_v57  ;;  %v564_v30 = vpop.f32.mrb[23].mxu0  ;;  %v10249_v18 = vpack.c.bf16 %v927_v8, %v926_v62  ;;  %v932_v32 = vmax.f32 %v868_v21, 0.0 }
 0x14f   :  { %9011 = vmatprep.mubr.bf16.mxu1 %v946_v22  ;;  %v830_v33 = vadd.f32 %v10144_v59, %v761_v24  ;;  %v762_v34 = vmul.f32 %v10139_v57, %v564_v30 }
 0x150   :  { %9012 = vmatmul.mubr.bf16.gmra.mrb[40].mxu1 %v947_v17  ;;  %v833_v38 = vadd.f32 %v10144_v59, %v764_v29  ;;  %v896_v39 = vmax.f32 %v832_v27, 0.0  ;;  %v8974_v17 = vpop.f32.mrb[18].mxu1 }
 0x151   :  { %v831_v43 = vadd.f32 %v10144_v59, %v762_v34  ;;  %v894_v44 = vmax.f32 %v830_v33, 0.0  ;;  %v800_v22 = vmul.f32 %v8974_v17, %v10139_v57  ;;  %v708_v24 = vpop.f32.mrb[19].mxu1 }
 0x152   :  { %v897_v48 = vmax.f32 %v833_v38, 0.0  ;;  %v798_v27 = vmul.f32 %v10139_v57, %v708_v24  ;;  %v930_v38 = vmax.f32 %v866_v26, 0.0  ;;  %v8977_v47 = vpop.f32.mrb[20].mxu1 }
 0x153   :  { %v895_v51 = vmax.f32 %v831_v43, 0.0  ;;  %v8941_v52 = vpop.f32.mrb[24].mxu0  ;;  %v869_v31 = vadd.f32 %v10144_v59, %v800_v22 }
 0x154   :  { %v949_v55 = vpack.c.bf16 %v897_v48, %v896_v39  ;;  %v767_v56 = vmul.f32 %v8941_v52, %v10139_v57  ;;  %v577_v58 = vpop.f32.mrb[25].mxu0  ;;  %v867_v36 = vadd.f32 %v10144_v59, %v798_v27  ;;  %v721_v52 = vpop.f32.mrb[21].mxu1 }
 0x155   :  { %v948_v63 = vpack.c.bf16 %v895_v51, %v894_v44  ;;  %v765_v0 = vmul.f32 %v10139_v57, %v577_v58  ;;  %v8942_v1 = vpop.f32.mrb[26].mxu0  ;;  %v933_v43 = vmax.f32 %v869_v31, 0.0  ;;  %v803_v51 = vmul.f32 %v8977_v47, %v10139_v57  ;;  %v8978_v58 = vpop.f32.mrb[22].mxu1 }
 0x156   :  { %v836_v4 = vadd.f32 %v10144_v59, %v767_v56  ;;  %v768_v5 = vmul.f32 %v8942_v1, %v10139_v57  ;;  %v580_v6 = vpop.f32.mrb[27].mxu0  ;;  %v931_v48 = vmax.f32 %v867_v36, 0.0  ;;  %v801_v56 = vmul.f32 %v10139_v57, %v721_v52  ;;  %v724_v3 = vpop.f32.mrb[23].mxu1 }
 0x157   :  { %9015 = vmatprep.mubr.bf16.mxu1 %v948_v63  ;;  %v834_v9 = vadd.f32 %v10144_v59, %v765_v0  ;;  %v766_v10 = vmul.f32 %v10139_v57, %v580_v6  ;;  %v10265_v53 = vpack.c.bf16 %v933_v43, %v932_v32  ;;  %v872_v0 = vadd.f32 %v10144_v59, %v803_v51 }
 0x158   :  { %9016 = vmatmul.mubr.bf16.gmra.mrb[44].mxu1 %v949_v55  ;;  %v837_v14 = vadd.f32 %v10144_v59, %v768_v5  ;;  %v900_v15 = vmax.f32 %v836_v4, 0.0  ;;  %v10269_v60 = vpack.c.bf16 %v931_v48, %v930_v38  ;;  %v804_v1 = vmul.f32 %v8978_v58, %v10139_v57 }
 0x159   :  { %v835_v19 = vadd.f32 %v10144_v59, %v766_v10  ;;  %v898_v20 = vmax.f32 %v834_v9, 0.0  ;;  %v870_v5 = vadd.f32 %v10144_v59, %v801_v56  ;;  %v802_v6 = vmul.f32 %v10139_v57, %v724_v3  ;;  %v9219_v3 = vld [vmem:[#allocation6 + $0xe4] ss:$8 sps:$4 sm:$0xff]  }
 0x15a   :  { %v901_v25 = vmax.f32 %v837_v14, 0.0  ;;  %v873_v9 = vadd.f32 %v10144_v59, %v804_v1  ;;  %v936_v10 = vmax.f32 %v872_v0, 0.0  ;;  %v9211_v1 = vld [vmem:[#allocation6 + $0xd0] ss:$8 sps:$4 sm:$0xff]  }
 0x15b   :  { %v899_v29 = vmax.f32 %v835_v19, 0.0  ;;  %v8945_v30 = vpop.f32.mrb[28].mxu0  ;;  %v934_v16 = vmax.f32 %v870_v5, 0.0  ;;  %v9216_v5 = vld [vmem:[#allocation6 + $0x74] ss:$8 sps:$4 sm:$0xff]  }
 0x15c   :  { %v951_v33 = vpack.c.bf16 %v901_v25, %v900_v15  ;;  %v771_v34 = vmul.f32 %v8945_v30, %v10139_v57  ;;  %v593_v35 = vpop.f32.mrb[29].mxu0  ;;  %v871_v15 = vadd.f32 %v10144_v59, %v802_v6  ;;  %v937_v21 = vmax.f32 %v873_v9, 0.0  ;;  %v9222_v6 = vld [vmem:[#allocation6 + $0xf4] ss:$8 sps:$4 sm:$0xff]   ;;  %1667 = vmatprep.subr.bf16.mxu0 %v9216_v5 }
 0x15d   :  { %v950_v39 = vpack.c.bf16 %v899_v29, %v898_v20  ;;  %v769_v40 = vmul.f32 %v10139_v57, %v593_v35  ;;  %v8946_v41 = vpop.f32.mrb[30].mxu0 }
 0x15e   :  { %v840_v44 = vadd.f32 %v10144_v59, %v771_v34  ;;  %v772_v45 = vmul.f32 %v8946_v41, %v10139_v57  ;;  %v596_v46 = vpop.f32.mrb[31].mxu0  ;;  %v935_v26 = vmax.f32 %v871_v15, 0.0  ;;  %v10284_v30 = vpack.c.bf16 %v937_v21, %v936_v10 }
 0x15f   :  { %9019 = vmatprep.mubr.bf16.mxu1 %v950_v39  ;;  %v838_v49 = vadd.f32 %v10144_v59, %v769_v40  ;;  %v770_v50 = vmul.f32 %v10139_v57, %v596_v46 }
 0x160   :  { %9020 = vmatmul.mubr.bf16.gmra.mrb[48].mxu1 %v951_v33  ;;  %v841_v54 = vadd.f32 %v10144_v59, %v772_v45  ;;  %v904_v55 = vmax.f32 %v840_v44, 0.0  ;;  %v968_v33 = vpack.c.bf16 %v935_v26, %v934_v16 }
 0x161   :  { %v839_v62 = vadd.f32 %v10144_v59, %v770_v50  ;;  %v902_v63 = vmax.f32 %v838_v49, 0.0 }
 0x162   :  { %v905_v4 = vmax.f32 %v841_v54, 0.0 }
 0x163   :  { %v903_v7 = vmax.f32 %v839_v62, 0.0  ;;  %v8949_v8 = vpop.f32.mrb[32].mxu0 }
 0x164   :  { %v953_v11 = vpack.c.bf16 %v905_v4, %v904_v55  ;;  %v775_v12 = vmul.f32 %v8949_v8, %v10139_v57  ;;  %v609_v14 = vpop.f32.mrb[33].mxu0  ;;  %v9217_v4 = vld [vmem:[#allocation6 + $0xe0] ss:$8 sps:$4 sm:$0xff]  }
 0x165   :  { %v952_v17 = vpack.c.bf16 %v903_v7, %v902_v63  ;;  %v773_v19 = vmul.f32 %v10139_v57, %v609_v14  ;;  %v8950_v20 = vpop.f32.mrb[34].mxu0 }
 0x166   :  { %v844_v22 = vadd.f32 %v10144_v59, %v775_v12  ;;  %v776_v24 = vmul.f32 %v8950_v20, %v10139_v57  ;;  %v612_v25 = vpop.f32.mrb[35].mxu0 }
 0x167   :  { %9023 = vmatprep.mubr.bf16.mxu1 %v952_v17  ;;  %v842_v27 = vadd.f32 %v10144_v59, %v773_v19  ;;  %v774_v29 = vmul.f32 %v10139_v57, %v612_v25  ;;  %v9223_v25 = vld [vmem:[#allocation6 + $0x100] ss:$8 sps:$4 sm:$0xff]  }
 0x168   :  { %9024 = vmatmul.mubr.bf16.gmra.mrb[52].mxu1 %v953_v11  ;;  %v845_v31 = vadd.f32 %v10144_v59, %v776_v24  ;;  %v908_v32 = vmax.f32 %v844_v22, 0.0 }
 0x169   :  { %v843_v34 = vadd.f32 %v10144_v59, %v774_v29  ;;  %v906_v35 = vmax.f32 %v842_v27, 0.0 }
 0x16a   :  { %v909_v36 = vmax.f32 %v845_v31, 0.0  ;;  %v9228_v31 = vld [vmem:[#allocation6 + $0x114] ss:$8 sps:$4 sm:$0xff]  }
 0x16b   :  { %v907_v38 = vmax.f32 %v843_v34, 0.0  ;;  %v8953_v39 = vpop.f32.mrb[36].mxu0 }
 0x16c   :  { %v955_v40 = vpack.c.bf16 %v909_v36, %v908_v32  ;;  %v779_v41 = vmul.f32 %v8953_v39, %v10139_v57  ;;  %v625_v43 = vpop.f32.mrb[37].mxu0  ;;  %v9237_v39 = vld [vmem:[#allocation6 + $0x194] ss:$8 sps:$4 sm:$0xff]  }
 0x16d   :  { %v954_v44 = vpack.c.bf16 %v907_v38, %v906_v35  ;;  %v777_v45 = vmul.f32 %v10139_v57, %v625_v43  ;;  %v8954_v46 = vpop.f32.mrb[38].mxu0  ;;  %v9229_v35 = vld [vmem:[#allocation6 + $0x180] ss:$8 sps:$4 sm:$0xff]   ;;  %v9226_v43 = vld [vmem:[#allocation6 + $0x110] ss:$8 sps:$4 sm:$0xff]  }
 0x16e   :  { %v848_v47 = vadd.f32 %v10144_v59, %v779_v41  ;;  %v780_v48 = vmul.f32 %v8954_v46, %v10139_v57  ;;  %v628_v49 = vpop.f32.mrb[39].mxu0  ;;  %v9234_v46 = vld [vmem:[#allocation6 + $0x124] ss:$8 sps:$4 sm:$0xff]  }
 0x16f   :  { %9027 = vmatprep.mubr.bf16.mxu1 %v954_v44  ;;  %v846_v50 = vadd.f32 %v10144_v59, %v777_v45  ;;  %v778_v51 = vmul.f32 %v10139_v57, %v628_v49  ;;  %v9213_v57 = vld [vmem:[#allocation6 + $0xd4] ss:$8 sps:$4 sm:$0xff]  }
 0x170   :  { %9028 = vmatmul.mubr.bf16.gmra.mrb[56].mxu1 %v955_v40  ;;  %v849_v52 = vadd.f32 %v10144_v59, %v780_v48  ;;  %v912_v54 = vmax.f32 %v848_v47, 0.0  ;;  %2671 = vmatprep.subr.bf16.mxu1 %v9213_v57  ;;  %v9235_v48 = vld [vmem:[#allocation6 + $0x190] ss:$8 sps:$4 sm:$0xff]  }
 0x171   :  { %v847_v55 = vadd.f32 %v10144_v59, %v778_v51  ;;  %v910_v56 = vmax.f32 %v846_v50, 0.0  ;;  %2672 = vmatpush1.bf16.msra.mxu1 %v9211_v1  ;;  %v9214_v59 = vld [vmem:[#allocation6 + $0x70] ss:$8 sps:$4 sm:$0xff]  }
 0x172   :  { %v913_v58 = vmax.f32 %v849_v52, 0.0  ;;  %2673 = vmatprep.subr.bf16.mxu1 %v9219_v3  ;;  %1668 = vmatpush1.bf16.msra.mxu0 %v9214_v59  ;;  %v9240_v3 = vld [vmem:[#allocation6 + $0x134] ss:$8 sps:$4 sm:$0xff]  }
 0x173   :  { %v911_v62 = vmax.f32 %v847_v55, 0.0 }
 0x174   :  { %v957_v63 = vpack.c.bf16 %v913_v58, %v912_v54 }
 0x175   :  { %v956_v0 = vpack.c.bf16 %v911_v62, %v910_v56  ;;  %2674 = vmatpush1.bf16.msra.mxu1 %v9217_v4  ;;  %v9232_v62 = vld [vmem:[#allocation6 + $0x120] ss:$8 sps:$4 sm:$0xff]  }
 0x176   :  { %2675 = vmatprep.subr.bf16.mxu1 %v9222_v6  ;;  %v9241_v4 = vld [vmem:[#allocation6 + $0x1a0] ss:$8 sps:$4 sm:$0xff]  }
 0x177   :  { %9031 = vmatprep.mubr.bf16.mxu1 %v956_v0 }
 0x178   :  { %9032 = vmatmul.mubr.bf16.gmra.mrb[60].mxu1 %v957_v63  ;;  %v9243_v63 = vld [vmem:[#allocation6 + $0x1a4] ss:$8 sps:$4 sm:$0xff]  }
 0x179   :  { %9035 = vmatprep.mubr.bf16.mxu1 %v10188_v28  ;;  %v9220_v28 = vld [vmem:[#allocation6 + $0xf0] ss:$8 sps:$4 sm:$0xff]  }
 0x17a   :  { %2676 = vmatpush1.bf16.msra.mxu1 %v9220_v28 }
 0x180   :  { %9036 = vmatmul.mubr.bf16.gmra.mrb[64].mxu1 %v10184_v23  ;;  %v12895_v23 = vmov 0  }
 0x181   :  { %9039 = vmatprep.mubr.bf16.mxu1 %v10208_v2  ;;  %1685 = vmatprep.mubr.bf16.mxu0 %v12895_v23  ;;  %v9225_v2 = vld [vmem:[#allocation6 + $0x104] ss:$8 sps:$4 sm:$0xff]  }
 0x182   :  { %3671 = vmatprep.subr.bf16.mxu0 %v9225_v2 }
 0x188   :  { %9040 = vmatmul.mubr.bf16.gmra.mrb[68].mxu1 %v10204_v61  ;;  %v9231_v61 = vld [vmem:[#allocation6 + $0x184] ss:$8 sps:$4 sm:$0xff]  }
 0x189   :  { %9043 = vmatprep.mubr.bf16.mxu1 %v10229_v42  ;;  %4681 = vmatprep.subr.bf16.mxu1 %v9231_v61 }
 0x190   :  { %9044 = vmatmul.mubr.bf16.gmra.mrb[72].mxu1 %v10225_v37  ;;  %v10312_v37 = vld [vmem:[%s12875_s4] ss:$0 sm:$0xff] }
 0x191   :  { %9047 = vmatprep.mubr.bf16.mxu1 %v10249_v18 }
 0x198   :  { %9048 = vmatmul.mubr.bf16.gmra.mrb[76].mxu1 %v10245_v13  ;;  %v10317_v13 = vld [vmem:[%s12875_s4 + $0x1] ss:$0 sm:$0xff] }
 0x199   :  { %9051 = vmatprep.mubr.bf16.mxu1 %v10269_v60 }
 0x1a0   :  { %9052 = vmatmul.mubr.bf16.gmra.mrb[80].mxu1 %v10265_v53 }
 0x1a1   :  { %9055 = vmatprep.mubr.bf16.mxu1 %v968_v33 }
 0x1a8   :  { %9056 = vmatmul.mubr.bf16.gmra.mrb[84].mxu1 %v10284_v30 }
 0x1a9   :  { %2693 = vmatprep.mubr.bf16.mxu1 %v12895_v23 }
 0x203   :  { %v8997_v42 = vpop.f32.mrb[24].mxu1 }
 0x204   :  { %v1330_v18 = vmul.f32 %v8997_v42, %v10312_v37  ;;  %v1068_v53 = vpop.f32.mrb[25].mxu1  ;;  %v9238_v42 = vld [vmem:[#allocation6 + $0x130] ss:$8 sps:$4 sm:$0xff]  }
 0x205   :  { %v1328_v60 = vmul.f32 %v10312_v37, %v1068_v53  ;;  %v8998_v7 = vpop.f32.mrb[26].mxu1  ;;  %v9246_v53 = vld [vmem:[#allocation6 + $0x144] ss:$8 sps:$4 sm:$0xff]  }
 0x206   :  { %v1399_v8 = vadd.f32 %v10317_v13, %v1330_v18  ;;  %v1331_v9 = vmul.f32 %v8998_v7, %v10312_v37  ;;  %v1071_v10 = vpop.f32.mrb[27].mxu1 }
 0x207   :  { %v1397_v11 = vadd.f32 %v10317_v13, %v1328_v60  ;;  %v1329_v12 = vmul.f32 %v10312_v37, %v1071_v10 }
 0x208   :  { %v1400_v14 = vadd.f32 %v10317_v13, %v1331_v9  ;;  %v1463_v16 = vmax.f32 %v1399_v8, 0.0 }
 0x209   :  { %v1398_v15 = vadd.f32 %v10317_v13, %v1329_v12  ;;  %v1461_v19 = vmax.f32 %v1397_v11, 0.0 }
 0x20a   :  { %v1464_v17 = vmax.f32 %v1400_v14, 0.0 }
 0x20b   :  { %v1462_v20 = vmax.f32 %v1398_v15, 0.0  ;;  %v9001_v21 = vpop.f32.mrb[28].mxu1  ;;  %v9244_v15 = vld [vmem:[#allocation6 + $0x140] ss:$8 sps:$4 sm:$0xff]  }
 0x20c   :  { %v1334_v22 = vmul.f32 %v9001_v21, %v10312_v37  ;;  %v1084_v24 = vpop.f32.mrb[29].mxu1  ;;  %v10328_v26 = vpack.c.bf16 %v1464_v17, %v1463_v16 }
 0x20d   :  { %v10330_v27 = vpack.c.bf16 %v1462_v20, %v1461_v19  ;;  %v1332_v29 = vmul.f32 %v10312_v37, %v1084_v24  ;;  %v9002_v30 = vpop.f32.mrb[30].mxu1 }
 0x20e   :  { %v1403_v32 = vadd.f32 %v10317_v13, %v1334_v22  ;;  %v1335_v33 = vmul.f32 %v9002_v30, %v10312_v37  ;;  %v1087_v34 = vpop.f32.mrb[31].mxu1 }
 0x20f   :  { %v1401_v36 = vadd.f32 %v10317_v13, %v1332_v29  ;;  %v1333_v38 = vmul.f32 %v10312_v37, %v1087_v34  ;;  %1686 = vmatmul.mubr.bf16.vlgmr.msra.gmra.mrb[40].mxu0 %v10330_v27  ;;  %2694 = vmatmul.mubr.bf16.vlgmr.msra.gmra.mrb[88].mxu1 %v10330_v27 }
 0x210   :  { %v1467_v40 = vmax.f32 %v1403_v32, 0.0  ;;  %v1404_v41 = vadd.f32 %v10317_v13, %v1335_v33  ;;  %3672 = vmatpush1.bf16.msra.mxu0 %v9223_v25  ;;  %1695 = vmatprep.mubr.bf16.mxu0 %v12895_v23 }
 0x211   :  { %v1465_v44 = vmax.f32 %v1401_v36, 0.0  ;;  %v1402_v45 = vadd.f32 %v10317_v13, %v1333_v38  ;;  %2703 = vmatprep.mubr.bf16.mxu1 %v12895_v23  ;;  %3673 = vmatprep.subr.bf16.mxu0 %v9228_v31 }
 0x212   :  { %v1468_v47 = vmax.f32 %v1404_v41, 0.0  ;;  %4682 = vmatpush1.bf16.msra.mxu1 %v9229_v35 }
 0x213   :  { %v1466_v49 = vmax.f32 %v1402_v45, 0.0  ;;  %v9005_v50 = vpop.f32.mrb[32].mxu1  ;;  %4683 = vmatprep.subr.bf16.mxu1 %v9237_v39 }
 0x214   :  { %v1338_v51 = vmul.f32 %v9005_v50, %v10312_v37  ;;  %v1100_v52 = vpop.f32.mrb[33].mxu1  ;;  %v10344_v54 = vpack.c.bf16 %v1468_v47, %v1467_v40  ;;  %3674 = vmatpush1.bf16.msra.mxu0 %v9226_v43  ;;  %v9249_v47 = vld [vmem:[#allocation6 + $0x1b4] ss:$8 sps:$4 sm:$0xff]   ;;  %v9250_v50 = vld [vmem:[#allocation6 + $0x150] ss:$8 sps:$4 sm:$0xff]  }
 0x215   :  { %v1336_v55 = vmul.f32 %v10312_v37, %v1100_v52  ;;  %v9006_v56 = vpop.f32.mrb[34].mxu1  ;;  %v10347_v58 = vpack.c.bf16 %v1466_v49, %v1465_v44  ;;  %3675 = vmatprep.subr.bf16.mxu0 %v9234_v46  ;;  %v9247_v46 = vld [vmem:[#allocation6 + $0x1b0] ss:$8 sps:$4 sm:$0xff]  }
 0x216   :  { %v1407_v0 = vadd.f32 %v10317_v13, %v1338_v51  ;;  %v1339_v57 = vmul.f32 %v9006_v56, %v10312_v37  ;;  %v1103_v1 = vpop.f32.mrb[35].mxu1  ;;  %4684 = vmatpush1.bf16.msra.mxu1 %v9235_v48  ;;  %v9252_v51 = vld [vmem:[#allocation6 + $0x154] ss:$8 sps:$4 sm:$0xff]  }
 0x217   :  { %1696 = vmatmul.mubr.bf16.gmra.mrb[44].mxu0 %v10328_v26  ;;  %2704 = vmatmul.mubr.bf16.gmra.mrb[92].mxu1 %v10328_v26  ;;  %v1405_v59 = vadd.f32 %v10317_v13, %v1336_v55  ;;  %v1337_v5 = vmul.f32 %v10312_v37, %v1103_v1 }
 0x218   :  { %v1471_v6 = vmax.f32 %v1407_v0, 0.0  ;;  %v1408_v28 = vadd.f32 %v10317_v13, %v1339_v57  ;;  %1705 = vmatprep.mubr.bf16.mxu0 %v12895_v23  ;;  %2713 = vmatprep.mubr.bf16.mxu1 %v12895_v23 }
 0x219   :  { %v1469_v2 = vmax.f32 %v1405_v59, 0.0  ;;  %v1406_v61 = vadd.f32 %v10317_v13, %v1337_v5  ;;  %3676 = vmatpush1.bf16.msra.mxu0 %v9232_v62  ;;  %4685 = vmatprep.subr.bf16.mxu1 %v9243_v63 }
 0x21a   :  { %v1472_v18 = vmax.f32 %v1408_v28, 0.0  ;;  %3677 = vmatprep.subr.bf16.mxu0 %v9240_v3  ;;  %4686 = vmatpush1.bf16.msra.mxu1 %v9241_v4 }
 0x21b   :  { %v1470_v60 = vmax.f32 %v1406_v61, 0.0  ;;  %v9009_v7 = vpop.f32.mrb[36].mxu1  ;;  %4687 = vmatprep.subr.bf16.mxu1 %v9249_v47 }
 0x21c   :  { %v1342_v8 = vmul.f32 %v9009_v7, %v10312_v37  ;;  %v1116_v9 = vpop.f32.mrb[37].mxu1  ;;  %v10360_v10 = vpack.c.bf16 %v1472_v18, %v1471_v6 }
 0x21d   :  { %v1340_v11 = vmul.f32 %v10312_v37, %v1116_v9  ;;  %v9010_v12 = vpop.f32.mrb[38].mxu1  ;;  %v10363_v14 = vpack.c.bf16 %v1470_v60, %v1469_v2  ;;  %3678 = vmatpush1.bf16.msra.mxu0 %v9238_v42 }
 0x21e   :  { %v1411_v16 = vadd.f32 %v10317_v13, %v1342_v8  ;;  %v1343_v17 = vmul.f32 %v9010_v12, %v10312_v37  ;;  %v1119_v19 = vpop.f32.mrb[39].mxu1  ;;  %3679 = vmatprep.subr.bf16.mxu0 %v9246_v53  ;;  %4688 = vmatpush1.bf16.msra.mxu1 %v9247_v46 }
 0x21f   :  { %1706 = vmatmul.mubr.bf16.gmra.mrb[48].mxu0 %v10347_v58  ;;  %2714 = vmatmul.mubr.bf16.gmra.mrb[96].mxu1 %v10347_v58  ;;  %v1409_v20 = vadd.f32 %v10317_v13, %v1340_v11  ;;  %v1341_v21 = vmul.f32 %v10312_v37, %v1119_v19 }
 0x220   :  { %1715 = vmatprep.mubr.bf16.mxu0 %v12895_v23  ;;  %2723 = vmatprep.mubr.bf16.mxu1 %v12895_v23  ;;  %v1475_v22 = vmax.f32 %v1411_v16, 0.0  ;;  %v1412_v24 = vadd.f32 %v10317_v13, %v1343_v17 }
 0x221   :  { %v1473_v25 = vmax.f32 %v1409_v20, 0.0  ;;  %v1410_v29 = vadd.f32 %v10317_v13, %v1341_v21  ;;  %3680 = vmatpush1.bf16.msra.mxu0 %v9244_v15 }
 0x222   :  { %v1476_v30 = vmax.f32 %v1412_v24, 0.0  ;;  %3681 = vmatprep.subr.bf16.mxu0 %v9252_v51 }
 0x223   :  { %v1474_v31 = vmax.f32 %v1410_v29, 0.0  ;;  %v9013_v32 = vpop.f32.mrb[40].mxu1 }
 0x224   :  { %v1346_v33 = vmul.f32 %v9013_v32, %v10312_v37  ;;  %v1132_v34 = vpop.f32.mrb[41].mxu1  ;;  %v10376_v35 = vpack.c.bf16 %v1476_v30, %v1475_v22 }
 0x225   :  { %v1344_v36 = vmul.f32 %v10312_v37, %v1132_v34  ;;  %v9014_v38 = vpop.f32.mrb[42].mxu1  ;;  %v10379_v39 = vpack.c.bf16 %v1474_v31, %v1473_v25  ;;  %3682 = vmatpush1.bf16.msra.mxu0 %v9250_v50 }
 0x226   :  { %v1415_v40 = vadd.f32 %v10317_v13, %v1346_v33  ;;  %v1347_v41 = vmul.f32 %v9014_v38, %v10312_v37  ;;  %v1135_v43 = vpop.f32.mrb[43].mxu1 }
 0x227   :  { %1716 = vmatmul.mubr.bf16.gmra.mrb[52].mxu0 %v10344_v54  ;;  %2724 = vmatmul.mubr.bf16.gmra.mrb[100].mxu1 %v10344_v54  ;;  %v1413_v44 = vadd.f32 %v10317_v13, %v1344_v36  ;;  %v1345_v45 = vmul.f32 %v10312_v37, %v1135_v43 }
 0x228   :  { %1725 = vmatprep.mubr.bf16.mxu0 %v12895_v23  ;;  %2733 = vmatprep.mubr.bf16.mxu1 %v12895_v23  ;;  %v1479_v48 = vmax.f32 %v1415_v40, 0.0  ;;  %v1416_v49 = vadd.f32 %v10317_v13, %v1347_v41 }
 0x229   :  { %v1477_v52 = vmax.f32 %v1413_v44, 0.0  ;;  %v1414_v55 = vadd.f32 %v10317_v13, %v1345_v45 }
 0x22a   :  { %v1480_v56 = vmax.f32 %v1416_v49, 0.0 }
 0x22b   :  { %v1478_v62 = vmax.f32 %v1414_v55, 0.0  ;;  %v9017_v63 = vpop.f32.mrb[44].mxu1 }
 0x22c   :  { %v1350_v0 = vmul.f32 %v9017_v63, %v10312_v37  ;;  %v1148_v57 = vpop.f32.mrb[45].mxu1  ;;  %v10392_v1 = vpack.c.bf16 %v1480_v56, %v1479_v48 }
 0x22d   :  { %v1348_v3 = vmul.f32 %v10312_v37, %v1148_v57  ;;  %v9018_v4 = vpop.f32.mrb[46].mxu1  ;;  %v10395_v59 = vpack.c.bf16 %v1478_v62, %v1477_v52 }
 0x22e   :  { %v1419_v5 = vadd.f32 %v10317_v13, %v1350_v0  ;;  %v1351_v6 = vmul.f32 %v9018_v4, %v10312_v37  ;;  %v1151_v28 = vpop.f32.mrb[47].mxu1 }
 0x22f   :  { %1726 = vmatmul.mubr.bf16.gmra.mrb[56].mxu0 %v10363_v14  ;;  %2734 = vmatmul.mubr.bf16.gmra.mrb[104].mxu1 %v10363_v14  ;;  %v1417_v2 = vadd.f32 %v10317_v13, %v1348_v3  ;;  %v1349_v61 = vmul.f32 %v10312_v37, %v1151_v28 }
 0x230   :  { %1735 = vmatprep.mubr.bf16.mxu0 %v12895_v23  ;;  %2743 = vmatprep.mubr.bf16.mxu1 %v12895_v23  ;;  %v1483_v42 = vmax.f32 %v1419_v5, 0.0  ;;  %v1420_v18 = vadd.f32 %v10317_v13, %v1351_v6 }
 0x231   :  { %v1481_v53 = vmax.f32 %v1417_v2, 0.0  ;;  %v1418_v60 = vadd.f32 %v10317_v13, %v1349_v61 }
 0x232   :  { %v1484_v7 = vmax.f32 %v1420_v18, 0.0 }
 0x233   :  { %v1482_v8 = vmax.f32 %v1418_v60, 0.0  ;;  %v9021_v9 = vpop.f32.mrb[48].mxu1  ;;  %v9253_v60 = vld [vmem:[#allocation6 + $0x1c0] ss:$8 sps:$4 sm:$0xff]  }
 0x234   :  { %v1354_v11 = vmul.f32 %v9021_v9, %v10312_v37  ;;  %v1164_v12 = vpop.f32.mrb[49].mxu1  ;;  %v10408_v15 = vpack.c.bf16 %v1484_v7, %v1483_v42  ;;  %v9255_v7 = vld [vmem:[#allocation6 + $0x1c4] ss:$8 sps:$4 sm:$0xff]  }
 0x235   :  { %v1352_v16 = vmul.f32 %v10312_v37, %v1164_v12  ;;  %v9022_v17 = vpop.f32.mrb[50].mxu1  ;;  %v10411_v19 = vpack.c.bf16 %v1482_v8, %v1481_v53  ;;  %v9258_v12 = vld [vmem:[#allocation6 + $0x164] ss:$8 sps:$4 sm:$0xff]   ;;  %4689 = vmatprep.subr.bf16.mxu1 %v9255_v7 }
 0x236   :  { %v1423_v20 = vadd.f32 %v10317_v13, %v1354_v11  ;;  %v1355_v21 = vmul.f32 %v9022_v17, %v10312_v37  ;;  %v1167_v22 = vpop.f32.mrb[51].mxu1  ;;  %v9256_v11 = vld [vmem:[#allocation6 + $0x160] ss:$8 sps:$4 sm:$0xff]   ;;  %3683 = vmatprep.subr.bf16.mxu0 %v9258_v12  ;;  %4690 = vmatpush1.bf16.msra.mxu1 %v9253_v60 }
 0x237   :  { %1736 = vmatmul.mubr.bf16.gmra.mrb[60].mxu0 %v10360_v10  ;;  %2744 = vmatmul.mubr.bf16.gmra.mrb[108].mxu1 %v10360_v10  ;;  %v1421_v24 = vadd.f32 %v10317_v13, %v1352_v16  ;;  %v1353_v25 = vmul.f32 %v10312_v37, %v1167_v22 }
 0x238   :  { %1745 = vmatprep.mubr.bf16.mxu0 %v12895_v23  ;;  %2753 = vmatprep.mubr.bf16.mxu1 %v12895_v23  ;;  %v1487_v29 = vmax.f32 %v1423_v20, 0.0  ;;  %v1424_v30 = vadd.f32 %v10317_v13, %v1355_v21 }
 0x239   :  { %v1485_v31 = vmax.f32 %v1421_v24, 0.0  ;;  %v1422_v32 = vadd.f32 %v10317_v13, %v1353_v25  ;;  %3684 = vmatpush1.bf16.msra.mxu0 %v9256_v11 }
 0x23a   :  { %v1488_v33 = vmax.f32 %v1424_v30, 0.0 }
 0x23b   :  { %v1486_v34 = vmax.f32 %v1422_v32, 0.0  ;;  %v9025_v36 = vpop.f32.mrb[52].mxu1 }
 0x23c   :  { %v1358_v38 = vmul.f32 %v9025_v36, %v10312_v37  ;;  %v1180_v40 = vpop.f32.mrb[53].mxu1  ;;  %v10424_v41 = vpack.c.bf16 %v1488_v33, %v1487_v29 }
 0x23d   :  { %v1356_v43 = vmul.f32 %v10312_v37, %v1180_v40  ;;  %v9026_v44 = vpop.f32.mrb[54].mxu1  ;;  %v10427_v45 = vpack.c.bf16 %v1486_v34, %v1485_v31 }
 0x23e   :  { %v1427_v46 = vadd.f32 %v10317_v13, %v1358_v38  ;;  %v1359_v47 = vmul.f32 %v9026_v44, %v10312_v37  ;;  %v1183_v48 = vpop.f32.mrb[55].mxu1 }
 0x23f   :  { %1746 = vmatmul.mubr.bf16.gmra.mrb[64].mxu0 %v10379_v39  ;;  %2754 = vmatmul.mubr.bf16.gmra.mrb[112].mxu1 %v10379_v39  ;;  %v1425_v49 = vadd.f32 %v10317_v13, %v1356_v43  ;;  %v1357_v50 = vmul.f32 %v10312_v37, %v1183_v48 }
 0x240   :  { %1755 = vmatprep.mubr.bf16.mxu0 %v12895_v23  ;;  %2763 = vmatprep.mubr.bf16.mxu1 %v12895_v23  ;;  %v1491_v51 = vmax.f32 %v1427_v46, 0.0  ;;  %v1428_v52 = vadd.f32 %v10317_v13, %v1359_v47 }
 0x241   :  { %v1489_v55 = vmax.f32 %v1425_v49, 0.0  ;;  %v1426_v56 = vadd.f32 %v10317_v13, %v1357_v50 }
 0x242   :  { %v1492_v62 = vmax.f32 %v1428_v52, 0.0 }
 0x243   :  { %v1490_v63 = vmax.f32 %v1426_v56, 0.0  ;;  %v9029_v0 = vpop.f32.mrb[56].mxu1 }
 0x244   :  { %v1362_v57 = vmul.f32 %v9029_v0, %v10312_v37  ;;  %v1196_v3 = vpop.f32.mrb[57].mxu1  ;;  %v10440_v4 = vpack.c.bf16 %v1492_v62, %v1491_v51 }
 0x245   :  { %v1360_v5 = vmul.f32 %v10312_v37, %v1196_v3  ;;  %v9030_v6 = vpop.f32.mrb[58].mxu1  ;;  %v10443_v28 = vpack.c.bf16 %v1490_v63, %v1489_v55 }
 0x246   :  { %v1431_v2 = vadd.f32 %v10317_v13, %v1362_v57  ;;  %v1363_v61 = vmul.f32 %v9030_v6, %v10312_v37  ;;  %v1199_v42 = vpop.f32.mrb[59].mxu1 }
 0x247   :  { %1756 = vmatmul.mubr.bf16.gmra.mrb[68].mxu0 %v10376_v35  ;;  %2764 = vmatmul.mubr.bf16.gmra.mrb[116].mxu1 %v10376_v35  ;;  %v1429_v18 = vadd.f32 %v10317_v13, %v1360_v5  ;;  %v1361_v53 = vmul.f32 %v10312_v37, %v1199_v42 }
 0x248   :  { %1765 = vmatprep.mubr.bf16.mxu0 %v12895_v23  ;;  %2773 = vmatprep.mubr.bf16.mxu1 %v12895_v23  ;;  %v1495_v8 = vmax.f32 %v1431_v2, 0.0  ;;  %v1432_v9 = vadd.f32 %v10317_v13, %v1363_v61 }
 0x249   :  { %v1493_v16 = vmax.f32 %v1429_v18, 0.0  ;;  %v1430_v17 = vadd.f32 %v10317_v13, %v1361_v53 }
 0x24a   :  { %v1496_v20 = vmax.f32 %v1432_v9, 0.0 }
 0x24b   :  { %v1494_v21 = vmax.f32 %v1430_v17, 0.0  ;;  %v9033_v22 = vpop.f32.mrb[60].mxu1 }
 0x24c   :  { %v1366_v24 = vmul.f32 %v9033_v22, %v10312_v37  ;;  %v1212_v25 = vpop.f32.mrb[61].mxu1  ;;  %v10456_v29 = vpack.c.bf16 %v1496_v20, %v1495_v8 }
 0x24d   :  { %v1364_v30 = vmul.f32 %v10312_v37, %v1212_v25  ;;  %v9034_v31 = vpop.f32.mrb[62].mxu1  ;;  %v10459_v32 = vpack.c.bf16 %v1494_v21, %v1493_v16 }
 0x24e   :  { %v1435_v33 = vadd.f32 %v10317_v13, %v1366_v24  ;;  %v1367_v34 = vmul.f32 %v9034_v31, %v10312_v37  ;;  %v1215_v36 = vpop.f32.mrb[63].mxu1 }
 0x24f   :  { %1766 = vmatmul.mubr.bf16.gmra.mrb[72].mxu0 %v10395_v59  ;;  %2774 = vmatmul.mubr.bf16.gmra.mrb[120].mxu1 %v10395_v59  ;;  %v1433_v38 = vadd.f32 %v10317_v13, %v1364_v30  ;;  %v1365_v40 = vmul.f32 %v10312_v37, %v1215_v36 }
 0x250   :  { %1775 = vmatprep.mubr.bf16.mxu0 %v12895_v23  ;;  %2783 = vmatprep.mubr.bf16.mxu1 %v12895_v23  ;;  %v1499_v43 = vmax.f32 %v1435_v33, 0.0  ;;  %v1436_v44 = vadd.f32 %v10317_v13, %v1367_v34 }
 0x251   :  { %v1497_v46 = vmax.f32 %v1433_v38, 0.0  ;;  %v1434_v47 = vadd.f32 %v10317_v13, %v1365_v40 }
 0x252   :  { %v1500_v48 = vmax.f32 %v1436_v44, 0.0 }
 0x253   :  { %v1498_v49 = vmax.f32 %v1434_v47, 0.0  ;;  %v9037_v50 = vpop.f32.mrb[64].mxu1 }
 0x254   :  { %v1370_v51 = vmul.f32 %v9037_v50, %v10312_v37  ;;  %v1228_v52 = vpop.f32.mrb[65].mxu1  ;;  %v10472_v55 = vpack.c.bf16 %v1500_v48, %v1499_v43 }
 0x255   :  { %v1368_v56 = vmul.f32 %v10312_v37, %v1228_v52  ;;  %v9038_v62 = vpop.f32.mrb[66].mxu1  ;;  %v10475_v63 = vpack.c.bf16 %v1498_v49, %v1497_v46 }
 0x256   :  { %v1439_v0 = vadd.f32 %v10317_v13, %v1370_v51  ;;  %v1371_v57 = vmul.f32 %v9038_v62, %v10312_v37  ;;  %v1231_v3 = vpop.f32.mrb[67].mxu1 }
 0x257   :  { %1776 = vmatmul.mubr.bf16.gmra.mrb[76].mxu0 %v10392_v1  ;;  %2784 = vmatmul.mubr.bf16.gmra.mrb[124].mxu1 %v10392_v1  ;;  %v1437_v5 = vadd.f32 %v10317_v13, %v1368_v56  ;;  %v1369_v6 = vmul.f32 %v10312_v37, %v1231_v3 }
 0x258   :  { %1785 = vmatprep.mubr.bf16.mxu0 %v12895_v23  ;;  %2793 = vmatprep.mubr.bf16.mxu1 %v12895_v23  ;;  %v1503_v2 = vmax.f32 %v1439_v0, 0.0  ;;  %v1440_v61 = vadd.f32 %v10317_v13, %v1371_v57 }
 0x259   :  { %v1501_v42 = vmax.f32 %v1437_v5, 0.0  ;;  %v1438_v18 = vadd.f32 %v10317_v13, %v1369_v6 }
 0x25a   :  { %v1504_v53 = vmax.f32 %v1440_v61, 0.0 }
 0x25b   :  { %v1502_v60 = vmax.f32 %v1438_v18, 0.0  ;;  %v9041_v7 = vpop.f32.mrb[68].mxu1 }
 0x25c   :  { %v1374_v8 = vmul.f32 %v9041_v7, %v10312_v37  ;;  %v1244_v9 = vpop.f32.mrb[69].mxu1  ;;  %v10488_v11 = vpack.c.bf16 %v1504_v53, %v1503_v2 }
 0x25d   :  { %v1372_v12 = vmul.f32 %v10312_v37, %v1244_v9  ;;  %v9042_v16 = vpop.f32.mrb[70].mxu1  ;;  %v10491_v17 = vpack.c.bf16 %v1502_v60, %v1501_v42 }
 0x25e   :  { %v1443_v20 = vadd.f32 %v10317_v13, %v1374_v8  ;;  %v1375_v21 = vmul.f32 %v9042_v16, %v10312_v37  ;;  %v1247_v22 = vpop.f32.mrb[71].mxu1 }
 0x25f   :  { %1786 = vmatmul.mubr.bf16.gmra.mrb[80].mxu0 %v10411_v19  ;;  %2794 = vmatmul.mubr.bf16.gmra.mrb[128].mxu1 %v10411_v19  ;;  %v1441_v24 = vadd.f32 %v10317_v13, %v1372_v12  ;;  %v1373_v25 = vmul.f32 %v10312_v37, %v1247_v22 }
 0x260   :  { %1795 = vmatprep.mubr.bf16.mxu0 %v12895_v23  ;;  %2803 = vmatprep.mubr.bf16.mxu1 %v12895_v23  ;;  %v1507_v30 = vmax.f32 %v1443_v20, 0.0  ;;  %v1444_v31 = vadd.f32 %v10317_v13, %v1375_v21 }
 0x261   :  { %v1505_v33 = vmax.f32 %v1441_v24, 0.0  ;;  %v1442_v34 = vadd.f32 %v10317_v13, %v1373_v25 }
 0x262   :  { %v1508_v36 = vmax.f32 %v1444_v31, 0.0 }
 0x263   :  { %v1506_v38 = vmax.f32 %v1442_v34, 0.0  ;;  %v9045_v40 = vpop.f32.mrb[72].mxu1 }
 0x264   :  { %v1378_v43 = vmul.f32 %v9045_v40, %v10312_v37  ;;  %v1260_v44 = vpop.f32.mrb[73].mxu1  ;;  %v10504_v46 = vpack.c.bf16 %v1508_v36, %v1507_v30 }
 0x265   :  { %v1376_v47 = vmul.f32 %v10312_v37, %v1260_v44  ;;  %v9046_v48 = vpop.f32.mrb[74].mxu1  ;;  %v10507_v49 = vpack.c.bf16 %v1506_v38, %v1505_v33 }
 0x266   :  { %12917 = vst [vmem:[#allocation16_spill] sm:$0xff] %v10504_v46  ;;  %v1447_v50 = vadd.f32 %v10317_v13, %v1378_v43  ;;  %v1379_v51 = vmul.f32 %v9046_v48, %v10312_v37  ;;  %v1263_v52 = vpop.f32.mrb[75].mxu1  ;;  %v9261_v43 = vld [vmem:[#allocation6 + $0x1d4] ss:$8 sps:$4 sm:$0xff]  }
 0x267   :  { %1796 = vmatmul.mubr.bf16.gmra.mrb[84].mxu0 %v10408_v15  ;;  %2804 = vmatmul.mubr.bf16.gmra.mrb[132].mxu1 %v10408_v15  ;;  %v1445_v56 = vadd.f32 %v10317_v13, %v1376_v47  ;;  %v1377_v62 = vmul.f32 %v10312_v37, %v1263_v52 }
 0x268   :  { %1805 = vmatprep.mubr.bf16.mxu0 %v12895_v23  ;;  %2813 = vmatprep.mubr.bf16.mxu1 %v12895_v23  ;;  %v1511_v0 = vmax.f32 %v1447_v50, 0.0  ;;  %v1448_v57 = vadd.f32 %v10317_v13, %v1379_v51  ;;  %v9259_v50 = vld [vmem:[#allocation6 + $0x1d0] ss:$8 sps:$4 sm:$0xff]   ;;  %v9264_v51 = vld [vmem:[#allocation6 + $0x174] ss:$8 sps:$4 sm:$0xff]  }
 0x269   :  { %v1509_v3 = vmax.f32 %v1445_v56, 0.0  ;;  %v1446_v5 = vadd.f32 %v10317_v13, %v1377_v62  ;;  %4691 = vmatprep.subr.bf16.mxu1 %v9261_v43  ;;  %3685 = vmatprep.subr.bf16.mxu0 %v9264_v51  ;;  %v9267_v51 = vld [vmem:[#allocation6 + $0x1e4] ss:$8 sps:$4 sm:$0xff]  }
 0x26a   :  { %v1512_v6 = vmax.f32 %v1448_v57, 0.0  ;;  %4692 = vmatpush1.bf16.msra.mxu1 %v9259_v50 }
 0x26b   :  { %v1510_v2 = vmax.f32 %v1446_v5, 0.0  ;;  %v9049_v61 = vpop.f32.mrb[76].mxu1  ;;  %4693 = vmatprep.subr.bf16.mxu1 %v9267_v51 }
 0x26c   :  { %v1382_v42 = vmul.f32 %v9049_v61, %v10312_v37  ;;  %v1276_v18 = vpop.f32.mrb[77].mxu1  ;;  %v10520_v53 = vpack.c.bf16 %v1512_v6, %v1511_v0  ;;  %v9262_v0 = vld [vmem:[#allocation6 + $0x170] ss:$8 sps:$4 sm:$0xff]  }
 0x26d   :  { %v1380_v60 = vmul.f32 %v10312_v37, %v1276_v18  ;;  %v9050_v7 = vpop.f32.mrb[78].mxu1  ;;  %v10523_v8 = vpack.c.bf16 %v1510_v2, %v1509_v3  ;;  %3686 = vmatpush1.bf16.msra.mxu0 %v9262_v0 }
 0x26e   :  { %12918 = vst [vmem:[#allocation17_spill] sm:$0xff] %v10520_v53  ;;  %v1451_v9 = vadd.f32 %v10317_v13, %v1382_v42  ;;  %v1383_v12 = vmul.f32 %v9050_v7, %v10312_v37  ;;  %v1279_v16 = vpop.f32.mrb[79].mxu1 }
 0x26f   :  { %12919 = vst [vmem:[#allocation18_spill] sm:$0xff] %v10523_v8  ;;  %1806 = vmatmul.mubr.bf16.gmra.mrb[88].mxu0 %v10427_v45  ;;  %2814 = vmatmul.mubr.bf16.gmra.mrb[136].mxu1 %v10427_v45  ;;  %v1449_v20 = vadd.f32 %v10317_v13, %v1380_v60  ;;  %v1381_v21 = vmul.f32 %v10312_v37, %v1279_v16 }
 0x270   :  { %1815 = vmatprep.mubr.bf16.mxu0 %v12895_v23  ;;  %2823 = vmatprep.mubr.bf16.mxu1 %v12895_v23  ;;  %v1515_v22 = vmax.f32 %v1451_v9, 0.0  ;;  %v1452_v24 = vadd.f32 %v10317_v13, %v1383_v12 }
 0x271   :  { %v1513_v25 = vmax.f32 %v1449_v20, 0.0  ;;  %v1450_v30 = vadd.f32 %v10317_v13, %v1381_v21 }
 0x272   :  { %v1516_v31 = vmax.f32 %v1452_v24, 0.0 }
 0x273   :  { %v1514_v33 = vmax.f32 %v1450_v30, 0.0  ;;  %v9053_v34 = vpop.f32.mrb[80].mxu1 }
 0x274   :  { %v1386_v36 = vmul.f32 %v9053_v34, %v10312_v37  ;;  %v1292_v38 = vpop.f32.mrb[81].mxu1  ;;  %v10536_v40 = vpack.c.bf16 %v1516_v31, %v1515_v22 }
 0x275   :  { %v1384_v44 = vmul.f32 %v10312_v37, %v1292_v38  ;;  %v9054_v47 = vpop.f32.mrb[82].mxu1  ;;  %v10539_v48 = vpack.c.bf16 %v1514_v33, %v1513_v25 }
 0x276   :  { %12920 = vst [vmem:[#allocation19_spill] sm:$0xff] %v10536_v40  ;;  %v1455_v52 = vadd.f32 %v10317_v13, %v1386_v36  ;;  %v1387_v56 = vmul.f32 %v9054_v47, %v10312_v37  ;;  %v1295_v62 = vpop.f32.mrb[83].mxu1 }
 0x277   :  { %12921 = vst [vmem:[#allocation20_spill] sm:$0xff] %v10539_v48  ;;  %1816 = vmatmul.mubr.bf16.gmra.mrb[92].mxu0 %v10424_v41  ;;  %2824 = vmatmul.mubr.bf16.gmra.mrb[140].mxu1 %v10424_v41  ;;  %v1453_v57 = vadd.f32 %v10317_v13, %v1384_v44  ;;  %v1385_v3 = vmul.f32 %v10312_v37, %v1295_v62 }
 0x278   :  { %1825 = vmatprep.mubr.bf16.mxu0 %v12895_v23  ;;  %2833 = vmatprep.mubr.bf16.mxu1 %v12895_v23  ;;  %v1519_v5 = vmax.f32 %v1455_v52, 0.0  ;;  %v1456_v6 = vadd.f32 %v10317_v13, %v1387_v56  ;;  %v9265_v52 = vld [vmem:[#allocation6 + $0x1e0] ss:$8 sps:$4 sm:$0xff]   ;;  %v2008_v56 = vlaneseq }
 0x279   :  { %v1517_v2 = vmax.f32 %v1453_v57, 0.0  ;;  %v1454_v61 = vadd.f32 %v10317_v13, %v1385_v3  ;;  %4694 = vmatpush1.bf16.msra.mxu1 %v9265_v52  ;;  %v2006_v57 = vld [vmem:[%s12877_s6] sm:$0xf]  ;;  %v8447_v3 = vld [vmem:[%s12877_s6 + $0x4] sm:$0xf] }
 0x27a   :  { %v1520_v42 = vmax.f32 %v1456_v6, 0.0  ;;  %v2009_v62 = vshrl.u32 %v2008_v56, 7 }
 0x27b   :  { %v1518_v18 = vmax.f32 %v1454_v61, 0.0  ;;  %v9057_v60 = vpop.f32.mrb[84].mxu1 }
 0x27c   :  { %v1390_v7 = vmul.f32 %v9057_v60, %v10312_v37  ;;  %v1308_v9 = vpop.f32.mrb[85].mxu1  ;;  %v10552_v12 = vpack.c.bf16 %v1520_v42, %v1519_v5  ;;  %v10613_v0 = vsub.s32 0, %v2009_v62  ;;  %v10623_v5 = vsub.s32 2, %v2009_v62 }
 0x27d   :  { %v1388_v16 = vmul.f32 %v10312_v37, %v1308_v9  ;;  %v9058_v20 = vpop.f32.mrb[86].mxu1  ;;  %v10555_v21 = vpack.c.bf16 %v1518_v18, %v1517_v2  ;;  %v10625_v6 = vsub.s32 1, %v2009_v62  ;;  %v10627_v2 = vsub.s32 3, %v2009_v62 }
 0x27e   :  { %12922 = vst [vmem:[#allocation21_spill] sm:$0xff] %v10552_v12  ;;  %v1459_v22 = vadd.f32 %v10317_v13, %v1390_v7  ;;  %v1391_v24 = vmul.f32 %v9058_v20, %v10312_v37  ;;  %v1311_v25 = vpop.f32.mrb[87].mxu1  ;;  %12924 = vst [vmem:[#allocation23_spill] sm:$0xff] %v10613_v0  ;;  %v2011_v61 = vrot.slane %v2006_v57, %v10613_v0 }
 0x27f   :  { %12923 = vst [vmem:[#allocation22_spill] sm:$0xff] %v10555_v21  ;;  %1826 = vmatmul.mubr.bf16.gmra.mrb[96].mxu0 %v10443_v28  ;;  %2834 = vmatmul.mubr.bf16.gmra.mrb[144].mxu1 %v10443_v28  ;;  %v1457_v30 = vadd.f32 %v10317_v13, %v1388_v16  ;;  %v1389_v31 = vmul.f32 %v10312_v37, %v1311_v25  ;;  %v9270_v37 = vld [vmem:[#allocation6 + $0x1f4] ss:$8 sps:$4 sm:$0xff]   ;;  %12925 = vst [vmem:[#allocation24_spill] sm:$0xff] %v10623_v5 }
 0x280   :  { %1835 = vmatprep.mubr.bf16.mxu0 %v12895_v23  ;;  %2843 = vmatprep.mubr.bf16.mxu1 %v12895_v23  ;;  %v1523_v33 = vmax.f32 %v1459_v22, 0.0  ;;  %v1460_v34 = vadd.f32 %v10317_v13, %v1391_v24  ;;  %12926 = vst [vmem:[#allocation25_spill] sm:$0xff] %v10625_v6  ;;  %12927 = vst [vmem:[#allocation26_spill] sm:$0xff] %v10627_v2  ;;  %v3020_v42 = vrot.slane %v8447_v3, %v10613_v0 }
 0x281   :  { %v1521_v36 = vmax.f32 %v1457_v30, 0.0  ;;  %v1458_v38 = vadd.f32 %v10317_v13, %v1389_v31  ;;  %v9268_v13 = vld [vmem:[#allocation6 + $0x1f0] ss:$8 sps:$4 sm:$0xff]   ;;  %4695 = vmatprep.subr.bf16.mxu1 %v9270_v37  ;;  %v2015_v18 = vrot.slane %v2006_v57, %v10623_v5  ;;  %v3024_v60 = vrot.slane %v8447_v3, %v10623_v5 }
 0x282   :  { %v1524_v43 = vmax.f32 %v1460_v34, 0.0  ;;  %4696 = vmatpush1.bf16.msra.mxu1 %v9268_v13  ;;  %v2157_v7 = vrot.slane %v2006_v57, %v10625_v6  ;;  %v3166_v9 = vrot.slane %v8447_v3, %v10625_v6  ;;  %v2161_v16 = vrot.slane %v2006_v57, %v10627_v2 }
 0x283   :  { %v1522_v44 = vmax.f32 %v1458_v38, 0.0  ;;  %v3170_v20 = vrot.slane %v8447_v3, %v10627_v2  ;;  %v10640_v22 = vrot.slane %v2011_v61, %v10613_v0  ;;  %v10643_v24 = vrot.slane %v3020_v42, %v10613_v0 }
 0x284   :  { %v10567_v47 = vpack.c.bf16 %v1524_v43, %v1523_v33  ;;  %v10646_v25 = vrot.slane %v2015_v18, %v10613_v0  ;;  %v10649_v30 = vrot.slane %v3024_v60, %v10613_v0  ;;  %v10654_v31 = vrot.slane %v2157_v7, %v10625_v6 }
 0x285   :  { %v10569_v50 = vpack.c.bf16 %v1522_v44, %v1521_v36  ;;  %v10657_v33 = vrot.slane %v3166_v9, %v10625_v6  ;;  %v10660_v38 = vrot.slane %v2161_v16, %v10625_v6  ;;  %v10663_v43 = vrot.slane %v3170_v20, %v10625_v6 }
 0x287   :  { %1836 = vmatmul.mubr.bf16.gmra.mrb[100].mxu0 %v10440_v4  ;;  %2844 = vmatmul.mubr.bf16.gmra.mrb[148].mxu1 %v10440_v4 }
 0x288   :  { %1845 = vmatprep.mubr.bf16.mxu0 %v12895_v23  ;;  %2853 = vmatprep.mubr.bf16.mxu1 %v12895_v23 }
 0x28f   :  { %1846 = vmatmul.mubr.bf16.gmra.mrb[104].mxu0 %v10459_v32  ;;  %2854 = vmatmul.mubr.bf16.gmra.mrb[152].mxu1 %v10459_v32 }
 0x290   :  { %1855 = vmatprep.mubr.bf16.mxu0 %v12895_v23  ;;  %2863 = vmatprep.mubr.bf16.mxu1 %v12895_v23 }
 0x297   :  { %1856 = vmatmul.mubr.bf16.gmra.mrb[108].mxu0 %v10456_v29  ;;  %2864 = vmatmul.mubr.bf16.gmra.mrb[156].mxu1 %v10456_v29 }
 0x298   :  { %1865 = vmatprep.mubr.bf16.mxu0 %v12895_v23  ;;  %2873 = vmatprep.mubr.bf16.mxu1 %v12895_v23 }
 0x29f   :  { %1866 = vmatmul.mubr.bf16.gmra.mrb[112].mxu0 %v10475_v63  ;;  %2874 = vmatmul.mubr.bf16.gmra.mrb[160].mxu1 %v10475_v63 }
 0x2a0   :  { %1875 = vmatprep.mubr.bf16.mxu0 %v12895_v23  ;;  %2883 = vmatprep.mubr.bf16.mxu1 %v12895_v23 }
 0x2a7   :  { %1876 = vmatmul.mubr.bf16.gmra.mrb[116].mxu0 %v10472_v55  ;;  %2884 = vmatmul.mubr.bf16.gmra.mrb[164].mxu1 %v10472_v55 }
 0x2a8   :  { %1885 = vmatprep.mubr.bf16.mxu0 %v12895_v23  ;;  %2893 = vmatprep.mubr.bf16.mxu1 %v12895_v23 }
 0x2af   :  { %1886 = vmatmul.mubr.bf16.gmra.mrb[120].mxu0 %v10491_v17  ;;  %2894 = vmatmul.mubr.bf16.gmra.mrb[168].mxu1 %v10491_v17 }
 0x2b0   :  { %1895 = vmatprep.mubr.bf16.mxu0 %v12895_v23  ;;  %2903 = vmatprep.mubr.bf16.mxu1 %v12895_v23 }
 0x2b7   :  { %1896 = vmatmul.mubr.bf16.gmra.mrb[124].mxu0 %v10488_v11  ;;  %2904 = vmatmul.mubr.bf16.gmra.mrb[172].mxu1 %v10488_v11 }
 0x2b8   :  { %1905 = vmatprep.mubr.bf16.mxu0 %v12895_v23  ;;  %2913 = vmatprep.mubr.bf16.mxu1 %v12895_v23 }
 0x2bf   :  { %1906 = vmatmul.mubr.bf16.gmra.mrb[128].mxu0 %v10507_v49  ;;  %2914 = vmatmul.mubr.bf16.gmra.mrb[176].mxu1 %v10507_v49 }
 0x2c0   :  { %1915 = vmatprep.mubr.bf16.mxu0 %v12895_v23  ;;  %2923 = vmatprep.mubr.bf16.mxu1 %v12895_v23 }
 0x2c7   :  { %1916 = vmatmul.mubr.bf16.gmra.mrb[132].mxu0 %v10504_v46  ;;  %2924 = vmatmul.mubr.bf16.gmra.mrb[180].mxu1 %v10504_v46 }
 0x2c8   :  { %1925 = vmatprep.mubr.bf16.mxu0 %v12895_v23  ;;  %2933 = vmatprep.mubr.bf16.mxu1 %v12895_v23 }
 0x2cf   :  { %1926 = vmatmul.mubr.bf16.gmra.mrb[136].mxu0 %v10523_v8  ;;  %2934 = vmatmul.mubr.bf16.gmra.mrb[184].mxu1 %v10523_v8 }
 0x2d0   :  { %1935 = vmatprep.mubr.bf16.mxu0 %v12895_v23  ;;  %2943 = vmatprep.mubr.bf16.mxu1 %v12895_v23 }
 0x2d7   :  { %1936 = vmatmul.mubr.bf16.gmra.mrb[140].mxu0 %v10520_v53  ;;  %2944 = vmatmul.mubr.bf16.gmra.mrb[188].mxu1 %v10520_v53 }
 0x2d8   :  { %1945 = vmatprep.mubr.bf16.mxu0 %v12895_v23  ;;  %2953 = vmatprep.mubr.bf16.mxu1 %v12895_v23 }
 0x2df   :  { %1946 = vmatmul.mubr.bf16.gmra.mrb[144].mxu0 %v10539_v48  ;;  %2954 = vmatmul.mubr.bf16.gmra.mrb[192].mxu1 %v10539_v48 }
 0x2e0   :  { %1955 = vmatprep.mubr.bf16.mxu0 %v12895_v23  ;;  %2963 = vmatprep.mubr.bf16.mxu1 %v12895_v23 }
 0x2e2   :  { %v1687_v34 = vpop.f32.mrb[40].mxu0  ;;  %v2695_v36 = vpop.f32.mrb[88].mxu1 }
 0x2e3   :  { %v2026_v44 = vmul.f32 %v10640_v22, %v1687_v34  ;;  %v3035_v51 = vmul.f32 %v10643_v24, %v2695_v36  ;;  %v1689_v52 = vpop.f32.mrb[41].mxu0  ;;  %v2697_v37 = vpop.f32.mrb[89].mxu1 }
 0x2e4   :  { %v2027_v13 = vmul.f32 %v10646_v25, %v1689_v52  ;;  %v3036_v56 = vmul.f32 %v10649_v30, %v2697_v37  ;;  %v1691_v62 = vpop.f32.mrb[42].mxu0  ;;  %v2699_v57 = vpop.f32.mrb[90].mxu1 }
 0x2e5   :  { %v2028_v3 = vmul.f32 %v10640_v22, %v1691_v62  ;;  %v3037_v61 = vmul.f32 %v10643_v24, %v2699_v57  ;;  %v1693_v42 = vpop.f32.mrb[43].mxu0  ;;  %v2701_v18 = vpop.f32.mrb[91].mxu1  ;;  %v3181_v60 = vadd.f32 %v10657_v33, %v3035_v51  ;;  %v2172_v7 = vadd.f32 %v10654_v31, %v2026_v44 }
 0x2e6   :  { %v2029_v9 = vmul.f32 %v10646_v25, %v1693_v42  ;;  %v3038_v16 = vmul.f32 %v10649_v30, %v2701_v18  ;;  %v3182_v20 = vadd.f32 %v10663_v43, %v3036_v56  ;;  %v2173_v34 = vadd.f32 %v10660_v38, %v2027_v13 }
 0x2e7   :  { %1956 = vmatmul.mubr.bf16.gmra.mrb[148].mxu0 %v10536_v40  ;;  %2964 = vmatmul.mubr.bf16.gmra.mrb[196].mxu1 %v10536_v40  ;;  %v3183_v36 = vadd.f32 %v10657_v33, %v3037_v61  ;;  %v2174_v52 = vadd.f32 %v10654_v31, %v2028_v3  ;;  %v3309_v37 = vmax.f32 %v3181_v60, 0.0  ;;  %v2300_v62 = vmax.f32 %v2172_v7, 0.0 }
 0x2e8   :  { %v3184_v51 = vadd.f32 %v10663_v43, %v3038_v16  ;;  %1965 = vmatprep.mubr.bf16.mxu0 %v12895_v23  ;;  %2973 = vmatprep.mubr.bf16.mxu1 %v12895_v23  ;;  %v2175_v44 = vadd.f32 %v10660_v38, %v2029_v9  ;;  %v3310_v18 = vmax.f32 %v3182_v20, 0.0  ;;  %v2301_v5 = vmax.f32 %v2173_v34, 0.0 }
 0x2e9   :  { %v3311_v56 = vmax.f32 %v3183_v36, 0.0  ;;  %v2302_v13 = vmax.f32 %v2174_v52, 0.0 }
 0x2ea   :  { %v1697_v57 = vpop.f32.mrb[44].mxu0  ;;  %v2705_v42 = vpop.f32.mrb[92].mxu1  ;;  %v3312_v2 = vmax.f32 %v3184_v51, 0.0  ;;  %v2303_v61 = vmax.f32 %v2175_v44, 0.0 }
 0x2eb   :  { %v2030_v3 = vmul.f32 %v10640_v22, %v1697_v57  ;;  %v3039_v16 = vmul.f32 %v10643_v24, %v2705_v42  ;;  %v1699_v6 = vpop.f32.mrb[45].mxu0  ;;  %v2707_v0 = vpop.f32.mrb[93].mxu1  ;;  %v3437_v40 = vmax.f32 %v3309_v37, %v3311_v56  ;;  %v2428_v23 = vmax.f32 %v2300_v62, %v2302_v13 }
 0x2ec   :  { %v2031_v9 = vmul.f32 %v10646_v25, %v1699_v6  ;;  %v3040_v60 = vmul.f32 %v10649_v30, %v2707_v0  ;;  %v1701_v7 = vpop.f32.mrb[46].mxu0  ;;  %v2709_v36 = vpop.f32.mrb[94].mxu1  ;;  %v3468_v52 = vmax.f32 %v3310_v18, %v3312_v2  ;;  %v2459_v48 = vmax.f32 %v2301_v5, %v2303_v61 }
 0x2ed   :  { %v2176_v20 = vadd.f32 %v10654_v31, %v2030_v3  ;;  %v3185_v34 = vadd.f32 %v10657_v33, %v3039_v16  ;;  %v2032_v51 = vmul.f32 %v10640_v22, %v1701_v7  ;;  %v3041_v44 = vmul.f32 %v10643_v24, %v2709_v36  ;;  %v1703_v57 = vpop.f32.mrb[47].mxu0  ;;  %v2711_v42 = vpop.f32.mrb[95].mxu1 }
 0x2ee   :  { %v2177_v37 = vadd.f32 %v10660_v38, %v2031_v9  ;;  %v3186_v6 = vadd.f32 %v10663_v43, %v3040_v60  ;;  %v2033_v0 = vmul.f32 %v10646_v25, %v1703_v57  ;;  %v3042_v56 = vmul.f32 %v10649_v30, %v2711_v42 }
 0x2ef   :  { %v2304_v2 = vmax.f32 %v2176_v20, 0.0  ;;  %v3313_v5 = vmax.f32 %v3185_v34, 0.0  ;;  %v2178_v62 = vadd.f32 %v10654_v31, %v2032_v51  ;;  %v3187_v13 = vadd.f32 %v10657_v33, %v3041_v44  ;;  %1966 = vmatmul.mubr.bf16.gmra.mrb[152].mxu0 %v10555_v21  ;;  %2974 = vmatmul.mubr.bf16.gmra.mrb[200].mxu1 %v10555_v21 }
 0x2f0   :  { %v2305_v18 = vmax.f32 %v2177_v37, 0.0  ;;  %v3314_v61 = vmax.f32 %v3186_v6, 0.0  ;;  %v2179_v3 = vadd.f32 %v10660_v38, %v2033_v0  ;;  %v3188_v16 = vadd.f32 %v10663_v43, %v3042_v56 }
 0x2f1   :  { %v12928_v9 = vmov 0   ;;  %v2306_v60 = vmax.f32 %v2178_v62, 0.0  ;;  %v3315_v7 = vmax.f32 %v3187_v13, 0.0  ;;  %v3438_v36 = vmax.f32 %v3437_v40, %v3313_v5 }
 0x2f2   :  { %1975 = vmatprep.mubr.bf16.mxu0 %v12928_v9  ;;  %2983 = vmatprep.mubr.bf16.mxu1 %v12928_v9  ;;  %v2429_v20 = vmax.f32 %v2428_v23, %v2304_v2  ;;  %v2307_v34 = vmax.f32 %v2179_v3, 0.0  ;;  %v3316_v51 = vmax.f32 %v3188_v16, 0.0  ;;  %v3469_v44 = vmax.f32 %v3468_v52, %v3314_v61  ;;  %v1707_v57 = vpop.f32.mrb[48].mxu0  ;;  %v2715_v42 = vpop.f32.mrb[96].mxu1 }
 0x2f3   :  { %v2460_v21 = vmax.f32 %v2459_v48, %v2305_v18  ;;  %v3439_v37 = vmax.f32 %v3438_v36, %v3315_v7  ;;  %v2034_v6 = vmul.f32 %v10640_v22, %v1707_v57  ;;  %v3043_v56 = vmul.f32 %v10643_v24, %v2715_v42  ;;  %v1709_v53 = vpop.f32.mrb[49].mxu0  ;;  %v2717_v8 = vpop.f32.mrb[97].mxu1 }
 0x2f4   :  { %v2430_v0 = vmax.f32 %v2429_v20, %v2306_v60  ;;  %v3470_v46 = vmax.f32 %v3469_v44, %v3316_v51  ;;  %v2035_v62 = vmul.f32 %v10646_v25, %v1709_v53  ;;  %v3044_v23 = vmul.f32 %v10649_v30, %v2717_v8  ;;  %v1711_v40 = vpop.f32.mrb[50].mxu0  ;;  %v2719_v2 = vpop.f32.mrb[98].mxu1 }
 0x2f5   :  { %v2461_v13 = vmax.f32 %v2460_v21, %v2307_v34  ;;  %v2180_v52 = vadd.f32 %v10654_v31, %v2034_v6  ;;  %v3189_v48 = vadd.f32 %v10657_v33, %v3043_v56  ;;  %v2036_v5 = vmul.f32 %v10640_v22, %v1711_v40  ;;  %v1713_v61 = vpop.f32.mrb[51].mxu0  ;;  %v2721_v3 = vpop.f32.mrb[99].mxu1 }
 0x2f6   :  { %v3045_v18 = vmul.f32 %v10643_v24, %v2719_v2  ;;  %v2181_v16 = vadd.f32 %v10660_v38, %v2035_v62  ;;  %v3190_v60 = vadd.f32 %v10663_v43, %v3044_v23  ;;  %v2037_v53 = vmul.f32 %v10646_v25, %v1713_v61 }
 0x2f7   :  { %v3046_v8 = vmul.f32 %v10649_v30, %v2721_v3  ;;  %v2308_v21 = vmax.f32 %v2180_v52, 0.0  ;;  %v3317_v7 = vmax.f32 %v3189_v48, 0.0  ;;  %v2182_v36 = vadd.f32 %v10654_v31, %v2036_v5  ;;  %1976 = vmatmul.mubr.bf16.gmra.mrb[156].mxu0 %v10552_v12  ;;  %2984 = vmatmul.mubr.bf16.gmra.mrb[204].mxu1 %v10552_v12 }
 0x2f8   :  { %v3191_v20 = vadd.f32 %v10657_v33, %v3045_v18  ;;  %v2309_v34 = vmax.f32 %v2181_v16, 0.0  ;;  %v3318_v51 = vmax.f32 %v3190_v60, 0.0  ;;  %v2183_v44 = vadd.f32 %v10660_v38, %v2037_v53  ;;  %1985 = vmatprep.mubr.bf16.mxu0 %v12928_v9  ;;  %2993 = vmatprep.mubr.bf16.mxu1 %v12928_v9 }
 0x2f9   :  { %v3192_v57 = vadd.f32 %v10663_v43, %v3046_v8  ;;  %v2431_v42 = vmax.f32 %v2430_v0, %v2308_v21  ;;  %v3440_v6 = vmax.f32 %v3439_v37, %v3317_v7  ;;  %v2310_v56 = vmax.f32 %v2182_v36, 0.0 }
 0x2fa   :  { %v3319_v62 = vmax.f32 %v3191_v20, 0.0  ;;  %v2462_v23 = vmax.f32 %v2461_v13, %v2309_v34  ;;  %v3471_v40 = vmax.f32 %v3470_v46, %v3318_v51  ;;  %v2311_v2 = vmax.f32 %v2183_v44, 0.0  ;;  %v1717_v48 = vpop.f32.mrb[52].mxu0  ;;  %v2725_v5 = vpop.f32.mrb[100].mxu1 }
 0x2fb   :  { %v3320_v52 = vmax.f32 %v3192_v57, 0.0  ;;  %v2432_v18 = vmax.f32 %v2431_v42, %v2310_v56  ;;  %v2038_v3 = vmul.f32 %v10640_v22, %v1717_v48  ;;  %v3047_v16 = vmul.f32 %v10643_v24, %v2725_v5  ;;  %v1719_v60 = vpop.f32.mrb[53].mxu0  ;;  %v2727_v53 = vpop.f32.mrb[101].mxu1 }
 0x2fc   :  { %v3441_v61 = vmax.f32 %v3440_v6, %v3319_v62  ;;  %v2463_v8 = vmax.f32 %v2462_v23, %v2311_v2  ;;  %v2039_v37 = vmul.f32 %v10646_v25, %v1719_v60  ;;  %v3048_v0 = vmul.f32 %v10649_v30, %v2727_v53  ;;  %v1721_v13 = vpop.f32.mrb[54].mxu0  ;;  %v2729_v46 = vpop.f32.mrb[102].mxu1 }
 0x2fd   :  { %v3472_v12 = vmax.f32 %v3471_v40, %v3320_v52  ;;  %v2184_v21 = vadd.f32 %v10654_v31, %v2038_v3  ;;  %v3193_v7 = vadd.f32 %v10657_v33, %v3047_v16  ;;  %v2040_v36 = vmul.f32 %v10640_v22, %v1721_v13  ;;  %v1723_v34 = vpop.f32.mrb[55].mxu0  ;;  %v2731_v51 = vpop.f32.mrb[103].mxu1 }
 0x2fe   :  { %v3049_v20 = vmul.f32 %v10643_v24, %v2729_v46  ;;  %v2185_v44 = vadd.f32 %v10660_v38, %v2039_v37  ;;  %v3194_v57 = vadd.f32 %v10663_v43, %v3048_v0  ;;  %v2041_v42 = vmul.f32 %v10646_v25, %v1723_v34 }
 0x2ff   :  { %v3050_v6 = vmul.f32 %v10649_v30, %v2731_v51  ;;  %v2312_v56 = vmax.f32 %v2184_v21, 0.0  ;;  %v3321_v62 = vmax.f32 %v3193_v7, 0.0  ;;  %v2186_v23 = vadd.f32 %v10654_v31, %v2040_v36  ;;  %1986 = vmatmul.mubr.bf16.gmra.mrb[160].mxu0 %v10569_v50  ;;  %2994 = vmatmul.mubr.bf16.gmra.mrb[208].mxu1 %v10569_v50 }
 0x300   :  { %v3195_v40 = vadd.f32 %v10657_v33, %v3049_v20  ;;  %v2313_v2 = vmax.f32 %v2185_v44, 0.0  ;;  %v3322_v52 = vmax.f32 %v3194_v57, 0.0  ;;  %v2187_v48 = vadd.f32 %v10660_v38, %v2041_v42  ;;  %1995 = vmatprep.mubr.bf16.mxu0 %v12928_v9  ;;  %3003 = vmatprep.mubr.bf16.mxu1 %v12928_v9  ;;  %v9273_v42 = vld [vmem:[#allocation8 + $0x204] ss:$16 sps:$4 sm:$0xff]  }
 0x301   :  { %v3196_v5 = vadd.f32 %v10663_v43, %v3050_v6  ;;  %v2433_v3 = vmax.f32 %v2432_v18, %v2312_v56  ;;  %v3442_v16 = vmax.f32 %v3441_v61, %v3321_v62  ;;  %v2314_v60 = vmax.f32 %v2186_v23, 0.0  ;;  %6124 = vmatprep.subr.bf16.mxu0 %v9273_v42 }
 0x302   :  { %v3323_v53 = vmax.f32 %v3195_v40, 0.0  ;;  %v2464_v37 = vmax.f32 %v2463_v8, %v2313_v2  ;;  %v3473_v0 = vmax.f32 %v3472_v12, %v3322_v52  ;;  %v2315_v13 = vmax.f32 %v2187_v48, 0.0  ;;  %v1727_v21 = vpop.f32.mrb[56].mxu0  ;;  %v2735_v7 = vpop.f32.mrb[104].mxu1 }
 0x303   :  { %v3324_v46 = vmax.f32 %v3196_v5, 0.0  ;;  %v2434_v36 = vmax.f32 %v2433_v3, %v2314_v60  ;;  %v2042_v34 = vmul.f32 %v10640_v22, %v1727_v21  ;;  %v3051_v51 = vmul.f32 %v10643_v24, %v2735_v7  ;;  %v1729_v44 = vpop.f32.mrb[57].mxu0  ;;  %v2737_v57 = vpop.f32.mrb[105].mxu1 }
 0x304   :  { %v3443_v20 = vmax.f32 %v3442_v16, %v3323_v53  ;;  %v2465_v6 = vmax.f32 %v2464_v37, %v2315_v13  ;;  %v2043_v61 = vmul.f32 %v10646_v25, %v1729_v44  ;;  %v3052_v8 = vmul.f32 %v10649_v30, %v2737_v57  ;;  %v1731_v12 = vpop.f32.mrb[58].mxu0  ;;  %v2739_v56 = vpop.f32.mrb[106].mxu1 }
 0x305   :  { %v3474_v18 = vmax.f32 %v3473_v0, %v3324_v46  ;;  %v2188_v62 = vadd.f32 %v10654_v31, %v2042_v34  ;;  %v3197_v23 = vadd.f32 %v10657_v33, %v3051_v51  ;;  %v2044_v40 = vmul.f32 %v10640_v22, %v1731_v12  ;;  %v1733_v52 = vpop.f32.mrb[59].mxu0  ;;  %v2741_v48 = vpop.f32.mrb[107].mxu1 }
 0x306   :  { %v3053_v2 = vmul.f32 %v10643_v24, %v2739_v56  ;;  %v2189_v5 = vadd.f32 %v10660_v38, %v2043_v61  ;;  %v3198_v3 = vadd.f32 %v10663_v43, %v3052_v8  ;;  %v2045_v16 = vmul.f32 %v10646_v25, %v1733_v52 }
 0x307   :  { %v3054_v60 = vmul.f32 %v10649_v30, %v2741_v48  ;;  %v2316_v53 = vmax.f32 %v2188_v62, 0.0  ;;  %v3325_v37 = vmax.f32 %v3197_v23, 0.0  ;;  %v2190_v0 = vadd.f32 %v10654_v31, %v2044_v40  ;;  %1996 = vmatmul.mubr.bf16.gmra.mrb[164].mxu0 %v10567_v47  ;;  %3004 = vmatmul.mubr.bf16.gmra.mrb[212].mxu1 %v10567_v47 }
 0x308   :  { %v3199_v13 = vadd.f32 %v10657_v33, %v3053_v2  ;;  %v2317_v46 = vmax.f32 %v2189_v5, 0.0  ;;  %v3326_v21 = vmax.f32 %v3198_v3, 0.0  ;;  %v2191_v7 = vadd.f32 %v10660_v38, %v2045_v16  ;;  %3703 = vmatprep.mubr.bf16.mxu0 %v12928_v9  ;;  %4713 = vmatprep.mubr.bf16.mxu1 %v12928_v9 }
 0x309   :  { %v3200_v34 = vadd.f32 %v10663_v43, %v3054_v60  ;;  %v2435_v51 = vmax.f32 %v2434_v36, %v2316_v53  ;;  %v3444_v44 = vmax.f32 %v3443_v20, %v3325_v37  ;;  %v2318_v57 = vmax.f32 %v2190_v0, 0.0 }
 0x30a   :  { %v3327_v42 = vmax.f32 %v3199_v13, 0.0  ;;  %v2466_v61 = vmax.f32 %v2465_v6, %v2317_v46  ;;  %v3475_v8 = vmax.f32 %v3474_v18, %v3326_v21  ;;  %v2319_v12 = vmax.f32 %v2191_v7, 0.0  ;;  %v1737_v62 = vpop.f32.mrb[60].mxu0  ;;  %v2745_v23 = vpop.f32.mrb[108].mxu1  ;;  %v9271_v7 = vld [vmem:[#allocation8 + $0x200] ss:$16 sps:$4 sm:$0xff]  }
 0x30b   :  { %v3328_v56 = vmax.f32 %v3200_v34, 0.0  ;;  %v2436_v40 = vmax.f32 %v2435_v51, %v2318_v57  ;;  %v2046_v52 = vmul.f32 %v10640_v22, %v1737_v62  ;;  %v3055_v48 = vmul.f32 %v10643_v24, %v2745_v23  ;;  %v1739_v5 = vpop.f32.mrb[61].mxu0  ;;  %v2747_v3 = vpop.f32.mrb[109].mxu1 }
 0x30c   :  { %v3445_v2 = vmax.f32 %v3444_v44, %v3327_v42  ;;  %v2467_v16 = vmax.f32 %v2466_v61, %v2319_v12  ;;  %v2047_v36 = vmul.f32 %v10646_v25, %v1739_v5  ;;  %v3056_v20 = vmul.f32 %v10649_v30, %v2747_v3  ;;  %v1741_v6 = vpop.f32.mrb[62].mxu0  ;;  %v2749_v18 = vpop.f32.mrb[110].mxu1 }
 0x30d   :  { %v3476_v60 = vmax.f32 %v3475_v8, %v3328_v56  ;;  %v2192_v53 = vadd.f32 %v10654_v31, %v2046_v52  ;;  %v3201_v37 = vadd.f32 %v10657_v33, %v3055_v48  ;;  %v2048_v0 = vmul.f32 %v10640_v22, %v1741_v6  ;;  %v1743_v46 = vpop.f32.mrb[63].mxu0  ;;  %v2751_v21 = vpop.f32.mrb[111].mxu1 }
 0x30e   :  { %v3057_v13 = vmul.f32 %v10643_v24, %v2749_v18  ;;  %v2193_v34 = vadd.f32 %v10660_v38, %v2047_v36  ;;  %v3202_v51 = vadd.f32 %v10663_v43, %v3056_v20  ;;  %v2049_v44 = vmul.f32 %v10646_v25, %v1743_v46 }
 0x30f   :  { %v3058_v57 = vmul.f32 %v10649_v30, %v2751_v21  ;;  %v2320_v42 = vmax.f32 %v2192_v53, 0.0  ;;  %v3329_v61 = vmax.f32 %v3201_v37, 0.0  ;;  %v2194_v8 = vadd.f32 %v10654_v31, %v2048_v0  ;;  %3704 = vmatmul.mubr.bf16.vlgmr.msra.gmra.mrb[168].mxu0 %v10330_v27  ;;  %4714 = vmatmul.mubr.bf16.vlgmr.msra.gmra.mrb[216].mxu1 %v10330_v27 }
 0x310   :  { %v3203_v12 = vadd.f32 %v10657_v33, %v3057_v13  ;;  %v2321_v56 = vmax.f32 %v2193_v34, 0.0  ;;  %v3330_v62 = vmax.f32 %v3202_v51, 0.0  ;;  %v2195_v23 = vadd.f32 %v10660_v38, %v2049_v44  ;;  %3713 = vmatprep.mubr.bf16.mxu0 %v12928_v9  ;;  %4723 = vmatprep.mubr.bf16.mxu1 %v12928_v9  ;;  %v9274_v44 = vld [vmem:[#allocation8 + $0x220] ss:$16 sps:$4 sm:$0xff]  }
 0x311   :  { %v3204_v52 = vadd.f32 %v10663_v43, %v3058_v57  ;;  %v2437_v48 = vmax.f32 %v2436_v40, %v2320_v42  ;;  %v3446_v5 = vmax.f32 %v3445_v2, %v3329_v61  ;;  %v2322_v3 = vmax.f32 %v2194_v8, 0.0  ;;  %6125 = vmatpush1.bf16.msra.mxu0 %v9271_v7  ;;  %v9276_v40 = vld [vmem:[#allocation8 + $0x224] ss:$16 sps:$4 sm:$0xff]  }
 0x312   :  { %v3331_v36 = vmax.f32 %v3203_v12, 0.0  ;;  %v2468_v20 = vmax.f32 %v2467_v16, %v2321_v56  ;;  %v3477_v6 = vmax.f32 %v3476_v60, %v3330_v62  ;;  %v2323_v18 = vmax.f32 %v2195_v23, 0.0  ;;  %v1747_v27 = vpop.f32.mrb[64].mxu0  ;;  %v2755_v37 = vpop.f32.mrb[112].mxu1  ;;  %6126 = vmatprep.subr.bf16.mxu0 %v9276_v40 }
 0x313   :  { %v3332_v53 = vmax.f32 %v3204_v52, 0.0  ;;  %v2438_v0 = vmax.f32 %v2437_v48, %v2322_v3  ;;  %v2050_v46 = vmul.f32 %v10640_v22, %v1747_v27  ;;  %v3059_v21 = vmul.f32 %v10643_v24, %v2755_v37  ;;  %v1749_v34 = vpop.f32.mrb[65].mxu0  ;;  %v2757_v51 = vpop.f32.mrb[113].mxu1 }
 0x314   :  { %v3447_v13 = vmax.f32 %v3446_v5, %v3331_v36  ;;  %v2469_v2 = vmax.f32 %v2468_v20, %v2323_v18  ;;  %v2051_v7 = vmul.f32 %v10646_v25, %v1749_v34  ;;  %v3060_v16 = vmul.f32 %v10649_v30, %v2757_v51  ;;  %v1751_v60 = vpop.f32.mrb[66].mxu0  ;;  %v2759_v42 = vpop.f32.mrb[114].mxu1 }
 0x315   :  { %v3478_v57 = vmax.f32 %v3477_v6, %v3332_v53  ;;  %v2196_v61 = vadd.f32 %v10654_v31, %v2050_v46  ;;  %v3205_v8 = vadd.f32 %v10657_v33, %v3059_v21  ;;  %v2052_v12 = vmul.f32 %v10640_v22, %v1751_v60  ;;  %v1753_v62 = vpop.f32.mrb[67].mxu0  ;;  %v2761_v23 = vpop.f32.mrb[115].mxu1  ;;  %6127 = vmatpush1.bf16.msra.mxu0 %v9274_v44 }
 0x316   :  { %v3061_v56 = vmul.f32 %v10643_v24, %v2759_v42  ;;  %v2197_v52 = vadd.f32 %v10660_v38, %v2051_v7  ;;  %v3206_v48 = vadd.f32 %v10663_v43, %v3060_v16  ;;  %v2053_v5 = vmul.f32 %v10646_v25, %v1753_v62 }
 0x317   :  { %v3062_v3 = vmul.f32 %v10649_v30, %v2761_v23  ;;  %v2324_v36 = vmax.f32 %v2196_v61, 0.0  ;;  %v3333_v20 = vmax.f32 %v3205_v8, 0.0  ;;  %v2198_v6 = vadd.f32 %v10654_v31, %v2052_v12  ;;  %3714 = vmatmul.mubr.bf16.gmra.mrb[172].mxu0 %v10328_v26  ;;  %4724 = vmatmul.mubr.bf16.gmra.mrb[220].mxu1 %v10328_v26 }
 0x318   :  { %v3207_v18 = vadd.f32 %v10657_v33, %v3061_v56  ;;  %v2325_v53 = vmax.f32 %v2197_v52, 0.0  ;;  %v3334_v27 = vmax.f32 %v3206_v48, 0.0  ;;  %v2199_v37 = vadd.f32 %v10660_v38, %v2053_v5  ;;  %3723 = vmatprep.mubr.bf16.mxu0 %v12928_v9  ;;  %4733 = vmatprep.mubr.bf16.mxu1 %v12928_v9 }
 0x319   :  { %v3208_v46 = vadd.f32 %v10663_v43, %v3062_v3  ;;  %v2439_v21 = vmax.f32 %v2438_v0, %v2324_v36  ;;  %v3448_v34 = vmax.f32 %v3447_v13, %v3333_v20  ;;  %v2326_v51 = vmax.f32 %v2198_v6, 0.0 }
 0x31a   :  { %v3335_v44 = vmax.f32 %v3207_v18, 0.0  ;;  %v2470_v40 = vmax.f32 %v2469_v2, %v2325_v53  ;;  %v3479_v7 = vmax.f32 %v3478_v57, %v3334_v27  ;;  %v2327_v16 = vmax.f32 %v2199_v37, 0.0  ;;  %v1757_v42 = vpop.f32.mrb[68].mxu0  ;;  %v2765_v26 = vpop.f32.mrb[116].mxu1 }
 0x31b   :  { %v3336_v60 = vmax.f32 %v3208_v46, 0.0  ;;  %v2440_v61 = vmax.f32 %v2439_v21, %v2326_v51  ;;  %v2054_v12 = vmul.f32 %v10640_v22, %v1757_v42  ;;  %v3063_v56 = vmul.f32 %v10643_v24, %v2765_v26  ;;  %v1759_v62 = vpop.f32.mrb[69].mxu0  ;;  %v2767_v23 = vpop.f32.mrb[117].mxu1 }
 0x31c   :  { %v3449_v8 = vmax.f32 %v3448_v34, %v3335_v44  ;;  %v2471_v52 = vmax.f32 %v2470_v40, %v2327_v16  ;;  %v2055_v0 = vmul.f32 %v10646_v25, %v1759_v62  ;;  %v3064_v13 = vmul.f32 %v10649_v30, %v2767_v23  ;;  %v1761_v2 = vpop.f32.mrb[70].mxu0  ;;  %v2769_v57 = vpop.f32.mrb[118].mxu1 }
 0x31d   :  { %v3480_v48 = vmax.f32 %v3479_v7, %v3336_v60  ;;  %v2200_v5 = vadd.f32 %v10654_v31, %v2054_v12  ;;  %v3209_v3 = vadd.f32 %v10657_v33, %v3063_v56  ;;  %v2056_v36 = vmul.f32 %v10640_v22, %v1761_v2  ;;  %v1763_v6 = vpop.f32.mrb[71].mxu0  ;;  %v2771_v18 = vpop.f32.mrb[119].mxu1 }
 0x31e   :  { %v3065_v20 = vmul.f32 %v10643_v24, %v2769_v57  ;;  %v2201_v53 = vadd.f32 %v10660_v38, %v2055_v0  ;;  %v3210_v27 = vadd.f32 %v10663_v43, %v3064_v13  ;;  %v2057_v37 = vmul.f32 %v10646_v25, %v1763_v6 }
 0x31f   :  { %v3066_v46 = vmul.f32 %v10649_v30, %v2771_v18  ;;  %v2328_v21 = vmax.f32 %v2200_v5, 0.0  ;;  %v3337_v34 = vmax.f32 %v3209_v3, 0.0  ;;  %v2202_v51 = vadd.f32 %v10654_v31, %v2056_v36  ;;  %3724 = vmatmul.mubr.bf16.gmra.mrb[176].mxu0 %v10347_v58  ;;  %4734 = vmatmul.mubr.bf16.gmra.mrb[224].mxu1 %v10347_v58  ;;  %v9277_v18 = vld [vmem:[#allocation8 + $0x240] ss:$16 sps:$4 sm:$0xff]  }
 0x320   :  { %v3211_v44 = vadd.f32 %v10657_v33, %v3065_v20  ;;  %v2329_v40 = vmax.f32 %v2201_v53, 0.0  ;;  %v3338_v7 = vmax.f32 %v3210_v27, 0.0  ;;  %v2203_v16 = vadd.f32 %v10660_v38, %v2057_v37  ;;  %3733 = vmatprep.mubr.bf16.mxu0 %v12928_v9  ;;  %4743 = vmatprep.mubr.bf16.mxu1 %v12928_v9  ;;  %v9279_v53 = vld [vmem:[#allocation8 + $0x244] ss:$16 sps:$4 sm:$0xff]  }
 0x321   :  { %v3212_v60 = vadd.f32 %v10663_v43, %v3066_v46  ;;  %v2441_v42 = vmax.f32 %v2440_v61, %v2328_v21  ;;  %v3450_v26 = vmax.f32 %v3449_v8, %v3337_v34  ;;  %v2330_v12 = vmax.f32 %v2202_v51, 0.0  ;;  %6128 = vmatprep.subr.bf16.mxu0 %v9279_v53 }
 0x322   :  { %v3339_v56 = vmax.f32 %v3211_v44, 0.0  ;;  %v2472_v62 = vmax.f32 %v2471_v52, %v2329_v40  ;;  %v3481_v23 = vmax.f32 %v3480_v48, %v3338_v7  ;;  %v2331_v0 = vmax.f32 %v2203_v16, 0.0  ;;  %v1767_v2 = vpop.f32.mrb[72].mxu0  ;;  %v2775_v58 = vpop.f32.mrb[120].mxu1  ;;  %6129 = vmatpush1.bf16.msra.mxu0 %v9277_v18 }
 0x323   :  { %v3340_v13 = vmax.f32 %v3212_v60, 0.0  ;;  %v2442_v57 = vmax.f32 %v2441_v42, %v2330_v12  ;;  %v2058_v3 = vmul.f32 %v10640_v22, %v1767_v2  ;;  %v3067_v36 = vmul.f32 %v10643_v24, %v2775_v58  ;;  %v1769_v20 = vpop.f32.mrb[73].mxu0  ;;  %v2777_v6 = vpop.f32.mrb[121].mxu1 }
 0x324   :  { %v3451_v5 = vmax.f32 %v3450_v26, %v3339_v56  ;;  %v2473_v61 = vmax.f32 %v2472_v62, %v2331_v0  ;;  %v2059_v27 = vmul.f32 %v10646_v25, %v1769_v20  ;;  %v3068_v52 = vmul.f32 %v10649_v30, %v2777_v6  ;;  %v1771_v48 = vpop.f32.mrb[74].mxu0  ;;  %v2779_v37 = vpop.f32.mrb[122].mxu1 }
 0x325   :  { %v3482_v8 = vmax.f32 %v3481_v23, %v3340_v13  ;;  %v2204_v46 = vadd.f32 %v10654_v31, %v2058_v3  ;;  %v3213_v21 = vadd.f32 %v10657_v33, %v3067_v36  ;;  %v2060_v34 = vmul.f32 %v10640_v22, %v1771_v48  ;;  %v1773_v44 = vpop.f32.mrb[75].mxu0  ;;  %v2781_v40 = vpop.f32.mrb[123].mxu1 }
 0x326   :  { %v3069_v51 = vmul.f32 %v10643_v24, %v2779_v37  ;;  %v2205_v7 = vadd.f32 %v10660_v38, %v2059_v27  ;;  %v3214_v16 = vadd.f32 %v10663_v43, %v3068_v52  ;;  %v2061_v60 = vmul.f32 %v10646_v25, %v1773_v44 }
 0x327   :  { %v3070_v42 = vmul.f32 %v10649_v30, %v2781_v40  ;;  %v2332_v26 = vmax.f32 %v2204_v46, 0.0  ;;  %v3341_v12 = vmax.f32 %v3213_v21, 0.0  ;;  %v2206_v56 = vadd.f32 %v10654_v31, %v2060_v34  ;;  %3734 = vmatmul.mubr.bf16.gmra.mrb[180].mxu0 %v10344_v54  ;;  %4744 = vmatmul.mubr.bf16.gmra.mrb[228].mxu1 %v10344_v54 }
 0x328   :  { %v3215_v62 = vadd.f32 %v10657_v33, %v3069_v51  ;;  %v2333_v23 = vmax.f32 %v2205_v7, 0.0  ;;  %v3342_v0 = vmax.f32 %v3214_v16, 0.0  ;;  %v2207_v13 = vadd.f32 %v10660_v38, %v2061_v60  ;;  %3743 = vmatprep.mubr.bf16.mxu0 %v12928_v9  ;;  %4753 = vmatprep.mubr.bf16.mxu1 %v12928_v9 }
 0x329   :  { %v3216_v2 = vadd.f32 %v10663_v43, %v3070_v42  ;;  %v2443_v58 = vmax.f32 %v2442_v57, %v2332_v26  ;;  %v3452_v3 = vmax.f32 %v3451_v5, %v3341_v12  ;;  %v2334_v36 = vmax.f32 %v2206_v56, 0.0 }
 0x32a   :  { %v3343_v20 = vmax.f32 %v3215_v62, 0.0  ;;  %v2474_v6 = vmax.f32 %v2473_v61, %v2333_v23  ;;  %v3483_v18 = vmax.f32 %v3482_v8, %v3342_v0  ;;  %v2335_v53 = vmax.f32 %v2207_v13, 0.0  ;;  %v1777_v52 = vpop.f32.mrb[76].mxu0  ;;  %v2785_v54 = vpop.f32.mrb[124].mxu1 }
 0x32b   :  { %v3344_v27 = vmax.f32 %v3216_v2, 0.0  ;;  %v2444_v48 = vmax.f32 %v2443_v58, %v2334_v36  ;;  %v2062_v46 = vmul.f32 %v10640_v22, %v1777_v52  ;;  %v3071_v21 = vmul.f32 %v10643_v24, %v2785_v54  ;;  %v1779_v34 = vpop.f32.mrb[77].mxu0  ;;  %v2787_v51 = vpop.f32.mrb[125].mxu1 }
 0x32c   :  { %v3453_v37 = vmax.f32 %v3452_v3, %v3343_v20  ;;  %v2475_v44 = vmax.f32 %v2474_v6, %v2335_v53  ;;  %v2063_v57 = vmul.f32 %v10646_v25, %v1779_v34  ;;  %v3072_v5 = vmul.f32 %v10649_v30, %v2787_v51  ;;  %v1781_v61 = vpop.f32.mrb[78].mxu0  ;;  %v2789_v8 = vpop.f32.mrb[126].mxu1 }
 0x32d   :  { %v3484_v40 = vmax.f32 %v3483_v18, %v3344_v27  ;;  %v2208_v7 = vadd.f32 %v10654_v31, %v2062_v46  ;;  %v3217_v16 = vadd.f32 %v10657_v33, %v3071_v21  ;;  %v2064_v60 = vmul.f32 %v10640_v22, %v1781_v61  ;;  %v1783_v26 = vpop.f32.mrb[79].mxu0  ;;  %v2791_v12 = vpop.f32.mrb[127].mxu1 }
 0x32e   :  { %v3073_v42 = vmul.f32 %v10643_v24, %v2789_v8  ;;  %v2209_v56 = vadd.f32 %v10660_v38, %v2063_v57  ;;  %v3218_v62 = vadd.f32 %v10663_v43, %v3072_v5  ;;  %v2065_v23 = vmul.f32 %v10646_v25, %v1783_v26  ;;  %v9282_v26 = vld [vmem:[#allocation8 + $0x264] ss:$16 sps:$4 sm:$0xff]  }
 0x32f   :  { %v3074_v0 = vmul.f32 %v10649_v30, %v2791_v12  ;;  %v2336_v13 = vmax.f32 %v2208_v7, 0.0  ;;  %v3345_v2 = vmax.f32 %v3217_v16, 0.0  ;;  %v2210_v58 = vadd.f32 %v10654_v31, %v2064_v60  ;;  %3744 = vmatmul.mubr.bf16.gmra.mrb[184].mxu0 %v10363_v14  ;;  %4754 = vmatmul.mubr.bf16.gmra.mrb[232].mxu1 %v10363_v14 }
 0x330   :  { %v3219_v3 = vadd.f32 %v10657_v33, %v3073_v42  ;;  %v2337_v36 = vmax.f32 %v2209_v56, 0.0  ;;  %v3346_v20 = vmax.f32 %v3218_v62, 0.0  ;;  %v2211_v6 = vadd.f32 %v10660_v38, %v2065_v23  ;;  %3753 = vmatprep.mubr.bf16.mxu0 %v12928_v9  ;;  %4763 = vmatprep.mubr.bf16.mxu1 %v12928_v9  ;;  %v9280_v42 = vld [vmem:[#allocation8 + $0x260] ss:$16 sps:$4 sm:$0xff]  }
 0x331   :  { %v3220_v18 = vadd.f32 %v10663_v43, %v3074_v0  ;;  %v2445_v53 = vmax.f32 %v2444_v48, %v2336_v13  ;;  %v3454_v27 = vmax.f32 %v3453_v37, %v3345_v2  ;;  %v2338_v52 = vmax.f32 %v2210_v58, 0.0  ;;  %6130 = vmatprep.subr.bf16.mxu0 %v9282_v26 }
 0x332   :  { %v3347_v54 = vmax.f32 %v3219_v3, 0.0  ;;  %v2476_v46 = vmax.f32 %v2475_v44, %v2337_v36  ;;  %v3485_v21 = vmax.f32 %v3484_v40, %v3346_v20  ;;  %v2339_v34 = vmax.f32 %v2211_v6, 0.0  ;;  %v1787_v57 = vpop.f32.mrb[80].mxu0  ;;  %v2795_v14 = vpop.f32.mrb[128].mxu1  ;;  %6131 = vmatpush1.bf16.msra.mxu0 %v9280_v42 }
 0x333   :  { %v3348_v51 = vmax.f32 %v3220_v18, 0.0  ;;  %v2446_v5 = vmax.f32 %v2445_v53, %v2338_v52  ;;  %v2066_v8 = vmul.f32 %v10640_v22, %v1787_v57  ;;  %v3075_v7 = vmul.f32 %v10643_v24, %v2795_v14  ;;  %v1789_v16 = vpop.f32.mrb[81].mxu0  ;;  %v2797_v60 = vpop.f32.mrb[129].mxu1 }
 0x334   :  { %v3455_v61 = vmax.f32 %v3454_v27, %v3347_v54  ;;  %v2477_v48 = vmax.f32 %v2476_v46, %v2339_v34  ;;  %v2067_v12 = vmul.f32 %v10646_v25, %v1789_v16  ;;  %v3076_v44 = vmul.f32 %v10649_v30, %v2797_v60  ;;  %v1791_v40 = vpop.f32.mrb[82].mxu0  ;;  %v2799_v56 = vpop.f32.mrb[130].mxu1 }
 0x335   :  { %v3486_v37 = vmax.f32 %v3485_v21, %v3348_v51  ;;  %v2212_v62 = vadd.f32 %v10654_v31, %v2066_v8  ;;  %v3221_v23 = vadd.f32 %v10657_v33, %v3075_v7  ;;  %v2068_v0 = vmul.f32 %v10640_v22, %v1791_v40  ;;  %v1793_v2 = vpop.f32.mrb[83].mxu0  ;;  %v2801_v58 = vpop.f32.mrb[131].mxu1 }
 0x336   :  { %v3077_v13 = vmul.f32 %v10643_v24, %v2799_v56  ;;  %v2213_v3 = vadd.f32 %v10660_v38, %v2067_v12  ;;  %v3222_v36 = vadd.f32 %v10663_v43, %v3076_v44  ;;  %v2069_v20 = vmul.f32 %v10646_v25, %v1793_v2 }
 0x337   :  { %v3078_v6 = vmul.f32 %v10649_v30, %v2801_v58  ;;  %v2340_v18 = vmax.f32 %v2212_v62, 0.0  ;;  %v3349_v53 = vmax.f32 %v3221_v23, 0.0  ;;  %v2214_v27 = vadd.f32 %v10654_v31, %v2068_v0  ;;  %3754 = vmatmul.mubr.bf16.gmra.mrb[188].mxu0 %v10360_v10  ;;  %4764 = vmatmul.mubr.bf16.gmra.mrb[236].mxu1 %v10360_v10 }
 0x338   :  { %v3223_v52 = vadd.f32 %v10657_v33, %v3077_v13  ;;  %v2341_v54 = vmax.f32 %v2213_v3, 0.0  ;;  %v3350_v46 = vmax.f32 %v3222_v36, 0.0  ;;  %v2215_v21 = vadd.f32 %v10660_v38, %v2069_v20  ;;  %3763 = vmatprep.mubr.bf16.mxu0 %v12928_v9  ;;  %4773 = vmatprep.mubr.bf16.mxu1 %v12928_v9 }
 0x339   :  { %v3224_v34 = vadd.f32 %v10663_v43, %v3078_v6  ;;  %v2447_v51 = vmax.f32 %v2446_v5, %v2340_v18  ;;  %v3456_v57 = vmax.f32 %v3455_v61, %v3349_v53  ;;  %v2342_v14 = vmax.f32 %v2214_v27, 0.0 }
 0x33a   :  { %v3351_v8 = vmax.f32 %v3223_v52, 0.0  ;;  %v2478_v7 = vmax.f32 %v2477_v48, %v2341_v54  ;;  %v3487_v16 = vmax.f32 %v3486_v37, %v3350_v46  ;;  %v2343_v60 = vmax.f32 %v2215_v21, 0.0  ;;  %v1797_v26 = vpop.f32.mrb[84].mxu0  ;;  %v2805_v10 = vpop.f32.mrb[132].mxu1 }
 0x33b   :  { %v3352_v42 = vmax.f32 %v3224_v34, 0.0  ;;  %v2448_v12 = vmax.f32 %v2447_v51, %v2342_v14  ;;  %v2070_v40 = vmul.f32 %v10640_v22, %v1797_v26  ;;  %v3079_v56 = vmul.f32 %v10643_v24, %v2805_v10  ;;  %v1799_v62 = vpop.f32.mrb[85].mxu0  ;;  %v2807_v23 = vpop.f32.mrb[133].mxu1 }
 0x33c   :  { %v3457_v44 = vmax.f32 %v3456_v57, %v3351_v8  ;;  %v2479_v0 = vmax.f32 %v2478_v7, %v2343_v60  ;;  %v2071_v5 = vmul.f32 %v10646_v25, %v1799_v62  ;;  %v3080_v61 = vmul.f32 %v10649_v30, %v2807_v23  ;;  %v1801_v48 = vpop.f32.mrb[86].mxu0  ;;  %v2809_v37 = vpop.f32.mrb[134].mxu1 }
 0x33d   :  { %v3488_v13 = vmax.f32 %v3487_v16, %v3352_v42  ;;  %v2216_v2 = vadd.f32 %v10654_v31, %v2070_v40  ;;  %v3225_v58 = vadd.f32 %v10657_v33, %v3079_v56  ;;  %v2072_v3 = vmul.f32 %v10640_v22, %v1801_v48  ;;  %v1803_v20 = vpop.f32.mrb[87].mxu0  ;;  %v2811_v6 = vpop.f32.mrb[135].mxu1 }
 0x33e   :  { %v3081_v36 = vmul.f32 %v10643_v24, %v2809_v37  ;;  %v2217_v18 = vadd.f32 %v10660_v38, %v2071_v5  ;;  %v3226_v53 = vadd.f32 %v10663_v43, %v3080_v61  ;;  %v2073_v27 = vmul.f32 %v10646_v25, %v1803_v20  ;;  %v9288_v20 = vld [vmem:[#allocation8 + $0x284] ss:$16 sps:$4 sm:$0xff]  }
 0x33f   :  { %v3082_v52 = vmul.f32 %v10649_v30, %v2811_v6  ;;  %v2344_v54 = vmax.f32 %v2216_v2, 0.0  ;;  %v3353_v46 = vmax.f32 %v3225_v58, 0.0  ;;  %v2218_v21 = vadd.f32 %v10654_v31, %v2072_v3  ;;  %3764 = vmatmul.mubr.bf16.gmra.mrb[192].mxu0 %v10379_v39  ;;  %4774 = vmatmul.mubr.bf16.gmra.mrb[240].mxu1 %v10379_v39  ;;  %v9285_v58 = vld [vmem:[#allocation8 + $0x20c] ss:$16 sps:$4 sm:$0xff]  }
 0x340   :  { %v3227_v34 = vadd.f32 %v10657_v33, %v3081_v36  ;;  %v2345_v51 = vmax.f32 %v2217_v18, 0.0  ;;  %v3354_v57 = vmax.f32 %v3226_v53, 0.0  ;;  %v2219_v14 = vadd.f32 %v10660_v38, %v2073_v27  ;;  %3773 = vmatprep.mubr.bf16.mxu0 %v12928_v9  ;;  %4783 = vmatprep.mubr.bf16.mxu1 %v12928_v9 }
 0x341   :  { %v3228_v8 = vadd.f32 %v10663_v43, %v3082_v52  ;;  %v2449_v7 = vmax.f32 %v2448_v12, %v2344_v54  ;;  %v3458_v16 = vmax.f32 %v3457_v44, %v3353_v46  ;;  %v2346_v60 = vmax.f32 %v2218_v21, 0.0  ;;  %v9283_v46 = vld [vmem:[#allocation8 + $0x208] ss:$16 sps:$4 sm:$0xff]   ;;  %6165 = vmatprep.subr.bf16.mxu1 %v9285_v58  ;;  %v9286_v21 = vld [vmem:[#allocation8 + $0x280] ss:$16 sps:$4 sm:$0xff]   ;;  %6132 = vmatprep.subr.bf16.mxu0 %v9288_v20 }
 0x342   :  { %v3355_v42 = vmax.f32 %v3227_v34, 0.0  ;;  %v2480_v26 = vmax.f32 %v2479_v0, %v2345_v51  ;;  %v3489_v10 = vmax.f32 %v3488_v13, %v3354_v57  ;;  %v2347_v40 = vmax.f32 %v2219_v14, 0.0  ;;  %v1807_v62 = vpop.f32.mrb[88].mxu0  ;;  %v2815_v39 = vpop.f32.mrb[136].mxu1  ;;  %6166 = vmatpush1.bf16.msra.mxu1 %v9283_v46  ;;  %6133 = vmatpush1.bf16.msra.mxu0 %v9286_v21 }
 0x343   :  { %v3356_v56 = vmax.f32 %v3228_v8, 0.0  ;;  %v2450_v23 = vmax.f32 %v2449_v7, %v2346_v60  ;;  %v2074_v61 = vmul.f32 %v10640_v22, %v1807_v62  ;;  %v3083_v48 = vmul.f32 %v10643_v24, %v2815_v39  ;;  %v1809_v37 = vpop.f32.mrb[89].mxu0  ;;  %v2817_v2 = vpop.f32.mrb[137].mxu1 }
 0x344   :  { %v3459_v5 = vmax.f32 %v3458_v16, %v3355_v42  ;;  %v2481_v3 = vmax.f32 %v2480_v26, %v2347_v40  ;;  %v2075_v44 = vmul.f32 %v10646_v25, %v1809_v37  ;;  %v3084_v0 = vmul.f32 %v10649_v30, %v2817_v2  ;;  %v1811_v13 = vpop.f32.mrb[90].mxu0  ;;  %v2819_v36 = vpop.f32.mrb[138].mxu1 }
 0x345   :  { %v3490_v12 = vmax.f32 %v3489_v10, %v3356_v56  ;;  %v2220_v6 = vadd.f32 %v10654_v31, %v2074_v61  ;;  %v3229_v18 = vadd.f32 %v10657_v33, %v3083_v48  ;;  %v2076_v53 = vmul.f32 %v10640_v22, %v1811_v13  ;;  %v1813_v52 = vpop.f32.mrb[91].mxu0  ;;  %v2821_v54 = vpop.f32.mrb[139].mxu1 }
 0x346   :  { %v3085_v27 = vmul.f32 %v10643_v24, %v2819_v36  ;;  %v2221_v34 = vadd.f32 %v10660_v38, %v2075_v44  ;;  %v3230_v51 = vadd.f32 %v10663_v43, %v3084_v0  ;;  %v2077_v57 = vmul.f32 %v10646_v25, %v1813_v52 }
 0x347   :  { %v3086_v14 = vmul.f32 %v10649_v30, %v2821_v54  ;;  %v2348_v8 = vmax.f32 %v2220_v6, 0.0  ;;  %v3357_v7 = vmax.f32 %v3229_v18, 0.0  ;;  %v2222_v16 = vadd.f32 %v10654_v31, %v2076_v53  ;;  %3774 = vmatmul.mubr.bf16.gmra.mrb[196].mxu0 %v10376_v35  ;;  %4784 = vmatmul.mubr.bf16.gmra.mrb[244].mxu1 %v10376_v35 }
 0x348   :  { %v3231_v60 = vadd.f32 %v10657_v33, %v3085_v27  ;;  %v2349_v42 = vmax.f32 %v2221_v34, 0.0  ;;  %v3358_v26 = vmax.f32 %v3230_v51, 0.0  ;;  %v2223_v10 = vadd.f32 %v10660_v38, %v2077_v57  ;;  %3783 = vmatprep.mubr.bf16.mxu0 %v12928_v9  ;;  %4793 = vmatprep.mubr.bf16.mxu1 %v12928_v9 }
 0x349   :  { %v3232_v40 = vadd.f32 %v10663_v43, %v3086_v14  ;;  %v2451_v56 = vmax.f32 %v2450_v23, %v2348_v8  ;;  %v3460_v62 = vmax.f32 %v3459_v5, %v3357_v7  ;;  %v2350_v39 = vmax.f32 %v2222_v16, 0.0 }
 0x34a   :  { %v3359_v61 = vmax.f32 %v3231_v60, 0.0  ;;  %v2482_v48 = vmax.f32 %v2481_v3, %v2349_v42  ;;  %v3491_v37 = vmax.f32 %v3490_v12, %v3358_v26  ;;  %v2351_v2 = vmax.f32 %v2223_v10, 0.0  ;;  %v1817_v58 = vpop.f32.mrb[92].mxu0  ;;  %v2825_v44 = vpop.f32.mrb[140].mxu1 }
 0x34b   :  { %v3360_v35 = vmax.f32 %v3232_v40, 0.0  ;;  %v2452_v0 = vmax.f32 %v2451_v56, %v2350_v39  ;;  %v2078_v36 = vmul.f32 %v10640_v22, %v1817_v58  ;;  %v3087_v20 = vmul.f32 %v10643_v24, %v2825_v44  ;;  %v1819_v6 = vpop.f32.mrb[93].mxu0  ;;  %v2827_v18 = vpop.f32.mrb[141].mxu1 }
 0x34c   :  { %v3461_v13 = vmax.f32 %v3460_v62, %v3359_v61  ;;  %v2483_v23 = vmax.f32 %v2482_v48, %v2351_v2  ;;  %v2079_v53 = vmul.f32 %v10646_v25, %v1819_v6  ;;  %v3088_v27 = vmul.f32 %v10649_v30, %v2827_v18  ;;  %v1821_v3 = vpop.f32.mrb[94].mxu0  ;;  %v2829_v12 = vpop.f32.mrb[142].mxu1 }
 0x34d   :  { %v3492_v5 = vmax.f32 %v3491_v37, %v3360_v35  ;;  %v2224_v52 = vadd.f32 %v10654_v31, %v2078_v36  ;;  %v3233_v54 = vadd.f32 %v10657_v33, %v3087_v20  ;;  %v2080_v46 = vmul.f32 %v10640_v22, %v1821_v3  ;;  %v1823_v34 = vpop.f32.mrb[95].mxu0  ;;  %v2831_v51 = vpop.f32.mrb[143].mxu1 }
 0x34e   :  { %v3089_v21 = vmul.f32 %v10643_v24, %v2829_v12  ;;  %v2225_v57 = vadd.f32 %v10660_v38, %v2079_v53  ;;  %v3234_v14 = vadd.f32 %v10663_v43, %v3088_v27  ;;  %v2081_v8 = vmul.f32 %v10646_v25, %v1823_v34  ;;  %v9291_v12 = vld [vmem:[#allocation8 + $0x22c] ss:$16 sps:$4 sm:$0xff]  }
 0x34f   :  { %v3090_v7 = vmul.f32 %v10649_v30, %v2831_v51  ;;  %v2352_v16 = vmax.f32 %v2224_v52, 0.0  ;;  %v3361_v60 = vmax.f32 %v3233_v54, 0.0  ;;  %v2226_v42 = vadd.f32 %v10654_v31, %v2080_v46  ;;  %3784 = vmatmul.mubr.bf16.gmra.mrb[200].mxu0 %v10395_v59  ;;  %4794 = vmatmul.mubr.bf16.gmra.mrb[248].mxu1 %v10395_v59  ;;  %v9294_v46 = vld [vmem:[#allocation8 + $0x2a4] ss:$16 sps:$4 sm:$0xff]  }
 0x350   :  { %v3235_v26 = vadd.f32 %v10657_v33, %v3089_v21  ;;  %v2353_v10 = vmax.f32 %v2225_v57, 0.0  ;;  %v3362_v40 = vmax.f32 %v3234_v14, 0.0  ;;  %v2227_v56 = vadd.f32 %v10660_v38, %v2081_v8  ;;  %3793 = vmatprep.mubr.bf16.mxu0 %v12928_v9  ;;  %4803 = vmatprep.mubr.bf16.mxu1 %v12928_v9 }
 0x351   :  { %v3236_v62 = vadd.f32 %v10663_v43, %v3090_v7  ;;  %v2453_v39 = vmax.f32 %v2452_v0, %v2352_v16  ;;  %v3462_v61 = vmax.f32 %v3461_v13, %v3361_v60  ;;  %v2354_v48 = vmax.f32 %v2226_v42, 0.0  ;;  %v9289_v7 = vld [vmem:[#allocation8 + $0x228] ss:$16 sps:$4 sm:$0xff]   ;;  %6167 = vmatprep.subr.bf16.mxu1 %v9291_v12  ;;  %v9292_v16 = vld [vmem:[#allocation8 + $0x2a0] ss:$16 sps:$4 sm:$0xff]   ;;  %6134 = vmatprep.subr.bf16.mxu0 %v9294_v46 }
 0x352   :  { %v3363_v37 = vmax.f32 %v3235_v26, 0.0  ;;  %v2484_v2 = vmax.f32 %v2483_v23, %v2353_v10  ;;  %v3493_v35 = vmax.f32 %v3492_v5, %v3362_v40  ;;  %v2355_v58 = vmax.f32 %v2227_v56, 0.0  ;;  %v1827_v36 = vpop.f32.mrb[96].mxu0  ;;  %v2835_v59 = vpop.f32.mrb[144].mxu1  ;;  %6168 = vmatpush1.bf16.msra.mxu1 %v9289_v7  ;;  %6135 = vmatpush1.bf16.msra.mxu0 %v9292_v16 }
 0x353   :  { %v3364_v44 = vmax.f32 %v3236_v62, 0.0  ;;  %v2454_v20 = vmax.f32 %v2453_v39, %v2354_v48  ;;  %v2082_v18 = vmul.f32 %v10640_v22, %v1827_v36  ;;  %v3091_v53 = vmul.f32 %v10643_v24, %v2835_v59  ;;  %v1829_v27 = vpop.f32.mrb[97].mxu0  ;;  %v2837_v3 = vpop.f32.mrb[145].mxu1 }
 0x354   :  { %v3463_v6 = vmax.f32 %v3462_v61, %v3363_v37  ;;  %v2485_v52 = vmax.f32 %v2484_v2, %v2355_v58  ;;  %v2083_v13 = vmul.f32 %v10646_v25, %v1829_v27  ;;  %v3092_v23 = vmul.f32 %v10649_v30, %v2837_v3  ;;  %v1831_v5 = vpop.f32.mrb[98].mxu0  ;;  %v2839_v54 = vpop.f32.mrb[146].mxu1 }
 0x355   :  { %v3494_v0 = vmax.f32 %v3493_v35, %v3364_v44  ;;  %v2228_v21 = vadd.f32 %v10654_v31, %v2082_v18  ;;  %v3237_v34 = vadd.f32 %v10657_v33, %v3091_v53  ;;  %v2084_v51 = vmul.f32 %v10640_v22, %v1831_v5  ;;  %v1833_v14 = vpop.f32.mrb[99].mxu0  ;;  %v2841_v8 = vpop.f32.mrb[147].mxu1 }
 0x356   :  { %v3093_v57 = vmul.f32 %v10643_v24, %v2839_v54  ;;  %v2229_v60 = vadd.f32 %v10660_v38, %v2083_v13  ;;  %v3238_v42 = vadd.f32 %v10663_v43, %v3092_v23  ;;  %v2085_v26 = vmul.f32 %v10646_v25, %v1833_v14 }
 0x357   :  { %v3094_v10 = vmul.f32 %v10649_v30, %v2841_v8  ;;  %v2356_v40 = vmax.f32 %v2228_v21, 0.0  ;;  %v3365_v56 = vmax.f32 %v3237_v34, 0.0  ;;  %v2230_v62 = vadd.f32 %v10654_v31, %v2084_v51  ;;  %3794 = vmatmul.mubr.bf16.gmra.mrb[204].mxu0 %v10392_v1  ;;  %4804 = vmatmul.mubr.bf16.gmra.mrb[252].mxu1 %v10392_v1 }
 0x358   :  { %v3239_v39 = vadd.f32 %v10657_v33, %v3093_v57  ;;  %v2357_v61 = vmax.f32 %v2229_v60, 0.0  ;;  %v3366_v48 = vmax.f32 %v3238_v42, 0.0  ;;  %v2231_v37 = vadd.f32 %v10660_v38, %v2085_v26  ;;  %3803 = vmatprep.mubr.bf16.mxu0 %v12928_v9  ;;  %4813 = vmatprep.mubr.bf16.mxu1 %v12928_v9  ;;  %v9295_v57 = vld [vmem:[#allocation8 + $0x248] ss:$16 sps:$4 sm:$0xff]  }
 0x359   :  { %v3240_v2 = vadd.f32 %v10663_v43, %v3094_v10  ;;  %v2455_v35 = vmax.f32 %v2454_v20, %v2356_v40  ;;  %v3464_v58 = vmax.f32 %v3463_v6, %v3365_v56  ;;  %v2358_v44 = vmax.f32 %v2230_v62, 0.0  ;;  %v9297_v20 = vld [vmem:[#allocation8 + $0x24c] ss:$16 sps:$4 sm:$0xff]  }
 0x35a   :  { %v3367_v36 = vmax.f32 %v3239_v39, 0.0  ;;  %v2486_v59 = vmax.f32 %v2485_v52, %v2357_v61  ;;  %v3495_v18 = vmax.f32 %v3494_v0, %v3366_v48  ;;  %v2359_v53 = vmax.f32 %v2231_v37, 0.0  ;;  %v1837_v27 = vpop.f32.mrb[100].mxu0  ;;  %v2845_v3 = vpop.f32.mrb[148].mxu1  ;;  %6169 = vmatprep.subr.bf16.mxu1 %v9297_v20  ;;  %v9303_v37 = vld [vmem:[#allocation8 + $0x26c] ss:$16 sps:$4 sm:$0xff]  }
 0x35b   :  { %v3368_v1 = vmax.f32 %v3240_v2, 0.0  ;;  %v2456_v12 = vmax.f32 %v2455_v35, %v2358_v44  ;;  %v2086_v23 = vmul.f32 %v10640_v22, %v1837_v27  ;;  %v3095_v5 = vmul.f32 %v10643_v24, %v2845_v3  ;;  %v1839_v54 = vpop.f32.mrb[101].mxu0  ;;  %v2847_v46 = vpop.f32.mrb[149].mxu1  ;;  %6170 = vmatpush1.bf16.msra.mxu1 %v9295_v57 }
 0x35c   :  { %v3465_v13 = vmax.f32 %v3464_v58, %v3367_v36  ;;  %v2487_v6 = vmax.f32 %v2486_v59, %v2359_v53  ;;  %v2087_v34 = vmul.f32 %v10646_v25, %v1839_v54  ;;  %v3096_v52 = vmul.f32 %v10649_v30, %v2847_v46  ;;  %v1841_v0 = vpop.f32.mrb[102].mxu0  ;;  %v2849_v51 = vpop.f32.mrb[150].mxu1  ;;  %v9301_v36 = vld [vmem:[#allocation8 + $0x268] ss:$16 sps:$4 sm:$0xff]   ;;  %6171 = vmatprep.subr.bf16.mxu1 %v9303_v37 }
 0x35d   :  { %v3496_v21 = vmax.f32 %v3495_v18, %v3368_v1  ;;  %v2232_v14 = vadd.f32 %v10654_v31, %v2086_v23  ;;  %v3241_v8 = vadd.f32 %v10657_v33, %v3095_v5  ;;  %v2088_v7 = vmul.f32 %v10640_v22, %v1841_v0  ;;  %v1843_v60 = vpop.f32.mrb[103].mxu0  ;;  %v2851_v42 = vpop.f32.mrb[151].mxu1 }
 0x35e   :  { %v3097_v16 = vmul.f32 %v10643_v24, %v2849_v51  ;;  %v2233_v26 = vadd.f32 %v10660_v38, %v2087_v34  ;;  %v3242_v10 = vadd.f32 %v10663_v43, %v3096_v52  ;;  %v2089_v40 = vmul.f32 %v10646_v25, %v1843_v60 }
 0x35f   :  { %v3098_v56 = vmul.f32 %v10649_v30, %v2851_v42  ;;  %v2360_v62 = vmax.f32 %v2232_v14, 0.0  ;;  %v3369_v39 = vmax.f32 %v3241_v8, 0.0  ;;  %v2234_v61 = vadd.f32 %v10654_v31, %v2088_v7  ;;  %3804 = vmatmul.mubr.bf16.gmra.mrb[208].mxu0 %v10411_v19  ;;  %4814 = vmatmul.mubr.bf16.gmra.mrb[0].mxu1 %v10411_v19 }
 0x360   :  { %v3243_v48 = vadd.f32 %v10657_v33, %v3097_v16  ;;  %v2361_v2 = vmax.f32 %v2233_v26, 0.0  ;;  %v3370_v35 = vmax.f32 %v3242_v10, 0.0  ;;  %v2235_v58 = vadd.f32 %v10660_v38, %v2089_v40  ;;  %3813 = vmatprep.mubr.bf16.mxu0 %v12928_v9  ;;  %4823 = vmatprep.mubr.bf16.mxu1 %v12928_v9  ;;  %v9306_v16 = vld [vmem:[#allocation8 + $0x28c] ss:$16 sps:$4 sm:$0xff]  }
 0x361   :  { %v3244_v44 = vadd.f32 %v10663_v43, %v3098_v56  ;;  %v2457_v59 = vmax.f32 %v2456_v12, %v2360_v62  ;;  %v3466_v18 = vmax.f32 %v3465_v13, %v3369_v39  ;;  %v2362_v53 = vmax.f32 %v2234_v61, 0.0  ;;  %6172 = vmatpush1.bf16.msra.mxu1 %v9301_v36  ;;  %v9298_v12 = vld [vmem:[#allocation8 + $0x2c0] ss:$16 sps:$4 sm:$0xff]   ;;  %v9300_v13 = vld [vmem:[#allocation8 + $0x2c4] ss:$16 sps:$4 sm:$0xff]  }
 0x362   :  { %v3371_v1 = vmax.f32 %v3243_v48, 0.0  ;;  %v2488_v27 = vmax.f32 %v2487_v6, %v2361_v2  ;;  %v3497_v3 = vmax.f32 %v3496_v21, %v3370_v35  ;;  %v2363_v19 = vmax.f32 %v2235_v58, 0.0  ;;  %v1847_v5 = vpop.f32.mrb[104].mxu0  ;;  %v2855_v54 = vpop.f32.mrb[152].mxu1  ;;  %6136 = vmatprep.subr.bf16.mxu0 %v9300_v13  ;;  %v9304_v62 = vld [vmem:[#allocation8 + $0x288] ss:$16 sps:$4 sm:$0xff]   ;;  %6173 = vmatprep.subr.bf16.mxu1 %v9306_v16 }
 0x363   :  { %v3372_v23 = vmax.f32 %v3244_v44, 0.0  ;;  %v2458_v46 = vmax.f32 %v2457_v59, %v2362_v53  ;;  %v2090_v34 = vmul.f32 %v10640_v22, %v1847_v5  ;;  %v3099_v52 = vmul.f32 %v10643_v24, %v2855_v54  ;;  %v1849_v0 = vpop.f32.mrb[105].mxu0  ;;  %v2857_v51 = vpop.f32.mrb[153].mxu1  ;;  %6137 = vmatpush1.bf16.msra.mxu0 %v9298_v12 }
 0x364   :  { %v3467_v20 = vmax.f32 %v3466_v18, %v3371_v1  ;;  %v2489_v57 = vmax.f32 %v2488_v27, %v2363_v19  ;;  %v2091_v6 = vmul.f32 %v10646_v25, %v1849_v0  ;;  %v3100_v21 = vmul.f32 %v10649_v30, %v2857_v51  ;;  %v1851_v8 = vpop.f32.mrb[106].mxu0  ;;  %v2859_v7 = vpop.f32.mrb[154].mxu1 }
 0x365   :  { %v3498_v14 = vmax.f32 %v3497_v3, %v3372_v23  ;;  %v5601_v60 = vrot.slane %v2458_v46, 4  ;;  %v10990_v26 = vadd.f32 %v10654_v31, %v2090_v34  ;;  %v10993_v10 = vadd.f32 %v10657_v33, %v3099_v52  ;;  %v1853_v40 = vpop.f32.mrb[107].mxu0  ;;  %v2861_v56 = vpop.f32.mrb[155].mxu1  ;;  %6174 = vmatpush1.bf16.msra.mxu1 %v9304_v62 }
 0x366   :  { %v5697_v42 = vrot.slane %v3467_v20, 4  ;;  %v5607_v39 = vrot.slane %v2489_v57, 4  ;;  %v2237_v48 = vadd.f32 %v10660_v38, %v2091_v6  ;;  %v3246_v58 = vadd.f32 %v10663_v43, %v3100_v21 }
 0x367   :  { %v5703_v61 = vrot.slane %v3498_v14, 4  ;;  %v5602_v37 = vmax.f32 %v2458_v46, %v5601_v60  ;;  %v2364_v35 = vmax.f32 %v10990_v26, 0.0  ;;  %3814 = vmatmul.mubr.bf16.gmra.mrb[212].mxu0 %v10408_v15  ;;  %4824 = vmatmul.mubr.bf16.gmra.mrb[4].mxu1 %v10408_v15  ;;  %v3373_v59 = vmax.f32 %v10993_v10, 0.0 }
 0x368   :  { %v5698_v2 = vmax.f32 %v3467_v20, %v5697_v42  ;;  %v5608_v44 = vmax.f32 %v2489_v57, %v5607_v39  ;;  %v2365_v18 = vmax.f32 %v2237_v48, 0.0  ;;  %3823 = vmatprep.mubr.bf16.mxu0 %v12928_v9  ;;  %4833 = vmatprep.mubr.bf16.mxu1 %v12928_v9  ;;  %v2092_v27 = vmul.f32 %v10640_v22, %v1851_v8  ;;  %v9309_v20 = vld [vmem:[#allocation8 + $0x2ac] ss:$16 sps:$4 sm:$0xff]   ;;  %v9307_v57 = vld [vmem:[#allocation8 + $0x2a8] ss:$16 sps:$4 sm:$0xff]  }
 0x369   :  { %v5704_v36 = vmax.f32 %v3498_v14, %v5703_v61  ;;  %v5603_v53 = vrot.slane %v5602_v37, 2  ;;  %v3101_v3 = vmul.f32 %v10643_v24, %v2859_v7  ;;  %v2093_v15 = vmul.f32 %v10646_v25, %v1853_v40  ;;  %6175 = vmatprep.subr.bf16.mxu1 %v9309_v20 }
 0x36a   :  { %v5699_v1 = vrot.slane %v5698_v2, 2  ;;  %v5609_v19 = vrot.slane %v5608_v44, 2  ;;  %v3102_v5 = vmul.f32 %v10649_v30, %v2861_v56  ;;  %v1857_v54 = vpop.f32.mrb[108].mxu0  ;;  %v2865_v46 = vpop.f32.mrb[156].mxu1  ;;  %v2238_v0 = vadd.f32 %v10654_v31, %v2092_v27  ;;  %6176 = vmatpush1.bf16.msra.mxu1 %v9307_v57 }
 0x36b   :  { %v5705_v23 = vrot.slane %v5704_v36, 2  ;;  %v5604_v34 = vmax.f32 %v5602_v37, %v5603_v53  ;;  %v3247_v51 = vadd.f32 %v10657_v33, %v3101_v3  ;;  %v1859_v12 = vpop.f32.mrb[109].mxu0  ;;  %v2867_v13 = vpop.f32.mrb[157].mxu1  ;;  %v2239_v21 = vadd.f32 %v10660_v38, %v2093_v15 }
 0x36c   :  { %v5700_v52 = vmax.f32 %v5698_v2, %v5699_v1  ;;  %v11009_v14 = vmax.f32 %v5608_v44, %v5609_v19  ;;  %v3248_v8 = vadd.f32 %v10663_v43, %v3102_v5  ;;  %v1861_v7 = vpop.f32.mrb[110].mxu0  ;;  %v2869_v16 = vpop.f32.mrb[158].mxu1  ;;  %v2366_v26 = vmax.f32 %v2238_v0, 0.0 }
 0x36d   :  { %v11011_v6 = vmax.f32 %v5704_v36, %v5705_v23  ;;  %v5605_v60 = vrot.slane %v5604_v34, 1  ;;  %v3375_v10 = vmax.f32 %v3247_v51, 0.0  ;;  %v1863_v40 = vpop.f32.mrb[111].mxu0  ;;  %v2871_v56 = vpop.f32.mrb[159].mxu1  ;;  %v3374_v39 = vmax.f32 %v3246_v58, 0.0 }
 0x36e   :  { %v5701_v42 = vrot.slane %v5700_v52, 1  ;;  %v5611_v62 = vrot.slane %v11009_v14, 1  ;;  %v2367_v61 = vmax.f32 %v2239_v21, 0.0  ;;  %v3376_v48 = vmax.f32 %v3248_v8, 0.0 }
 0x36f   :  { %v5606_v37 = vmax.f32 %v5604_v34, %v5605_v60  ;;  %v2490_v44 = vmax.f32 %v2364_v35, %v2366_v26  ;;  %v3499_v36 = vmax.f32 %v3373_v59, %v3375_v10  ;;  %3824 = vmatmul.mubr.bf16.gmra.mrb[216].mxu0 %v10427_v45  ;;  %v2094_v27 = vmul.f32 %v10640_v22, %v1857_v54 }
 0x370   :  { %v11016_v2 = vmax.f32 %v5700_v52, %v5701_v42  ;;  %v2521_v53 = vmax.f32 %v2365_v18, %v2367_v61  ;;  %v3530_v1 = vmax.f32 %v3374_v39, %v3376_v48  ;;  %v3103_v3 = vmul.f32 %v10643_v24, %v2865_v46  ;;  %4834 = vmatmul.mubr.bf16.gmra.mrb[8].mxu1 %v10427_v45 }
 0x371   :  { %v5625_v19 = vpack.c.bf16 %v5606_v37, %v5606_v37  ;;  %v5707_v58 = vrot.slane %v11011_v6, 1  ;;  %v2095_v23 = vmul.f32 %v10646_v25, %v1859_v12  ;;  %v3104_v15 = vmul.f32 %v10649_v30, %v2867_v13  ;;  %3833 = vmatprep.mubr.bf16.mxu0 %v12928_v9  ;;  %4843 = vmatprep.mubr.bf16.mxu1 %v12928_v9 }
 0x372   :  { %v2240_v35 = vadd.f32 %v10654_v31, %v2094_v27  ;;  %v3249_v59 = vadd.f32 %v10657_v33, %v3103_v3  ;;  %v2096_v18 = vmul.f32 %v10640_v22, %v1861_v7  ;;  %v3105_v5 = vmul.f32 %v10643_v24, %v2869_v16  ;;  %v1867_v54 = vpop.f32.mrb[112].mxu0  ;;  %v2875_v46 = vpop.f32.mrb[160].mxu1  ;;  %v9312_v3 = vld [vmem:[#allocation8 + $0x2cc] ss:$16 sps:$4 sm:$0xff]  }
 0x373   :  { %v11031_v45 = vunpack.c.l.b16 %v5625_v19  ;;  %v5721_v20 = vpack.c.bf16 %v11016_v2, %v11016_v2  ;;  %v2241_v34 = vadd.f32 %v10660_v38, %v2095_v23  ;;  %v3250_v52 = vadd.f32 %v10663_v43, %v3104_v15  ;;  %v1869_v0 = vpop.f32.mrb[113].mxu0  ;;  %v2877_v51 = vpop.f32.mrb[161].mxu1  ;;  %6177 = vmatprep.subr.bf16.mxu1 %v9312_v3 }
 0x374   :  { %v2368_v12 = vmax.f32 %v2240_v35, 0.0  ;;  %v3377_v13 = vmax.f32 %v3249_v59, 0.0  ;;  %v2242_v57 = vadd.f32 %v10654_v31, %v2096_v18  ;;  %v3251_v21 = vadd.f32 %v10657_v33, %v3105_v5  ;;  %v1871_v8 = vpop.f32.mrb[114].mxu0  ;;  %v2879_v7 = vpop.f32.mrb[162].mxu1  ;;  %v9310_v59 = vld [vmem:[#allocation8 + $0x2c8] ss:$16 sps:$4 sm:$0xff]  }
 0x375   :  { %v2369_v16 = vmax.f32 %v2241_v34, 0.0  ;;  %v3378_v60 = vmax.f32 %v3250_v52, 0.0  ;;  %v2097_v42 = vmul.f32 %v10646_v25, %v1863_v40  ;;  %v3106_v26 = vmul.f32 %v10649_v30, %v2871_v56  ;;  %v1873_v10 = vpop.f32.mrb[115].mxu0  ;;  %v2881_v39 = vpop.f32.mrb[163].mxu1  ;;  %v9315_v34 = vld [vmem:[#allocation8 + $0x2e4] ss:$16 sps:$4 sm:$0xff]   ;;  %6178 = vmatpush1.bf16.msra.mxu1 %v9310_v59 }
 0x376   :  { %v2491_v61 = vmax.f32 %v2490_v44, %v2368_v12  ;;  %v3500_v48 = vmax.f32 %v3499_v36, %v3377_v13  ;;  %v2370_v37 = vmax.f32 %v2242_v57, 0.0  ;;  %v3379_v27 = vmax.f32 %v3251_v21, 0.0  ;;  %v9318_v52 = vld [vmem:[#allocation8 + $0x2ec] ss:$16 sps:$4 sm:$0xff]   ;;  %6138 = vmatprep.subr.bf16.mxu0 %v9315_v34 }
 0x377   :  { %v2522_v19 = vmax.f32 %v2521_v53, %v2369_v16  ;;  %v3531_v23 = vmax.f32 %v3530_v1, %v3378_v60  ;;  %v2243_v15 = vadd.f32 %v10660_v38, %v2097_v42  ;;  %v3252_v35 = vadd.f32 %v10663_v43, %v3106_v26  ;;  %3834 = vmatmul.mubr.bf16.gmra.mrb[220].mxu0 %v10424_v41 }
 0x378   :  { %v2492_v18 = vmax.f32 %v2491_v61, %v2370_v37  ;;  %v3501_v40 = vmax.f32 %v3500_v48, %v3379_v27  ;;  %v2098_v56 = vmul.f32 %v10640_v22, %v1867_v54  ;;  %v3107_v5 = vmul.f32 %v10643_v24, %v2875_v46  ;;  %4844 = vmatmul.mubr.bf16.gmra.mrb[12].mxu1 %v10424_v41 }
 0x379   :  { %v2371_v44 = vmax.f32 %v2243_v15, 0.0  ;;  %v3380_v36 = vmax.f32 %v3252_v35, 0.0  ;;  %v2099_v53 = vmul.f32 %v10646_v25, %v1869_v0  ;;  %v3108_v1 = vmul.f32 %v10649_v30, %v2877_v51  ;;  %3843 = vmatprep.mubr.bf16.mxu0 %v12928_v9  ;;  %4853 = vmatprep.mubr.bf16.mxu1 %v12928_v9  ;;  %v9313_v0 = vld [vmem:[#allocation8 + $0x2e0] ss:$16 sps:$4 sm:$0xff]  }
 0x37a   :  { %v2244_v12 = vadd.f32 %v10654_v31, %v2098_v56  ;;  %v3253_v54 = vadd.f32 %v10657_v33, %v3107_v5  ;;  %v2100_v46 = vmul.f32 %v10640_v22, %v1871_v8  ;;  %v3109_v41 = vmul.f32 %v10643_v24, %v2879_v7  ;;  %v1877_v13 = vpop.f32.mrb[116].mxu0  ;;  %v2885_v57 = vpop.f32.mrb[164].mxu1  ;;  %6179 = vmatprep.subr.bf16.mxu1 %v9318_v52  ;;  %v9321_v52 = vld [vmem:[#allocation8 + $0x304] ss:$16 sps:$4 sm:$0xff]  }
 0x37b   :  { %v2523_v21 = vmax.f32 %v2522_v19, %v2371_v44  ;;  %v3532_v51 = vmax.f32 %v3531_v23, %v3380_v36  ;;  %v2245_v16 = vadd.f32 %v10660_v38, %v2099_v53  ;;  %v3254_v60 = vadd.f32 %v10663_v43, %v3108_v1  ;;  %v1879_v42 = vpop.f32.mrb[117].mxu0  ;;  %v2887_v26 = vpop.f32.mrb[165].mxu1  ;;  %6139 = vmatpush1.bf16.msra.mxu0 %v9313_v0  ;;  %v9316_v53 = vld [vmem:[#allocation8 + $0x2e8] ss:$16 sps:$4 sm:$0xff]  }
 0x37c   :  { %v2372_v61 = vmax.f32 %v2244_v12, 0.0  ;;  %v3381_v48 = vmax.f32 %v3253_v54, 0.0  ;;  %v2246_v37 = vadd.f32 %v10654_v31, %v2100_v46  ;;  %v3255_v8 = vadd.f32 %v10657_v33, %v3109_v41  ;;  %v1881_v7 = vpop.f32.mrb[118].mxu0  ;;  %v2889_v27 = vpop.f32.mrb[166].mxu1  ;;  %6180 = vmatpush1.bf16.msra.mxu1 %v9316_v53  ;;  %6140 = vmatprep.subr.bf16.mxu0 %v9321_v52 }
 0x37d   :  { %v2373_v3 = vmax.f32 %v2245_v16, 0.0  ;;  %v3382_v19 = vmax.f32 %v3254_v60, 0.0  ;;  %v2101_v23 = vmul.f32 %v10646_v25, %v1873_v10  ;;  %v3110_v15 = vmul.f32 %v10649_v30, %v2881_v39  ;;  %v1883_v35 = vpop.f32.mrb[119].mxu0  ;;  %v2891_v56 = vpop.f32.mrb[167].mxu1 }
 0x37e   :  { %v2493_v59 = vmax.f32 %v2492_v18, %v2372_v61  ;;  %v3502_v5 = vmax.f32 %v3501_v40, %v3381_v48  ;;  %v2374_v44 = vmax.f32 %v2246_v37, 0.0  ;;  %v3383_v36 = vmax.f32 %v3255_v8, 0.0  ;;  %v9319_v18 = vld [vmem:[#allocation8 + $0x300] ss:$16 sps:$4 sm:$0xff]   ;;  %v9324_v40 = vld [vmem:[#allocation8 + $0x30c] ss:$16 sps:$4 sm:$0xff]  }
 0x37f   :  { %v2524_v1 = vmax.f32 %v2523_v21, %v2373_v3  ;;  %v3533_v12 = vmax.f32 %v3532_v51, %v3382_v19  ;;  %v2247_v54 = vadd.f32 %v10660_v38, %v2101_v23  ;;  %v3256_v34 = vadd.f32 %v10663_v43, %v3110_v15  ;;  %3844 = vmatmul.mubr.bf16.gmra.mrb[224].mxu0 %v10443_v28  ;;  %v9322_v37 = vld [vmem:[#allocation8 + $0x308] ss:$16 sps:$4 sm:$0xff]   ;;  %v9327_v8 = vld [vmem:[#allocation8 + $0x324] ss:$16 sps:$4 sm:$0xff]  }
 0x380   :  { %v2494_v10 = vmax.f32 %v2493_v59, %v2374_v44  ;;  %v3503_v46 = vmax.f32 %v3502_v5, %v3383_v36  ;;  %v2102_v39 = vmul.f32 %v10640_v22, %v1877_v13  ;;  %v3111_v41 = vmul.f32 %v10643_v24, %v2885_v57  ;;  %4854 = vmatmul.mubr.bf16.gmra.mrb[16].mxu1 %v10443_v28 }
 0x381   :  { %v2375_v0 = vmax.f32 %v2247_v54, 0.0  ;;  %v3384_v21 = vmax.f32 %v3256_v34, 0.0  ;;  %v2103_v51 = vmul.f32 %v10646_v25, %v1879_v42  ;;  %v3112_v16 = vmul.f32 %v10649_v30, %v2887_v26  ;;  %3853 = vmatprep.mubr.bf16.mxu0 %v12928_v9  ;;  %4863 = vmatprep.mubr.bf16.mxu1 %v12928_v9 }
 0x382   :  { %v2248_v60 = vadd.f32 %v10654_v31, %v2102_v39  ;;  %v3257_v13 = vadd.f32 %v10657_v33, %v3111_v41  ;;  %v2104_v57 = vmul.f32 %v10640_v22, %v1881_v7  ;;  %v3113_v28 = vmul.f32 %v10643_v24, %v2889_v27  ;;  %v1887_v61 = vpop.f32.mrb[120].mxu0  ;;  %v2895_v48 = vpop.f32.mrb[168].mxu1  ;;  %6181 = vmatprep.subr.bf16.mxu1 %v9324_v40 }
 0x383   :  { %v2525_v42 = vmax.f32 %v2524_v1, %v2375_v0  ;;  %v3534_v3 = vmax.f32 %v3533_v12, %v3384_v21  ;;  %v2249_v26 = vadd.f32 %v10660_v38, %v2103_v51  ;;  %v3258_v19 = vadd.f32 %v10663_v43, %v3112_v16  ;;  %v1889_v23 = vpop.f32.mrb[121].mxu0  ;;  %v2897_v15 = vpop.f32.mrb[169].mxu1  ;;  %6141 = vmatpush1.bf16.msra.mxu0 %v9319_v18  ;;  %v9330_v51 = vld [vmem:[#allocation8 + $0x32c] ss:$16 sps:$4 sm:$0xff]  }
 0x384   :  { %v2376_v59 = vmax.f32 %v2248_v60, 0.0  ;;  %v3385_v5 = vmax.f32 %v3257_v13, 0.0  ;;  %v2250_v7 = vadd.f32 %v10654_v31, %v2104_v57  ;;  %v3259_v27 = vadd.f32 %v10657_v33, %v3113_v28  ;;  %v1891_v44 = vpop.f32.mrb[122].mxu0  ;;  %v2899_v36 = vpop.f32.mrb[170].mxu1  ;;  %6142 = vmatprep.subr.bf16.mxu0 %v9327_v8  ;;  %6182 = vmatpush1.bf16.msra.mxu1 %v9322_v37  ;;  %v9333_v28 = vld [vmem:[#allocation8 + $0x344] ss:$16 sps:$4 sm:$0xff]  }
 0x385   :  { %v2377_v53 = vmax.f32 %v2249_v26, 0.0  ;;  %v3386_v1 = vmax.f32 %v3258_v19, 0.0  ;;  %v2105_v12 = vmul.f32 %v10646_v25, %v1883_v35  ;;  %v3114_v54 = vmul.f32 %v10649_v30, %v2891_v56  ;;  %v1893_v34 = vpop.f32.mrb[123].mxu0  ;;  %v2901_v39 = vpop.f32.mrb[171].mxu1  ;;  %v9325_v35 = vld [vmem:[#allocation8 + $0x320] ss:$16 sps:$4 sm:$0xff]   ;;  %6183 = vmatprep.subr.bf16.mxu1 %v9330_v51 }
 0x386   :  { %v2495_v52 = vmax.f32 %v2494_v10, %v2376_v59  ;;  %v3504_v41 = vmax.f32 %v3503_v46, %v3385_v5  ;;  %v2378_v0 = vmax.f32 %v2250_v7, 0.0  ;;  %v3387_v21 = vmax.f32 %v3259_v27, 0.0  ;;  %v9328_v46 = vld [vmem:[#allocation8 + $0x328] ss:$16 sps:$4 sm:$0xff]   ;;  %v9336_v26 = vld [vmem:[#allocation8 + $0x34c] ss:$16 sps:$4 sm:$0xff]  }
 0x387   :  { %v2526_v16 = vmax.f32 %v2525_v42, %v2377_v53  ;;  %v3535_v60 = vmax.f32 %v3534_v3, %v3386_v1  ;;  %v2251_v40 = vadd.f32 %v10660_v38, %v2105_v12  ;;  %v3260_v18 = vadd.f32 %v10663_v43, %v3114_v54  ;;  %3854 = vmatmul.mubr.bf16.gmra.mrb[228].mxu0 %v10440_v4 }
 0x388   :  { %v2496_v13 = vmax.f32 %v2495_v52, %v2378_v0  ;;  %v3505_v56 = vmax.f32 %v3504_v41, %v3387_v21  ;;  %v2106_v57 = vmul.f32 %v10640_v22, %v1887_v61  ;;  %v3115_v10 = vmul.f32 %v10643_v24, %v2895_v48  ;;  %4864 = vmatmul.mubr.bf16.gmra.mrb[20].mxu1 %v10440_v4 }
 0x389   :  { %v2379_v37 = vmax.f32 %v2251_v40, 0.0  ;;  %v3388_v8 = vmax.f32 %v3260_v18, 0.0  ;;  %v2107_v42 = vmul.f32 %v10646_v25, %v1889_v23  ;;  %v3116_v3 = vmul.f32 %v10649_v30, %v2897_v15  ;;  %3863 = vmatprep.mubr.bf16.mxu0 %v12928_v9  ;;  %4873 = vmatprep.mubr.bf16.mxu1 %v12928_v9 }
 0x38a   :  { %v2252_v19 = vadd.f32 %v10654_v31, %v2106_v57  ;;  %v3261_v61 = vadd.f32 %v10657_v33, %v3115_v10  ;;  %v2108_v48 = vmul.f32 %v10640_v22, %v1891_v44  ;;  %v3117_v4 = vmul.f32 %v10643_v24, %v2899_v36  ;;  %v1897_v59 = vpop.f32.mrb[124].mxu0  ;;  %v2905_v5 = vpop.f32.mrb[172].mxu1  ;;  %6143 = vmatpush1.bf16.msra.mxu0 %v9325_v35 }
 0x38b   :  { %v2527_v7 = vmax.f32 %v2526_v16, %v2379_v37  ;;  %v3536_v23 = vmax.f32 %v3535_v60, %v3388_v8  ;;  %v2253_v15 = vadd.f32 %v10660_v38, %v2107_v42  ;;  %v3262_v27 = vadd.f32 %v10663_v43, %v3116_v3  ;;  %v1899_v53 = vpop.f32.mrb[125].mxu0  ;;  %v2907_v1 = vpop.f32.mrb[173].mxu1  ;;  %6184 = vmatpush1.bf16.msra.mxu1 %v9328_v46  ;;  %v9331_v37 = vld [vmem:[#allocation8 + $0x340] ss:$16 sps:$4 sm:$0xff]  }
 0x38c   :  { %v2380_v12 = vmax.f32 %v2252_v19, 0.0  ;;  %v3389_v54 = vmax.f32 %v3261_v61, 0.0  ;;  %v2254_v52 = vadd.f32 %v10654_v31, %v2108_v48  ;;  %v3263_v44 = vadd.f32 %v10657_v33, %v3117_v4  ;;  %v1901_v41 = vpop.f32.mrb[126].mxu0  ;;  %v2909_v36 = vpop.f32.mrb[174].mxu1  ;;  %6144 = vmatprep.subr.bf16.mxu0 %v9333_v28  ;;  %6185 = vmatprep.subr.bf16.mxu1 %v9336_v26  ;;  %v9334_v28 = vld [vmem:[#allocation8 + $0x348] ss:$16 sps:$4 sm:$0xff]  }
 0x38d   :  { %v2381_v0 = vmax.f32 %v2253_v15, 0.0  ;;  %v3390_v21 = vmax.f32 %v3262_v27, 0.0  ;;  %v2109_v51 = vmul.f32 %v10646_v25, %v1893_v34  ;;  %v3118_v16 = vmul.f32 %v10649_v30, %v2901_v39  ;;  %v1903_v60 = vpop.f32.mrb[127].mxu0  ;;  %v2911_v40 = vpop.f32.mrb[175].mxu1 }
 0x38e   :  { %v2497_v18 = vmax.f32 %v2496_v13, %v2380_v12  ;;  %v3506_v35 = vmax.f32 %v3505_v56, %v3389_v54  ;;  %v2382_v57 = vmax.f32 %v2254_v52, 0.0  ;;  %v3391_v10 = vmax.f32 %v3263_v44, 0.0  ;;  %v9339_v13 = vld [vmem:[#allocation8 + $0x364] ss:$16 sps:$4 sm:$0xff]   ;;  %v9342_v56 = vld [vmem:[#allocation8 + $0x36c] ss:$16 sps:$4 sm:$0xff]   ;;  %6145 = vmatpush1.bf16.msra.mxu0 %v9331_v37 }
 0x38f   :  { %v2528_v8 = vmax.f32 %v2527_v7, %v2381_v0  ;;  %v3537_v42 = vmax.f32 %v3536_v23, %v3390_v21  ;;  %v2255_v3 = vadd.f32 %v10660_v38, %v2109_v51  ;;  %v3264_v46 = vadd.f32 %v10663_v43, %v3118_v16  ;;  %3864 = vmatmul.mubr.bf16.gmra.mrb[232].mxu0 %v10459_v32  ;;  %v9337_v12 = vld [vmem:[#allocation8 + $0x360] ss:$16 sps:$4 sm:$0xff]  }
 0x390   :  { %v2498_v34 = vmax.f32 %v2497_v18, %v2382_v57  ;;  %v3507_v19 = vmax.f32 %v3506_v35, %v3391_v10  ;;  %v2110_v39 = vmul.f32 %v10640_v22, %v1897_v59  ;;  %v3119_v26 = vmul.f32 %v10643_v24, %v2905_v5  ;;  %4874 = vmatmul.mubr.bf16.gmra.mrb[24].mxu1 %v10459_v32 }
 0x391   :  { %v2383_v61 = vmax.f32 %v2255_v3, 0.0  ;;  %v3392_v48 = vmax.f32 %v3264_v46, 0.0  ;;  %v2111_v4 = vmul.f32 %v10646_v25, %v1899_v53  ;;  %v3120_v7 = vmul.f32 %v10649_v30, %v2907_v1  ;;  %3873 = vmatprep.mubr.bf16.mxu0 %v12928_v9  ;;  %4883 = vmatprep.mubr.bf16.mxu1 %v12928_v9 }
 0x392   :  { %v2256_v23 = vadd.f32 %v10654_v31, %v2110_v39  ;;  %v3265_v59 = vadd.f32 %v10657_v33, %v3119_v26  ;;  %v2112_v5 = vmul.f32 %v10640_v22, %v1901_v41  ;;  %v3121_v32 = vmul.f32 %v10643_v24, %v2909_v36  ;;  %v1907_v15 = vpop.f32.mrb[128].mxu0  ;;  %v2915_v27 = vpop.f32.mrb[176].mxu1  ;;  %6186 = vmatpush1.bf16.msra.mxu1 %v9334_v28  ;;  %v9340_v26 = vld [vmem:[#allocation8 + $0x368] ss:$16 sps:$4 sm:$0xff]  }
 0x393   :  { %v2529_v54 = vmax.f32 %v2528_v8, %v2383_v61  ;;  %v3538_v53 = vmax.f32 %v3537_v42, %v3392_v48  ;;  %v2257_v1 = vadd.f32 %v10660_v38, %v2111_v4  ;;  %v3266_v52 = vadd.f32 %v10663_v43, %v3120_v7  ;;  %v1909_v44 = vpop.f32.mrb[129].mxu0  ;;  %v2917_v0 = vpop.f32.mrb[177].mxu1  ;;  %6146 = vmatprep.subr.bf16.mxu0 %v9339_v13 }
 0x394   :  { %v2384_v21 = vmax.f32 %v2256_v23, 0.0  ;;  %v3393_v51 = vmax.f32 %v3265_v59, 0.0  ;;  %v2258_v16 = vadd.f32 %v10654_v31, %v2112_v5  ;;  %v3267_v41 = vadd.f32 %v10657_v33, %v3121_v32  ;;  %v1911_v36 = vpop.f32.mrb[130].mxu0  ;;  %v2919_v18 = vpop.f32.mrb[178].mxu1  ;;  %6187 = vmatprep.subr.bf16.mxu1 %v9342_v56  ;;  %6147 = vmatpush1.bf16.msra.mxu0 %v9337_v12  ;;  %v9345_v56 = vld [vmem:[#allocation8 + $0x384] ss:$16 sps:$4 sm:$0xff]  }
 0x395   :  { %v2385_v35 = vmax.f32 %v2257_v1, 0.0  ;;  %v3394_v57 = vmax.f32 %v3266_v52, 0.0  ;;  %v2113_v10 = vmul.f32 %v10646_v25, %v1903_v60  ;;  %v3122_v37 = vmul.f32 %v10649_v30, %v2911_v40  ;;  %v1913_v8 = vpop.f32.mrb[131].mxu0  ;;  %v2921_v42 = vpop.f32.mrb[179].mxu1  ;;  %v9348_v23 = vld [vmem:[#allocation8 + $0x38c] ss:$16 sps:$4 sm:$0xff]   ;;  %6148 = vmatprep.subr.bf16.mxu0 %v9345_v56 }
 0x396   :  { %v2499_v3 = vmax.f32 %v2498_v34, %v2384_v21  ;;  %v3508_v46 = vmax.f32 %v3507_v19, %v3393_v51  ;;  %v2386_v28 = vmax.f32 %v2258_v16, 0.0  ;;  %v3395_v39 = vmax.f32 %v3267_v41, 0.0  ;;  %v9343_v19 = vld [vmem:[#allocation8 + $0x380] ss:$16 sps:$4 sm:$0xff]   ;;  %6188 = vmatpush1.bf16.msra.mxu1 %v9340_v26  ;;  %v9346_v21 = vld [vmem:[#allocation8 + $0x388] ss:$16 sps:$4 sm:$0xff]  }
 0x397   :  { %v2530_v61 = vmax.f32 %v2529_v54, %v2385_v35  ;;  %v3539_v48 = vmax.f32 %v3538_v53, %v3394_v57  ;;  %v2259_v4 = vadd.f32 %v10660_v38, %v2113_v10  ;;  %v3268_v13 = vadd.f32 %v10663_v43, %v3122_v37  ;;  %3874 = vmatmul.mubr.bf16.gmra.mrb[236].mxu0 %v10456_v29  ;;  %v9351_v54 = vld [vmem:[#allocation8 + $0x3a4] ss:$16 sps:$4 sm:$0xff]  }
 0x398   :  { %v2500_v60 = vmax.f32 %v2499_v3, %v2386_v28  ;;  %v3509_v7 = vmax.f32 %v3508_v46, %v3395_v39  ;;  %v2114_v40 = vmul.f32 %v10640_v22, %v1907_v15  ;;  %v3123_v34 = vmul.f32 %v10643_v24, %v2915_v27  ;;  %4884 = vmatmul.mubr.bf16.gmra.mrb[28].mxu1 %v10456_v29 }
 0x399   :  { %v2387_v59 = vmax.f32 %v2259_v4, 0.0  ;;  %v3396_v5 = vmax.f32 %v3268_v13, 0.0  ;;  %v2115_v32 = vmul.f32 %v10646_v25, %v1909_v44  ;;  %v3124_v12 = vmul.f32 %v10649_v30, %v2917_v0  ;;  %3883 = vmatprep.mubr.bf16.mxu0 %v12928_v9  ;;  %4893 = vmatprep.mubr.bf16.mxu1 %v12928_v9 }
 0x39a   :  { %v2260_v53 = vadd.f32 %v10654_v31, %v2114_v40  ;;  %v3269_v15 = vadd.f32 %v10657_v33, %v3123_v34  ;;  %v2116_v27 = vmul.f32 %v10640_v22, %v1911_v36  ;;  %v3125_v29 = vmul.f32 %v10643_v24, %v2919_v18  ;;  %v1917_v1 = vpop.f32.mrb[132].mxu0  ;;  %v2925_v52 = vpop.f32.mrb[180].mxu1  ;;  %6189 = vmatprep.subr.bf16.mxu1 %v9348_v23  ;;  %v9354_v34 = vld [vmem:[#allocation8 + $0x3ac] ss:$16 sps:$4 sm:$0xff]  }
 0x39b   :  { %v2531_v44 = vmax.f32 %v2530_v61, %v2387_v59  ;;  %v3540_v51 = vmax.f32 %v3539_v48, %v3396_v5  ;;  %v2261_v0 = vadd.f32 %v10660_v38, %v2115_v32  ;;  %v3270_v16 = vadd.f32 %v10663_v43, %v3124_v12  ;;  %v1919_v41 = vpop.f32.mrb[133].mxu0  ;;  %v2927_v35 = vpop.f32.mrb[181].mxu1  ;;  %6149 = vmatpush1.bf16.msra.mxu0 %v9343_v19 }
 0x39c   :  { %v2388_v57 = vmax.f32 %v2260_v53, 0.0  ;;  %v3397_v10 = vmax.f32 %v3269_v15, 0.0  ;;  %v2262_v37 = vadd.f32 %v10654_v31, %v2116_v27  ;;  %v3271_v36 = vadd.f32 %v10657_v33, %v3125_v29  ;;  %v1921_v18 = vpop.f32.mrb[134].mxu0  ;;  %v2929_v3 = vpop.f32.mrb[182].mxu1  ;;  %6150 = vmatprep.subr.bf16.mxu0 %v9351_v54  ;;  %6190 = vmatpush1.bf16.msra.mxu1 %v9346_v21  ;;  %v9357_v54 = vld [vmem:[#allocation8 + $0x3c4] ss:$16 sps:$4 sm:$0xff]  }
 0x39d   :  { %v2389_v46 = vmax.f32 %v2261_v0, 0.0  ;;  %v3398_v28 = vmax.f32 %v3270_v16, 0.0  ;;  %v2117_v39 = vmul.f32 %v10646_v25, %v1913_v8  ;;  %v3126_v26 = vmul.f32 %v10649_v30, %v2921_v42  ;;  %v1923_v61 = vpop.f32.mrb[135].mxu0  ;;  %v2931_v48 = vpop.f32.mrb[183].mxu1  ;;  %v9349_v8 = vld [vmem:[#allocation8 + $0x3a0] ss:$16 sps:$4 sm:$0xff]   ;;  %6191 = vmatprep.subr.bf16.mxu1 %v9354_v34 }
 0x39e   :  { %v2501_v4 = vmax.f32 %v2500_v60, %v2388_v57  ;;  %v3510_v13 = vmax.f32 %v3509_v7, %v3397_v10  ;;  %v2390_v56 = vmax.f32 %v2262_v37, 0.0  ;;  %v3399_v40 = vmax.f32 %v3271_v36, 0.0  ;;  %v9352_v7 = vld [vmem:[#allocation8 + $0x3a8] ss:$16 sps:$4 sm:$0xff]   ;;  %v9360_v21 = vld [vmem:[#allocation8 + $0x3cc] ss:$16 sps:$4 sm:$0xff]  }
 0x39f   :  { %v2532_v59 = vmax.f32 %v2531_v44, %v2389_v46  ;;  %v3541_v5 = vmax.f32 %v3540_v51, %v3398_v28  ;;  %v2263_v23 = vadd.f32 %v10660_v38, %v2117_v39  ;;  %v3272_v19 = vadd.f32 %v10663_v43, %v3126_v26  ;;  %3884 = vmatmul.mubr.bf16.gmra.mrb[240].mxu0 %v10475_v63 }
 0x3a0   :  { %v2502_v32 = vmax.f32 %v2501_v4, %v2390_v56  ;;  %v3511_v42 = vmax.f32 %v3510_v13, %v3399_v40  ;;  %v2118_v12 = vmul.f32 %v10640_v22, %v1917_v1  ;;  %v3127_v60 = vmul.f32 %v10643_v24, %v2925_v52  ;;  %4894 = vmatmul.mubr.bf16.gmra.mrb[32].mxu1 %v10475_v63 }
 0x3a1   :  { %v2391_v53 = vmax.f32 %v2263_v23, 0.0  ;;  %v3400_v15 = vmax.f32 %v3272_v19, 0.0  ;;  %v2119_v27 = vmul.f32 %v10646_v25, %v1919_v41  ;;  %v3128_v29 = vmul.f32 %v10649_v30, %v2927_v35  ;;  %3893 = vmatprep.mubr.bf16.mxu0 %v12928_v9  ;;  %4903 = vmatprep.mubr.bf16.mxu1 %v12928_v9 }
 0x3a2   :  { %v2264_v44 = vadd.f32 %v10654_v31, %v2118_v12  ;;  %v3273_v1 = vadd.f32 %v10657_v33, %v3127_v60  ;;  %v2120_v52 = vmul.f32 %v10640_v22, %v1921_v18  ;;  %v3129_v63 = vmul.f32 %v10643_v24, %v2929_v3  ;;  %v1927_v51 = vpop.f32.mrb[136].mxu0  ;;  %v2935_v0 = vpop.f32.mrb[184].mxu1  ;;  %6151 = vmatpush1.bf16.msra.mxu0 %v9349_v8  ;;  %v9355_v8 = vld [vmem:[#allocation8 + $0x3c0] ss:$16 sps:$4 sm:$0xff]  }
 0x3a3   :  { %v2533_v16 = vmax.f32 %v2532_v59, %v2391_v53  ;;  %v3542_v41 = vmax.f32 %v3541_v5, %v3400_v15  ;;  %v2265_v35 = vadd.f32 %v10660_v38, %v2119_v27  ;;  %v3274_v57 = vadd.f32 %v10663_v43, %v3128_v29  ;;  %v1929_v10 = vpop.f32.mrb[137].mxu0  ;;  %v2937_v37 = vpop.f32.mrb[185].mxu1  ;;  %6192 = vmatpush1.bf16.msra.mxu1 %v9352_v7 }
 0x3a4   :  { %v2392_v36 = vmax.f32 %v2264_v44, 0.0  ;;  %v3401_v46 = vmax.f32 %v3273_v1, 0.0  ;;  %v2266_v28 = vadd.f32 %v10654_v31, %v2120_v52  ;;  %v3275_v18 = vadd.f32 %v10657_v33, %v3129_v63  ;;  %v1931_v39 = vpop.f32.mrb[138].mxu0  ;;  %v2939_v3 = vpop.f32.mrb[186].mxu1  ;;  %6152 = vmatprep.subr.bf16.mxu0 %v9357_v54  ;;  %6193 = vmatprep.subr.bf16.mxu1 %v9360_v21  ;;  %v9358_v54 = vld [vmem:[#allocation8 + $0x3c8] ss:$16 sps:$4 sm:$0xff]  }
 0x3a5   :  { %v2393_v26 = vmax.f32 %v2265_v35, 0.0  ;;  %v3402_v4 = vmax.f32 %v3274_v57, 0.0  ;;  %v2121_v13 = vmul.f32 %v10646_v25, %v1923_v61  ;;  %v3130_v56 = vmul.f32 %v10649_v30, %v2931_v48  ;;  %v1933_v40 = vpop.f32.mrb[139].mxu0  ;;  %v2941_v34 = vpop.f32.mrb[187].mxu1 }
 0x3a6   :  { %v2503_v59 = vmax.f32 %v2502_v32, %v2392_v36  ;;  %v3512_v5 = vmax.f32 %v3511_v42, %v3401_v46  ;;  %v2394_v23 = vmax.f32 %v2266_v28, 0.0  ;;  %v3403_v19 = vmax.f32 %v3275_v18, 0.0  ;;  %v9363_v32 = vld [vmem:[#allocation8 + $0x3e4] ss:$16 sps:$4 sm:$0xff]   ;;  %v9366_v42 = vld [vmem:[#allocation8 + $0x3ec] ss:$16 sps:$4 sm:$0xff]   ;;  %6153 = vmatpush1.bf16.msra.mxu0 %v9355_v8 }
 0x3a7   :  { %v2534_v12 = vmax.f32 %v2533_v16, %v2393_v26  ;;  %v3543_v60 = vmax.f32 %v3542_v41, %v3402_v4  ;;  %v2267_v53 = vadd.f32 %v10660_v38, %v2121_v13  ;;  %v3276_v7 = vadd.f32 %v10663_v43, %v3130_v56  ;;  %3894 = vmatmul.mubr.bf16.gmra.mrb[244].mxu0 %v10472_v55  ;;  %v9361_v41 = vld [vmem:[#allocation8 + $0x3e0] ss:$16 sps:$4 sm:$0xff]  }
 0x3a8   :  { %v2504_v61 = vmax.f32 %v2503_v59, %v2394_v23  ;;  %v3513_v15 = vmax.f32 %v3512_v5, %v3403_v19  ;;  %v2122_v48 = vmul.f32 %v10640_v22, %v1927_v51  ;;  %v3131_v27 = vmul.f32 %v10643_v24, %v2935_v0  ;;  %4904 = vmatmul.mubr.bf16.gmra.mrb[36].mxu1 %v10472_v55 }
 0x3a9   :  { %v2395_v29 = vmax.f32 %v2267_v53, 0.0  ;;  %v3404_v21 = vmax.f32 %v3276_v7, 0.0  ;;  %v2123_v44 = vmul.f32 %v10646_v25, %v1929_v10  ;;  %v3132_v1 = vmul.f32 %v10649_v30, %v2937_v37  ;;  %3903 = vmatprep.mubr.bf16.mxu0 %v12928_v9  ;;  %4913 = vmatprep.mubr.bf16.mxu1 %v12928_v9  ;;  %v9364_v7 = vld [vmem:[#allocation8 + $0x3e8] ss:$16 sps:$4 sm:$0xff]  }
 0x3aa   :  { %v2268_v52 = vadd.f32 %v10654_v31, %v2122_v48  ;;  %v3277_v63 = vadd.f32 %v10657_v33, %v3131_v27  ;;  %v2124_v51 = vmul.f32 %v10640_v22, %v1931_v39  ;;  %v3133_v55 = vmul.f32 %v10643_v24, %v2939_v3  ;;  %v1937_v0 = vpop.f32.mrb[140].mxu0  ;;  %v2945_v16 = vpop.f32.mrb[188].mxu1  ;;  %6194 = vmatpush1.bf16.msra.mxu1 %v9358_v54 }
 0x3ab   :  { %v2535_v35 = vmax.f32 %v2534_v12, %v2395_v29  ;;  %v3544_v57 = vmax.f32 %v3543_v60, %v3404_v21  ;;  %v2269_v10 = vadd.f32 %v10660_v38, %v2123_v44  ;;  %v3278_v37 = vadd.f32 %v10663_v43, %v3132_v1  ;;  %v1939_v36 = vpop.f32.mrb[141].mxu0  ;;  %v2947_v46 = vpop.f32.mrb[189].mxu1  ;;  %6154 = vmatprep.subr.bf16.mxu0 %v9363_v32 }
 0x3ac   :  { %v2396_v28 = vmax.f32 %v2268_v52, 0.0  ;;  %v3405_v18 = vmax.f32 %v3277_v63, 0.0  ;;  %v2270_v26 = vadd.f32 %v10654_v31, %v2124_v51  ;;  %v3279_v39 = vadd.f32 %v10657_v33, %v3133_v55  ;;  %v1941_v3 = vpop.f32.mrb[142].mxu0  ;;  %v2949_v4 = vpop.f32.mrb[190].mxu1  ;;  %6195 = vmatprep.subr.bf16.mxu1 %v9366_v42  ;;  %6155 = vmatpush1.bf16.msra.mxu0 %v9361_v41  ;;  %v9369_v42 = vld [vmem:[#allocation8 + $0x4] ss:$16 sps:$4 sm:$0xff]  }
 0x3ad   :  { %v2397_v13 = vmax.f32 %v2269_v10, 0.0  ;;  %v3406_v56 = vmax.f32 %v3278_v37, 0.0  ;;  %v2125_v59 = vmul.f32 %v10646_v25, %v1933_v40  ;;  %v3134_v5 = vmul.f32 %v10649_v30, %v2941_v34  ;;  %v1943_v23 = vpop.f32.mrb[143].mxu0  ;;  %v2951_v19 = vpop.f32.mrb[191].mxu1  ;;  %6540 = vmatprep.subr.bf16.mxu0 %v9369_v42 }
 0x3ae   :  { %v2505_v8 = vmax.f32 %v2504_v61, %v2396_v28  ;;  %v3514_v12 = vmax.f32 %v3513_v15, %v3405_v18  ;;  %v2398_v60 = vmax.f32 %v2270_v26, 0.0  ;;  %v3407_v53 = vmax.f32 %v3279_v39, 0.0  ;;  %v9372_v15 = vld [vmem:[#allocation8 + $0xc] ss:$16 sps:$4 sm:$0xff]   ;;  %6196 = vmatpush1.bf16.msra.mxu1 %v9364_v7 }
 0x3af   :  { %v2536_v54 = vmax.f32 %v2535_v35, %v2397_v13  ;;  %v3545_v48 = vmax.f32 %v3544_v57, %v3406_v56  ;;  %v2271_v27 = vadd.f32 %v10660_v38, %v2125_v59  ;;  %v3280_v32 = vadd.f32 %v10663_v43, %v3134_v5  ;;  %3904 = vmatmul.mubr.bf16.gmra.mrb[248].mxu0 %v10491_v17 }
 0x3b0   :  { %v2506_v40 = vmax.f32 %v2505_v8, %v2398_v60  ;;  %v3515_v29 = vmax.f32 %v3514_v12, %v3407_v53  ;;  %v2126_v34 = vmul.f32 %v10640_v22, %v1937_v0  ;;  %v3135_v61 = vmul.f32 %v10643_v24, %v2945_v16  ;;  %4914 = vmatmul.mubr.bf16.gmra.mrb[40].mxu1 %v10491_v17 }
 0x3b1   :  { %v2399_v21 = vmax.f32 %v2271_v27, 0.0  ;;  %v3408_v44 = vmax.f32 %v3280_v32, 0.0  ;;  %v2127_v1 = vmul.f32 %v10646_v25, %v1939_v36  ;;  %v3136_v52 = vmul.f32 %v10649_v30, %v2947_v46  ;;  %3913 = vmatprep.mubr.bf16.mxu0 %v12928_v9  ;;  %4923 = vmatprep.mubr.bf16.mxu1 %v12928_v9 }
 0x3b2   :  { %v2272_v63 = vadd.f32 %v10654_v31, %v2126_v34  ;;  %v3281_v51 = vadd.f32 %v10657_v33, %v3135_v61  ;;  %v2128_v55 = vmul.f32 %v10640_v22, %v1941_v3  ;;  %v3137_v0 = vmul.f32 %v10643_v24, %v2949_v4  ;;  %v1947_v17 = vpop.f32.mrb[144].mxu0  ;;  %v2955_v16 = vpop.f32.mrb[192].mxu1  ;;  %6581 = vmatprep.subr.bf16.mxu1 %v9372_v15 }
 0x3b3   :  { %v2537_v41 = vmax.f32 %v2536_v54, %v2399_v21  ;;  %v3546_v35 = vmax.f32 %v3545_v48, %v3408_v44  ;;  %v2273_v57 = vadd.f32 %v10660_v38, %v2127_v1  ;;  %v3282_v10 = vadd.f32 %v10663_v43, %v3136_v52  ;;  %v1949_v37 = vpop.f32.mrb[145].mxu0  ;;  %v2957_v36 = vpop.f32.mrb[193].mxu1 }
 0x3b4   :  { %v2400_v46 = vmax.f32 %v2272_v63, 0.0  ;;  %v3409_v28 = vmax.f32 %v3281_v51, 0.0  ;;  %v2274_v18 = vadd.f32 %v10654_v31, %v2128_v55  ;;  %v3283_v26 = vadd.f32 %v10657_v33, %v3137_v0  ;;  %v1951_v39 = vpop.f32.mrb[146].mxu0  ;;  %v2959_v3 = vpop.f32.mrb[194].mxu1 }
 0x3b5   :  { %v2401_v4 = vmax.f32 %v2273_v57, 0.0  ;;  %v3410_v13 = vmax.f32 %v3282_v10, 0.0  ;;  %v2129_v56 = vmul.f32 %v10646_v25, %v1943_v23  ;;  %v3138_v59 = vmul.f32 %v10649_v30, %v2951_v19  ;;  %v1953_v5 = vpop.f32.mrb[147].mxu0  ;;  %v2961_v8 = vpop.f32.mrb[195].mxu1 }
 0x3b6   :  { %v2507_v12 = vmax.f32 %v2506_v40, %v2400_v46  ;;  %v3516_v60 = vmax.f32 %v3515_v29, %v3409_v28  ;;  %v2402_v53 = vmax.f32 %v2274_v18, 0.0  ;;  %v3411_v7 = vmax.f32 %v3283_v26, 0.0 }
 0x3b7   :  { %v2538_v54 = vmax.f32 %v2537_v41, %v2401_v4  ;;  %v3547_v48 = vmax.f32 %v3546_v35, %v3410_v13  ;;  %v2275_v27 = vadd.f32 %v10660_v38, %v2129_v56  ;;  %v3284_v32 = vadd.f32 %v10663_v43, %v3138_v59  ;;  %3914 = vmatmul.mubr.bf16.gmra.mrb[252].mxu0 %v10488_v11 }
 0x3b8   :  { %v2508_v42 = vmax.f32 %v2507_v12, %v2402_v53  ;;  %v3517_v34 = vmax.f32 %v3516_v60, %v3411_v7  ;;  %v2130_v23 = vmul.f32 %v10640_v22, %v1947_v17  ;;  %v3139_v19 = vmul.f32 %v10643_v24, %v2955_v16  ;;  %4924 = vmatmul.mubr.bf16.gmra.mrb[44].mxu1 %v10488_v11 }
 0x3b9   :  { %v2403_v40 = vmax.f32 %v2275_v27, 0.0  ;;  %v3412_v29 = vmax.f32 %v3284_v32, 0.0  ;;  %v2131_v61 = vmul.f32 %v10646_v25, %v1949_v37  ;;  %v3140_v15 = vmul.f32 %v10649_v30, %v2957_v36  ;;  %3923 = vmatprep.mubr.bf16.mxu0 %v12928_v9  ;;  %4933 = vmatprep.mubr.bf16.mxu1 %v12928_v9 }
 0x3ba   :  { %v2276_v21 = vadd.f32 %v10654_v31, %v2130_v23  ;;  %v3285_v44 = vadd.f32 %v10657_v33, %v3139_v19  ;;  %v2132_v1 = vmul.f32 %v10640_v22, %v1951_v39  ;;  %v3141_v52 = vmul.f32 %v10643_v24, %v2959_v3  ;;  %v1957_v63 = vpop.f32.mrb[148].mxu0  ;;  %v2965_v11 = vpop.f32.mrb[196].mxu1 }
 0x3bb   :  { %v2539_v51 = vmax.f32 %v2538_v54, %v2403_v40  ;;  %v3548_v55 = vmax.f32 %v3547_v48, %v3412_v29  ;;  %v2277_v0 = vadd.f32 %v10660_v38, %v2131_v61  ;;  %v3286_v17 = vadd.f32 %v10663_v43, %v3140_v15  ;;  %v1959_v16 = vpop.f32.mrb[149].mxu0  ;;  %v2967_v41 = vpop.f32.mrb[197].mxu1 }
 0x3bc   :  { %v2404_v35 = vmax.f32 %v2276_v21, 0.0  ;;  %v3413_v57 = vmax.f32 %v3285_v44, 0.0  ;;  %v2278_v10 = vadd.f32 %v10654_v31, %v2132_v1  ;;  %v3287_v37 = vadd.f32 %v10657_v33, %v3141_v52  ;;  %v1961_v36 = vpop.f32.mrb[150].mxu0  ;;  %v2969_v46 = vpop.f32.mrb[198].mxu1 }
 0x3bd   :  { %v2405_v28 = vmax.f32 %v2277_v0, 0.0  ;;  %v3414_v18 = vmax.f32 %v3286_v17, 0.0  ;;  %v2133_v26 = vmul.f32 %v10646_v25, %v1953_v5  ;;  %v3142_v39 = vmul.f32 %v10649_v30, %v2961_v8  ;;  %v1963_v3 = vpop.f32.mrb[151].mxu0  ;;  %v2971_v4 = vpop.f32.mrb[199].mxu1 }
 0x3be   :  { %v2509_v13 = vmax.f32 %v2508_v42, %v2404_v35  ;;  %v3518_v56 = vmax.f32 %v3517_v34, %v3413_v57  ;;  %v2406_v59 = vmax.f32 %v2278_v10, 0.0  ;;  %v3415_v12 = vmax.f32 %v3287_v37, 0.0 }
 0x3bf   :  { %v2540_v60 = vmax.f32 %v2539_v51, %v2405_v28  ;;  %v3549_v53 = vmax.f32 %v3548_v55, %v3414_v18  ;;  %v2279_v7 = vadd.f32 %v10660_v38, %v2133_v26  ;;  %v3288_v54 = vadd.f32 %v10663_v43, %v3142_v39  ;;  %3924 = vmatmul.mubr.bf16.gmra.mrb[0].mxu0 %v10507_v49 }
 0x3c0   :  { %v2510_v48 = vmax.f32 %v2509_v13, %v2406_v59  ;;  %v3519_v27 = vmax.f32 %v3518_v56, %v3415_v12  ;;  %v2134_v5 = vmul.f32 %v10640_v22, %v1957_v63  ;;  %v3143_v8 = vmul.f32 %v10643_v24, %v2965_v11  ;;  %4934 = vmatmul.mubr.bf16.gmra.mrb[48].mxu1 %v10507_v49 }
 0x3c1   :  { %v2407_v32 = vmax.f32 %v2279_v7, 0.0  ;;  %v3416_v42 = vmax.f32 %v3288_v54, 0.0  ;;  %v2135_v34 = vmul.f32 %v10646_v25, %v1959_v16  ;;  %v3144_v23 = vmul.f32 %v10649_v30, %v2967_v41  ;;  %3933 = vmatprep.mubr.bf16.mxu0 %v12928_v9  ;;  %4943 = vmatprep.mubr.bf16.mxu1 %v12928_v9 }
 0x3c2   :  { %v2280_v19 = vadd.f32 %v10654_v31, %v2134_v5  ;;  %v3289_v40 = vadd.f32 %v10657_v33, %v3143_v8  ;;  %v2136_v29 = vmul.f32 %v10640_v22, %v1961_v36  ;;  %v3145_v61 = vmul.f32 %v10643_v24, %v2969_v46  ;;  %v1967_v15 = vpop.f32.mrb[152].mxu0  ;;  %v2975_v49 = vpop.f32.mrb[200].mxu1 }
 0x3c3   :  { %v2541_v21 = vmax.f32 %v2540_v60, %v2407_v32  ;;  %v3550_v44 = vmax.f32 %v3549_v53, %v3416_v42  ;;  %v2281_v1 = vadd.f32 %v10660_v38, %v2135_v34  ;;  %v3290_v52 = vadd.f32 %v10663_v43, %v3144_v23  ;;  %v1969_v63 = vpop.f32.mrb[153].mxu0  ;;  %v2977_v11 = vpop.f32.mrb[201].mxu1  ;;  %v12929_v60 = vld [vmem:[#allocation16_spill] sm:$0xff] }
 0x3c4   :  { %v2408_v51 = vmax.f32 %v2280_v19, 0.0  ;;  %v3417_v55 = vmax.f32 %v3289_v40, 0.0  ;;  %v2282_v0 = vadd.f32 %v10654_v31, %v2136_v29  ;;  %v3291_v17 = vadd.f32 %v10657_v33, %v3145_v61  ;;  %v1971_v16 = vpop.f32.mrb[154].mxu0  ;;  %v2979_v41 = vpop.f32.mrb[202].mxu1 }
 0x3c5   :  { %v2409_v35 = vmax.f32 %v2281_v1, 0.0  ;;  %v3418_v57 = vmax.f32 %v3290_v52, 0.0  ;;  %v2137_v10 = vmul.f32 %v10646_v25, %v1963_v3  ;;  %v3146_v37 = vmul.f32 %v10649_v30, %v2971_v4  ;;  %v1973_v36 = vpop.f32.mrb[155].mxu0  ;;  %v2981_v46 = vpop.f32.mrb[203].mxu1 }
 0x3c6   :  { %v2511_v28 = vmax.f32 %v2510_v48, %v2408_v51  ;;  %v3520_v18 = vmax.f32 %v3519_v27, %v3417_v55  ;;  %v2410_v26 = vmax.f32 %v2282_v0, 0.0  ;;  %v3419_v39 = vmax.f32 %v3291_v17, 0.0 }
 0x3c7   :  { %v2542_v13 = vmax.f32 %v2541_v21, %v2409_v35  ;;  %v3551_v56 = vmax.f32 %v3550_v44, %v3418_v57  ;;  %v2283_v59 = vadd.f32 %v10660_v38, %v2137_v10  ;;  %v3292_v12 = vadd.f32 %v10663_v43, %v3146_v37  ;;  %3934 = vmatmul.mubr.bf16.gmra.mrb[4].mxu0 %v12929_v60 }
 0x3c8   :  { %v2512_v53 = vmax.f32 %v2511_v28, %v2410_v26  ;;  %v3521_v7 = vmax.f32 %v3520_v18, %v3419_v39  ;;  %v2138_v3 = vmul.f32 %v10640_v22, %v1967_v15  ;;  %v3147_v4 = vmul.f32 %v10643_v24, %v2975_v49  ;;  %4944 = vmatmul.mubr.bf16.gmra.mrb[52].mxu1 %v12929_v60 }
 0x3c9   :  { %v2411_v54 = vmax.f32 %v2283_v59, 0.0  ;;  %v3420_v48 = vmax.f32 %v3292_v12, 0.0  ;;  %v2139_v27 = vmul.f32 %v10646_v25, %v1969_v63  ;;  %v3148_v5 = vmul.f32 %v10649_v30, %v2977_v11  ;;  %3943 = vmatprep.mubr.bf16.mxu0 %v12928_v9  ;;  %4953 = vmatprep.mubr.bf16.mxu1 %v12928_v9 }
 0x3ca   :  { %v2284_v8 = vadd.f32 %v10654_v31, %v2138_v3  ;;  %v3293_v32 = vadd.f32 %v10657_v33, %v3147_v4  ;;  %v2140_v42 = vmul.f32 %v10640_v22, %v1971_v16  ;;  %v3149_v34 = vmul.f32 %v10643_v24, %v2979_v41  ;;  %v1977_v23 = vpop.f32.mrb[156].mxu0  ;;  %v2985_v19 = vpop.f32.mrb[204].mxu1 }
 0x3cb   :  { %v2543_v40 = vmax.f32 %v2542_v13, %v2411_v54  ;;  %v3552_v29 = vmax.f32 %v3551_v56, %v3420_v48  ;;  %v2285_v61 = vadd.f32 %v10660_v38, %v2139_v27  ;;  %v3294_v15 = vadd.f32 %v10663_v43, %v3148_v5  ;;  %v1979_v49 = vpop.f32.mrb[157].mxu0  ;;  %v2987_v21 = vpop.f32.mrb[205].mxu1  ;;  %v12930_v56 = vld [vmem:[#allocation18_spill] sm:$0xff] }
 0x3cc   :  { %v2412_v44 = vmax.f32 %v2284_v8, 0.0  ;;  %v3421_v1 = vmax.f32 %v3293_v32, 0.0  ;;  %v2286_v52 = vadd.f32 %v10654_v31, %v2140_v42  ;;  %v3295_v63 = vadd.f32 %v10657_v33, %v3149_v34  ;;  %v1981_v11 = vpop.f32.mrb[158].mxu0  ;;  %v2989_v51 = vpop.f32.mrb[206].mxu1 }
 0x3cd   :  { %v2413_v55 = vmax.f32 %v2285_v61, 0.0  ;;  %v3422_v0 = vmax.f32 %v3294_v15, 0.0  ;;  %v2141_v17 = vmul.f32 %v10646_v25, %v1973_v36  ;;  %v3150_v16 = vmul.f32 %v10649_v30, %v2981_v46  ;;  %v1983_v41 = vpop.f32.mrb[159].mxu0  ;;  %v2991_v35 = vpop.f32.mrb[207].mxu1 }
 0x3ce   :  { %v2513_v57 = vmax.f32 %v2512_v53, %v2412_v44  ;;  %v3522_v10 = vmax.f32 %v3521_v7, %v3421_v1  ;;  %v2414_v37 = vmax.f32 %v2286_v52, 0.0  ;;  %v3423_v28 = vmax.f32 %v3295_v63, 0.0 }
 0x3cf   :  { %v2544_v18 = vmax.f32 %v2543_v40, %v2413_v55  ;;  %v3553_v26 = vmax.f32 %v3552_v29, %v3422_v0  ;;  %v2287_v39 = vadd.f32 %v10660_v38, %v2141_v17  ;;  %v3296_v13 = vadd.f32 %v10663_v43, %v3150_v16  ;;  %3944 = vmatmul.mubr.bf16.gmra.mrb[8].mxu0 %v12930_v56 }
 0x3d0   :  { %v2514_v59 = vmax.f32 %v2513_v57, %v2414_v37  ;;  %v3523_v12 = vmax.f32 %v3522_v10, %v3423_v28  ;;  %v2142_v36 = vmul.f32 %v10640_v22, %v1977_v23  ;;  %v3151_v46 = vmul.f32 %v10643_v24, %v2985_v19  ;;  %4954 = vmatmul.mubr.bf16.gmra.mrb[56].mxu1 %v12930_v56 }
 0x3d1   :  { %v2415_v60 = vmax.f32 %v2287_v39, 0.0  ;;  %v3424_v53 = vmax.f32 %v3296_v13, 0.0  ;;  %v2143_v7 = vmul.f32 %v10646_v25, %v1979_v49  ;;  %v3152_v3 = vmul.f32 %v10649_v30, %v2987_v21  ;;  %3953 = vmatprep.mubr.bf16.mxu0 %v12928_v9  ;;  %4963 = vmatprep.mubr.bf16.mxu1 %v12928_v9 }
 0x3d2   :  { %v2288_v4 = vadd.f32 %v10654_v31, %v2142_v36  ;;  %v3297_v54 = vadd.f32 %v10657_v33, %v3151_v46  ;;  %v2144_v48 = vmul.f32 %v10640_v22, %v1981_v11  ;;  %v3153_v27 = vmul.f32 %v10643_v24, %v2989_v51  ;;  %v1987_v5 = vpop.f32.mrb[160].mxu0  ;;  %v2995_v8 = vpop.f32.mrb[208].mxu1 }
 0x3d3   :  { %v2545_v32 = vmax.f32 %v2544_v18, %v2415_v60  ;;  %v3554_v42 = vmax.f32 %v3553_v26, %v3424_v53  ;;  %v2289_v34 = vadd.f32 %v10660_v38, %v2143_v7  ;;  %v3298_v23 = vadd.f32 %v10663_v43, %v3152_v3  ;;  %v1989_v19 = vpop.f32.mrb[161].mxu0  ;;  %v2997_v40 = vpop.f32.mrb[209].mxu1  ;;  %v12931_v26 = vld [vmem:[#allocation17_spill] sm:$0xff] }
 0x3d4   :  { %v2416_v29 = vmax.f32 %v2288_v4, 0.0  ;;  %v3425_v61 = vmax.f32 %v3297_v54, 0.0  ;;  %v2290_v15 = vadd.f32 %v10654_v31, %v2144_v48  ;;  %v3299_v49 = vadd.f32 %v10657_v33, %v3153_v27  ;;  %v1991_v21 = vpop.f32.mrb[162].mxu0  ;;  %v2999_v44 = vpop.f32.mrb[210].mxu1 }
 0x3d5   :  { %v2417_v1 = vmax.f32 %v2289_v34, 0.0  ;;  %v3426_v52 = vmax.f32 %v3298_v23, 0.0  ;;  %v2145_v63 = vmul.f32 %v10646_v25, %v1983_v41  ;;  %v3154_v11 = vmul.f32 %v10649_v30, %v2991_v35  ;;  %v1993_v51 = vpop.f32.mrb[163].mxu0  ;;  %v3001_v55 = vpop.f32.mrb[211].mxu1 }
 0x3d6   :  { %v2515_v0 = vmax.f32 %v2514_v59, %v2416_v29  ;;  %v3524_v17 = vmax.f32 %v3523_v12, %v3425_v61  ;;  %v2418_v16 = vmax.f32 %v2290_v15, 0.0  ;;  %v3427_v57 = vmax.f32 %v3299_v49, 0.0 }
 0x3d7   :  { %v2546_v10 = vmax.f32 %v2545_v32, %v2417_v1  ;;  %v3555_v37 = vmax.f32 %v3554_v42, %v3426_v52  ;;  %v2291_v28 = vadd.f32 %v10660_v38, %v2145_v63  ;;  %v3300_v18 = vadd.f32 %v10663_v43, %v3154_v11  ;;  %3954 = vmatmul.mubr.bf16.gmra.mrb[12].mxu0 %v12931_v26 }
 0x3d8   :  { %v2516_v39 = vmax.f32 %v2515_v0, %v2418_v16  ;;  %v3525_v13 = vmax.f32 %v3524_v17, %v3427_v57  ;;  %v2146_v41 = vmul.f32 %v10640_v22, %v1987_v5  ;;  %v3155_v35 = vmul.f32 %v10643_v24, %v2995_v8  ;;  %4964 = vmatmul.mubr.bf16.gmra.mrb[60].mxu1 %v12931_v26 }
 0x3d9   :  { %v2419_v56 = vmax.f32 %v2291_v28, 0.0  ;;  %v3428_v59 = vmax.f32 %v3300_v18, 0.0  ;;  %v2147_v12 = vmul.f32 %v10646_v25, %v1989_v19  ;;  %v3156_v36 = vmul.f32 %v10649_v30, %v2997_v40  ;;  %3963 = vmatprep.mubr.bf16.mxu0 %v12928_v9  ;;  %4973 = vmatprep.mubr.bf16.mxu1 %v12928_v9 }
 0x3da   :  { %v2292_v46 = vadd.f32 %v10654_v31, %v2146_v41  ;;  %v3301_v60 = vadd.f32 %v10657_v33, %v3155_v35  ;;  %v2148_v53 = vmul.f32 %v10640_v22, %v1991_v21  ;;  %v3157_v7 = vmul.f32 %v10643_v24, %v2999_v44  ;;  %v1997_v3 = vpop.f32.mrb[164].mxu0  ;;  %v3005_v4 = vpop.f32.mrb[212].mxu1 }
 0x3db   :  { %v2547_v54 = vmax.f32 %v2546_v10, %v2419_v56  ;;  %v3556_v48 = vmax.f32 %v3555_v37, %v3428_v59  ;;  %v2293_v27 = vadd.f32 %v10660_v38, %v2147_v12  ;;  %v3302_v5 = vadd.f32 %v10663_v43, %v3156_v36  ;;  %v1999_v8 = vpop.f32.mrb[165].mxu0  ;;  %v3007_v32 = vpop.f32.mrb[213].mxu1  ;;  %v12932_v37 = vld [vmem:[#allocation20_spill] sm:$0xff] }
 0x3dc   :  { %v2420_v42 = vmax.f32 %v2292_v46, 0.0  ;;  %v3429_v34 = vmax.f32 %v3301_v60, 0.0  ;;  %v2294_v23 = vadd.f32 %v10654_v31, %v2148_v53  ;;  %v3303_v19 = vadd.f32 %v10657_v33, %v3157_v7  ;;  %v2001_v40 = vpop.f32.mrb[166].mxu0  ;;  %v3009_v29 = vpop.f32.mrb[214].mxu1 }
 0x3dd   :  { %v2421_v61 = vmax.f32 %v2293_v27, 0.0  ;;  %v3430_v15 = vmax.f32 %v3302_v5, 0.0  ;;  %v2149_v49 = vmul.f32 %v10646_v25, %v1993_v51  ;;  %v3158_v21 = vmul.f32 %v10649_v30, %v3001_v55  ;;  %v2003_v44 = vpop.f32.mrb[167].mxu0  ;;  %v3011_v1 = vpop.f32.mrb[215].mxu1 }
 0x3de   :  { %v2517_v52 = vmax.f32 %v2516_v39, %v2420_v42  ;;  %v3526_v63 = vmax.f32 %v3525_v13, %v3429_v34  ;;  %v2422_v11 = vmax.f32 %v2294_v23, 0.0  ;;  %v3431_v0 = vmax.f32 %v3303_v19, 0.0  ;;  %v8464_v23 = vld [vmem:[%s12877_s6 + $0x8] sm:$0xf] }
 0x3df   :  { %v2548_v17 = vmax.f32 %v2547_v54, %v2421_v61  ;;  %v3557_v16 = vmax.f32 %v3556_v48, %v3430_v15  ;;  %v2295_v57 = vadd.f32 %v10660_v38, %v2149_v49  ;;  %v3304_v10 = vadd.f32 %v10663_v43, %v3158_v21  ;;  %3964 = vmatmul.mubr.bf16.gmra.mrb[16].mxu0 %v12932_v37  ;;  %v11344_v15 = vld [vmem:[%s12877_s6 + $0xc] sm:$0xf] }
 0x3e0   :  { %v2518_v28 = vmax.f32 %v2517_v52, %v2422_v11  ;;  %v3527_v18 = vmax.f32 %v3526_v63, %v3431_v0  ;;  %v2150_v51 = vmul.f32 %v10640_v22, %v1997_v3  ;;  %v3159_v55 = vmul.f32 %v10643_v24, %v3005_v4  ;;  %4974 = vmatmul.mubr.bf16.gmra.mrb[64].mxu1 %v12932_v37  ;;  %v12934_v63 = vld [vmem:[#allocation23_spill] sm:$0xff]  ;;  %v12935_v0 = vld [vmem:[#allocation25_spill] sm:$0xff] }
 0x3e1   :  { %v2423_v26 = vmax.f32 %v2295_v57, 0.0  ;;  %v3432_v39 = vmax.f32 %v3304_v10, 0.0  ;;  %v2151_v13 = vmul.f32 %v10646_v25, %v1999_v8  ;;  %v3160_v41 = vmul.f32 %v10649_v30, %v3007_v32  ;;  %3973 = vmatprep.mubr.bf16.mxu0 %v12928_v9  ;;  %4983 = vmatprep.mubr.bf16.mxu1 %v12928_v9 }
 0x3e2   :  { %v11314_v35 = vunpack.c.l.b16 %v5721_v20  ;;  %v2296_v56 = vadd.f32 %v10654_v31, %v2150_v51  ;;  %v3305_v59 = vadd.f32 %v10657_v33, %v3159_v55  ;;  %v2152_v12 = vmul.f32 %v10640_v22, %v2001_v40  ;;  %v3705_v36 = vpop.f32.mrb[168].mxu0  ;;  %v4715_v46 = vpop.f32.mrb[216].mxu1 }
 0x3e3   :  { %v2549_v60 = vmax.f32 %v2548_v17, %v2423_v26  ;;  %v3558_v53 = vmax.f32 %v3557_v16, %v3432_v39  ;;  %v2297_v7 = vadd.f32 %v10660_v38, %v2151_v13  ;;  %v3306_v3 = vadd.f32 %v10663_v43, %v3160_v41  ;;  %v11321_v4 = vpop.f32.mrb[169].mxu0  ;;  %v11323_v54 = vpop.f32.mrb[217].mxu1 }
 0x3e4   :  { %v2424_v2 = vmax.f32 %v2296_v56, 0.0  ;;  %v3433_v20 = vmax.f32 %v3305_v59, 0.0  ;;  %v2298_v48 = vadd.f32 %v10654_v31, %v2152_v12  ;;  %v3161_v27 = vmul.f32 %v10643_v24, %v3009_v29  ;;  %v11327_v5 = vpop.f32.mrb[170].mxu0  ;;  %v11329_v22 = vpop.f32.mrb[218].mxu1 }
 0x3e5   :  { %v2425_v8 = vmax.f32 %v2297_v7, 0.0  ;;  %v3434_v32 = vmax.f32 %v3306_v3, 0.0  ;;  %v2153_v42 = vmul.f32 %v10646_v25, %v2003_v44  ;;  %v3162_v34 = vmul.f32 %v10649_v30, %v3011_v1  ;;  %v11336_v19 = vpop.f32.mrb[171].mxu0  ;;  %v11338_v40 = vpop.f32.mrb[219].mxu1  ;;  %v12933_v44 = vld [vmem:[#allocation19_spill] sm:$0xff] }
 0x3e6   :  { %v2519_v31 = vmax.f32 %v2518_v28, %v2424_v2  ;;  %v3528_v24 = vmax.f32 %v3527_v18, %v3433_v20  ;;  %v2426_v29 = vmax.f32 %v2298_v48, 0.0  ;;  %v3307_v61 = vadd.f32 %v10657_v33, %v3161_v27 }
 0x3e7   :  { %v2550_v25 = vmax.f32 %v2549_v60, %v2425_v8  ;;  %v3559_v30 = vmax.f32 %v3558_v53, %v3434_v32  ;;  %v2299_v49 = vadd.f32 %v10660_v38, %v2153_v42  ;;  %v3308_v21 = vadd.f32 %v10663_v43, %v3162_v34  ;;  %3974 = vmatmul.mubr.bf16.gmra.mrb[20].mxu0 %v12933_v44  ;;  %v12936_v53 = vld [vmem:[#allocation24_spill] sm:$0xff]  ;;  %v12937_v8 = vld [vmem:[#allocation26_spill] sm:$0xff] }
 0x3e8   :  { %v2520_v1 = vmax.f32 %v2519_v31, %v2426_v29  ;;  %v3435_v52 = vmax.f32 %v3307_v61, 0.0  ;;  %v4030_v11 = vrot.slane %v8464_v23, %v12934_v63  ;;  %v4176_v17 = vrot.slane %v8464_v23, %v12935_v0  ;;  %4984 = vmatmul.mubr.bf16.gmra.mrb[68].mxu1 %v12933_v44  ;;  %3983 = vmatprep.mubr.bf16.mxu0 %v12928_v9 }
 0x3e9   :  { %v2427_v33 = vmax.f32 %v2299_v49, 0.0  ;;  %v3436_v16 = vmax.f32 %v3308_v21, 0.0  ;;  %v5040_v57 = vrot.slane %v11344_v15, %v12934_v63  ;;  %v5186_v38 = vrot.slane %v11344_v15, %v12935_v0  ;;  %4993 = vmatprep.mubr.bf16.mxu1 %v12928_v9 }
 0x3ea   :  { %v5613_v43 = vrot.slane %v2520_v1, 4  ;;  %v3529_v10 = vmax.f32 %v3528_v24, %v3435_v52  ;;  %v11359_v37 = vrot.slane %v4030_v11, %v12934_v63  ;;  %v11362_v28 = vrot.slane %v4176_v17, %v12935_v0  ;;  %v11364_v18 = vpop.f32.mrb[172].mxu0  ;;  %v11366_v51 = vpop.f32.mrb[220].mxu1 }
 0x3eb   :  { %v2551_v55 = vmax.f32 %v2550_v25, %v2427_v33  ;;  %v3560_v26 = vmax.f32 %v3559_v30, %v3436_v16  ;;  %v11369_v39 = vrot.slane %v5040_v57, %v12934_v63  ;;  %v11372_v13 = vrot.slane %v5186_v38, %v12935_v0  ;;  %v11374_v41 = vpop.f32.mrb[173].mxu0  ;;  %v11376_v56 = vpop.f32.mrb[221].mxu1 }
 0x3ec   :  { %v5614_v59 = vmax.f32 %v2520_v1, %v5613_v43  ;;  %v5709_v12 = vrot.slane %v3529_v10, 4  ;;  %v4045_v60 = vmul.f32 %v11359_v37, %v3705_v36  ;;  %v4034_v7 = vrot.slane %v8464_v23, %v12936_v53  ;;  %v11380_v3 = vpop.f32.mrb[174].mxu0  ;;  %v11382_v2 = vpop.f32.mrb[222].mxu1 }
 0x3ed   :  { %v5619_v20 = vrot.slane %v2551_v55, 4  ;;  %v5715_v48 = vrot.slane %v3560_v26, 4  ;;  %v5055_v27 = vmul.f32 %v11369_v39, %v4715_v46  ;;  %v4180_v32 = vrot.slane %v8464_v23, %v12937_v8  ;;  %v11386_v42 = vpop.f32.mrb[175].mxu0  ;;  %v11388_v34 = vpop.f32.mrb[223].mxu1  ;;  %v12938_v23 = vld [vmem:[#allocation22_spill] sm:$0xff] }
 0x3ee   :  { %v5615_v31 = vrot.slane %v5614_v59, 2  ;;  %v5710_v24 = vmax.f32 %v3529_v10, %v5709_v12  ;;  %v4191_v36 = vadd.f32 %v11362_v28, %v4045_v60  ;;  %v11392_v29 = vrot.slane %v4034_v7, %v12934_v63 }
 0x3ef   :  { %v5620_v61 = vmax.f32 %v2551_v55, %v5619_v20  ;;  %v5716_v25 = vmax.f32 %v3560_v26, %v5715_v48  ;;  %v11395_v30 = vadd.f32 %v11372_v13, %v5055_v27  ;;  %v11398_v46 = vrot.slane %v4180_v32, %v12935_v0  ;;  %3984 = vmatmul.mubr.bf16.gmra.mrb[24].mxu0 %v12938_v23 }
 0x3f0   :  { %v5616_v49 = vmax.f32 %v5614_v59, %v5615_v31  ;;  %v5711_v21 = vrot.slane %v5710_v24, 2  ;;  %v4319_v44 = vmax.f32 %v4191_v36, 0.0  ;;  %v4046_v1 = vmul.f32 %v11392_v29, %v11321_v4  ;;  %4994 = vmatmul.mubr.bf16.gmra.mrb[72].mxu1 %v12938_v23  ;;  %3993 = vmatprep.mubr.bf16.mxu0 %v12928_v9 }
 0x3f1   :  { %v5621_v52 = vrot.slane %v5620_v61, 2  ;;  %v5717_v11 = vrot.slane %v5716_v25, 2  ;;  %v5329_v17 = vmax.f32 %v11395_v30, 0.0  ;;  %v5044_v33 = vrot.slane %v11344_v15, %v12936_v53  ;;  %5003 = vmatprep.mubr.bf16.mxu1 %v12928_v9  ;;  %v9511_v53 = vld [vmem:[#allocation8 + $0x500] ss:$16 sps:$4 sm:$0xff]  }
 0x3f2   :  { %v5617_v16 = vrot.slane %v5616_v49, 1  ;;  %v5712_v57 = vmax.f32 %v5710_v24, %v5711_v21  ;;  %v4192_v38 = vadd.f32 %v11398_v46, %v4046_v1  ;;  %v5190_v4 = vrot.slane %v11344_v15, %v12937_v8  ;;  %v11412_v43 = vpop.f32.mrb[176].mxu0  ;;  %v11414_v10 = vpop.f32.mrb[224].mxu1 }
 0x3f3   :  { %v11416_v55 = vmax.f32 %v5620_v61, %v5621_v52  ;;  %v11418_v26 = vmax.f32 %v5716_v25, %v5717_v11  ;;  %v11421_v59 = vrot.slane %v5044_v33, %v12934_v63  ;;  %v4047_v12 = vmul.f32 %v11359_v37, %v11327_v5  ;;  %v11425_v60 = vpop.f32.mrb[177].mxu0  ;;  %v11427_v7 = vpop.f32.mrb[225].mxu1 }
 0x3f4   :  { %v5618_v20 = vmax.f32 %v5616_v49, %v5617_v16  ;;  %v5713_v15 = vrot.slane %v5712_v57, 1  ;;  %v4320_v48 = vmax.f32 %v4192_v38, 0.0  ;;  %v11430_v27 = vrot.slane %v5190_v4, %v12935_v0  ;;  %v11432_v32 = vpop.f32.mrb[178].mxu0  ;;  %v11434_v31 = vpop.f32.mrb[226].mxu1  ;;  %v12939_v16 = vld [vmem:[#allocation21_spill] sm:$0xff] }
 0x3f5   :  { %v5719_v36 = vrot.slane %v11418_v26, 1  ;;  %v5056_v5 = vmul.f32 %v11421_v59, %v11323_v54  ;;  %v4193_v61 = vadd.f32 %v11362_v28, %v4047_v12  ;;  %v11441_v25 = vpop.f32.mrb[179].mxu0  ;;  %v11443_v30 = vpop.f32.mrb[227].mxu1  ;;  %v5057_v21 = vmul.f32 %v11369_v39, %v11329_v22 }
 0x3f6   :  { %v5627_v23 = vpack.c.bf16 %v5618_v20, %v5618_v20  ;;  %v5714_v49 = vmax.f32 %v5712_v57, %v5713_v15  ;;  %v4048_v1 = vmul.f32 %v11392_v29, %v11336_v19  ;;  %v5058_v54 = vmul.f32 %v11421_v59, %v11338_v40 }
 0x3f7   :  { %v5202_v52 = vadd.f32 %v11430_v27, %v5056_v5  ;;  %v4321_v11 = vmax.f32 %v4193_v61, 0.0  ;;  %v4049_v33 = vmul.f32 %v11359_v37, %v11364_v18  ;;  %3994 = vmatmul.mubr.bf16.gmra.mrb[28].mxu0 %v12939_v16  ;;  %v5203_v57 = vadd.f32 %v11372_v13, %v5057_v21 }
 0x3f8   :  { %v6212_v38 = vunpack.c.l.b16 %v5627_v23  ;;  %v5723_v4 = vpack.c.bf16 %v5714_v49, %v5714_v49  ;;  %v4194_v22 = vadd.f32 %v11398_v46, %v4048_v1  ;;  %5004 = vmatmul.mubr.bf16.gmra.mrb[76].mxu1 %v12939_v16  ;;  %4003 = vmatprep.mubr.bf16.mxu0 %v12928_v9  ;;  %v5204_v20 = vadd.f32 %v11430_v27, %v5058_v54 }
 0x3f9   :  { %v5330_v19 = vmax.f32 %v5202_v52, 0.0  ;;  %v4447_v12 = vmax.f32 %v4319_v44, %v4321_v11  ;;  %v4195_v40 = vadd.f32 %v11362_v28, %v4049_v33  ;;  %5013 = vmatprep.mubr.bf16.mxu1 %v12928_v9  ;;  %v5331_v5 = vmax.f32 %v5203_v57, 0.0 }
 0x3fa   :  { %v6214_v18 = vsel %vm5797_vm2, %v6212_v38, %v11031_v45  ;;  %v5795_v15 = vunpack.c.l.b16 %v5723_v4  ;;  %v4322_v61 = vmax.f32 %v4194_v22, 0.0  ;;  %v11464_v23 = vpop.f32.mrb[180].mxu0  ;;  %v11466_v49 = vpop.f32.mrb[228].mxu1  ;;  %v5332_v1 = vmax.f32 %v5204_v20, 0.0 }
 0x3fb   :  { %v11468_v21 = vpack.c.b16 %v6214_v18, %v6214_v18  ;;  %v4323_v44 = vmax.f32 %v4195_v40, 0.0  ;;  %v5059_v52 = vmul.f32 %v11369_v39, %v11366_v51  ;;  %v11472_v11 = vpop.f32.mrb[181].mxu0  ;;  %v11474_v54 = vpop.f32.mrb[229].mxu1  ;;  %v5457_v33 = vmax.f32 %v5329_v17, %v5331_v5 }
 0x3fc   :  { %v5798_v45 = vsel %vm5797_vm2, %v5795_v15, %v11314_v35  ;;  %v4478_v16 = vmax.f32 %v4320_v48, %v4322_v61  ;;  %v4050_v38 = vmul.f32 %v11392_v29, %v11374_v41  ;;  %v11480_v4 = vpop.f32.mrb[182].mxu0  ;;  %v11482_v57 = vpop.f32.mrb[230].mxu1  ;;  %v5488_v20 = vmax.f32 %v5330_v19, %v5332_v1 }
 0x3fd   :  { %v11484_v22 = vpack.c.b16 %v5798_v45, %v5798_v45  ;;  %v4448_v51 = vmax.f32 %v4447_v12, %v4323_v44  ;;  %v5205_v40 = vadd.f32 %v11372_v13, %v5059_v52  ;;  %v11487_v18 = vpop.f32.mrb[183].mxu0  ;;  %v11489_v24 = vpop.f32.mrb[231].mxu1  ;;  %v5060_v17 = vmul.f32 %v11421_v59, %v11376_v56 }
 0x3fe   :  { %v4196_v35 = vadd.f32 %v11398_v46, %v4050_v38  ;;  %v4051_v41 = vmul.f32 %v11359_v37, %v11380_v3  ;;  %v5061_v48 = vmul.f32 %v11369_v39, %v11382_v2  ;;  %v4052_v19 = vmul.f32 %v11392_v29, %v11386_v42 }
 0x3ff   :  { %v5333_v15 = vmax.f32 %v5205_v40, 0.0  ;;  %v5062_v12 = vmul.f32 %v11421_v59, %v11388_v34  ;;  %v4053_v5 = vmul.f32 %v11359_v37, %v11412_v43  ;;  %4004 = vmatmul.mubr.bf16.gmra.mrb[32].mxu0 %v10569_v50  ;;  %v5206_v56 = vadd.f32 %v11430_v27, %v5060_v17 }
 0x400   :  { %v4324_v61 = vmax.f32 %v4196_v35, 0.0  ;;  %v4197_v3 = vadd.f32 %v11362_v28, %v4051_v41  ;;  %v5207_v1 = vadd.f32 %v11372_v13, %v5061_v48  ;;  %5014 = vmatmul.mubr.bf16.gmra.mrb[80].mxu1 %v10569_v50  ;;  %4013 = vmatprep.mubr.bf16.mxu0 %v12928_v9  ;;  %v4198_v42 = vadd.f32 %v11398_v46, %v4052_v19 }
 0x401   :  { %v5458_v2 = vmax.f32 %v5457_v33, %v5333_v15  ;;  %v5208_v34 = vadd.f32 %v11430_v27, %v5062_v12  ;;  %v4199_v43 = vadd.f32 %v11362_v28, %v4053_v5  ;;  %5023 = vmatprep.mubr.bf16.mxu1 %v12928_v9  ;;  %v5334_v52 = vmax.f32 %v5206_v56, 0.0 }
 0x402   :  { %v4479_v44 = vmax.f32 %v4478_v16, %v4324_v61  ;;  %v4325_v45 = vmax.f32 %v4197_v3, 0.0  ;;  %v5335_v38 = vmax.f32 %v5207_v1, 0.0  ;;  %v11514_v40 = vpop.f32.mrb[184].mxu0  ;;  %v11516_v35 = vpop.f32.mrb[232].mxu1  ;;  %v4326_v50 = vmax.f32 %v4198_v42, 0.0 }
 0x403   :  { %v5336_v17 = vmax.f32 %v5208_v34, 0.0  ;;  %v4327_v41 = vmax.f32 %v4199_v43, 0.0  ;;  %v5063_v33 = vmul.f32 %v11369_v39, %v11414_v10  ;;  %v11520_v48 = vpop.f32.mrb[185].mxu0  ;;  %v11522_v15 = vpop.f32.mrb[233].mxu1  ;;  %v5489_v19 = vmax.f32 %v5488_v20, %v5334_v52 }
 0x404   :  { %v4449_v9 = vmax.f32 %v4448_v51, %v4325_v45  ;;  %v5459_v16 = vmax.f32 %v5458_v2, %v5335_v38  ;;  %v4054_v12 = vmul.f32 %v11392_v29, %v11425_v60  ;;  %v11526_v5 = vpop.f32.mrb[186].mxu0  ;;  %v11528_v61 = vpop.f32.mrb[234].mxu1  ;;  %v4480_v56 = vmax.f32 %v4479_v44, %v4326_v50 }
 0x405   :  { %v5209_v3 = vadd.f32 %v11372_v13, %v5063_v33  ;;  %v5064_v10 = vmul.f32 %v11421_v59, %v11427_v7  ;;  %v4055_v1 = vmul.f32 %v11359_v37, %v11432_v32  ;;  %v11535_v42 = vpop.f32.mrb[187].mxu0  ;;  %v11537_v20 = vpop.f32.mrb[235].mxu1  ;;  %v5490_v51 = vmax.f32 %v5489_v19, %v5336_v17 }
 0x406   :  { %v4450_v2 = vmax.f32 %v4449_v9, %v4327_v41  ;;  %v4200_v60 = vadd.f32 %v11398_v46, %v4054_v12  ;;  %v5065_v34 = vmul.f32 %v11369_v39, %v11434_v31  ;;  %v4056_v7 = vmul.f32 %v11392_v29, %v11441_v25 }
 0x407   :  { %v5337_v43 = vmax.f32 %v5209_v3, 0.0  ;;  %v5210_v44 = vadd.f32 %v11430_v27, %v5064_v10  ;;  %v4201_v52 = vadd.f32 %v11362_v28, %v4055_v1  ;;  %4014 = vmatmul.mubr.bf16.gmra.mrb[36].mxu0 %v10567_v47  ;;  %v5066_v38 = vmul.f32 %v11421_v59, %v11443_v30 }
 0x408   :  { %v4328_v32 = vmax.f32 %v4200_v60, 0.0  ;;  %v5211_v45 = vadd.f32 %v11372_v13, %v5065_v34  ;;  %v4057_v50 = vmul.f32 %v11359_v37, %v11464_v23  ;;  %5024 = vmatmul.mubr.bf16.gmra.mrb[84].mxu1 %v10567_v47  ;;  %v4202_v33 = vadd.f32 %v11398_v46, %v4056_v7 }
 0x409   :  { %v5460_v31 = vmax.f32 %v5459_v16, %v5337_v43  ;;  %v5338_v17 = vmax.f32 %v5210_v44, 0.0  ;;  %v4329_v41 = vmax.f32 %v4201_v52, 0.0  ;;  %v5212_v9 = vadd.f32 %v11430_v27, %v5066_v38 }
 0x40a   :  { %v4481_v19 = vmax.f32 %v4480_v56, %v4328_v32  ;;  %v5339_v25 = vmax.f32 %v5211_v45, 0.0  ;;  %v4203_v12 = vadd.f32 %v11362_v28, %v4057_v50  ;;  %v11556_v3 = vpop.f32.mrb[188].mxu0  ;;  %v11558_v10 = vpop.f32.mrb[236].mxu1  ;;  %v4330_v23 = vmax.f32 %v4202_v33, 0.0 }
 0x40b   :  { %v5491_v30 = vmax.f32 %v5490_v51, %v5338_v17  ;;  %v4451_v1 = vmax.f32 %v4450_v2, %v4329_v41  ;;  %v5067_v47 = vmul.f32 %v11369_v39, %v11466_v49  ;;  %v11562_v16 = vpop.f32.mrb[189].mxu0  ;;  %v11564_v60 = vpop.f32.mrb[237].mxu1  ;;  %v5340_v34 = vmax.f32 %v5212_v9, 0.0 }
 0x40c   :  { %v5461_v56 = vmax.f32 %v5460_v31, %v5339_v25  ;;  %v4331_v43 = vmax.f32 %v4203_v12, 0.0  ;;  %v4058_v44 = vmul.f32 %v11392_v29, %v11472_v11  ;;  %v11568_v52 = vpop.f32.mrb[190].mxu0  ;;  %v11570_v7 = vpop.f32.mrb[238].mxu1  ;;  %v4482_v51 = vmax.f32 %v4481_v19, %v4330_v23 }
 0x40d   :  { %v5213_v2 = vadd.f32 %v11372_v13, %v5067_v47  ;;  %v5068_v49 = vmul.f32 %v11421_v59, %v11474_v54  ;;  %v4059_v32 = vmul.f32 %v11359_v37, %v11480_v4  ;;  %v11577_v45 = vpop.f32.mrb[191].mxu0  ;;  %v11579_v38 = vpop.f32.mrb[239].mxu1  ;;  %v5492_v50 = vmax.f32 %v5491_v30, %v5340_v34 }
 0x40e   :  { %v4452_v31 = vmax.f32 %v4451_v1, %v4331_v43  ;;  %v4204_v11 = vadd.f32 %v11398_v46, %v4058_v44  ;;  %v5069_v17 = vmul.f32 %v11369_v39, %v11482_v57  ;;  %v4060_v54 = vmul.f32 %v11392_v29, %v11487_v18 }
 0x40f   :  { %v5341_v41 = vmax.f32 %v5213_v2, 0.0  ;;  %v5214_v33 = vadd.f32 %v11430_v27, %v5068_v49  ;;  %v4205_v19 = vadd.f32 %v11362_v28, %v4059_v32  ;;  %v5070_v9 = vmul.f32 %v11421_v59, %v11489_v24 }
 0x410   :  { %v4332_v4 = vmax.f32 %v4204_v11, 0.0  ;;  %v5215_v25 = vadd.f32 %v11372_v13, %v5069_v17  ;;  %v4061_v12 = vmul.f32 %v11359_v37, %v11514_v40  ;;  %v4206_v23 = vadd.f32 %v11398_v46, %v4060_v54 }
 0x411   :  { %v5462_v30 = vmax.f32 %v5461_v56, %v5341_v41  ;;  %v5342_v1 = vmax.f32 %v5214_v33, 0.0  ;;  %v4333_v57 = vmax.f32 %v4205_v19, 0.0  ;;  %v5216_v43 = vadd.f32 %v11430_v27, %v5070_v9 }
 0x412   :  { %v4483_v47 = vmax.f32 %v4482_v51, %v4332_v4  ;;  %v5343_v34 = vmax.f32 %v5215_v25, 0.0  ;;  %v4207_v18 = vadd.f32 %v11362_v28, %v4061_v12  ;;  %v11596_v44 = vpop.f32.mrb[192].mxu0  ;;  %v11598_v2 = vpop.f32.mrb[240].mxu1  ;;  %v4334_v32 = vmax.f32 %v4206_v23, 0.0 }
 0x413   :  { %v5493_v49 = vmax.f32 %v5492_v50, %v5342_v1  ;;  %v4453_v24 = vmax.f32 %v4452_v31, %v4333_v57  ;;  %v5071_v40 = vmul.f32 %v11369_v39, %v11516_v35  ;;  %v11602_v56 = vpop.f32.mrb[193].mxu0  ;;  %v11604_v11 = vpop.f32.mrb[241].mxu1  ;;  %v5344_v17 = vmax.f32 %v5216_v43, 0.0 }
 0x414   :  { %v5463_v51 = vmax.f32 %v5462_v30, %v5343_v34  ;;  %v4335_v41 = vmax.f32 %v4207_v18, 0.0  ;;  %v4062_v33 = vmul.f32 %v11392_v29, %v11520_v48  ;;  %v11608_v19 = vpop.f32.mrb[194].mxu0  ;;  %v11610_v54 = vpop.f32.mrb[242].mxu1  ;;  %v4484_v50 = vmax.f32 %v4483_v47, %v4334_v32 }
 0x415   :  { %v5217_v31 = vadd.f32 %v11372_v13, %v5071_v40  ;;  %v5072_v35 = vmul.f32 %v11421_v59, %v11522_v15  ;;  %v4063_v4 = vmul.f32 %v11359_v37, %v11526_v5  ;;  %v11617_v25 = vpop.f32.mrb[195].mxu0  ;;  %v11619_v9 = vpop.f32.mrb[243].mxu1  ;;  %v5494_v12 = vmax.f32 %v5493_v49, %v5344_v17 }
 0x416   :  { %v4454_v30 = vmax.f32 %v4453_v24, %v4335_v41  ;;  %v4208_v48 = vadd.f32 %v11398_v46, %v4062_v33  ;;  %v5073_v1 = vmul.f32 %v11369_v39, %v11528_v61  ;;  %v4064_v15 = vmul.f32 %v11392_v29, %v11535_v42 }
 0x417   :  { %v5345_v57 = vmax.f32 %v5217_v31, 0.0  ;;  %v5218_v23 = vadd.f32 %v11430_v27, %v5072_v35  ;;  %v4209_v47 = vadd.f32 %v11362_v28, %v4063_v4  ;;  %v5074_v43 = vmul.f32 %v11421_v59, %v11537_v20 }
 0x418   :  { %v4336_v5 = vmax.f32 %v4208_v48, 0.0  ;;  %v5219_v34 = vadd.f32 %v11372_v13, %v5073_v1  ;;  %v5708_v18 = vmax.f32 %v11011_v6, %v5707_v58  ;;  %v4210_v32 = vadd.f32 %v11398_v46, %v4064_v15 }
 0x419   :  { %v5464_v49 = vmax.f32 %v5463_v51, %v5345_v57  ;;  %v5346_v61 = vmax.f32 %v5218_v23, 0.0  ;;  %v4337_v24 = vmax.f32 %v4209_v47, 0.0  ;;  %v5220_v41 = vadd.f32 %v11430_v27, %v5074_v43 }
 0x41a   :  { %v4485_v40 = vmax.f32 %v4484_v50, %v4336_v5  ;;  %v5347_v17 = vmax.f32 %v5219_v34, 0.0  ;;  %v5720_v42 = vmax.f32 %v11418_v26, %v5719_v36  ;;  %v11639_v33 = vpop.f32.mrb[196].mxu0  ;;  %v11641_v20 = vpop.f32.mrb[244].mxu1  ;;  %v4338_v6 = vmax.f32 %v4210_v32, 0.0 }
 0x41b   :  { %v5495_v31 = vmax.f32 %v5494_v12, %v5346_v61  ;;  %v4455_v35 = vmax.f32 %v4454_v30, %v4337_v24  ;;  %v5722_v58 = vpack.c.bf16 %v5708_v18, %v5708_v18  ;;  %v11643_v51 = vpop.f32.mrb[197].mxu0  ;;  %v11645_v4 = vpop.f32.mrb[245].mxu1  ;;  %v5348_v48 = vmax.f32 %v5220_v41, 0.0 }
 0x41c   :  { %v5465_v50 = vmax.f32 %v5464_v49, %v5347_v17  ;;  %v5724_v1 = vpack.c.bf16 %v5720_v42, %v5720_v42  ;;  %v4065_v57 = vmul.f32 %v11359_v37, %v11556_v3  ;;  %v11649_v23 = vpop.f32.mrb[198].mxu0  ;;  %v11651_v26 = vpop.f32.mrb[246].mxu1  ;;  %v4486_v36 = vmax.f32 %v4485_v40, %v4338_v6  ;;  %v9367_v6 = vld [vmem:[#allocation8] ss:$16 sps:$4 sm:$0xff]  }
 0x41d   :  { %v5794_v47 = vunpack.c.l.b16 %v5722_v58  ;;  %v5075_v12 = vmul.f32 %v11369_v39, %v11558_v10  ;;  %v4066_v30 = vmul.f32 %v11392_v29, %v11562_v16  ;;  %v11657_v15 = vpop.f32.mrb[199].mxu0  ;;  %v11659_v5 = vpop.f32.mrb[247].mxu1  ;;  %v5496_v34 = vmax.f32 %v5495_v31, %v5348_v48  ;;  %v9370_v58 = vld [vmem:[#allocation8 + $0x8] ss:$16 sps:$4 sm:$0xff]  }
 0x41e   :  { %v5796_v43 = vunpack.c.l.b16 %v5724_v1  ;;  %v4211_v3 = vadd.f32 %v11362_v28, %v4065_v57  ;;  %v5076_v18 = vmul.f32 %v11421_v59, %v11564_v60  ;;  %v4067_v10 = vmul.f32 %v11359_v37, %v11568_v52  ;;  %v9375_v57 = vld [vmem:[#allocation8 + $0x24] ss:$16 sps:$4 sm:$0xff]  }
 0x41f   :  { %v5221_v49 = vadd.f32 %v11372_v13, %v5075_v12  ;;  %v4212_v61 = vadd.f32 %v11398_v46, %v4066_v30  ;;  %v5077_v16 = vmul.f32 %v11369_v39, %v11570_v7  ;;  %v4068_v17 = vmul.f32 %v11392_v29, %v11577_v45 }
 0x420   :  { %v5799_v24 = vsel %vm5797_vm2, %v5796_v43, %v5794_v47  ;;  %v4339_v32 = vmax.f32 %v4211_v3, 0.0  ;;  %v5222_v40 = vadd.f32 %v11430_v27, %v5076_v18  ;;  %v4213_v31 = vadd.f32 %v11362_v28, %v4067_v10  ;;  %v9378_v18 = vld [vmem:[#allocation8 + $0x2c] ss:$16 sps:$4 sm:$0xff]  }
 0x421   :  { %v5801_v41 = vpack.c.b16 %v5799_v24, %v5799_v24  ;;  %v5349_v60 = vmax.f32 %v5221_v49, 0.0  ;;  %v4340_v42 = vmax.f32 %v4212_v61, 0.0  ;;  %v5223_v1 = vadd.f32 %v11372_v13, %v5077_v16 }
 0x422   :  { %v4456_v48 = vmax.f32 %v4455_v35, %v4339_v32  ;;  %v5350_v52 = vmax.f32 %v5222_v40, 0.0  ;;  %v4214_v7 = vadd.f32 %v11398_v46, %v4068_v17  ;;  %v11677_v47 = vpop.f32.mrb[200].mxu0  ;;  %v11679_v12 = vpop.f32.mrb[248].mxu1  ;;  %v4341_v43 = vmax.f32 %v4213_v31, 0.0  ;;  %v9373_v17 = vld [vmem:[#allocation8 + $0x20] ss:$16 sps:$4 sm:$0xff]  }
 0x423   :  { %6156 = vmatprep.mubr.bf16.mxu0 %v5801_v41  ;;  %6197 = vmatprep.mubr.bf16.mxu1 %v5801_v41  ;;  %v5466_v45 = vmax.f32 %v5465_v50, %v5349_v60  ;;  %v4487_v30 = vmax.f32 %v4486_v36, %v4340_v42  ;;  %v5078_v3 = vmul.f32 %v11421_v59, %v11579_v38  ;;  %v11683_v35 = vpop.f32.mrb[201].mxu0  ;;  %v11685_v49 = vpop.f32.mrb[249].mxu1  ;;  %v5351_v10 = vmax.f32 %v5223_v1, 0.0  ;;  %v9376_v41 = vld [vmem:[#allocation8 + $0x28] ss:$16 sps:$4 sm:$0xff]  }
 0x424   :  { %v5497_v61 = vmax.f32 %v5496_v34, %v5350_v52  ;;  %v4342_v16 = vmax.f32 %v4214_v7, 0.0  ;;  %6157 = vmatmul.mubr.bf16.vlgmr.msra.gmra.mrb[40].mxu0 %v11484_v22  ;;  %6198 = vmatmul.mubr.bf16.vlgmr.msra.gmra.mrb[88].mxu1 %v11484_v22  ;;  %v5612_v50 = vmax.f32 %v11009_v14, %v5611_v62  ;;  %v11692_v36 = vpop.f32.mrb[202].mxu0  ;;  %v11694_v24 = vpop.f32.mrb[250].mxu1  ;;  %v4457_v38 = vmax.f32 %v4456_v48, %v4341_v43  ;;  %v9381_v48 = vld [vmem:[#allocation8 + $0x44] ss:$16 sps:$4 sm:$0xff]  }
 0x425   :  { %v5224_v32 = vadd.f32 %v11430_v27, %v5078_v3  ;;  %6541 = vmatpush1.bf16.msra.mxu0 %v9367_v6  ;;  %6582 = vmatpush1.bf16.msra.mxu1 %v9370_v58  ;;  %v12940_v34 = vrot.slane %v11416_v55, 1  ;;  %v11700_v22 = vpop.f32.mrb[203].mxu0  ;;  %v11702_v60 = vpop.f32.mrb[251].mxu1  ;;  %v5467_v14 = vmax.f32 %v5466_v45, %v5351_v10  ;;  %v4069_v31 = vmul.f32 %v11359_v37, %v11596_v44  ;;  %v9384_v6 = vld [vmem:[#allocation8 + $0x4c] ss:$16 sps:$4 sm:$0xff]  }
 0x426   :  { %v4488_v62 = vmax.f32 %v4487_v30, %v4342_v16  ;;  %v5626_v42 = vpack.c.bf16 %v5612_v50, %v5612_v50  ;;  %6542 = vmatprep.subr.bf16.mxu0 %v9375_v57  ;;  %6583 = vmatprep.subr.bf16.mxu1 %v9378_v18  ;;  %v4070_v1 = vmul.f32 %v11392_v29, %v11602_v56  ;;  %v9382_v50 = vld [vmem:[#allocation8 + $0x48] ss:$16 sps:$4 sm:$0xff]  }
 0x427   :  { %v5624_v40 = vmax.f32 %v11416_v55, %v12940_v34  ;;  %v5352_v58 = vmax.f32 %v5224_v32, 0.0  ;;  %v5079_v55 = vmul.f32 %v11369_v39, %v11598_v2  ;;  %v4215_v45 = vadd.f32 %v11362_v28, %v4069_v31  ;;  %v9379_v2 = vld [vmem:[#allocation8 + $0x40] ss:$16 sps:$4 sm:$0xff]  }
 0x428   :  { %v6211_v7 = vunpack.c.l.b16 %v5626_v42  ;;  %v5080_v30 = vmul.f32 %v11421_v59, %v11604_v11  ;;  %v4071_v44 = vmul.f32 %v11359_v37, %v11608_v19  ;;  %v4216_v10 = vadd.f32 %v11398_v46, %v4070_v1 }
 0x429   :  { %v5628_v52 = vpack.c.bf16 %v5624_v40, %v5624_v40  ;;  %v5498_v57 = vmax.f32 %v5497_v61, %v5352_v58  ;;  %v5225_v3 = vadd.f32 %v11372_v13, %v5079_v55  ;;  %6543 = vmatpush1.bf16.msra.mxu0 %v9373_v17  ;;  %6584 = vmatpush1.bf16.msra.mxu1 %v9376_v41  ;;  %v4343_v18 = vmax.f32 %v4215_v45, 0.0  ;;  %v9387_v41 = vld [vmem:[#allocation8 + $0x64] ss:$16 sps:$4 sm:$0xff]  }
 0x42a   :  { %v5226_v56 = vadd.f32 %v11430_v27, %v5080_v30  ;;  %v4217_v16 = vadd.f32 %v11362_v28, %v4071_v44  ;;  %v5081_v11 = vmul.f32 %v11369_v39, %v11610_v54  ;;  %6544 = vmatprep.subr.bf16.mxu0 %v9381_v48  ;;  %6585 = vmatprep.subr.bf16.mxu1 %v9384_v6  ;;  %v11721_v19 = vpop.f32.mrb[204].mxu0  ;;  %v11723_v61 = vpop.f32.mrb[252].mxu1  ;;  %v4344_v40 = vmax.f32 %v4216_v10, 0.0  ;;  %v9385_v44 = vld [vmem:[#allocation8 + $0x60] ss:$16 sps:$4 sm:$0xff]  }
 0x42b   :  { %v6213_v43 = vunpack.c.l.b16 %v5628_v52  ;;  %v5353_v34 = vmax.f32 %v5225_v3, 0.0  ;;  %v4072_v17 = vmul.f32 %v11392_v29, %v11617_v25  ;;  %v11728_v42 = vpop.f32.mrb[205].mxu0  ;;  %v11730_v31 = vpop.f32.mrb[253].mxu1  ;;  %v4458_v48 = vmax.f32 %v4457_v38, %v4343_v18  ;;  %v9390_v52 = vld [vmem:[#allocation8 + $0x6c] ss:$16 sps:$4 sm:$0xff]  }
 0x42c   :  { %v5354_v58 = vmax.f32 %v5226_v56, 0.0  ;;  %v4345_v6 = vmax.f32 %v4217_v16, 0.0  ;;  %v11732_v55 = vpop.f32.mrb[206].mxu0  ;;  %v11734_v1 = vpop.f32.mrb[254].mxu1  ;;  %v4489_v45 = vmax.f32 %v4488_v62, %v4344_v40  ;;  %v5227_v30 = vadd.f32 %v11372_v13, %v5081_v11  ;;  %v9393_v56 = vld [vmem:[#allocation8 + $0x84] ss:$16 sps:$4 sm:$0xff]  }
 0x42d   :  { %v6215_v32 = vsel %vm5797_vm2, %v6213_v43, %v6211_v7  ;;  %v5468_v7 = vmax.f32 %v5467_v14, %v5353_v34  ;;  %v4218_v25 = vadd.f32 %v11398_v46, %v4072_v17  ;;  %6545 = vmatpush1.bf16.msra.mxu0 %v9379_v2  ;;  %v11738_v43 = vpop.f32.mrb[207].mxu0  ;;  %v11740_v3 = vpop.f32.mrb[255].mxu1  ;;  %v5082_v18 = vmul.f32 %v11421_v59, %v11619_v9  ;;  %v9388_v11 = vld [vmem:[#allocation8 + $0x68] ss:$16 sps:$4 sm:$0xff]   ;;  %v9396_v34 = vld [vmem:[#allocation8 + $0x8c] ss:$16 sps:$4 sm:$0xff]  }
 0x42e   :  { %v6217_v54 = vpack.c.b16 %v6215_v32, %v6215_v32  ;;  %v5499_v38 = vmax.f32 %v5498_v57, %v5354_v58  ;;  %v4459_v10 = vmax.f32 %v4458_v48, %v4345_v6  ;;  %v5355_v14 = vmax.f32 %v5227_v30, 0.0  ;;  %6586 = vmatpush1.bf16.msra.mxu1 %v9382_v50  ;;  %6546 = vmatprep.subr.bf16.mxu0 %v9387_v41  ;;  %v9391_v41 = vld [vmem:[#allocation8 + $0x80] ss:$16 sps:$4 sm:$0xff]   ;;  %v9399_v6 = vld [vmem:[#allocation8 + $0xa4] ss:$16 sps:$4 sm:$0xff]  }
 0x42f   :  { %v4346_v62 = vmax.f32 %v4218_v25, 0.0  ;;  %v4073_v16 = vmul.f32 %v11359_v37, %v11639_v33  ;;  %v5083_v2 = vmul.f32 %v11369_v39, %v11641_v20  ;;  %v5228_v32 = vadd.f32 %v11430_v27, %v5082_v18  ;;  %6587 = vmatprep.subr.bf16.mxu1 %v9390_v52 }
 0x430   :  { %6572 = vmatprep.mubr.bf16.mxu0 %v6217_v54  ;;  %6613 = vmatprep.mubr.bf16.mxu1 %v6217_v54  ;;  %v4074_v57 = vmul.f32 %v11392_v29, %v11643_v51  ;;  %v5084_v9 = vmul.f32 %v11421_v59, %v11645_v4  ;;  %v4075_v50 = vmul.f32 %v11359_v37, %v11649_v23  ;;  %v9394_v54 = vld [vmem:[#allocation8 + $0x88] ss:$16 sps:$4 sm:$0xff]  }
 0x431   :  { %v5469_v40 = vmax.f32 %v5468_v7, %v5355_v14  ;;  %v4490_v33 = vmax.f32 %v4489_v45, %v4346_v62  ;;  %v4219_v17 = vadd.f32 %v11362_v28, %v4073_v16  ;;  %v5229_v20 = vadd.f32 %v11372_v13, %v5083_v2  ;;  %6547 = vmatpush1.bf16.msra.mxu0 %v9385_v44  ;;  %v9402_v44 = vld [vmem:[#allocation8 + $0xac] ss:$16 sps:$4 sm:$0xff]  }
 0x432   :  { %v5356_v48 = vmax.f32 %v5228_v32, 0.0  ;;  %v4220_v58 = vadd.f32 %v11398_v46, %v4074_v57  ;;  %v5230_v51 = vadd.f32 %v11430_v27, %v5084_v9  ;;  %v4221_v4 = vadd.f32 %v11362_v28, %v4075_v50  ;;  %6548 = vmatprep.subr.bf16.mxu0 %v9393_v56  ;;  %v11760_v23 = vpop.f32.mrb[208].mxu0  ;;  %v11762_v52 = vpop.f32.mrb[0].mxu1  ;;  %6588 = vmatpush1.bf16.msra.mxu1 %v9388_v11  ;;  %v9397_v50 = vld [vmem:[#allocation8 + $0xa0] ss:$16 sps:$4 sm:$0xff]  }
 0x433   :  { %v4347_v7 = vmax.f32 %v4219_v17, 0.0  ;;  %v5357_v45 = vmax.f32 %v5229_v20, 0.0  ;;  %v5085_v30 = vmul.f32 %v11369_v39, %v11651_v26  ;;  %v4076_v25 = vmul.f32 %v11392_v29, %v11657_v15  ;;  %v11768_v18 = vpop.f32.mrb[209].mxu0  ;;  %v11770_v14 = vpop.f32.mrb[1].mxu1  ;;  %6589 = vmatprep.subr.bf16.mxu1 %v9396_v34 }
 0x434   :  { %v5500_v56 = vmax.f32 %v5499_v38, %v5356_v48  ;;  %v4348_v62 = vmax.f32 %v4220_v58, 0.0  ;;  %v5358_v16 = vmax.f32 %v5230_v51, 0.0  ;;  %v4349_v2 = vmax.f32 %v4221_v4, 0.0  ;;  %v11772_v32 = vpop.f32.mrb[210].mxu0  ;;  %v11774_v57 = vpop.f32.mrb[2].mxu1 }
 0x435   :  { %v4460_v11 = vmax.f32 %v4459_v10, %v4347_v7  ;;  %v5470_v9 = vmax.f32 %v5469_v40, %v5357_v45  ;;  %v5231_v26 = vadd.f32 %v11372_v13, %v5085_v30  ;;  %v4222_v15 = vadd.f32 %v11398_v46, %v4076_v25  ;;  %6549 = vmatpush1.bf16.msra.mxu0 %v9391_v41  ;;  %v11778_v17 = vpop.f32.mrb[211].mxu0  ;;  %v11780_v20 = vpop.f32.mrb[3].mxu1  ;;  %v9405_v10 = vld [vmem:[#allocation8 + $0xc4] ss:$16 sps:$4 sm:$0xff]   ;;  %v9400_v7 = vld [vmem:[#allocation8 + $0xa8] ss:$16 sps:$4 sm:$0xff]  }
 0x436   :  { %v4491_v38 = vmax.f32 %v4490_v33, %v4348_v62  ;;  %v5501_v48 = vmax.f32 %v5500_v56, %v5358_v16  ;;  %v5086_v34 = vmul.f32 %v11421_v59, %v11659_v5  ;;  %v4077_v58 = vmul.f32 %v11359_v37, %v11677_v47  ;;  %6550 = vmatprep.subr.bf16.mxu0 %v9399_v6  ;;  %v9408_v6 = vld [vmem:[#allocation8 + $0xcc] ss:$16 sps:$4 sm:$0xff]   ;;  %v9403_v56 = vld [vmem:[#allocation8 + $0xc0] ss:$16 sps:$4 sm:$0xff]  }
 0x437   :  { %v4461_v40 = vmax.f32 %v4460_v11, %v4349_v2  ;;  %v5359_v51 = vmax.f32 %v5231_v26, 0.0  ;;  %v4350_v4 = vmax.f32 %v4222_v15, 0.0  ;;  %6590 = vmatpush1.bf16.msra.mxu1 %v9394_v54  ;;  %v5087_v41 = vmul.f32 %v11369_v39, %v11679_v12 }
 0x438   :  { %v5232_v45 = vadd.f32 %v11430_v27, %v5086_v34  ;;  %v4223_v33 = vadd.f32 %v11362_v28, %v4077_v58  ;;  %6591 = vmatprep.subr.bf16.mxu1 %v9402_v44  ;;  %v4078_v5 = vmul.f32 %v11392_v29, %v11683_v35  ;;  %v5088_v47 = vmul.f32 %v11421_v59, %v11685_v49  ;;  %v9411_v35 = vld [vmem:[#allocation8 + $0xe4] ss:$16 sps:$4 sm:$0xff]  }
 0x439   :  { %v5471_v30 = vmax.f32 %v5470_v9, %v5359_v51  ;;  %v4492_v25 = vmax.f32 %v4491_v38, %v4350_v4  ;;  %v5233_v54 = vadd.f32 %v11372_v13, %v5087_v41  ;;  %6551 = vmatpush1.bf16.msra.mxu0 %v9397_v50  ;;  %v4079_v12 = vmul.f32 %v11359_v37, %v11692_v36  ;;  %v9406_v50 = vld [vmem:[#allocation8 + $0xc8] ss:$16 sps:$4 sm:$0xff]   ;;  %v9414_v41 = vld [vmem:[#allocation8 + $0xec] ss:$16 sps:$4 sm:$0xff]  }
 0x43a   :  { %v5360_v62 = vmax.f32 %v5232_v45, 0.0  ;;  %v4351_v16 = vmax.f32 %v4223_v33, 0.0  ;;  %v4224_v44 = vadd.f32 %v11398_v46, %v4078_v5  ;;  %v5234_v2 = vadd.f32 %v11430_v27, %v5088_v47  ;;  %6552 = vmatprep.subr.bf16.mxu0 %v9405_v10  ;;  %v11799_v11 = vpop.f32.mrb[212].mxu0  ;;  %v11801_v49 = vpop.f32.mrb[4].mxu1  ;;  %v9409_v47 = vld [vmem:[#allocation8 + $0xe0] ss:$16 sps:$4 sm:$0xff]  }
 0x43b   :  { %v5361_v9 = vmax.f32 %v5233_v54, 0.0  ;;  %6592 = vmatpush1.bf16.msra.mxu1 %v9400_v7  ;;  %v4225_v26 = vadd.f32 %v11362_v28, %v4079_v12  ;;  %v5089_v36 = vmul.f32 %v11369_v39, %v11694_v24  ;;  %v4080_v15 = vmul.f32 %v11392_v29, %v11700_v22  ;;  %v11808_v38 = vpop.f32.mrb[213].mxu0  ;;  %v11810_v34 = vpop.f32.mrb[5].mxu1 }
 0x43c   :  { %v5502_v58 = vmax.f32 %v5501_v48, %v5360_v62  ;;  %v4462_v10 = vmax.f32 %v4461_v40, %v4351_v16  ;;  %v4352_v51 = vmax.f32 %v4224_v44, 0.0  ;;  %v5362_v4 = vmax.f32 %v5234_v2, 0.0  ;;  %6593 = vmatprep.subr.bf16.mxu1 %v9408_v6  ;;  %v11812_v7 = vpop.f32.mrb[214].mxu0  ;;  %v11814_v45 = vpop.f32.mrb[6].mxu1 }
 0x43d   :  { %v5472_v33 = vmax.f32 %v5471_v30, %v5361_v9  ;;  %v4353_v24 = vmax.f32 %v4225_v26, 0.0  ;;  %v5235_v5 = vadd.f32 %v11372_v13, %v5089_v36  ;;  %v4226_v22 = vadd.f32 %v11398_v46, %v4080_v15  ;;  %6553 = vmatpush1.bf16.msra.mxu0 %v9403_v56  ;;  %v11818_v54 = vpop.f32.mrb[215].mxu0  ;;  %v11820_v48 = vpop.f32.mrb[7].mxu1  ;;  %v9417_v30 = vld [vmem:[#allocation8 + $0x104] ss:$16 sps:$4 sm:$0xff]  }
 0x43e   :  { %v4493_v40 = vmax.f32 %v4492_v25, %v4352_v51  ;;  %v5503_v12 = vmax.f32 %v5502_v58, %v5362_v4  ;;  %v5090_v6 = vmul.f32 %v11421_v59, %v11702_v60  ;;  %v4081_v62 = vmul.f32 %v11359_v37, %v11721_v19  ;;  %6554 = vmatprep.subr.bf16.mxu0 %v9411_v35  ;;  %v9412_v9 = vld [vmem:[#allocation8 + $0xe8] ss:$16 sps:$4 sm:$0xff]   ;;  %v9420_v35 = vld [vmem:[#allocation8 + $0x10c] ss:$16 sps:$4 sm:$0xff]   ;;  %v9415_v58 = vld [vmem:[#allocation8 + $0x100] ss:$16 sps:$4 sm:$0xff]  }
 0x43f   :  { %v4463_v16 = vmax.f32 %v4462_v10, %v4353_v24  ;;  %v5363_v44 = vmax.f32 %v5235_v5, 0.0  ;;  %v4354_v2 = vmax.f32 %v4226_v22, 0.0  ;;  %6594 = vmatpush1.bf16.msra.mxu1 %v9406_v50  ;;  %v5091_v56 = vmul.f32 %v11369_v39, %v11723_v61  ;;  %v9418_v22 = vld [vmem:[#allocation8 + $0x108] ss:$16 sps:$4 sm:$0xff]  }
 0x440   :  { %v5236_v26 = vadd.f32 %v11430_v27, %v5090_v6  ;;  %v4227_v25 = vadd.f32 %v11362_v28, %v4081_v62  ;;  %6595 = vmatprep.subr.bf16.mxu1 %v9414_v41  ;;  %v4082_v60 = vmul.f32 %v11392_v29, %v11728_v42  ;;  %v5092_v19 = vmul.f32 %v11421_v59, %v11730_v31  ;;  %v9423_v42 = vld [vmem:[#allocation8 + $0x124] ss:$16 sps:$4 sm:$0xff]  }
 0x441   :  { %v5473_v36 = vmax.f32 %v5472_v33, %v5363_v44  ;;  %v4494_v15 = vmax.f32 %v4493_v40, %v4354_v2  ;;  %v5237_v50 = vadd.f32 %v11372_v13, %v5091_v56  ;;  %6555 = vmatpush1.bf16.msra.mxu0 %v9409_v47  ;;  %v4083_v61 = vmul.f32 %v11359_v37, %v11732_v55  ;;  %v9426_v2 = vld [vmem:[#allocation8 + $0x12c] ss:$16 sps:$4 sm:$0xff]  }
 0x442   :  { %v5364_v10 = vmax.f32 %v5236_v26, 0.0  ;;  %v4355_v51 = vmax.f32 %v4227_v25, 0.0  ;;  %v4228_v4 = vadd.f32 %v11398_v46, %v4082_v60  ;;  %v5238_v41 = vadd.f32 %v11430_v27, %v5092_v19  ;;  %6556 = vmatprep.subr.bf16.mxu0 %v9417_v30  ;;  %v11839_v24 = vpop.f32.mrb[216].mxu0  ;;  %v9421_v60 = vld [vmem:[#allocation8 + $0x120] ss:$16 sps:$4 sm:$0xff]  }
 0x443   :  { %v5365_v31 = vmax.f32 %v5237_v50, 0.0  ;;  %6596 = vmatpush1.bf16.msra.mxu1 %v9412_v9  ;;  %v4229_v33 = vadd.f32 %v11362_v28, %v4083_v61  ;;  %v5093_v5 = vmul.f32 %v11369_v39, %v11734_v1  ;;  %v4084_v55 = vmul.f32 %v11392_v29, %v11738_v43  ;;  %v11846_v47 = vpop.f32.mrb[8].mxu1  ;;  %v11848_v40 = vpop.f32.mrb[217].mxu0 }
 0x444   :  { %v5504_v6 = vmax.f32 %v5503_v12, %v5364_v10  ;;  %v4464_v62 = vmax.f32 %v4463_v16, %v4355_v51  ;;  %v4356_v30 = vmax.f32 %v4228_v4, 0.0  ;;  %v5366_v44 = vmax.f32 %v5238_v41, 0.0  ;;  %6597 = vmatprep.subr.bf16.mxu1 %v9420_v35  ;;  %v11850_v56 = vpop.f32.mrb[9].mxu1  ;;  %v11852_v9 = vpop.f32.mrb[218].mxu0 }
 0x445   :  { %v5474_v26 = vmax.f32 %v5473_v36, %v5365_v31  ;;  %v4357_v1 = vmax.f32 %v4229_v33, 0.0  ;;  %v5239_v25 = vadd.f32 %v11372_v13, %v5093_v5  ;;  %v4230_v43 = vadd.f32 %v11398_v46, %v4084_v55  ;;  %6557 = vmatpush1.bf16.msra.mxu0 %v9415_v58  ;;  %v11856_v19 = vpop.f32.mrb[10].mxu1  ;;  %v11858_v12 = vpop.f32.mrb[219].mxu0  ;;  %v9429_v36 = vld [vmem:[#allocation8 + $0x144] ss:$16 sps:$4 sm:$0xff]  }
 0x446   :  { %v4495_v16 = vmax.f32 %v4494_v15, %v4356_v30  ;;  %v5505_v50 = vmax.f32 %v5504_v6, %v5366_v44  ;;  %v5094_v35 = vmul.f32 %v11421_v59, %v11740_v3  ;;  %v4085_v61 = vmul.f32 %v11359_v37, %v11760_v23  ;;  %6558 = vmatprep.subr.bf16.mxu0 %v9423_v42  ;;  %v11864_v10 = vpop.f32.mrb[11].mxu1  ;;  %v9424_v31 = vld [vmem:[#allocation8 + $0x128] ss:$16 sps:$4 sm:$0xff]   ;;  %v9432_v42 = vld [vmem:[#allocation8 + $0x14c] ss:$16 sps:$4 sm:$0xff]  }
 0x447   :  { %v4465_v51 = vmax.f32 %v4464_v62, %v4357_v1  ;;  %v5367_v4 = vmax.f32 %v5239_v25, 0.0  ;;  %v4358_v58 = vmax.f32 %v4230_v43, 0.0  ;;  %6598 = vmatpush1.bf16.msra.mxu1 %v9418_v22  ;;  %v5095_v41 = vmul.f32 %v11369_v39, %v11762_v52  ;;  %v9427_v6 = vld [vmem:[#allocation8 + $0x140] ss:$16 sps:$4 sm:$0xff]   ;;  %v9430_v43 = vld [vmem:[#allocation8 + $0x148] ss:$16 sps:$4 sm:$0xff]  }
 0x448   :  { %v5240_v15 = vadd.f32 %v11430_v27, %v5094_v35  ;;  %v4231_v33 = vadd.f32 %v11362_v28, %v4085_v61  ;;  %6599 = vmatprep.subr.bf16.mxu1 %v9426_v2  ;;  %v4086_v3 = vmul.f32 %v11392_v29, %v11768_v18  ;;  %v5096_v23 = vmul.f32 %v11421_v59, %v11770_v14  ;;  %v9435_v18 = vld [vmem:[#allocation8 + $0x164] ss:$16 sps:$4 sm:$0xff]  }
 0x449   :  { %v5475_v5 = vmax.f32 %v5474_v26, %v5367_v4  ;;  %v4496_v55 = vmax.f32 %v4495_v16, %v4358_v58  ;;  %v5241_v22 = vadd.f32 %v11372_v13, %v5095_v41  ;;  %6559 = vmatpush1.bf16.msra.mxu0 %v9421_v60  ;;  %v4087_v52 = vmul.f32 %v11359_v37, %v11772_v32  ;;  %v9438_v58 = vld [vmem:[#allocation8 + $0x16c] ss:$16 sps:$4 sm:$0xff]  }
 0x44a   :  { %v5368_v62 = vmax.f32 %v5240_v15, 0.0  ;;  %v4359_v30 = vmax.f32 %v4231_v33, 0.0  ;;  %v4232_v44 = vadd.f32 %v11398_v46, %v4086_v3  ;;  %v5242_v2 = vadd.f32 %v11430_v27, %v5096_v23  ;;  %6560 = vmatprep.subr.bf16.mxu0 %v9429_v36  ;;  %v11879_v1 = vpop.f32.mrb[220].mxu0  ;;  %v9433_v3 = vld [vmem:[#allocation8 + $0x160] ss:$16 sps:$4 sm:$0xff]  }
 0x44b   :  { %v5369_v14 = vmax.f32 %v5241_v22, 0.0  ;;  %6600 = vmatpush1.bf16.msra.mxu1 %v9424_v31  ;;  %v4233_v26 = vadd.f32 %v11362_v28, %v4087_v52  ;;  %v5097_v25 = vmul.f32 %v11369_v39, %v11774_v57  ;;  %v4088_v32 = vmul.f32 %v11392_v29, %v11778_v17  ;;  %v11886_v60 = vpop.f32.mrb[12].mxu1  ;;  %v11888_v16 = vpop.f32.mrb[221].mxu0 }
 0x44c   :  { %v5506_v35 = vmax.f32 %v5505_v50, %v5368_v62  ;;  %v4466_v61 = vmax.f32 %v4465_v51, %v4359_v30  ;;  %v4360_v36 = vmax.f32 %v4232_v44, 0.0  ;;  %v5370_v4 = vmax.f32 %v5242_v2, 0.0  ;;  %6601 = vmatprep.subr.bf16.mxu1 %v9432_v42  ;;  %v11890_v41 = vpop.f32.mrb[13].mxu1  ;;  %v11892_v31 = vpop.f32.mrb[222].mxu0 }
 0x44d   :  { %v5476_v15 = vmax.f32 %v5475_v5, %v5369_v14  ;;  %v4361_v57 = vmax.f32 %v4233_v26, 0.0  ;;  %v5243_v33 = vadd.f32 %v11372_v13, %v5097_v25  ;;  %v4234_v17 = vadd.f32 %v11398_v46, %v4088_v32  ;;  %6561 = vmatpush1.bf16.msra.mxu0 %v9427_v6  ;;  %v11896_v23 = vpop.f32.mrb[14].mxu1  ;;  %v11898_v50 = vpop.f32.mrb[223].mxu0  ;;  %v9441_v5 = vld [vmem:[#allocation8 + $0x184] ss:$16 sps:$4 sm:$0xff]  }
 0x44e   :  { %v4497_v51 = vmax.f32 %v4496_v55, %v4360_v36  ;;  %v5507_v22 = vmax.f32 %v5506_v35, %v5370_v4  ;;  %v5098_v42 = vmul.f32 %v11421_v59, %v11780_v20  ;;  %v4089_v52 = vmul.f32 %v11359_v37, %v11799_v11  ;;  %6562 = vmatprep.subr.bf16.mxu0 %v9435_v18  ;;  %v11904_v62 = vpop.f32.mrb[15].mxu1  ;;  %v9436_v14 = vld [vmem:[#allocation8 + $0x168] ss:$16 sps:$4 sm:$0xff]   ;;  %v9444_v18 = vld [vmem:[#allocation8 + $0x18c] ss:$16 sps:$4 sm:$0xff]  }
 0x44f   :  { %v4467_v30 = vmax.f32 %v4466_v61, %v4361_v57  ;;  %v5371_v44 = vmax.f32 %v5243_v33, 0.0  ;;  %v4362_v6 = vmax.f32 %v4234_v17, 0.0  ;;  %6602 = vmatpush1.bf16.msra.mxu1 %v9430_v43  ;;  %v5099_v2 = vmul.f32 %v11369_v39, %v11801_v49  ;;  %v9439_v35 = vld [vmem:[#allocation8 + $0x180] ss:$16 sps:$4 sm:$0xff]   ;;  %v9442_v17 = vld [vmem:[#allocation8 + $0x188] ss:$16 sps:$4 sm:$0xff]  }
 0x450   :  { %v5244_v55 = vadd.f32 %v11430_v27, %v5098_v42  ;;  %v4235_v26 = vadd.f32 %v11362_v28, %v4089_v52  ;;  %6603 = vmatprep.subr.bf16.mxu1 %v9438_v58  ;;  %v4090_v20 = vmul.f32 %v11392_v29, %v11808_v38  ;;  %v5100_v11 = vmul.f32 %v11421_v59, %v11810_v34  ;;  %v9447_v38 = vld [vmem:[#allocation8 + $0x1a4] ss:$16 sps:$4 sm:$0xff]  }
 0x451   :  { %v5477_v25 = vmax.f32 %v5476_v15, %v5371_v44  ;;  %v4498_v32 = vmax.f32 %v4497_v51, %v4362_v6  ;;  %v5245_v43 = vadd.f32 %v11372_v13, %v5099_v2  ;;  %6563 = vmatpush1.bf16.msra.mxu0 %v9433_v3  ;;  %v4091_v49 = vmul.f32 %v11359_v37, %v11812_v7  ;;  %v9450_v6 = vld [vmem:[#allocation8 + $0x1ac] ss:$16 sps:$4 sm:$0xff]  }
 0x452   :  { %v5372_v61 = vmax.f32 %v5244_v55, 0.0  ;;  %v4363_v36 = vmax.f32 %v4235_v26, 0.0  ;;  %v4236_v4 = vadd.f32 %v11398_v46, %v4090_v20  ;;  %v5246_v58 = vadd.f32 %v11430_v27, %v5100_v11  ;;  %6564 = vmatprep.subr.bf16.mxu0 %v9441_v5  ;;  %v11919_v57 = vpop.f32.mrb[224].mxu0  ;;  %v9445_v20 = vld [vmem:[#allocation8 + $0x1a0] ss:$16 sps:$4 sm:$0xff]  }
 0x453   :  { %v5373_v34 = vmax.f32 %v5245_v43, 0.0  ;;  %6604 = vmatpush1.bf16.msra.mxu1 %v9436_v14  ;;  %v4237_v15 = vadd.f32 %v11362_v28, %v4091_v49  ;;  %v5101_v33 = vmul.f32 %v11369_v39, %v11814_v45  ;;  %v4092_v7 = vmul.f32 %v11392_v29, %v11818_v54  ;;  %v11926_v3 = vpop.f32.mrb[16].mxu1  ;;  %v11928_v51 = vpop.f32.mrb[225].mxu0 }
 0x454   :  { %v5508_v42 = vmax.f32 %v5507_v22, %v5372_v61  ;;  %v4468_v52 = vmax.f32 %v4467_v30, %v4363_v36  ;;  %v4364_v5 = vmax.f32 %v4236_v4, 0.0  ;;  %v5374_v44 = vmax.f32 %v5246_v58, 0.0  ;;  %6605 = vmatprep.subr.bf16.mxu1 %v9444_v18  ;;  %v11930_v2 = vpop.f32.mrb[17].mxu1  ;;  %v11932_v14 = vpop.f32.mrb[226].mxu0 }
 0x455   :  { %v5478_v55 = vmax.f32 %v5477_v25, %v5373_v34  ;;  %v4365_v45 = vmax.f32 %v4237_v15, 0.0  ;;  %v5247_v26 = vadd.f32 %v11372_v13, %v5101_v33  ;;  %v4238_v54 = vadd.f32 %v11398_v46, %v4092_v7  ;;  %6565 = vmatpush1.bf16.msra.mxu0 %v9439_v35  ;;  %v11936_v11 = vpop.f32.mrb[18].mxu1  ;;  %v11938_v22 = vpop.f32.mrb[227].mxu0  ;;  %v9453_v25 = vld [vmem:[#allocation8 + $0x1c4] ss:$16 sps:$4 sm:$0xff]  }
 0x456   :  { %v4499_v30 = vmax.f32 %v4498_v32, %v4364_v5  ;;  %v5509_v43 = vmax.f32 %v5508_v42, %v5374_v44  ;;  %v5102_v18 = vmul.f32 %v11421_v59, %v11820_v48  ;;  %v4093_v49 = vmul.f32 %v11359_v37, %v11839_v24  ;;  %6566 = vmatprep.subr.bf16.mxu0 %v9447_v38  ;;  %v11944_v61 = vpop.f32.mrb[19].mxu1  ;;  %v9448_v34 = vld [vmem:[#allocation8 + $0x1a8] ss:$16 sps:$4 sm:$0xff]   ;;  %v9456_v38 = vld [vmem:[#allocation8 + $0x1cc] ss:$16 sps:$4 sm:$0xff]  }
 0x457   :  { %v4469_v36 = vmax.f32 %v4468_v52, %v4365_v45  ;;  %v5375_v4 = vmax.f32 %v5247_v26, 0.0  ;;  %v4366_v35 = vmax.f32 %v4238_v54, 0.0  ;;  %6606 = vmatpush1.bf16.msra.mxu1 %v9442_v17  ;;  %v5103_v58 = vmul.f32 %v11369_v39, %v11846_v47  ;;  %v9451_v42 = vld [vmem:[#allocation8 + $0x1c0] ss:$16 sps:$4 sm:$0xff]   ;;  %v9454_v54 = vld [vmem:[#allocation8 + $0x1c8] ss:$16 sps:$4 sm:$0xff]  }
 0x458   :  { %v5248_v32 = vadd.f32 %v11430_v27, %v5102_v18  ;;  %v4239_v15 = vadd.f32 %v11362_v28, %v4093_v49  ;;  %6607 = vmatprep.subr.bf16.mxu1 %v9450_v6  ;;  %v4094_v48 = vmul.f32 %v11392_v29, %v11848_v40  ;;  %v5104_v24 = vmul.f32 %v11421_v59, %v11850_v56  ;;  %v9459_v40 = vld [vmem:[#allocation8 + $0x1e4] ss:$16 sps:$4 sm:$0xff]  }
 0x459   :  { %v5479_v33 = vmax.f32 %v5478_v55, %v5375_v4  ;;  %v4500_v7 = vmax.f32 %v4499_v30, %v4366_v35  ;;  %v5249_v17 = vadd.f32 %v11372_v13, %v5103_v58  ;;  %6567 = vmatpush1.bf16.msra.mxu0 %v9445_v20  ;;  %v4095_v47 = vmul.f32 %v11359_v37, %v11852_v9  ;;  %v9462_v35 = vld [vmem:[#allocation8 + $0x1ec] ss:$16 sps:$4 sm:$0xff]  }
 0x45a   :  { %v5376_v52 = vmax.f32 %v5248_v32, 0.0  ;;  %v4367_v5 = vmax.f32 %v4239_v15, 0.0  ;;  %v4240_v44 = vadd.f32 %v11398_v46, %v4094_v48  ;;  %v5250_v6 = vadd.f32 %v11430_v27, %v5104_v24  ;;  %6568 = vmatprep.subr.bf16.mxu0 %v9453_v25  ;;  %v11959_v45 = vpop.f32.mrb[228].mxu0  ;;  %v9457_v48 = vld [vmem:[#allocation8 + $0x1e0] ss:$16 sps:$4 sm:$0xff]  }
 0x45b   :  { %v5377_v56 = vmax.f32 %v5249_v17, 0.0  ;;  %6608 = vmatpush1.bf16.msra.mxu1 %v9448_v34  ;;  %v4241_v55 = vadd.f32 %v11362_v28, %v4095_v47  ;;  %v5105_v26 = vmul.f32 %v11369_v39, %v11856_v19  ;;  %v4096_v9 = vmul.f32 %v11392_v29, %v11858_v12  ;;  %v11966_v20 = vpop.f32.mrb[20].mxu1  ;;  %v11968_v30 = vpop.f32.mrb[229].mxu0 }
 0x45c   :  { %v5510_v18 = vmax.f32 %v5509_v43, %v5376_v52  ;;  %v4470_v49 = vmax.f32 %v4469_v36, %v4367_v5  ;;  %v4368_v25 = vmax.f32 %v4240_v44, 0.0  ;;  %v5378_v4 = vmax.f32 %v5250_v6, 0.0  ;;  %6609 = vmatprep.subr.bf16.mxu1 %v9456_v38  ;;  %v11970_v58 = vpop.f32.mrb[21].mxu1  ;;  %v11972_v34 = vpop.f32.mrb[230].mxu0  ;;  %v9465_v52 = vld [vmem:[#allocation8 + $0x404] ss:$16 sps:$4 sm:$0xff]  }
 0x45d   :  { %v5480_v32 = vmax.f32 %v5479_v33, %v5377_v56  ;;  %v4369_v19 = vmax.f32 %v4241_v55, 0.0  ;;  %v5251_v15 = vadd.f32 %v11372_v13, %v5105_v26  ;;  %v4242_v12 = vadd.f32 %v11398_v46, %v4096_v9  ;;  %6569 = vmatpush1.bf16.msra.mxu0 %v9451_v42  ;;  %v11976_v24 = vpop.f32.mrb[22].mxu1  ;;  %v11978_v43 = vpop.f32.mrb[231].mxu0  ;;  %v9460_v56 = vld [vmem:[#allocation8 + $0x1e8] ss:$16 sps:$4 sm:$0xff]  }
 0x45e   :  { %v4501_v36 = vmax.f32 %v4500_v7, %v4368_v25  ;;  %v5511_v17 = vmax.f32 %v5510_v18, %v5378_v4  ;;  %v5106_v38 = vmul.f32 %v11421_v59, %v11864_v10  ;;  %v4097_v47 = vmul.f32 %v11359_v37, %v11879_v1  ;;  %6570 = vmatprep.subr.bf16.mxu0 %v9459_v40  ;;  %v11984_v33 = vpop.f32.mrb[23].mxu1  ;;  %v9468_v40 = vld [vmem:[#allocation8 + $0x40c] ss:$16 sps:$4 sm:$0xff]   ;;  %v9463_v18 = vld [vmem:[#allocation8 + $0x400] ss:$16 sps:$4 sm:$0xff]  }
 0x45f   :  { %v4471_v5 = vmax.f32 %v4470_v49, %v4369_v19  ;;  %v5379_v44 = vmax.f32 %v5251_v15, 0.0  ;;  %v4370_v42 = vmax.f32 %v4242_v12, 0.0  ;;  %6610 = vmatpush1.bf16.msra.mxu1 %v9454_v54  ;;  %v5107_v6 = vmul.f32 %v11369_v39, %v11886_v60 }
 0x460   :  { %v5252_v7 = vadd.f32 %v11430_v27, %v5106_v38  ;;  %v4243_v55 = vadd.f32 %v11362_v28, %v4097_v47  ;;  %6611 = vmatprep.subr.bf16.mxu1 %v9462_v35  ;;  %v4098_v10 = vmul.f32 %v11392_v29, %v11888_v16  ;;  %v5108_v1 = vmul.f32 %v11421_v59, %v11890_v41  ;;  %v9466_v41 = vld [vmem:[#allocation8 + $0x408] ss:$16 sps:$4 sm:$0xff]  }
 0x461   :  { %v5481_v26 = vmax.f32 %v5480_v32, %v5379_v44  ;;  %v4502_v9 = vmax.f32 %v4501_v36, %v4370_v42  ;;  %v5253_v54 = vadd.f32 %v11372_v13, %v5107_v6  ;;  %6571 = vmatpush1.bf16.msra.mxu0 %v9457_v48  ;;  %v4099_v60 = vmul.f32 %v11359_v37, %v11892_v31  ;;  %v9471_v36 = vld [vmem:[#allocation8 + $0x424] ss:$16 sps:$4 sm:$0xff]  }
 0x462   :  { %v5380_v49 = vmax.f32 %v5252_v7, 0.0  ;;  %v4371_v25 = vmax.f32 %v4243_v55, 0.0  ;;  %v4244_v4 = vadd.f32 %v11398_v46, %v4098_v10  ;;  %v5254_v35 = vadd.f32 %v11430_v27, %v5108_v1  ;;  %v11999_v16 = vpop.f32.mrb[232].mxu0  ;;  %7052 = vmatprep.subr.bf16.mxu0 %v9465_v52 }
 0x463   :  { %v5381_v19 = vmax.f32 %v5253_v54, 0.0  ;;  %6612 = vmatpush1.bf16.msra.mxu1 %v9460_v56  ;;  %v4245_v32 = vadd.f32 %v11362_v28, %v4099_v60  ;;  %v5109_v15 = vmul.f32 %v11369_v39, %v11896_v23  ;;  %v4100_v31 = vmul.f32 %v11392_v29, %v11898_v50  ;;  %v12006_v12 = vpop.f32.mrb[24].mxu1  ;;  %v12008_v48 = vpop.f32.mrb[233].mxu0  ;;  %v9474_v23 = vld [vmem:[#allocation8 + $0x42c] ss:$16 sps:$4 sm:$0xff]  }
 0x464   :  { %v5512_v38 = vmax.f32 %v5511_v17, %v5380_v49  ;;  %v4472_v47 = vmax.f32 %v4471_v5, %v4371_v25  ;;  %v4372_v44 = vmax.f32 %v4244_v4, 0.0  ;;  %v5382_v52 = vmax.f32 %v5254_v35, 0.0  ;;  %6573 = vmatmul.mubr.bf16.vlgmr.msra.gmra.mrb[40].mxu0 %v11468_v21  ;;  %v12011_v42 = vpop.f32.mrb[25].mxu1  ;;  %v12013_v6 = vpop.f32.mrb[234].mxu0  ;;  %7093 = vmatprep.subr.bf16.mxu1 %v9468_v40  ;;  %v9469_v5 = vld [vmem:[#allocation8 + $0x420] ss:$16 sps:$4 sm:$0xff]  }
 0x465   :  { %v5482_v56 = vmax.f32 %v5481_v26, %v5381_v19  ;;  %v4373_v7 = vmax.f32 %v4245_v32, 0.0  ;;  %v5255_v50 = vadd.f32 %v11372_v13, %v5109_v15  ;;  %v4246_v55 = vadd.f32 %v11398_v46, %v4100_v31  ;;  %v12017_v10 = vpop.f32.mrb[26].mxu1  ;;  %v12019_v17 = vpop.f32.mrb[235].mxu0  ;;  %7053 = vmatpush1.bf16.msra.mxu0 %v9463_v18  ;;  %v9477_v49 = vld [vmem:[#allocation8 + $0x444] ss:$16 sps:$4 sm:$0xff]  }
 0x466   :  { %v4503_v1 = vmax.f32 %v4502_v9, %v4372_v44  ;;  %v5513_v54 = vmax.f32 %v5512_v38, %v5382_v52  ;;  %v5110_v60 = vmul.f32 %v11421_v59, %v11904_v62  ;;  %6614 = vmatmul.mubr.bf16.vlgmr.msra.gmra.mrb[88].mxu1 %v11468_v21  ;;  %v4101_v40 = vmul.f32 %v11359_v37, %v11919_v57  ;;  %v12026_v26 = vpop.f32.mrb[27].mxu1  ;;  %v9472_v9 = vld [vmem:[#allocation8 + $0x428] ss:$16 sps:$4 sm:$0xff]   ;;  %v9480_v32 = vld [vmem:[#allocation8 + $0x44c] ss:$16 sps:$4 sm:$0xff]  }
 0x467   :  { %v4473_v25 = vmax.f32 %v4472_v47, %v4373_v7  ;;  %v5383_v4 = vmax.f32 %v5255_v50, 0.0  ;;  %v4374_v35 = vmax.f32 %v4246_v55, 0.0  ;;  %v5111_v18 = vmul.f32 %v11369_v39, %v11926_v3  ;;  %7094 = vmatpush1.bf16.msra.mxu1 %v9466_v41  ;;  %7054 = vmatprep.subr.bf16.mxu0 %v9471_v36  ;;  %v9475_v41 = vld [vmem:[#allocation8 + $0x440] ss:$16 sps:$4 sm:$0xff]  }
 0x468   :  { %v5256_v19 = vadd.f32 %v11430_v27, %v5110_v60  ;;  %v4247_v62 = vadd.f32 %v11362_v28, %v4101_v40  ;;  %v4102_v21 = vmul.f32 %v11392_v29, %v11928_v51  ;;  %v5112_v57 = vmul.f32 %v11421_v59, %v11930_v2  ;;  %7095 = vmatprep.subr.bf16.mxu1 %v9474_v23  ;;  %v9483_v2 = vld [vmem:[#allocation8 + $0x464] ss:$16 sps:$4 sm:$0xff]  }
 0x469   :  { %v5483_v15 = vmax.f32 %v5482_v56, %v5383_v4  ;;  %v4504_v31 = vmax.f32 %v4503_v1, %v4374_v35  ;;  %v5257_v38 = vadd.f32 %v11372_v13, %v5111_v18  ;;  %v4103_v3 = vmul.f32 %v11359_v37, %v11932_v14  ;;  %7055 = vmatpush1.bf16.msra.mxu0 %v9469_v5  ;;  %v9478_v5 = vld [vmem:[#allocation8 + $0x448] ss:$16 sps:$4 sm:$0xff]   ;;  %v9486_v18 = vld [vmem:[#allocation8 + $0x46c] ss:$16 sps:$4 sm:$0xff]  }
 0x46a   :  { %v5384_v36 = vmax.f32 %v5256_v19, 0.0  ;;  %v4375_v47 = vmax.f32 %v4247_v62, 0.0  ;;  %v4248_v44 = vadd.f32 %v11398_v46, %v4102_v21  ;;  %v5258_v51 = vadd.f32 %v11430_v27, %v5112_v57  ;;  %v12041_v52 = vpop.f32.mrb[236].mxu0  ;;  %7056 = vmatprep.subr.bf16.mxu0 %v9477_v49 }
 0x46b   :  { %v5385_v23 = vmax.f32 %v5257_v38, 0.0  ;;  %v4249_v56 = vadd.f32 %v11362_v28, %v4103_v3  ;;  %v5113_v7 = vmul.f32 %v11369_v39, %v11936_v11  ;;  %v4104_v14 = vmul.f32 %v11392_v29, %v11938_v22  ;;  %v12048_v50 = vpop.f32.mrb[28].mxu1  ;;  %v12050_v55 = vpop.f32.mrb[237].mxu0  ;;  %7096 = vmatpush1.bf16.msra.mxu1 %v9472_v9  ;;  %v9489_v3 = vld [vmem:[#allocation8 + $0x484] ss:$16 sps:$4 sm:$0xff]  }
 0x46c   :  { %v5514_v1 = vmax.f32 %v5513_v54, %v5384_v36  ;;  %v4474_v60 = vmax.f32 %v4473_v25, %v4375_v47  ;;  %v4376_v40 = vmax.f32 %v4248_v44, 0.0  ;;  %v5386_v49 = vmax.f32 %v5258_v51, 0.0  ;;  %v12052_v4 = vpop.f32.mrb[29].mxu1  ;;  %v12054_v35 = vpop.f32.mrb[238].mxu0  ;;  %7097 = vmatprep.subr.bf16.mxu1 %v9480_v32  ;;  %v9481_v54 = vld [vmem:[#allocation8 + $0x460] ss:$16 sps:$4 sm:$0xff]  }
 0x46d   :  { %v5484_v11 = vmax.f32 %v5483_v15, %v5385_v23  ;;  %v4377_v19 = vmax.f32 %v4249_v56, 0.0  ;;  %v5259_v22 = vadd.f32 %v11372_v13, %v5113_v7  ;;  %v4250_v62 = vadd.f32 %v11398_v46, %v4104_v14  ;;  %v12058_v21 = vpop.f32.mrb[30].mxu1  ;;  %v12060_v9 = vpop.f32.mrb[239].mxu0  ;;  %7057 = vmatpush1.bf16.msra.mxu0 %v9475_v41  ;;  %v9484_v41 = vld [vmem:[#allocation8 + $0x468] ss:$16 sps:$4 sm:$0xff]  }
 0x46e   :  { %v4505_v25 = vmax.f32 %v4504_v31, %v4376_v40  ;;  %v5515_v57 = vmax.f32 %v5514_v1, %v5386_v49  ;;  %v5114_v38 = vmul.f32 %v11421_v59, %v11944_v61  ;;  %v4105_v32 = vmul.f32 %v11359_v37, %v11959_v45  ;;  %v12066_v15 = vpop.f32.mrb[31].mxu1  ;;  %7058 = vmatprep.subr.bf16.mxu0 %v9483_v2  ;;  %v9492_v2 = vld [vmem:[#allocation8 + $0x48c] ss:$16 sps:$4 sm:$0xff]  }
 0x46f   :  { %v4475_v36 = vmax.f32 %v4474_v60, %v4377_v19  ;;  %v5387_v47 = vmax.f32 %v5259_v22, 0.0  ;;  %v4378_v44 = vmax.f32 %v4250_v62, 0.0  ;;  %v5115_v51 = vmul.f32 %v11369_v39, %v11966_v20  ;;  %7098 = vmatpush1.bf16.msra.mxu1 %v9478_v5  ;;  %v9487_v5 = vld [vmem:[#allocation8 + $0x480] ss:$16 sps:$4 sm:$0xff]  }
 0x470   :  { %v5260_v31 = vadd.f32 %v11430_v27, %v5114_v38  ;;  %v4251_v23 = vadd.f32 %v11362_v28, %v4105_v32  ;;  %v4106_v61 = vmul.f32 %v11392_v29, %v11968_v30  ;;  %v5116_v45 = vmul.f32 %v11421_v59, %v11970_v58  ;;  %7099 = vmatprep.subr.bf16.mxu1 %v9486_v18  ;;  %v9495_v58 = vld [vmem:[#allocation8 + $0x4a4] ss:$16 sps:$4 sm:$0xff]  }
 0x471   :  { %v5485_v56 = vmax.f32 %v5484_v11, %v5387_v47  ;;  %v4506_v7 = vmax.f32 %v4505_v25, %v4378_v44  ;;  %v5261_v14 = vadd.f32 %v11372_v13, %v5115_v51  ;;  %v4107_v20 = vmul.f32 %v11359_v37, %v11972_v34  ;;  %7059 = vmatpush1.bf16.msra.mxu0 %v9481_v54  ;;  %v9490_v54 = vld [vmem:[#allocation8 + $0x488] ss:$16 sps:$4 sm:$0xff]   ;;  %v9498_v51 = vld [vmem:[#allocation8 + $0x4ac] ss:$16 sps:$4 sm:$0xff]  }
 0x472   :  { %v5388_v1 = vmax.f32 %v5260_v31, 0.0  ;;  %v4379_v60 = vmax.f32 %v4251_v23, 0.0  ;;  %v4252_v40 = vadd.f32 %v11398_v46, %v4106_v61  ;;  %v5262_v30 = vadd.f32 %v11430_v27, %v5116_v45  ;;  %v12081_v49 = vpop.f32.mrb[240].mxu0  ;;  %7060 = vmatprep.subr.bf16.mxu0 %v9489_v3 }
 0x473   :  { %v5389_v18 = vmax.f32 %v5261_v14, 0.0  ;;  %v4253_v11 = vadd.f32 %v11362_v28, %v4107_v20  ;;  %v5117_v19 = vmul.f32 %v11369_v39, %v11976_v24  ;;  %v4108_v34 = vmul.f32 %v11392_v29, %v11978_v43  ;;  %v12088_v22 = vpop.f32.mrb[32].mxu1  ;;  %v12090_v62 = vpop.f32.mrb[241].mxu0  ;;  %7100 = vmatpush1.bf16.msra.mxu1 %v9484_v41 }
 0x474   :  { %v5516_v25 = vmax.f32 %v5515_v57, %v5388_v1  ;;  %v4476_v38 = vmax.f32 %v4475_v36, %v4379_v60  ;;  %v4380_v32 = vmax.f32 %v4252_v40, 0.0  ;;  %v5390_v3 = vmax.f32 %v5262_v30, 0.0  ;;  %v12092_v47 = vpop.f32.mrb[33].mxu1  ;;  %v12094_v44 = vpop.f32.mrb[242].mxu0  ;;  %7101 = vmatprep.subr.bf16.mxu1 %v9492_v2  ;;  %v9493_v57 = vld [vmem:[#allocation8 + $0x4a0] ss:$16 sps:$4 sm:$0xff]  }
 0x475   :  { %v5486_v24 = vmax.f32 %v5485_v56, %v5389_v18  ;;  %v4381_v31 = vmax.f32 %v4253_v11, 0.0  ;;  %v5263_v43 = vadd.f32 %v11372_v13, %v5117_v19  ;;  %v4254_v23 = vadd.f32 %v11398_v46, %v4108_v34  ;;  %v12098_v61 = vpop.f32.mrb[34].mxu1  ;;  %v12100_v41 = vpop.f32.mrb[243].mxu0  ;;  %7061 = vmatpush1.bf16.msra.mxu0 %v9487_v5  ;;  %v9501_v2 = vld [vmem:[#allocation8 + $0x4c4] ss:$16 sps:$4 sm:$0xff]  }
 0x476   :  { %v4507_v36 = vmax.f32 %v4506_v7, %v4380_v32  ;;  %v5517_v45 = vmax.f32 %v5516_v25, %v5390_v3  ;;  %v5118_v14 = vmul.f32 %v11421_v59, %v11984_v33  ;;  %v12104_v20 = vpop.f32.mrb[35].mxu1  ;;  %7062 = vmatprep.subr.bf16.mxu0 %v9495_v58  ;;  %v5119_v40 = vmul.f32 %v11369_v39, %v12006_v12  ;;  %v9496_v30 = vld [vmem:[#allocation8 + $0x4a8] ss:$16 sps:$4 sm:$0xff]   ;;  %v9504_v18 = vld [vmem:[#allocation8 + $0x4cc] ss:$16 sps:$4 sm:$0xff]  }
 0x477   :  { %v4477_v56 = vmax.f32 %v4476_v38, %v4381_v31  ;;  %v5391_v1 = vmax.f32 %v5263_v43, 0.0  ;;  %v4382_v60 = vmax.f32 %v4254_v23, 0.0  ;;  %7102 = vmatpush1.bf16.msra.mxu1 %v9490_v54  ;;  %v4109_v7 = vmul.f32 %v11359_v37, %v11999_v16  ;;  %v9499_v34 = vld [vmem:[#allocation8 + $0x4c0] ss:$16 sps:$4 sm:$0xff]   ;;  %v9507_v38 = vld [vmem:[#allocation8 + $0x4e4] ss:$16 sps:$4 sm:$0xff]  }
 0x478   :  { %v5264_v5 = vadd.f32 %v11430_v27, %v5118_v14  ;;  %7103 = vmatprep.subr.bf16.mxu1 %v9498_v51  ;;  %v5265_v58 = vadd.f32 %v11372_v13, %v5119_v40  ;;  %v4110_v19 = vmul.f32 %v11392_v29, %v12008_v48  ;;  %v5120_v12 = vmul.f32 %v11421_v59, %v12011_v42  ;;  %v9502_v3 = vld [vmem:[#allocation8 + $0x4c8] ss:$16 sps:$4 sm:$0xff]   ;;  %v9510_v43 = vld [vmem:[#allocation8 + $0x4ec] ss:$16 sps:$4 sm:$0xff]  }
 0x479   :  { %v5487_v33 = vmax.f32 %v5486_v24, %v5391_v1  ;;  %v4508_v11 = vmax.f32 %v4507_v36, %v4382_v60  ;;  %7063 = vmatpush1.bf16.msra.mxu0 %v9493_v57  ;;  %v4255_v48 = vadd.f32 %v11362_v28, %v4109_v7  ;;  %v4111_v24 = vmul.f32 %v11359_v37, %v12013_v6 }
 0x47a   :  { %v5392_v25 = vmax.f32 %v5264_v5, 0.0  ;;  %v12116_v54 = vpop.f32.mrb[244].mxu0  ;;  %7064 = vmatprep.subr.bf16.mxu0 %v9501_v2  ;;  %v6626_v23 = vrot.slane %v4477_v56, 4  ;;  %v4256_v57 = vadd.f32 %v11398_v46, %v4110_v19  ;;  %v5121_v36 = vmul.f32 %v11369_v39, %v12017_v10  ;;  %v9505_v2 = vld [vmem:[#allocation8 + $0x4e0] ss:$16 sps:$4 sm:$0xff]  }
 0x47b   :  { %v12118_v16 = vpop.f32.mrb[36].mxu1  ;;  %v12120_v32 = vpop.f32.mrb[245].mxu0  ;;  %7104 = vmatpush1.bf16.msra.mxu1 %v9496_v30  ;;  %v5266_v6 = vadd.f32 %v11430_v27, %v5120_v12  ;;  %v4257_v1 = vadd.f32 %v11362_v28, %v4111_v24  ;;  %v4112_v60 = vmul.f32 %v11392_v29, %v12019_v17  ;;  %v5122_v40 = vmul.f32 %v11421_v59, %v12026_v26  ;;  %v9513_v10 = vld [vmem:[#allocation8 + $0x504] ss:$16 sps:$4 sm:$0xff]   ;;  %v9508_v19 = vld [vmem:[#allocation8 + $0x4e8] ss:$16 sps:$4 sm:$0xff]  }
 0x47c   :  { %v12122_v51 = vmax.f32 %v5517_v45, %v5392_v25  ;;  %v12127_v31 = vpop.f32.mrb[37].mxu1  ;;  %v12129_v42 = vpop.f32.mrb[246].mxu0  ;;  %7105 = vmatprep.subr.bf16.mxu1 %v9504_v18  ;;  %v7142_v5 = vrot.slane %v5487_v33, 4  ;;  %v6632_v7 = vrot.slane %v4508_v11, 4  ;;  %v5267_v18 = vadd.f32 %v11372_v13, %v5121_v36  ;;  %v9516_v17 = vld [vmem:[#allocation8 + $0x50c] ss:$16 sps:$4 sm:$0xff]  }
 0x47d   :  { %v12134_v14 = vpop.f32.mrb[38].mxu1  ;;  %v12136_v45 = vpop.f32.mrb[247].mxu0  ;;  %7065 = vmatpush1.bf16.msra.mxu0 %v9499_v34  ;;  %v4383_v34 = vmax.f32 %v4255_v48, 0.0  ;;  %v4385_v25 = vmax.f32 %v4257_v1, 0.0  ;;  %v4258_v12 = vadd.f32 %v11398_v46, %v4112_v60  ;;  %v5268_v24 = vadd.f32 %v11430_v27, %v5122_v40 }
 0x47e   :  { %12941 = vst [vmem:[#allocation16_spill] sm:$0xff] %v12136_v45  ;;  %v12144_v30 = vpop.f32.mrb[39].mxu1  ;;  %7066 = vmatprep.subr.bf16.mxu0 %v9507_v38  ;;  %v12149_v8 = vmax.f32 %v4477_v56, %v6626_v23  ;;  %v5393_v26 = vmax.f32 %v5265_v58, 0.0  ;;  %v4384_v0 = vmax.f32 %v4256_v57, 0.0  ;;  %v5395_v38 = vmax.f32 %v5267_v18, 0.0 }
 0x47f   :  { %12942 = vst [vmem:[#allocation18_spill] sm:$0xff] %v12144_v30  ;;  %7106 = vmatpush1.bf16.msra.mxu1 %v9502_v3  ;;  %v5394_v63 = vmax.f32 %v5266_v6, 0.0  ;;  %v4509_v30 = vmax.f32 %v4383_v34, %v4385_v25  ;;  %v4386_v36 = vmax.f32 %v4258_v12, 0.0  ;;  %v5396_v3 = vmax.f32 %v5268_v24, 0.0  ;;  %v9514_v58 = vld [vmem:[#allocation8 + $0x508] ss:$16 sps:$4 sm:$0xff]  }
 0x480   :  { %7107 = vmatprep.subr.bf16.mxu1 %v9510_v43  ;;  %v12153_v48 = vmax.f32 %v5487_v33, %v7142_v5  ;;  %v12155_v1 = vmax.f32 %v4508_v11, %v6632_v7  ;;  %v5519_v43 = vmax.f32 %v5393_v26, %v5395_v38  ;;  %v7148_v33 = vrot.slane %v12122_v51, 4 }
 0x481   :  { %7067 = vmatpush1.bf16.msra.mxu0 %v9505_v2  ;;  %v4540_v23 = vmax.f32 %v4384_v0, %v4386_v36  ;;  %v5550_v57 = vmax.f32 %v5394_v63, %v5396_v3  ;;  %v4113_v2 = vmul.f32 %v11359_v37, %v12041_v52  ;;  %v5123_v11 = vmul.f32 %v11369_v39, %v12048_v50  ;;  %v9534_v50 = vld [vmem:[#allocation8 + $0x56c] ss:$16 sps:$4 sm:$0xff]  }
 0x482   :  { %v12151_v45 = vpop.f32.mrb[248].mxu0  ;;  %7068 = vmatprep.subr.bf16.mxu0 %v9513_v10  ;;  %12943 = vst [vmem:[#allocation17_spill] sm:$0xff] %v12153_v48  ;;  %12944 = vst [vmem:[#allocation20_spill] sm:$0xff] %v12155_v1  ;;  %v4114_v10 = vmul.f32 %v11392_v29, %v12050_v55  ;;  %v5124_v7 = vmul.f32 %v11421_v59, %v12052_v4  ;;  %v4115_v18 = vmul.f32 %v11359_v37, %v12054_v35 }
 0x483   :  { %v12157_v60 = vpop.f32.mrb[40].mxu1  ;;  %v12159_v56 = vpop.f32.mrb[249].mxu0  ;;  %7108 = vmatpush1.bf16.msra.mxu1 %v9508_v19  ;;  %v4259_v52 = vadd.f32 %v11362_v28, %v4113_v2  ;;  %v5269_v34 = vadd.f32 %v11372_v13, %v5123_v11  ;;  %v5125_v4 = vmul.f32 %v11369_v39, %v12058_v21  ;;  %v12193_v35 = vmax.f32 %v12122_v51, %v7148_v33 }
 0x484   :  { %v12163_v6 = vpop.f32.mrb[41].mxu1  ;;  %v12165_v40 = vpop.f32.mrb[250].mxu0  ;;  %7109 = vmatprep.subr.bf16.mxu1 %v9516_v17  ;;  %v5270_v12 = vadd.f32 %v11430_v27, %v5124_v7  ;;  %v4261_v24 = vadd.f32 %v11362_v28, %v4115_v18  ;;  %v4116_v38 = vmul.f32 %v11392_v29, %v12060_v9  ;;  %v5126_v21 = vmul.f32 %v11421_v59, %v12066_v15 }
 0x485   :  { %v12172_v5 = vpop.f32.mrb[42].mxu1  ;;  %v12174_v0 = vpop.f32.mrb[251].mxu0  ;;  %7069 = vmatpush1.bf16.msra.mxu0 %v9511_v53  ;;  %v4260_v53 = vadd.f32 %v11398_v46, %v4114_v10  ;;  %v4387_v25 = vmax.f32 %v4259_v52, 0.0  ;;  %v5397_v17 = vmax.f32 %v5269_v34, 0.0  ;;  %v4117_v34 = vmul.f32 %v11359_v37, %v12081_v49 }
 0x486   :  { %v12182_v19 = vpop.f32.mrb[43].mxu1  ;;  %v5398_v3 = vmax.f32 %v5270_v12, 0.0  ;;  %v4389_v2 = vmax.f32 %v4261_v24, 0.0  ;;  %v4262_v7 = vadd.f32 %v11398_v46, %v4116_v38  ;;  %v5127_v15 = vmul.f32 %v11369_v39, %v12088_v22 }
 0x487   :  { %7110 = vmatpush1.bf16.msra.mxu1 %v9514_v58  ;;  %v4388_v26 = vmax.f32 %v4260_v53, 0.0  ;;  %v4510_v36 = vmax.f32 %v4509_v30, %v4387_v25  ;;  %v5271_v58 = vadd.f32 %v11372_v13, %v5125_v4  ;;  %v5520_v10 = vmax.f32 %v5519_v43, %v5397_v17 }
 0x488   :  { %v5551_v18 = vmax.f32 %v5550_v57, %v5398_v3  ;;  %v4390_v43 = vmax.f32 %v4262_v7, 0.0  ;;  %v4118_v12 = vmul.f32 %v11392_v29, %v12090_v62  ;;  %v4263_v49 = vadd.f32 %v11362_v28, %v4117_v34  ;;  %v9519_v34 = vld [vmem:[#allocation8 + $0x524] ss:$16 sps:$4 sm:$0xff]  }
 0x489   :  { %v4541_v52 = vmax.f32 %v4540_v23, %v4388_v26  ;;  %v4511_v9 = vmax.f32 %v4510_v36, %v4389_v2  ;;  %v5399_v30 = vmax.f32 %v5271_v58, 0.0  ;;  %v5272_v23 = vadd.f32 %v11430_v27, %v5126_v21  ;;  %7070 = vmatprep.subr.bf16.mxu0 %v9519_v34 }
 0x48a   :  { %v12198_v11 = vpop.f32.mrb[252].mxu0  ;;  %v5128_v17 = vmul.f32 %v11421_v59, %v12092_v47  ;;  %v4119_v26 = vmul.f32 %v11359_v37, %v12094_v44  ;;  %v5273_v3 = vadd.f32 %v11372_v13, %v5127_v15  ;;  %v4264_v62 = vadd.f32 %v11398_v46, %v4118_v12 }
 0x48b   :  { %v12203_v51 = vpop.f32.mrb[44].mxu1  ;;  %v12205_v33 = vpop.f32.mrb[253].mxu0  ;;  %v5521_v4 = vmax.f32 %v5520_v10, %v5399_v30  ;;  %v4542_v36 = vmax.f32 %v4541_v52, %v4390_v43  ;;  %v5400_v22 = vmax.f32 %v5272_v23, 0.0  ;;  %v4391_v2 = vmax.f32 %v4263_v49, 0.0  ;;  %v9517_v52 = vld [vmem:[#allocation8 + $0x520] ss:$16 sps:$4 sm:$0xff]  }
 0x48c   :  { %v12209_v53 = vpop.f32.mrb[45].mxu1  ;;  %v12211_v25 = vpop.f32.mrb[254].mxu0  ;;  %v5274_v58 = vadd.f32 %v11430_v27, %v5128_v17  ;;  %v4265_v10 = vadd.f32 %v11362_v28, %v4119_v26  ;;  %v5129_v7 = vmul.f32 %v11369_v39, %v12098_v61  ;;  %v5401_v21 = vmax.f32 %v5273_v3, 0.0  ;;  %v9520_v17 = vld [vmem:[#allocation8 + $0x528] ss:$16 sps:$4 sm:$0xff]   ;;  %7071 = vmatpush1.bf16.msra.mxu0 %v9517_v52 }
 0x48d   :  { %v12218_v24 = vpop.f32.mrb[46].mxu1  ;;  %v12220_v57 = vpop.f32.mrb[255].mxu0  ;;  %v5552_v47 = vmax.f32 %v5551_v18, %v5400_v22  ;;  %v4392_v30 = vmax.f32 %v4264_v62, 0.0  ;;  %v4120_v44 = vmul.f32 %v11392_v29, %v12100_v41  ;;  %v4512_v43 = vmax.f32 %v4511_v9, %v4391_v2  ;;  %v9522_v9 = vld [vmem:[#allocation8 + $0x52c] ss:$16 sps:$4 sm:$0xff]  }
 0x48e   :  { %v12227_v38 = vpop.f32.mrb[47].mxu1  ;;  %v5402_v23 = vmax.f32 %v5274_v58, 0.0  ;;  %v4393_v15 = vmax.f32 %v4265_v10, 0.0  ;;  %v5275_v12 = vadd.f32 %v11372_v13, %v5129_v7  ;;  %v5522_v26 = vmax.f32 %v5521_v4, %v5401_v21  ;;  %v9523_v3 = vld [vmem:[#allocation8 + $0x540] ss:$16 sps:$4 sm:$0xff]   ;;  %7111 = vmatprep.subr.bf16.mxu1 %v9522_v9 }
 0x48f   :  { %v4543_v55 = vmax.f32 %v4542_v36, %v4392_v30  ;;  %v4266_v61 = vadd.f32 %v11398_v46, %v4120_v44  ;;  %v5130_v18 = vmul.f32 %v11421_v59, %v12104_v20  ;;  %v4121_v10 = vmul.f32 %v11359_v37, %v12116_v54  ;;  %v9525_v7 = vld [vmem:[#allocation8 + $0x544] ss:$16 sps:$4 sm:$0xff]   ;;  %7112 = vmatpush1.bf16.msra.mxu1 %v9520_v17  ;;  %v9529_v17 = vld [vmem:[#allocation8 + $0x560] ss:$16 sps:$4 sm:$0xff]  }
 0x490   :  { %v5553_v62 = vmax.f32 %v5552_v47, %v5402_v23  ;;  %v4513_v2 = vmax.f32 %v4512_v43, %v4393_v15  ;;  %v5403_v58 = vmax.f32 %v5275_v12, 0.0  ;;  %v5131_v30 = vmul.f32 %v11369_v39, %v12118_v16  ;;  %v9526_v16 = vld [vmem:[#allocation8 + $0x548] ss:$16 sps:$4 sm:$0xff]   ;;  %v9528_v12 = vld [vmem:[#allocation8 + $0x54c] ss:$16 sps:$4 sm:$0xff]   ;;  %7072 = vmatprep.subr.bf16.mxu0 %v9525_v7 }
 0x491   :  { %v4394_v20 = vmax.f32 %v4266_v61, 0.0  ;;  %v5276_v21 = vadd.f32 %v11430_v27, %v5130_v18  ;;  %v4122_v47 = vmul.f32 %v11392_v29, %v12120_v32  ;;  %v4267_v43 = vadd.f32 %v11362_v28, %v4121_v10  ;;  %7113 = vmatprep.subr.bf16.mxu1 %v9528_v12  ;;  %7073 = vmatpush1.bf16.msra.mxu0 %v9523_v3  ;;  %v9537_v7 = vld [vmem:[#allocation8 + $0x584] ss:$16 sps:$4 sm:$0xff]  }
 0x492   :  { %v12238_v49 = vpop.f32.mrb[0].mxu0  ;;  %v5523_v54 = vmax.f32 %v5522_v26, %v5403_v58  ;;  %v5132_v52 = vmul.f32 %v11421_v59, %v12127_v31  ;;  %v4123_v23 = vmul.f32 %v11359_v37, %v12129_v42  ;;  %v5277_v18 = vadd.f32 %v11372_v13, %v5131_v30  ;;  %v9531_v26 = vld [vmem:[#allocation8 + $0x564] ss:$16 sps:$4 sm:$0xff]  }
 0x493   :  { %v12243_v22 = vpop.f32.mrb[48].mxu1  ;;  %v12245_v41 = vpop.f32.mrb[1].mxu0  ;;  %v4544_v32 = vmax.f32 %v4543_v55, %v4394_v20  ;;  %v5404_v61 = vmax.f32 %v5276_v21, 0.0  ;;  %v4268_v9 = vadd.f32 %v11398_v46, %v4122_v47  ;;  %v4395_v58 = vmax.f32 %v4267_v43, 0.0  ;;  %v12945_v30 = vld [vmem:[#allocation16_spill] sm:$0xff]  ;;  %7074 = vmatprep.subr.bf16.mxu0 %v9531_v26  ;;  %7114 = vmatpush1.bf16.msra.mxu1 %v9526_v16 }
 0x494   :  { %v12249_v4 = vpop.f32.mrb[49].mxu1  ;;  %v12251_v36 = vpop.f32.mrb[2].mxu0  ;;  %v5278_v10 = vadd.f32 %v11430_v27, %v5132_v52  ;;  %v4269_v31 = vadd.f32 %v11362_v28, %v4123_v23  ;;  %v5133_v42 = vmul.f32 %v11369_v39, %v12134_v14  ;;  %v5405_v20 = vmax.f32 %v5277_v18, 0.0  ;;  %v9532_v14 = vld [vmem:[#allocation8 + $0x568] ss:$16 sps:$4 sm:$0xff]   ;;  %7115 = vmatprep.subr.bf16.mxu1 %v9534_v50 }
 0x495   :  { %v12258_v44 = vpop.f32.mrb[50].mxu1  ;;  %v12260_v34 = vpop.f32.mrb[3].mxu0  ;;  %v5554_v55 = vmax.f32 %v5553_v62, %v5404_v61  ;;  %v4396_v21 = vmax.f32 %v4268_v9, 0.0  ;;  %v4124_v47 = vmul.f32 %v11392_v29, %v12945_v30  ;;  %v4514_v43 = vmax.f32 %v4513_v2, %v4395_v58  ;;  %v12946_v61 = vld [vmem:[#allocation18_spill] sm:$0xff]  ;;  %v9540_v2 = vld [vmem:[#allocation8 + $0x58c] ss:$16 sps:$4 sm:$0xff]   ;;  %7075 = vmatpush1.bf16.msra.mxu0 %v9529_v17 }
 0x496   :  { %v12267_v15 = vpop.f32.mrb[51].mxu1  ;;  %v5406_v63 = vmax.f32 %v5278_v10, 0.0  ;;  %v4397_v52 = vmax.f32 %v4269_v31, 0.0  ;;  %v5279_v23 = vadd.f32 %v11372_v13, %v5133_v42  ;;  %v5524_v3 = vmax.f32 %v5523_v54, %v5405_v20  ;;  %7076 = vmatprep.subr.bf16.mxu0 %v9537_v7 }
 0x497   :  { %v4545_v12 = vmax.f32 %v4544_v32, %v4396_v21  ;;  %v4270_v62 = vadd.f32 %v11398_v46, %v4124_v47  ;;  %v5134_v18 = vmul.f32 %v11421_v59, %v12946_v61  ;;  %v4125_v16 = vmul.f32 %v11359_v37, %v12151_v45  ;;  %v9535_v32 = vld [vmem:[#allocation8 + $0x580] ss:$16 sps:$4 sm:$0xff]   ;;  %v9543_v45 = vld [vmem:[#allocation8 + $0x5a4] ss:$16 sps:$4 sm:$0xff]   ;;  %7116 = vmatpush1.bf16.msra.mxu1 %v9532_v14 }
 0x498   :  { %v5555_v58 = vmax.f32 %v5554_v55, %v5406_v63  ;;  %v4515_v10 = vmax.f32 %v4514_v43, %v4397_v52  ;;  %v5407_v31 = vmax.f32 %v5279_v23, 0.0  ;;  %v5135_v30 = vmul.f32 %v11369_v39, %v12157_v60  ;;  %v9538_v60 = vld [vmem:[#allocation8 + $0x588] ss:$16 sps:$4 sm:$0xff]   ;;  %7117 = vmatprep.subr.bf16.mxu1 %v9540_v2 }
 0x499   :  { %v4398_v20 = vmax.f32 %v4270_v62, 0.0  ;;  %v5280_v21 = vadd.f32 %v11430_v27, %v5134_v18  ;;  %v4126_v63 = vmul.f32 %v11392_v29, %v12159_v56  ;;  %v4271_v43 = vadd.f32 %v11362_v28, %v4125_v16  ;;  %7077 = vmatpush1.bf16.msra.mxu0 %v9535_v32  ;;  %v9541_v16 = vld [vmem:[#allocation8 + $0x5a0] ss:$16 sps:$4 sm:$0xff]  }
 0x49a   :  { %v12278_v1 = vpop.f32.mrb[4].mxu0  ;;  %v5525_v47 = vmax.f32 %v5524_v3, %v5407_v31  ;;  %v5136_v17 = vmul.f32 %v11421_v59, %v12163_v6  ;;  %v4127_v52 = vmul.f32 %v11359_v37, %v12165_v40  ;;  %v5281_v61 = vadd.f32 %v11372_v13, %v5135_v30  ;;  %v9546_v3 = vld [vmem:[#allocation8 + $0x5ac] ss:$16 sps:$4 sm:$0xff]   ;;  %7078 = vmatprep.subr.bf16.mxu0 %v9543_v45 }
 0x49b   :  { %v12283_v9 = vpop.f32.mrb[52].mxu1  ;;  %v12285_v26 = vpop.f32.mrb[5].mxu0  ;;  %v4546_v56 = vmax.f32 %v4545_v12, %v4398_v20  ;;  %v5408_v62 = vmax.f32 %v5280_v21, 0.0  ;;  %v4272_v7 = vadd.f32 %v11398_v46, %v4126_v63  ;;  %v4399_v18 = vmax.f32 %v4271_v43, 0.0  ;;  %v9549_v21 = vld [vmem:[#allocation8 + $0x5c4] ss:$16 sps:$4 sm:$0xff]   ;;  %7118 = vmatpush1.bf16.msra.mxu1 %v9538_v60 }
 0x49c   :  { %v12289_v42 = vpop.f32.mrb[53].mxu1  ;;  %v12291_v54 = vpop.f32.mrb[6].mxu0  ;;  %v5282_v31 = vadd.f32 %v11430_v27, %v5136_v17  ;;  %v4273_v6 = vadd.f32 %v11362_v28, %v4127_v52  ;;  %v5137_v40 = vmul.f32 %v11369_v39, %v12172_v5  ;;  %v5409_v48 = vmax.f32 %v5281_v61, 0.0  ;;  %v9544_v52 = vld [vmem:[#allocation8 + $0x5a8] ss:$16 sps:$4 sm:$0xff]   ;;  %7119 = vmatprep.subr.bf16.mxu1 %v9546_v3 }
 0x49d   :  { %v12298_v50 = vpop.f32.mrb[54].mxu1  ;;  %v12300_v55 = vpop.f32.mrb[7].mxu0  ;;  %v5556_v14 = vmax.f32 %v5555_v58, %v5408_v62  ;;  %v4400_v12 = vmax.f32 %v4272_v7, 0.0  ;;  %v4128_v20 = vmul.f32 %v11392_v29, %v12174_v0  ;;  %v4516_v2 = vmax.f32 %v4515_v10, %v4399_v18  ;;  %v9552_v10 = vld [vmem:[#allocation8 + $0x5cc] ss:$16 sps:$4 sm:$0xff]   ;;  %7079 = vmatpush1.bf16.msra.mxu0 %v9541_v16 }
 0x49e   :  { %v12307_v23 = vpop.f32.mrb[55].mxu1  ;;  %v5410_v30 = vmax.f32 %v5282_v31, 0.0  ;;  %v4401_v63 = vmax.f32 %v4273_v6, 0.0  ;;  %v5283_v43 = vadd.f32 %v11372_v13, %v5137_v40  ;;  %v5526_v5 = vmax.f32 %v5525_v47, %v5409_v48  ;;  %v9547_v47 = vld [vmem:[#allocation8 + $0x5c0] ss:$16 sps:$4 sm:$0xff]   ;;  %7080 = vmatprep.subr.bf16.mxu0 %v9549_v21 }
 0x49f   :  { %v4547_v32 = vmax.f32 %v4546_v56, %v4400_v12  ;;  %v4274_v58 = vadd.f32 %v11398_v46, %v4128_v20  ;;  %v5138_v62 = vmul.f32 %v11421_v59, %v12182_v19  ;;  %v4129_v60 = vmul.f32 %v11359_v37, %v12198_v11  ;;  %v9555_v11 = vld [vmem:[#allocation8 + $0x5e4] ss:$16 sps:$4 sm:$0xff]   ;;  %7120 = vmatpush1.bf16.msra.mxu1 %v9544_v52 }
 0x4a0   :  { %v5557_v45 = vmax.f32 %v5556_v14, %v5410_v30  ;;  %v4517_v7 = vmax.f32 %v4516_v2, %v4401_v63  ;;  %v5411_v18 = vmax.f32 %v5283_v43, 0.0  ;;  %v5139_v6 = vmul.f32 %v11369_v39, %v12203_v51  ;;  %v9550_v51 = vld [vmem:[#allocation8 + $0x5c8] ss:$16 sps:$4 sm:$0xff]   ;;  %7121 = vmatprep.subr.bf16.mxu1 %v9552_v10 }
 0x4a1   :  { %v4402_v56 = vmax.f32 %v4274_v58, 0.0  ;;  %v5284_v19 = vadd.f32 %v11430_v27, %v5138_v62  ;;  %v4130_v3 = vmul.f32 %v11392_v29, %v12205_v33  ;;  %v4275_v20 = vadd.f32 %v11362_v28, %v4129_v60  ;;  %7081 = vmatpush1.bf16.msra.mxu0 %v9547_v47 }
 0x4a2   :  { %v12318_v17 = vpop.f32.mrb[8].mxu0  ;;  %v5527_v12 = vmax.f32 %v5526_v5, %v5411_v18  ;;  %v5140_v16 = vmul.f32 %v11421_v59, %v12209_v53  ;;  %v4131_v2 = vmul.f32 %v11359_v37, %v12211_v25  ;;  %v5285_v43 = vadd.f32 %v11372_v13, %v5139_v6  ;;  %v9558_v5 = vld [vmem:[#allocation8 + $0x5ec] ss:$16 sps:$4 sm:$0xff]   ;;  %v9553_v18 = vld [vmem:[#allocation8 + $0x5e0] ss:$16 sps:$4 sm:$0xff]   ;;  %7082 = vmatprep.subr.bf16.mxu0 %v9555_v11 }
 0x4a3   :  { %v12323_v61 = vpop.f32.mrb[56].mxu1  ;;  %v12325_v0 = vpop.f32.mrb[9].mxu0  ;;  %v4548_v33 = vmax.f32 %v4547_v32, %v4402_v56  ;;  %v5412_v63 = vmax.f32 %v5284_v19, 0.0  ;;  %v4276_v21 = vadd.f32 %v11398_v46, %v4130_v3  ;;  %v4403_v58 = vmax.f32 %v4275_v20, 0.0  ;;  %v9561_v19 = vld [vmem:[#allocation8 + $0x604] ss:$16 sps:$4 sm:$0xff]   ;;  %7122 = vmatpush1.bf16.msra.mxu1 %v9550_v51 }
 0x4a4   :  { %v12329_v31 = vpop.f32.mrb[57].mxu1  ;;  %v12331_v48 = vpop.f32.mrb[10].mxu0  ;;  %v5286_v62 = vadd.f32 %v11430_v27, %v5140_v16  ;;  %v4277_v53 = vadd.f32 %v11362_v28, %v4131_v2  ;;  %v5141_v25 = vmul.f32 %v11369_v39, %v12218_v24  ;;  %v5413_v60 = vmax.f32 %v5285_v43, 0.0  ;;  %v9556_v2 = vld [vmem:[#allocation8 + $0x5e8] ss:$16 sps:$4 sm:$0xff]   ;;  %7123 = vmatprep.subr.bf16.mxu1 %v9558_v5 }
 0x4a5   :  { %v12338_v40 = vpop.f32.mrb[58].mxu1  ;;  %v12340_v14 = vpop.f32.mrb[11].mxu0  ;;  %v5558_v52 = vmax.f32 %v5557_v45, %v5412_v63  ;;  %v4404_v32 = vmax.f32 %v4276_v21, 0.0  ;;  %v4132_v56 = vmul.f32 %v11392_v29, %v12220_v57  ;;  %v4518_v10 = vmax.f32 %v4517_v7, %v4403_v58  ;;  %v9564_v7 = vld [vmem:[#allocation8 + $0x60c] ss:$16 sps:$4 sm:$0xff]   ;;  %7083 = vmatpush1.bf16.msra.mxu0 %v9553_v18 }
 0x4a6   :  { %v12347_v30 = vpop.f32.mrb[59].mxu1  ;;  %v5414_v6 = vmax.f32 %v5286_v62, 0.0  ;;  %v4405_v3 = vmax.f32 %v4277_v53, 0.0  ;;  %v5287_v20 = vadd.f32 %v11372_v13, %v5141_v25  ;;  %v5528_v24 = vmax.f32 %v5527_v12, %v5413_v60  ;;  %7568 = vmatprep.subr.bf16.mxu0 %v9561_v19 }
 0x4a7   :  { %v4549_v47 = vmax.f32 %v4548_v33, %v4404_v32  ;;  %v4278_v45 = vadd.f32 %v11398_v46, %v4132_v56  ;;  %v5142_v63 = vmul.f32 %v11421_v59, %v12227_v38  ;;  %v4133_v51 = vmul.f32 %v11359_v37, %v12238_v49  ;;  %7124 = vmatpush1.bf16.msra.mxu1 %v9556_v2 }
 0x4a8   :  { %v5559_v11 = vmax.f32 %v5558_v52, %v5414_v6  ;;  %v4519_v21 = vmax.f32 %v4518_v10, %v4405_v3  ;;  %v5415_v58 = vmax.f32 %v5287_v20, 0.0  ;;  %v5143_v53 = vmul.f32 %v11369_v39, %v12243_v22  ;;  %7609 = vmatprep.subr.bf16.mxu1 %v9564_v7 }
 0x4a9   :  { %v4406_v33 = vmax.f32 %v4278_v45, 0.0  ;;  %v5288_v38 = vadd.f32 %v11430_v27, %v5142_v63  ;;  %v4134_v5 = vmul.f32 %v11392_v29, %v12245_v41  ;;  %v4279_v60 = vadd.f32 %v11362_v28, %v4133_v51 }
 0x4aa   :  { %v12358_v16 = vpop.f32.mrb[12].mxu0  ;;  %v5529_v49 = vmax.f32 %v5528_v24, %v5415_v58  ;;  %v5144_v18 = vmul.f32 %v11421_v59, %v12249_v4  ;;  %v4135_v32 = vmul.f32 %v11359_v37, %v12251_v36  ;;  %v5289_v41 = vadd.f32 %v11372_v13, %v5143_v53 }
 0x4ab   :  { %v12363_v43 = vpop.f32.mrb[60].mxu1  ;;  %v12365_v57 = vpop.f32.mrb[13].mxu0  ;;  %v4550_v22 = vmax.f32 %v4549_v47, %v4406_v33  ;;  %v5416_v10 = vmax.f32 %v5288_v38, 0.0  ;;  %v4280_v6 = vadd.f32 %v11398_v46, %v4134_v5  ;;  %v4407_v19 = vmax.f32 %v4279_v60, 0.0 }
 0x4ac   :  { %v12369_v62 = vpop.f32.mrb[61].mxu1  ;;  %v12371_v12 = vpop.f32.mrb[14].mxu0  ;;  %v5290_v3 = vadd.f32 %v11430_v27, %v5144_v18  ;;  %v4281_v20 = vadd.f32 %v11362_v28, %v4135_v32  ;;  %v5145_v4 = vmul.f32 %v11369_v39, %v12258_v44  ;;  %v5417_v36 = vmax.f32 %v5289_v41, 0.0 }
 0x4ad   :  { %v12378_v25 = vpop.f32.mrb[62].mxu1  ;;  %v12380_v52 = vpop.f32.mrb[15].mxu0  ;;  %v5560_v24 = vmax.f32 %v5559_v11, %v5416_v10  ;;  %v4408_v45 = vmax.f32 %v4280_v6, 0.0  ;;  %v4136_v2 = vmul.f32 %v11392_v29, %v12260_v34  ;;  %v4520_v47 = vmax.f32 %v4519_v21, %v4407_v19 }
 0x4ae   :  { %v12387_v56 = vpop.f32.mrb[63].mxu1  ;;  %v5418_v63 = vmax.f32 %v5290_v3, 0.0  ;;  %v4409_v58 = vmax.f32 %v4281_v20, 0.0  ;;  %v5291_v51 = vadd.f32 %v11372_v13, %v5145_v4  ;;  %v5530_v33 = vmax.f32 %v5529_v49, %v5417_v36 }
 0x4af   :  { %v4551_v38 = vmax.f32 %v4550_v22, %v4408_v45  ;;  %v4282_v53 = vadd.f32 %v11398_v46, %v4136_v2  ;;  %v5146_v44 = vmul.f32 %v11421_v59, %v12267_v15  ;;  %v4137_v18 = vmul.f32 %v11359_v37, %v12278_v1 }
 0x4b0   :  { %v5561_v60 = vmax.f32 %v5560_v24, %v5418_v63  ;;  %v4521_v34 = vmax.f32 %v4520_v47, %v4409_v58  ;;  %v5419_v21 = vmax.f32 %v5291_v51, 0.0  ;;  %v5147_v15 = vmul.f32 %v11369_v39, %v12283_v9 }
 0x4b1   :  { %v4410_v49 = vmax.f32 %v4282_v53, 0.0  ;;  %v5292_v22 = vadd.f32 %v11430_v27, %v5146_v44  ;;  %v4138_v41 = vmul.f32 %v11392_v29, %v12285_v26  ;;  %v4283_v1 = vadd.f32 %v11362_v28, %v4137_v18 }
 0x4b2   :  { %v12398_v7 = vpop.f32.mrb[16].mxu0  ;;  %v5531_v3 = vmax.f32 %v5530_v33, %v5419_v21  ;;  %v5148_v20 = vmul.f32 %v11421_v59, %v12289_v42  ;;  %v4139_v4 = vmul.f32 %v11359_v37, %v12291_v54  ;;  %v5293_v45 = vadd.f32 %v11372_v13, %v5147_v15 }
 0x4b3   :  { %v12403_v11 = vpop.f32.mrb[64].mxu1  ;;  %v12405_v5 = vpop.f32.mrb[17].mxu0  ;;  %v4552_v36 = vmax.f32 %v4551_v38, %v4410_v49  ;;  %v5420_v9 = vmax.f32 %v5292_v22, 0.0  ;;  %v4284_v26 = vadd.f32 %v11398_v46, %v4138_v41  ;;  %v4411_v2 = vmax.f32 %v4283_v1, 0.0 }
 0x4b4   :  { %v12409_v32 = vpop.f32.mrb[65].mxu1  ;;  %v12411_v10 = vpop.f32.mrb[18].mxu0  ;;  %v5294_v47 = vadd.f32 %v11430_v27, %v5148_v20  ;;  %v4285_v63 = vadd.f32 %v11362_v28, %v4139_v4  ;;  %v5149_v58 = vmul.f32 %v11369_v39, %v12298_v50  ;;  %v5421_v51 = vmax.f32 %v5293_v45, 0.0 }
 0x4b5   :  { %v12418_v6 = vpop.f32.mrb[66].mxu1  ;;  %v12420_v19 = vpop.f32.mrb[19].mxu0  ;;  %v5562_v42 = vmax.f32 %v5561_v60, %v5420_v9  ;;  %v4412_v33 = vmax.f32 %v4284_v26, 0.0  ;;  %v4140_v54 = vmul.f32 %v11392_v29, %v12300_v55  ;;  %v4522_v38 = vmax.f32 %v4521_v34, %v4411_v2 }
 0x4b6   :  { %v12427_v24 = vpop.f32.mrb[67].mxu1  ;;  %v5422_v53 = vmax.f32 %v5294_v47, 0.0  ;;  %v4413_v44 = vmax.f32 %v4285_v63, 0.0  ;;  %v5295_v21 = vadd.f32 %v11372_v13, %v5149_v58  ;;  %v5532_v49 = vmax.f32 %v5531_v3, %v5421_v51 }
 0x4b7   :  { %v4553_v22 = vmax.f32 %v4552_v36, %v4412_v33  ;;  %v4286_v15 = vadd.f32 %v11398_v46, %v4140_v54  ;;  %v5150_v50 = vmul.f32 %v11421_v59, %v12307_v23  ;;  %v4141_v20 = vmul.f32 %v11359_v37, %v12318_v17 }
 0x4b8   :  { %v5563_v1 = vmax.f32 %v5562_v42, %v5422_v53  ;;  %v4523_v55 = vmax.f32 %v4522_v38, %v4413_v44  ;;  %v5423_v34 = vmax.f32 %v5295_v21, 0.0  ;;  %v5151_v23 = vmul.f32 %v11369_v39, %v12323_v61 }
 0x4b9   :  { %v4414_v3 = vmax.f32 %v4286_v15, 0.0  ;;  %v5296_v36 = vadd.f32 %v11430_v27, %v5150_v50  ;;  %v4142_v45 = vmul.f32 %v11392_v29, %v12325_v0  ;;  %v4287_v17 = vadd.f32 %v11362_v28, %v4141_v20 }
 0x4ba   :  { %v12438_v18 = vpop.f32.mrb[20].mxu0  ;;  %v5533_v47 = vmax.f32 %v5532_v49, %v5423_v34  ;;  %v5152_v63 = vmul.f32 %v11421_v59, %v12329_v31  ;;  %v4143_v58 = vmul.f32 %v11359_v37, %v12331_v48  ;;  %v5297_v33 = vadd.f32 %v11372_v13, %v5151_v23 }
 0x4bb   :  { %v12443_v60 = vpop.f32.mrb[68].mxu1  ;;  %v12445_v41 = vpop.f32.mrb[21].mxu0  ;;  %v4554_v51 = vmax.f32 %v4553_v22, %v4414_v3  ;;  %v5424_v61 = vmax.f32 %v5296_v36, 0.0  ;;  %v4288_v0 = vadd.f32 %v11398_v46, %v4142_v45  ;;  %v4415_v54 = vmax.f32 %v4287_v17, 0.0 }
 0x4bc   :  { %v12449_v4 = vpop.f32.mrb[69].mxu1  ;;  %v12451_v9 = vpop.f32.mrb[22].mxu0  ;;  %v5298_v38 = vadd.f32 %v11430_v27, %v5152_v63  ;;  %v4289_v53 = vadd.f32 %v11362_v28, %v4143_v58  ;;  %v5153_v44 = vmul.f32 %v11369_v39, %v12338_v40  ;;  %v5425_v21 = vmax.f32 %v5297_v33, 0.0 }
 0x4bd   :  { %v12458_v26 = vpop.f32.mrb[70].mxu1  ;;  %v12460_v2 = vpop.f32.mrb[23].mxu0  ;;  %v5564_v31 = vmax.f32 %v5563_v1, %v5424_v61  ;;  %v4416_v49 = vmax.f32 %v4288_v0, 0.0  ;;  %v4144_v48 = vmul.f32 %v11392_v29, %v12340_v14  ;;  %v4524_v22 = vmax.f32 %v4523_v55, %v4415_v54 }
 0x4be   :  { %v12467_v42 = vpop.f32.mrb[71].mxu1  ;;  %v5426_v15 = vmax.f32 %v5298_v38, 0.0  ;;  %v4417_v50 = vmax.f32 %v4289_v53, 0.0  ;;  %v5299_v34 = vadd.f32 %v11372_v13, %v5153_v44  ;;  %v5534_v3 = vmax.f32 %v5533_v47, %v5425_v21 }
 0x4bf   :  { %v4555_v36 = vmax.f32 %v4554_v51, %v4416_v49  ;;  %v4290_v23 = vadd.f32 %v11398_v46, %v4144_v48  ;;  %v5154_v40 = vmul.f32 %v11421_v59, %v12347_v30  ;;  %v4145_v63 = vmul.f32 %v11359_v37, %v12358_v16 }
 0x4c0   :  { %v5565_v17 = vmax.f32 %v5564_v31, %v5426_v15  ;;  %v4525_v14 = vmax.f32 %v4524_v22, %v4417_v50  ;;  %v5427_v55 = vmax.f32 %v5299_v34, 0.0  ;;  %v5155_v30 = vmul.f32 %v11369_v39, %v12363_v43 }
 0x4c1   :  { %v4418_v47 = vmax.f32 %v4290_v23, 0.0  ;;  %v5300_v51 = vadd.f32 %v11430_v27, %v5154_v40  ;;  %v4146_v33 = vmul.f32 %v11392_v29, %v12365_v57  ;;  %v4291_v16 = vadd.f32 %v11362_v28, %v4145_v63 }
 0x4c2   :  { %v12478_v20 = vpop.f32.mrb[24].mxu0  ;;  %v5535_v38 = vmax.f32 %v5534_v3, %v5427_v55  ;;  %v5156_v53 = vmul.f32 %v11421_v59, %v12369_v62  ;;  %v4147_v44 = vmul.f32 %v11359_v37, %v12371_v12  ;;  %v5301_v49 = vadd.f32 %v11372_v13, %v5155_v30 }
 0x4c3   :  { %v12483_v1 = vpop.f32.mrb[72].mxu1  ;;  %v12485_v45 = vpop.f32.mrb[25].mxu0  ;;  %v4556_v21 = vmax.f32 %v4555_v36, %v4418_v47  ;;  %v5428_v43 = vmax.f32 %v5300_v51, 0.0  ;;  %v4292_v57 = vadd.f32 %v11398_v46, %v4146_v33  ;;  %v4419_v48 = vmax.f32 %v4291_v16, 0.0 }
 0x4c4   :  { %v12489_v58 = vpop.f32.mrb[73].mxu1  ;;  %v12491_v61 = vpop.f32.mrb[26].mxu0  ;;  %v5302_v22 = vadd.f32 %v11430_v27, %v5156_v53  ;;  %v4293_v15 = vadd.f32 %v11362_v28, %v4147_v44  ;;  %v5157_v50 = vmul.f32 %v11369_v39, %v12378_v25  ;;  %v5429_v34 = vmax.f32 %v5301_v49, 0.0 }
 0x4c5   :  { %v12498_v0 = vpop.f32.mrb[74].mxu1  ;;  %v12500_v54 = vpop.f32.mrb[27].mxu0  ;;  %v5566_v62 = vmax.f32 %v5565_v17, %v5428_v43  ;;  %v4420_v3 = vmax.f32 %v4292_v57, 0.0  ;;  %v4148_v12 = vmul.f32 %v11392_v29, %v12380_v52  ;;  %v4526_v36 = vmax.f32 %v4525_v14, %v4419_v48 }
 0x4c6   :  { %v12507_v31 = vpop.f32.mrb[75].mxu1  ;;  %v5430_v23 = vmax.f32 %v5302_v22, 0.0  ;;  %v4421_v40 = vmax.f32 %v4293_v15, 0.0  ;;  %v5303_v55 = vadd.f32 %v11372_v13, %v5157_v50  ;;  %v5536_v47 = vmax.f32 %v5535_v38, %v5429_v34 }
 0x4c7   :  { %v4557_v51 = vmax.f32 %v4556_v21, %v4420_v3  ;;  %v4294_v30 = vadd.f32 %v11398_v46, %v4148_v12  ;;  %v5158_v25 = vmul.f32 %v11421_v59, %v12387_v56  ;;  %v4149_v53 = vmul.f32 %v11359_v37, %v12398_v7 }
 0x4c8   :  { %v5567_v16 = vmax.f32 %v5566_v62, %v5430_v23  ;;  %v4527_v52 = vmax.f32 %v4526_v36, %v4421_v40  ;;  %v5431_v14 = vmax.f32 %v5303_v55, 0.0  ;;  %v5159_v56 = vmul.f32 %v11369_v39, %v12403_v11 }
 0x4c9   :  { %v4422_v38 = vmax.f32 %v4294_v30, 0.0  ;;  %v5304_v21 = vadd.f32 %v11430_v27, %v5158_v25  ;;  %v4150_v49 = vmul.f32 %v11392_v29, %v12405_v5  ;;  %v4295_v7 = vadd.f32 %v11362_v28, %v4149_v53 }
 0x4ca   :  { %v12518_v63 = vpop.f32.mrb[28].mxu0  ;;  %v5537_v22 = vmax.f32 %v5536_v47, %v5431_v14  ;;  %v5160_v15 = vmul.f32 %v11421_v59, %v12409_v32  ;;  %v4151_v50 = vmul.f32 %v11359_v37, %v12411_v10  ;;  %v5305_v3 = vadd.f32 %v11372_v13, %v5159_v56 }
 0x4cb   :  { %v12523_v17 = vpop.f32.mrb[76].mxu1  ;;  %v12525_v33 = vpop.f32.mrb[29].mxu0  ;;  %v4558_v34 = vmax.f32 %v4557_v51, %v4422_v38  ;;  %v5432_v11 = vmax.f32 %v5304_v21, 0.0  ;;  %v4296_v5 = vadd.f32 %v11398_v46, %v4150_v49  ;;  %v4423_v12 = vmax.f32 %v4295_v7, 0.0 }
 0x4cc   :  { %v12529_v44 = vpop.f32.mrb[77].mxu1  ;;  %v12531_v43 = vpop.f32.mrb[30].mxu0  ;;  %v5306_v36 = vadd.f32 %v11430_v27, %v5160_v15  ;;  %v4297_v23 = vadd.f32 %v11362_v28, %v4151_v50  ;;  %v5161_v40 = vmul.f32 %v11369_v39, %v12418_v6  ;;  %v5433_v55 = vmax.f32 %v5305_v3, 0.0 }
 0x4cd   :  { %v12538_v57 = vpop.f32.mrb[78].mxu1  ;;  %v12540_v48 = vpop.f32.mrb[31].mxu0  ;;  %v5568_v32 = vmax.f32 %v5567_v16, %v5432_v11  ;;  %v4424_v47 = vmax.f32 %v4296_v5, 0.0  ;;  %v4152_v10 = vmul.f32 %v11392_v29, %v12420_v19  ;;  %v4528_v51 = vmax.f32 %v4527_v52, %v4423_v12 }
 0x4ce   :  { %v12547_v62 = vpop.f32.mrb[79].mxu1  ;;  %v5434_v30 = vmax.f32 %v5306_v36, 0.0  ;;  %v4425_v25 = vmax.f32 %v4297_v23, 0.0  ;;  %v5307_v14 = vadd.f32 %v11372_v13, %v5161_v40  ;;  %v5538_v38 = vmax.f32 %v5537_v22, %v5433_v55 }
 0x4cf   :  { %v4559_v21 = vmax.f32 %v4558_v34, %v4424_v47  ;;  %v4298_v56 = vadd.f32 %v11398_v46, %v4152_v10  ;;  %v5162_v6 = vmul.f32 %v11421_v59, %v12427_v24  ;;  %v4153_v15 = vmul.f32 %v11359_v37, %v12438_v18 }
 0x4d0   :  { %v5569_v7 = vmax.f32 %v5568_v32, %v5434_v30  ;;  %v4529_v19 = vmax.f32 %v4528_v51, %v4425_v25  ;;  %v5435_v52 = vmax.f32 %v5307_v14, 0.0  ;;  %v5163_v24 = vmul.f32 %v11369_v39, %v12443_v60 }
 0x4d1   :  { %v4426_v22 = vmax.f32 %v4298_v56, 0.0  ;;  %v5308_v34 = vadd.f32 %v11430_v27, %v5162_v6  ;;  %v4154_v3 = vmul.f32 %v11392_v29, %v12445_v41  ;;  %v4299_v18 = vadd.f32 %v11362_v28, %v4153_v15 }
 0x4d2   :  { %v12558_v53 = vpop.f32.mrb[32].mxu0  ;;  %v5539_v36 = vmax.f32 %v5538_v38, %v5435_v52  ;;  %v5164_v23 = vmul.f32 %v11421_v59, %v12449_v4  ;;  %v4155_v40 = vmul.f32 %v11359_v37, %v12451_v9  ;;  %v5309_v47 = vadd.f32 %v11372_v13, %v5163_v24 }
 0x4d3   :  { %v12563_v16 = vpop.f32.mrb[80].mxu1  ;;  %v12565_v49 = vpop.f32.mrb[33].mxu0  ;;  %v4560_v55 = vmax.f32 %v4559_v21, %v4426_v22  ;;  %v5436_v60 = vmax.f32 %v5308_v34, 0.0  ;;  %v4300_v41 = vadd.f32 %v11398_v46, %v4154_v3  ;;  %v4427_v10 = vmax.f32 %v4299_v18, 0.0 }
 0x4d4   :  { %v12569_v50 = vpop.f32.mrb[81].mxu1  ;;  %v12571_v11 = vpop.f32.mrb[34].mxu0  ;;  %v5310_v51 = vadd.f32 %v11430_v27, %v5164_v23  ;;  %v4301_v30 = vadd.f32 %v11362_v28, %v4155_v40  ;;  %v5165_v25 = vmul.f32 %v11369_v39, %v12458_v26  ;;  %v5437_v14 = vmax.f32 %v5309_v47, 0.0 }
 0x4d5   :  { %v12578_v5 = vpop.f32.mrb[82].mxu1  ;;  %v12580_v12 = vpop.f32.mrb[35].mxu0  ;;  %v5570_v4 = vmax.f32 %v5569_v7, %v5436_v60  ;;  %v4428_v38 = vmax.f32 %v4300_v41, 0.0  ;;  %v4156_v9 = vmul.f32 %v11392_v29, %v12460_v2  ;;  %v4530_v21 = vmax.f32 %v4529_v19, %v4427_v10 }
 0x4d6   :  { %v12587_v32 = vpop.f32.mrb[83].mxu1  ;;  %v5438_v56 = vmax.f32 %v5310_v51, 0.0  ;;  %v4429_v6 = vmax.f32 %v4301_v30, 0.0  ;;  %v5311_v52 = vadd.f32 %v11372_v13, %v5165_v25  ;;  %v5540_v22 = vmax.f32 %v5539_v36, %v5437_v14 }
 0x4d7   :  { %v4561_v34 = vmax.f32 %v4560_v55, %v4428_v38  ;;  %v4302_v24 = vadd.f32 %v11398_v46, %v4156_v9  ;;  %v5166_v26 = vmul.f32 %v11421_v59, %v12467_v42  ;;  %v4157_v23 = vmul.f32 %v11359_v37, %v12478_v20 }
 0x4d8   :  { %v5571_v18 = vmax.f32 %v5570_v4, %v5438_v56  ;;  %v4531_v2 = vmax.f32 %v4530_v21, %v4429_v6  ;;  %v5439_v19 = vmax.f32 %v5311_v52, 0.0  ;;  %v5167_v42 = vmul.f32 %v11369_v39, %v12483_v1 }
 0x4d9   :  { %v4430_v36 = vmax.f32 %v4302_v24, 0.0  ;;  %v5312_v55 = vadd.f32 %v11430_v27, %v5166_v26  ;;  %v4158_v47 = vmul.f32 %v11392_v29, %v12485_v45  ;;  %v4303_v20 = vadd.f32 %v11362_v28, %v4157_v23 }
 0x4da   :  { %v12598_v15 = vpop.f32.mrb[36].mxu0  ;;  %v5541_v51 = vmax.f32 %v5540_v22, %v5439_v19  ;;  %v5168_v30 = vmul.f32 %v11421_v59, %v12489_v58  ;;  %v4159_v25 = vmul.f32 %v11359_v37, %v12491_v61  ;;  %v5313_v38 = vadd.f32 %v11372_v13, %v5167_v42 }
 0x4db   :  { %v12603_v7 = vpop.f32.mrb[84].mxu1  ;;  %v12605_v3 = vpop.f32.mrb[37].mxu0  ;;  %v4562_v14 = vmax.f32 %v4561_v34, %v4430_v36  ;;  %v5440_v1 = vmax.f32 %v5312_v55, 0.0  ;;  %v4304_v45 = vadd.f32 %v11398_v46, %v4158_v47  ;;  %v4431_v9 = vmax.f32 %v4303_v20, 0.0 }
 0x4dc   :  { %v12609_v40 = vpop.f32.mrb[85].mxu1  ;;  %v12611_v60 = vpop.f32.mrb[38].mxu0  ;;  %v5314_v21 = vadd.f32 %v11430_v27, %v5168_v30  ;;  %v4305_v56 = vadd.f32 %v11362_v28, %v4159_v25  ;;  %v5169_v6 = vmul.f32 %v11369_v39, %v12498_v0  ;;  %v5441_v52 = vmax.f32 %v5313_v38, 0.0 }
 0x4dd   :  { %v12618_v41 = vpop.f32.mrb[86].mxu1  ;;  %v12620_v10 = vpop.f32.mrb[39].mxu0  ;;  %v5572_v58 = vmax.f32 %v5571_v18, %v5440_v1  ;;  %v4432_v22 = vmax.f32 %v4304_v45, 0.0  ;;  %v4160_v61 = vmul.f32 %v11392_v29, %v12500_v54  ;;  %v4532_v34 = vmax.f32 %v4531_v2, %v4431_v9 }
 0x4de   :  { %v12627_v4 = vpop.f32.mrb[87].mxu1  ;;  %v5442_v24 = vmax.f32 %v5314_v21, 0.0  ;;  %v4433_v26 = vmax.f32 %v4305_v56, 0.0  ;;  %v5315_v19 = vadd.f32 %v11372_v13, %v5169_v6  ;;  %v5542_v23 = vmax.f32 %v5541_v51, %v5441_v52 }
 0x4df   :  { %v4563_v36 = vmax.f32 %v4562_v14, %v4432_v22  ;;  %v4306_v55 = vadd.f32 %v11398_v46, %v4160_v61  ;;  %v5170_v42 = vmul.f32 %v11421_v59, %v12507_v31  ;;  %v4161_v20 = vmul.f32 %v11359_v37, %v12518_v63 }
 0x4e0   :  { %v5573_v47 = vmax.f32 %v5572_v58, %v5442_v24  ;;  %v4533_v0 = vmax.f32 %v4532_v34, %v4433_v26  ;;  %v5443_v18 = vmax.f32 %v5315_v19, 0.0  ;;  %v5171_v2 = vmul.f32 %v11369_v39, %v12523_v17 }
 0x4e1   :  { %v4434_v30 = vmax.f32 %v4306_v55, 0.0  ;;  %v5316_v54 = vadd.f32 %v11430_v27, %v5170_v42  ;;  %v4162_v51 = vmul.f32 %v11392_v29, %v12525_v33  ;;  %v4307_v14 = vadd.f32 %v11362_v28, %v4161_v20 }
 0x4e2   :  { %v5543_v25 = vmax.f32 %v5542_v23, %v5443_v18  ;;  %v5172_v31 = vmul.f32 %v11421_v59, %v12529_v44  ;;  %v4163_v1 = vmul.f32 %v11359_v37, %v12531_v43  ;;  %v5317_v45 = vadd.f32 %v11372_v13, %v5171_v2 }
 0x4e3   :  { %v4564_v38 = vmax.f32 %v4563_v36, %v4434_v30  ;;  %v5444_v63 = vmax.f32 %v5316_v54, 0.0  ;;  %v4308_v9 = vadd.f32 %v11398_v46, %v4162_v51  ;;  %v4435_v21 = vmax.f32 %v4307_v14, 0.0 }
 0x4e4   :  { %v5318_v17 = vadd.f32 %v11430_v27, %v5172_v31  ;;  %v4309_v33 = vadd.f32 %v11362_v28, %v4163_v1  ;;  %v5173_v56 = vmul.f32 %v11369_v39, %v12538_v57  ;;  %v5445_v58 = vmax.f32 %v5317_v45, 0.0 }
 0x4e5   :  { %v5574_v6 = vmax.f32 %v5573_v47, %v5444_v63  ;;  %v4436_v44 = vmax.f32 %v4308_v9, 0.0  ;;  %v4164_v43 = vmul.f32 %v11392_v29, %v12540_v48  ;;  %v4534_v52 = vmax.f32 %v4533_v0, %v4435_v21 }
 0x4e6   :  { %v5446_v22 = vmax.f32 %v5318_v17, 0.0  ;;  %v4437_v61 = vmax.f32 %v4309_v33, 0.0  ;;  %v5319_v34 = vadd.f32 %v11372_v13, %v5173_v56  ;;  %v5544_v24 = vmax.f32 %v5543_v25, %v5445_v58 }
 0x4e7   :  { %v4565_v26 = vmax.f32 %v4564_v38, %v4436_v44  ;;  %v4310_v19 = vadd.f32 %v11398_v46, %v4164_v43  ;;  %v5174_v23 = vmul.f32 %v11421_v59, %v12547_v62  ;;  %v4165_v42 = vmul.f32 %v11359_v37, %v12558_v53 }
 0x4e8   :  { %v5575_v36 = vmax.f32 %v5574_v6, %v5446_v22  ;;  %v4535_v57 = vmax.f32 %v4534_v52, %v4437_v61  ;;  %v5447_v55 = vmax.f32 %v5319_v34, 0.0  ;;  %v5175_v0 = vmul.f32 %v11369_v39, %v12563_v16 }
 0x4e9   :  { %v4438_v47 = vmax.f32 %v4310_v19, 0.0  ;;  %v5320_v48 = vadd.f32 %v11430_v27, %v5174_v23  ;;  %v4166_v18 = vmul.f32 %v11392_v29, %v12565_v49  ;;  %v4311_v30 = vadd.f32 %v11362_v28, %v4165_v42 }
 0x4ea   :  { %v5545_v20 = vmax.f32 %v5544_v24, %v5447_v55  ;;  %v5176_v62 = vmul.f32 %v11421_v59, %v12569_v50  ;;  %v4167_v54 = vmul.f32 %v11359_v37, %v12571_v11  ;;  %v5321_v51 = vadd.f32 %v11372_v13, %v5175_v0 }
 0x4eb   :  { %v4566_v2 = vmax.f32 %v4565_v26, %v4438_v47  ;;  %v5448_v53 = vmax.f32 %v5320_v48, 0.0  ;;  %v4312_v25 = vadd.f32 %v11398_v46, %v4166_v18  ;;  %v4439_v14 = vmax.f32 %v4311_v30, 0.0 }
 0x4ec   :  { %v5322_v16 = vadd.f32 %v11430_v27, %v5176_v62  ;;  %v4313_v49 = vadd.f32 %v11362_v28, %v4167_v54  ;;  %v5177_v31 = vmul.f32 %v11369_v39, %v12578_v5  ;;  %v5449_v38 = vmax.f32 %v5321_v51, 0.0 }
 0x4ed   :  { %v5576_v1 = vmax.f32 %v5575_v36, %v5448_v53  ;;  %v4440_v50 = vmax.f32 %v4312_v25, 0.0  ;;  %v4168_v11 = vmul.f32 %v11392_v29, %v12580_v12  ;;  %v4536_v63 = vmax.f32 %v4535_v57, %v4439_v14 }
 0x4ee   :  { %v5450_v45 = vmax.f32 %v5322_v16, 0.0  ;;  %v4441_v9 = vmax.f32 %v4313_v49, 0.0  ;;  %v5323_v21 = vadd.f32 %v11372_v13, %v5177_v31  ;;  %v5546_v17 = vmax.f32 %v5545_v20, %v5449_v38  ;;  %v12950_v49 = vld [vmem:[#allocation20_spill] sm:$0xff] }
 0x4ef   :  { %v4567_v33 = vmax.f32 %v4566_v2, %v4440_v50  ;;  %v4314_v56 = vadd.f32 %v11398_v46, %v4168_v11  ;;  %v5178_v6 = vmul.f32 %v11421_v59, %v12587_v32  ;;  %v4169_v43 = vmul.f32 %v11359_v37, %v12598_v15 }
 0x4f0   :  { %v5577_v58 = vmax.f32 %v5576_v1, %v5450_v45  ;;  %v4537_v5 = vmax.f32 %v4536_v63, %v4441_v9  ;;  %v5451_v44 = vmax.f32 %v5323_v21, 0.0  ;;  %v5179_v22 = vmul.f32 %v11369_v39, %v12603_v7 }
 0x4f1   :  { %v4442_v52 = vmax.f32 %v4314_v56, 0.0  ;;  %v5324_v12 = vadd.f32 %v11430_v27, %v5178_v6  ;;  %v4170_v61 = vmul.f32 %v11392_v29, %v12605_v3  ;;  %v4315_v24 = vadd.f32 %v11362_v28, %v4169_v43 }
 0x4f2   :  { %v5547_v34 = vmax.f32 %v5546_v17, %v5451_v44  ;;  %v5180_v32 = vmul.f32 %v11421_v59, %v12609_v40  ;;  %v4171_v26 = vmul.f32 %v11359_v37, %v12611_v60  ;;  %v5325_v23 = vadd.f32 %v11372_v13, %v5179_v22 }
 0x4f3   :  { %v4568_v19 = vmax.f32 %v4567_v33, %v4442_v52  ;;  %v5452_v15 = vmax.f32 %v5324_v12, 0.0  ;;  %v4316_v36 = vadd.f32 %v11398_v46, %v4170_v61  ;;  %v4443_v57 = vmax.f32 %v4315_v24, 0.0 }
 0x4f4   :  { %v5326_v7 = vadd.f32 %v11430_v27, %v5180_v32  ;;  %v4317_v3 = vadd.f32 %v11362_v28, %v4171_v26  ;;  %v5181_v55 = vmul.f32 %v11369_v39, %v12618_v41  ;;  %v5453_v47 = vmax.f32 %v5325_v23, 0.0 }
 0x4f5   :  { %v5578_v42 = vmax.f32 %v5577_v58, %v5452_v15  ;;  %v4444_v40 = vmax.f32 %v4316_v36, 0.0  ;;  %v4172_v37 = vmul.f32 %v11392_v29, %v12620_v10  ;;  %v4538_v60 = vmax.f32 %v4537_v5, %v4443_v57 }
 0x4f6   :  { %v5454_v48 = vmax.f32 %v5326_v7, 0.0  ;;  %v4445_v0 = vmax.f32 %v4317_v3, 0.0  ;;  %v5327_v18 = vadd.f32 %v11372_v13, %v5181_v55  ;;  %v5548_v20 = vmax.f32 %v5547_v34, %v5453_v47  ;;  %v12948_v13 = vld [vmem:[#allocation17_spill] sm:$0xff] }
 0x4f7   :  { %v4569_v30 = vmax.f32 %v4568_v19, %v4444_v40  ;;  %v4318_v62 = vadd.f32 %v11398_v46, %v4172_v37  ;;  %v5182_v28 = vmul.f32 %v11421_v59, %v12627_v4  ;;  %v12947_v39 = vrot.slane %v12149_v8, 2 }
 0x4f8   :  { %v5579_v54 = vmax.f32 %v5578_v42, %v5454_v48  ;;  %v4539_v2 = vmax.f32 %v4538_v60, %v4445_v0  ;;  %v5455_v53 = vmax.f32 %v5327_v18, 0.0  ;;  %v7150_v29 = vrot.slane %v12193_v35, 2 }
 0x4f9   :  { %v6629_v41 = vmax.f32 %v12149_v8, %v12947_v39  ;;  %v4446_v10 = vmax.f32 %v4318_v62, 0.0  ;;  %v5328_v51 = vadd.f32 %v11430_v27, %v5182_v28  ;;  %v12949_v25 = vrot.slane %v12948_v13, 2 }
 0x4fa   :  { %v6638_v46 = vrot.slane %v4539_v2, 4  ;;  %v5549_v16 = vmax.f32 %v5548_v20, %v5455_v53  ;;  %v12951_v59 = vrot.slane %v12950_v49, 2  ;;  %v7151_v11 = vmax.f32 %v12193_v35, %v7150_v29 }
 0x4fb   :  { %v7145_v14 = vmax.f32 %v12948_v13, %v12949_v25  ;;  %v4570_v31 = vmax.f32 %v4569_v30, %v4446_v10  ;;  %v5456_v8 = vmax.f32 %v5328_v51, 0.0  ;;  %v6630_v1 = vrot.slane %v6629_v41, 1  ;;  %v9559_v51 = vld [vmem:[#allocation8 + $0x600] ss:$16 sps:$4 sm:$0xff]   ;;  %v9562_v13 = vld [vmem:[#allocation8 + $0x608] ss:$16 sps:$4 sm:$0xff]  }
 0x4fc   :  { %v6635_v4 = vmax.f32 %v12950_v49, %v12951_v59  ;;  %v6639_v38 = vmax.f32 %v4539_v2, %v6638_v46  ;;  %v7154_v50 = vrot.slane %v5549_v16, 4  ;;  %v7152_v44 = vrot.slane %v7151_v11, 1  ;;  %v9567_v46 = vld [vmem:[#allocation8 + $0x624] ss:$16 sps:$4 sm:$0xff]   ;;  %v9565_v59 = vld [vmem:[#allocation8 + $0x620] ss:$16 sps:$4 sm:$0xff]  }
 0x4fd   :  { %v6644_v63 = vrot.slane %v4570_v31, 4  ;;  %v5580_v45 = vmax.f32 %v5579_v54, %v5456_v8  ;;  %v7146_v27 = vrot.slane %v7145_v14, 1  ;;  %v6631_v6 = vmax.f32 %v6629_v41, %v6630_v1  ;;  %v9576_v8 = vld [vmem:[#allocation8 + $0x64c] ss:$16 sps:$4 sm:$0xff]   ;;  %v9571_v1 = vld [vmem:[#allocation8 + $0x640] ss:$16 sps:$4 sm:$0xff]  }
 0x4fe   :  { %v6640_v9 = vrot.slane %v6639_v38, 2  ;;  %v7155_v21 = vmax.f32 %v5549_v16, %v7154_v50  ;;  %v6636_v17 = vrot.slane %v6635_v4, 1  ;;  %v7153_v36 = vmax.f32 %v7151_v11, %v7152_v44  ;;  %v9570_v16 = vld [vmem:[#allocation8 + $0x62c] ss:$16 sps:$4 sm:$0xff]   ;;  %v9579_v50 = vld [vmem:[#allocation8 + $0x664] ss:$16 sps:$4 sm:$0xff]  }
 0x4ff   :  { %v6645_v33 = vmax.f32 %v4570_v31, %v6644_v63  ;;  %v7160_v56 = vrot.slane %v5580_v45, 4  ;;  %v7147_v12 = vmax.f32 %v7145_v14, %v7146_v27  ;;  %v6650_v32 = vpack.c.bf16 %v6631_v6, %v6631_v6  ;;  %v9573_v31 = vld [vmem:[#allocation8 + $0x644] ss:$16 sps:$4 sm:$0xff]   ;;  %v9582_v11 = vld [vmem:[#allocation8 + $0x66c] ss:$16 sps:$4 sm:$0xff]  }
 0x500   :  { %v6641_v58 = vmax.f32 %v6639_v38, %v6640_v9  ;;  %v7156_v5 = vrot.slane %v7155_v21, 2  ;;  %v6637_v35 = vmax.f32 %v6635_v4, %v6636_v17  ;;  %v7167_v18 = vpack.c.bf16 %v7153_v36, %v7153_v36  ;;  %v9568_v4 = vld [vmem:[#allocation8 + $0x628] ss:$16 sps:$4 sm:$0xff]   ;;  %v9577_v63 = vld [vmem:[#allocation8 + $0x660] ss:$16 sps:$4 sm:$0xff]  }
 0x501   :  { %v6646_v43 = vrot.slane %v6645_v33, 2  ;;  %v7161_v52 = vmax.f32 %v5580_v45, %v7160_v56  ;;  %v7166_v57 = vpack.c.bf16 %v7147_v12, %v7147_v12  ;;  %v6722_v40 = vunpack.c.l.b16 %v6650_v32  ;;  %v9574_v38 = vld [vmem:[#allocation8 + $0x648] ss:$16 sps:$4 sm:$0xff]   ;;  %v9585_v27 = vld [vmem:[#allocation8 + $0x684] ss:$16 sps:$4 sm:$0xff]  }
 0x502   :  { %v6642_v22 = vrot.slane %v6641_v58, 1  ;;  %v7157_v61 = vmax.f32 %v7155_v21, %v7156_v5  ;;  %v6651_v47 = vpack.c.bf16 %v6637_v35, %v6637_v35  ;;  %v7239_v53 = vunpack.c.l.b16 %v7167_v18  ;;  %v9580_v45 = vld [vmem:[#allocation8 + $0x668] ss:$16 sps:$4 sm:$0xff]   ;;  %v9588_v9 = vld [vmem:[#allocation8 + $0x68c] ss:$16 sps:$4 sm:$0xff]  }
 0x503   :  { %v6647_v34 = vmax.f32 %v6645_v33, %v6646_v43  ;;  %v7162_v24 = vrot.slane %v7161_v52, 2  ;;  %v7238_v20 = vunpack.c.l.b16 %v7166_v57  ;;  %v9583_v21 = vld [vmem:[#allocation8 + $0x680] ss:$16 sps:$4 sm:$0xff]   ;;  %v9586_v17 = vld [vmem:[#allocation8 + $0x688] ss:$16 sps:$4 sm:$0xff]  }
 0x504   :  { %v6643_v26 = vmax.f32 %v6641_v58, %v6642_v22  ;;  %v7158_v19 = vrot.slane %v7157_v61, 1  ;;  %v6723_v28 = vunpack.c.l.b16 %v6651_v47  ;;  %v9591_v33 = vld [vmem:[#allocation8 + $0x6a4] ss:$16 sps:$4 sm:$0xff]   ;;  %v9594_v56 = vld [vmem:[#allocation8 + $0x6ac] ss:$16 sps:$4 sm:$0xff]  }
 0x505   :  { %v6648_v15 = vrot.slane %v6647_v34, 1  ;;  %v7163_v23 = vmax.f32 %v7161_v52, %v7162_v24  ;;  %v9589_v6 = vld [vmem:[#allocation8 + $0x6a0] ss:$16 sps:$4 sm:$0xff]   ;;  %v9592_v58 = vld [vmem:[#allocation8 + $0x6a8] ss:$16 sps:$4 sm:$0xff]  }
 0x506   :  { %v6652_v7 = vpack.c.bf16 %v6643_v26, %v6643_v26  ;;  %v7159_v3 = vmax.f32 %v7157_v61, %v7158_v19  ;;  %v9597_v5 = vld [vmem:[#allocation8 + $0x6c4] ss:$16 sps:$4 sm:$0xff]   ;;  %v9600_v44 = vld [vmem:[#allocation8 + $0x6cc] ss:$16 sps:$4 sm:$0xff]   ;;  %v9595_v43 = vld [vmem:[#allocation8 + $0x6c0] ss:$16 sps:$4 sm:$0xff]  }
 0x507   :  { %v7164_v55 = vrot.slane %v7163_v23, 1  ;;  %v6649_v42 = vmax.f32 %v6647_v34, %v6648_v15  ;;  %v9598_v52 = vld [vmem:[#allocation8 + $0x6c8] ss:$16 sps:$4 sm:$0xff]   ;;  %v9603_v12 = vld [vmem:[#allocation8 + $0x6e4] ss:$16 sps:$4 sm:$0xff]  }
 0x508   :  { %v6724_v37 = vunpack.c.l.b16 %v6652_v7  ;;  %v7168_v60 = vpack.c.bf16 %v7159_v3, %v7159_v3  ;;  %v9606_v22 = vld [vmem:[#allocation8 + $0x6ec] ss:$16 sps:$4 sm:$0xff]   ;;  %v9601_v61 = vld [vmem:[#allocation8 + $0x6e0] ss:$16 sps:$4 sm:$0xff]   ;;  %v9604_v34 = vld [vmem:[#allocation8 + $0x6e8] ss:$16 sps:$4 sm:$0xff]  }
 0x509   :  { %v6653_v48 = vpack.c.bf16 %v6649_v42, %v6649_v42  ;;  %v7165_v0 = vmax.f32 %v7163_v23, %v7164_v55  ;;  %v9609_v24 = vld [vmem:[#allocation8 + $0x704] ss:$16 sps:$4 sm:$0xff]   ;;  %v9612_v35 = vld [vmem:[#allocation8 + $0x70c] ss:$16 sps:$4 sm:$0xff]   ;;  %v9607_v32 = vld [vmem:[#allocation8 + $0x700] ss:$16 sps:$4 sm:$0xff]  }
 0x50a   :  { %v6726_v30 = vsel %vm5797_vm2, %v6724_v37, %v6722_v40  ;;  %v7240_v62 = vunpack.c.l.b16 %v7168_v60  ;;  %v9610_v26 = vld [vmem:[#allocation8 + $0x708] ss:$16 sps:$4 sm:$0xff]   ;;  %v9615_v19 = vld [vmem:[#allocation8 + $0x724] ss:$16 sps:$4 sm:$0xff]   ;;  %v9618_v15 = vld [vmem:[#allocation8 + $0x72c] ss:$16 sps:$4 sm:$0xff]  }
 0x50b   :  { %v6725_v39 = vunpack.c.l.b16 %v6653_v48  ;;  %v7169_v41 = vpack.c.bf16 %v7165_v0, %v7165_v0  ;;  %v6728_v25 = vpack.c.b16 %v6726_v30, %v6726_v30  ;;  %v9613_v23 = vld [vmem:[#allocation8 + $0x720] ss:$16 sps:$4 sm:$0xff]   ;;  %v9616_v36 = vld [vmem:[#allocation8 + $0x728] ss:$16 sps:$4 sm:$0xff]   ;;  %v9621_v57 = vld [vmem:[#allocation8 + $0x744] ss:$16 sps:$4 sm:$0xff]  }
 0x50c   :  { %v12727_v54 = vsel %vm5797_vm2, %v7240_v62, %v7238_v20  ;;  %v9624_v7 = vld [vmem:[#allocation8 + $0x74c] ss:$16 sps:$4 sm:$0xff]   ;;  %v9619_v3 = vld [vmem:[#allocation8 + $0x740] ss:$16 sps:$4 sm:$0xff]   ;;  %v9622_v55 = vld [vmem:[#allocation8 + $0x748] ss:$16 sps:$4 sm:$0xff]  }
 0x50d   :  { %v6727_v2 = vsel %vm5797_vm2, %v6725_v39, %v6723_v28  ;;  %v7241_v29 = vunpack.c.l.b16 %v7169_v41  ;;  %v9627_v42 = vld [vmem:[#allocation8 + $0x764] ss:$16 sps:$4 sm:$0xff]   ;;  %v9630_v47 = vld [vmem:[#allocation8 + $0x76c] ss:$16 sps:$4 sm:$0xff]   ;;  %v9625_v40 = vld [vmem:[#allocation8 + $0x760] ss:$16 sps:$4 sm:$0xff]  }
 0x50e   :  { %v6729_v10 = vpack.c.b16 %v6727_v2, %v6727_v2  ;;  %v9628_v37 = vld [vmem:[#allocation8 + $0x768] ss:$16 sps:$4 sm:$0xff]   ;;  %v9633_v60 = vld [vmem:[#allocation8 + $0x784] ss:$16 sps:$4 sm:$0xff]   ;;  %v9636_v48 = vld [vmem:[#allocation8 + $0x78c] ss:$16 sps:$4 sm:$0xff]  }
 0x50f   :  { %v7243_v14 = vsel %vm5797_vm2, %v7241_v29, %v7239_v53  ;;  %v9631_v0 = vld [vmem:[#allocation8 + $0x780] ss:$16 sps:$4 sm:$0xff]   ;;  %v9634_v18 = vld [vmem:[#allocation8 + $0x788] ss:$16 sps:$4 sm:$0xff]   ;;  %v9639_v20 = vld [vmem:[#allocation8 + $0x7a4] ss:$16 sps:$4 sm:$0xff]  }
 0x510   :  { %7084 = vmatprep.mubr.bf16.mxu0 %v6729_v10  ;;  %7125 = vmatprep.mubr.bf16.mxu1 %v6729_v10  ;;  %v7245_v49 = vpack.c.b16 %v7243_v14, %v7243_v14  ;;  %v9642_v30 = vld [vmem:[#allocation8 + $0x7ac] ss:$16 sps:$4 sm:$0xff]   ;;  %v9637_v62 = vld [vmem:[#allocation8 + $0x7a0] ss:$16 sps:$4 sm:$0xff]   ;;  %v9640_v28 = vld [vmem:[#allocation8 + $0x7a8] ss:$16 sps:$4 sm:$0xff]  }
 0x511   :  { %7085 = vmatmul.mubr.bf16.vlgmr.msra.gmra.mrb[40].mxu0 %v6728_v25  ;;  %7126 = vmatmul.mubr.bf16.vlgmr.msra.gmra.mrb[88].mxu1 %v6728_v25  ;;  %v9645_v39 = vld [vmem:[#allocation8 + $0x7c4] ss:$16 sps:$4 sm:$0xff]   ;;  %v9648_v41 = vld [vmem:[#allocation8 + $0x7cc] ss:$16 sps:$4 sm:$0xff]   ;;  %v9643_v2 = vld [vmem:[#allocation8 + $0x7c0] ss:$16 sps:$4 sm:$0xff]  }
 0x512   :  { %7569 = vmatpush1.bf16.msra.mxu0 %v9559_v51  ;;  %7610 = vmatpush1.bf16.msra.mxu1 %v9562_v13  ;;  %v9646_v53 = vld [vmem:[#allocation8 + $0x7c8] ss:$16 sps:$4 sm:$0xff]   ;;  %v9651_v29 = vld [vmem:[#allocation8 + $0x7e4] ss:$16 sps:$4 sm:$0xff]   ;;  %v9654_v10 = vld [vmem:[#allocation8 + $0x7ec] ss:$16 sps:$4 sm:$0xff]  }
 0x513   :  { %7600 = vmatprep.mubr.bf16.mxu0 %v7245_v49  ;;  %7641 = vmatprep.mubr.bf16.mxu1 %v7245_v49  ;;  %v9649_v51 = vld [vmem:[#allocation8 + $0x7e0] ss:$16 sps:$4 sm:$0xff]   ;;  %v9652_v13 = vld [vmem:[#allocation8 + $0x7e8] ss:$16 sps:$4 sm:$0xff]   ;;  %v9657_v25 = vld [vmem:[#allocation9 + $0x4] ss:$8 sps:$4 sm:$0xff]  }
 0x514   :  { %7570 = vmatprep.subr.bf16.mxu0 %v9567_v46  ;;  %7611 = vmatprep.subr.bf16.mxu1 %v9570_v16  ;;  %v9655_v14 = vld [vmem:[#allocation9] ss:$8 sps:$4 sm:$0xff]   ;;  %v7244_v46 = vpack.c.b16 %v12727_v54, %v12727_v54  ;;  %v9660_v16 = vld [vmem:[#allocation9 + $0x14] ss:$8 sps:$4 sm:$0xff]   ;;  %v9658_v49 = vld [vmem:[#allocation9 + $0x10] ss:$8 sps:$4 sm:$0xff]  }
 0x515   :  { %v9672_v54 = vld [vmem:[#allocation9 + $0x54] ss:$8 sps:$4 sm:$0xff]  }
 0x516   :  { %7571 = vmatpush1.bf16.msra.mxu0 %v9565_v59  ;;  %7612 = vmatpush1.bf16.msra.mxu1 %v9568_v4  ;;  %v9663_v59 = vld [vmem:[#allocation9 + $0x24] ss:$8 sps:$4 sm:$0xff]   ;;  %v9661_v4 = vld [vmem:[#allocation9 + $0x20] ss:$8 sps:$4 sm:$0xff]  }
 0x517   :  { %7572 = vmatprep.subr.bf16.mxu0 %v9573_v31  ;;  %7613 = vmatprep.subr.bf16.mxu1 %v9576_v8  ;;  %v9666_v31 = vld [vmem:[#allocation9 + $0x34] ss:$8 sps:$4 sm:$0xff]   ;;  %v9664_v8 = vld [vmem:[#allocation9 + $0x30] ss:$8 sps:$4 sm:$0xff]  }
 0x51a   :  { %7573 = vmatpush1.bf16.msra.mxu0 %v9571_v1  ;;  %7614 = vmatpush1.bf16.msra.mxu1 %v9574_v38  ;;  %v9669_v1 = vld [vmem:[#allocation9 + $0x44] ss:$8 sps:$4 sm:$0xff]   ;;  %v9667_v38 = vld [vmem:[#allocation9 + $0x40] ss:$8 sps:$4 sm:$0xff]  }
 0x51b   :  { %7574 = vmatprep.subr.bf16.mxu0 %v9579_v50  ;;  %7615 = vmatprep.subr.bf16.mxu1 %v9582_v11  ;;  %v9670_v50 = vld [vmem:[#allocation9 + $0x50] ss:$8 sps:$4 sm:$0xff]   ;;  %v9675_v11 = vld [vmem:[#allocation9 + $0x64] ss:$8 sps:$4 sm:$0xff]  }
 0x51e   :  { %7575 = vmatpush1.bf16.msra.mxu0 %v9577_v63  ;;  %7616 = vmatpush1.bf16.msra.mxu1 %v9580_v45  ;;  %v9673_v63 = vld [vmem:[#allocation9 + $0x60] ss:$8 sps:$4 sm:$0xff]   ;;  %v9678_v45 = vld [vmem:[#allocation9 + $0x74] ss:$8 sps:$4 sm:$0xff]  }
 0x51f   :  { %7576 = vmatprep.subr.bf16.mxu0 %v9585_v27  ;;  %7617 = vmatprep.subr.bf16.mxu1 %v9588_v9  ;;  %v9676_v27 = vld [vmem:[#allocation9 + $0x70] ss:$8 sps:$4 sm:$0xff]   ;;  %v9681_v9 = vld [vmem:[#allocation9 + $0x84] ss:$8 sps:$4 sm:$0xff]  }
 0x522   :  { %7577 = vmatpush1.bf16.msra.mxu0 %v9583_v21  ;;  %7618 = vmatpush1.bf16.msra.mxu1 %v9586_v17  ;;  %v9679_v21 = vld [vmem:[#allocation9 + $0x80] ss:$8 sps:$4 sm:$0xff]   ;;  %v9684_v17 = vld [vmem:[#allocation9 + $0x94] ss:$8 sps:$4 sm:$0xff]  }
 0x523   :  { %7578 = vmatprep.subr.bf16.mxu0 %v9591_v33  ;;  %7619 = vmatprep.subr.bf16.mxu1 %v9594_v56  ;;  %v9682_v33 = vld [vmem:[#allocation9 + $0x90] ss:$8 sps:$4 sm:$0xff]   ;;  %v9687_v56 = vld [vmem:[#allocation9 + $0xa4] ss:$8 sps:$4 sm:$0xff]  }
 0x526   :  { %7579 = vmatpush1.bf16.msra.mxu0 %v9589_v6  ;;  %7620 = vmatpush1.bf16.msra.mxu1 %v9592_v58  ;;  %v9685_v6 = vld [vmem:[#allocation9 + $0xa0] ss:$8 sps:$4 sm:$0xff]   ;;  %v9690_v58 = vld [vmem:[#allocation9 + $0xb4] ss:$8 sps:$4 sm:$0xff]  }
 0x527   :  { %7580 = vmatprep.subr.bf16.mxu0 %v9597_v5  ;;  %7621 = vmatprep.subr.bf16.mxu1 %v9600_v44  ;;  %v9688_v5 = vld [vmem:[#allocation9 + $0xb0] ss:$8 sps:$4 sm:$0xff]   ;;  %v9693_v44 = vld [vmem:[#allocation9 + $0xc4] ss:$8 sps:$4 sm:$0xff]  }
 0x52a   :  { %7581 = vmatpush1.bf16.msra.mxu0 %v9595_v43  ;;  %7622 = vmatpush1.bf16.msra.mxu1 %v9598_v52  ;;  %v9691_v43 = vld [vmem:[#allocation9 + $0xc0] ss:$8 sps:$4 sm:$0xff]   ;;  %v9696_v52 = vld [vmem:[#allocation9 + $0xd4] ss:$8 sps:$4 sm:$0xff]  }
 0x52b   :  { %7582 = vmatprep.subr.bf16.mxu0 %v9603_v12  ;;  %7623 = vmatprep.subr.bf16.mxu1 %v9606_v22  ;;  %v9694_v12 = vld [vmem:[#allocation9 + $0xd0] ss:$8 sps:$4 sm:$0xff]   ;;  %v9697_v22 = vld [vmem:[#allocation9 + $0xe0] ss:$8 sps:$4 sm:$0xff]  }
 0x52e   :  { %7583 = vmatpush1.bf16.msra.mxu0 %v9601_v61  ;;  %7624 = vmatpush1.bf16.msra.mxu1 %v9604_v34  ;;  %v9699_v61 = vld [vmem:[#allocation9 + $0xe4] ss:$8 sps:$4 sm:$0xff]   ;;  %v9702_v34 = vld [vmem:[#allocation9 + $0xf4] ss:$8 sps:$4 sm:$0xff]  }
 0x52f   :  { %7584 = vmatprep.subr.bf16.mxu0 %v9609_v24  ;;  %7625 = vmatprep.subr.bf16.mxu1 %v9612_v35  ;;  %v9700_v24 = vld [vmem:[#allocation9 + $0xf0] ss:$8 sps:$4 sm:$0xff]   ;;  %v9705_v35 = vld [vmem:[#allocation9 + $0x104] ss:$8 sps:$4 sm:$0xff]  }
 0x532   :  { %7585 = vmatpush1.bf16.msra.mxu0 %v9607_v32  ;;  %7626 = vmatpush1.bf16.msra.mxu1 %v9610_v26  ;;  %v8228_v32 = vld [vmem:[%s12882_s11 + $0x80] sm:$0xff]  ;;  %v8229_v26 = vld [vmem:[%s12882_s11 + $0x88] sm:$0xff] }
 0x533   :  { %7586 = vmatprep.subr.bf16.mxu0 %v9615_v19  ;;  %7627 = vmatprep.subr.bf16.mxu1 %v9618_v15  ;;  %v8212_v19 = vld [vmem:[%s12882_s11] sm:$0xff]  ;;  %v9059_v15 = vpack.c.bf16 %v8229_v26, %v8228_v32 }
 0x536   :  { %7587 = vmatpush1.bf16.msra.mxu0 %v9613_v23  ;;  %7628 = vmatpush1.bf16.msra.mxu1 %v9616_v36  ;;  %v8213_v23 = vld [vmem:[%s12882_s11 + $0x8] sm:$0xff]  ;;  %v8230_v36 = vld [vmem:[%s12882_s11 + $0x90] sm:$0xff] }
 0x537   :  { %7588 = vmatprep.subr.bf16.mxu0 %v9621_v57  ;;  %7629 = vmatprep.subr.bf16.mxu1 %v9624_v7  ;;  %v8231_v57 = vld [vmem:[%s12882_s11 + $0x98] sm:$0xff]  ;;  %v9061_v7 = vpack.c.bf16 %v8213_v23, %v8212_v19 }
 0x53a   :  { %7589 = vmatpush1.bf16.msra.mxu0 %v9619_v3  ;;  %7630 = vmatpush1.bf16.msra.mxu1 %v9622_v55  ;;  %v9063_v3 = vpack.c.bf16 %v8231_v57, %v8230_v36  ;;  %v8214_v55 = vld [vmem:[%s12882_s11 + $0x10] sm:$0xff]  ;;  %v9703_v57 = vld [vmem:[#allocation9 + $0x100] ss:$8 sps:$4 sm:$0xff]  }
 0x53b   :  { %7590 = vmatprep.subr.bf16.mxu0 %v9627_v42  ;;  %7631 = vmatprep.subr.bf16.mxu1 %v9630_v47  ;;  %v8215_v42 = vld [vmem:[%s12882_s11 + $0x18] sm:$0xff]  ;;  %v8232_v47 = vld [vmem:[%s12882_s11 + $0xa0] sm:$0xff] }
 0x53e   :  { %7591 = vmatpush1.bf16.msra.mxu0 %v9625_v40  ;;  %7632 = vmatpush1.bf16.msra.mxu1 %v9628_v37  ;;  %v8233_v40 = vld [vmem:[%s12882_s11 + $0xa8] sm:$0xff]  ;;  %v9065_v37 = vpack.c.bf16 %v8215_v42, %v8214_v55  ;;  %v9706_v42 = vld [vmem:[#allocation9 + $0x110] ss:$8 sps:$4 sm:$0xff]  }
 0x53f   :  { %7592 = vmatprep.subr.bf16.mxu0 %v9633_v60  ;;  %7633 = vmatprep.subr.bf16.mxu1 %v9636_v48  ;;  %v9067_v60 = vpack.c.bf16 %v8233_v40, %v8232_v47  ;;  %v8216_v48 = vld [vmem:[%s12882_s11 + $0x20] sm:$0xff] }
 0x540   :  { %v9711_v47 = vld [vmem:[#allocation9 + $0x124] ss:$8 sps:$4 sm:$0xff]   ;;  %v9709_v40 = vld [vmem:[#allocation9 + $0x120] ss:$8 sps:$4 sm:$0xff]  }
 0x542   :  { %7593 = vmatpush1.bf16.msra.mxu0 %v9631_v0  ;;  %7634 = vmatpush1.bf16.msra.mxu1 %v9634_v18  ;;  %v8217_v0 = vld [vmem:[%s12882_s11 + $0x28] sm:$0xff]  ;;  %v8234_v18 = vld [vmem:[%s12882_s11 + $0xb0] sm:$0xff] }
 0x543   :  { %7594 = vmatprep.subr.bf16.mxu0 %v9639_v20  ;;  %7635 = vmatprep.subr.bf16.mxu1 %v9642_v30  ;;  %v8235_v20 = vld [vmem:[%s12882_s11 + $0xb8] sm:$0xff]  ;;  %v9069_v30 = vpack.c.bf16 %v8217_v0, %v8216_v48  ;;  %v9717_v48 = vld [vmem:[#allocation9 + $0x144] ss:$8 sps:$4 sm:$0xff]   ;;  %v9715_v0 = vld [vmem:[#allocation9 + $0x140] ss:$8 sps:$4 sm:$0xff]  }
 0x546   :  { %7595 = vmatpush1.bf16.msra.mxu0 %v9637_v62  ;;  %7636 = vmatpush1.bf16.msra.mxu1 %v9640_v28  ;;  %v9071_v62 = vpack.c.bf16 %v8235_v20, %v8234_v18  ;;  %v8218_v28 = vld [vmem:[%s12882_s11 + $0x30] sm:$0xff] }
 0x547   :  { %7596 = vmatprep.subr.bf16.mxu0 %v9645_v39  ;;  %7637 = vmatprep.subr.bf16.mxu1 %v9648_v41  ;;  %v8219_v39 = vld [vmem:[%s12882_s11 + $0x38] sm:$0xff]  ;;  %v8236_v41 = vld [vmem:[%s12882_s11 + $0xc0] sm:$0xff] }
 0x548   :  { %v9720_v18 = vld [vmem:[#allocation9 + $0x154] ss:$8 sps:$4 sm:$0xff]   ;;  %v9718_v20 = vld [vmem:[#allocation9 + $0x150] ss:$8 sps:$4 sm:$0xff]  }
 0x54a   :  { %7597 = vmatpush1.bf16.msra.mxu0 %v9643_v2  ;;  %7638 = vmatpush1.bf16.msra.mxu1 %v9646_v53  ;;  %v8237_v2 = vld [vmem:[%s12882_s11 + $0xc8] sm:$0xff]  ;;  %v9073_v53 = vpack.c.bf16 %v8219_v39, %v8218_v28  ;;  %v9726_v28 = vld [vmem:[#allocation9 + $0x174] ss:$8 sps:$4 sm:$0xff]   ;;  %v9724_v39 = vld [vmem:[#allocation9 + $0x170] ss:$8 sps:$4 sm:$0xff]  }
 0x54b   :  { %7598 = vmatprep.subr.bf16.mxu0 %v9651_v29  ;;  %7639 = vmatprep.subr.bf16.mxu1 %v9654_v10  ;;  %v9075_v29 = vpack.c.bf16 %v8237_v2, %v8236_v41  ;;  %v8220_v10 = vld [vmem:[%s12882_s11 + $0x40] sm:$0xff] }
 0x54c   :  { %v9729_v41 = vld [vmem:[#allocation9 + $0x184] ss:$8 sps:$4 sm:$0xff]   ;;  %v9727_v2 = vld [vmem:[#allocation9 + $0x180] ss:$8 sps:$4 sm:$0xff]  }
 0x54e   :  { %7599 = vmatpush1.bf16.msra.mxu0 %v9649_v51  ;;  %7640 = vmatpush1.bf16.msra.mxu1 %v9652_v13  ;;  %v8221_v51 = vld [vmem:[%s12882_s11 + $0x48] sm:$0xff]  ;;  %v8238_v13 = vld [vmem:[%s12882_s11 + $0xd0] sm:$0xff] }
 0x54f   :  { %8099 = vmatprep.subr.bf16.mxu0 %v9657_v25  ;;  %9060 = vmatprep.subr.bf16.mxu1 %v9059_v15  ;;  %v8239_v25 = vld [vmem:[%s12882_s11 + $0xd8] sm:$0xff] }
 0x551   :  { %7601 = vmatmul.mubr.bf16.vlgmr.msra.gmra.mrb[40].mxu0 %v7244_v46  ;;  %7642 = vmatmul.mubr.bf16.vlgmr.msra.gmra.mrb[88].mxu1 %v7244_v46  ;;  %v9079_v46 = vpack.c.bf16 %v8239_v25, %v8238_v13  ;;  %v9738_v13 = vld [vmem:[#allocation9 + $0x1b4] ss:$8 sps:$4 sm:$0xff]   ;;  %v9736_v25 = vld [vmem:[#allocation9 + $0x1b0] ss:$8 sps:$4 sm:$0xff]  }
 0x552   :  { %8100 = vmatpush1.bf16.msra.mxu0 %v9655_v14  ;;  %9062 = vmatpush3.bf16.msra.mxu1 %v9061_v7  ;;  %v9077_v14 = vpack.c.bf16 %v8221_v51, %v8220_v10  ;;  %v9735_v10 = vld [vmem:[#allocation9 + $0x1a4] ss:$8 sps:$4 sm:$0xff]   ;;  %v9733_v51 = vld [vmem:[#allocation9 + $0x1a0] ss:$8 sps:$4 sm:$0xff]  }
 0x553   :  { %8101 = vmatprep.subr.bf16.mxu0 %v9660_v16  ;;  %9064 = vmatprep.subr.bf16.mxu1 %v9063_v3  ;;  %v8222_v16 = vld [vmem:[%s12882_s11 + $0x50] sm:$0xff] }
 0x554   :  { %v9708_v3 = vld [vmem:[#allocation9 + $0x114] ss:$8 sps:$4 sm:$0xff]  }
 0x556   :  { %8102 = vmatpush1.bf16.msra.mxu0 %v9658_v49  ;;  %9066 = vmatpush3.bf16.msra.mxu1 %v9065_v37  ;;  %v8223_v49 = vld [vmem:[%s12882_s11 + $0x58] sm:$0xff] }
 0x557   :  { %8103 = vmatprep.subr.bf16.mxu0 %v9663_v59  ;;  %9068 = vmatprep.subr.bf16.mxu1 %v9067_v60  ;;  %v9081_v59 = vpack.c.bf16 %v8223_v49, %v8222_v16  ;;  %v9714_v37 = vld [vmem:[#allocation9 + $0x134] ss:$8 sps:$4 sm:$0xff]   ;;  %v9712_v60 = vld [vmem:[#allocation9 + $0x130] ss:$8 sps:$4 sm:$0xff]  }
 0x558   :  { %v9744_v16 = vld [vmem:[#allocation9 + $0x1d4] ss:$8 sps:$4 sm:$0xff]   ;;  %v9742_v49 = vld [vmem:[#allocation9 + $0x1d0] ss:$8 sps:$4 sm:$0xff]  }
 0x55a   :  { %8104 = vmatpush1.bf16.msra.mxu0 %v9661_v4  ;;  %9070 = vmatpush3.bf16.msra.mxu1 %v9069_v30  ;;  %v7654_v4 = vld [vmem:[%s12879_s8] ss:$2 sm:$0xf] }
 0x55b   :  { %8105 = vmatprep.subr.bf16.mxu0 %v9666_v31  ;;  %9072 = vmatprep.subr.bf16.mxu1 %v9071_v62  ;;  %v8738_v31 = vld [vmem:[%s12879_s8 + $0x1] ss:$2 sm:$0xf] }
 0x55c   :  { %v9723_v30 = vld [vmem:[#allocation9 + $0x164] ss:$8 sps:$4 sm:$0xff]   ;;  %v9721_v62 = vld [vmem:[#allocation9 + $0x160] ss:$8 sps:$4 sm:$0xff]  }
 0x55e   :  { %8106 = vmatpush1.bf16.msra.mxu0 %v9664_v8  ;;  %9074 = vmatpush3.bf16.msra.mxu1 %v9073_v53  ;;  %v12952_v8 = vld [vmem:[#allocation23_spill] sm:$0xff] }
 0x55f   :  { %8107 = vmatprep.subr.bf16.mxu0 %v9669_v1  ;;  %9076 = vmatprep.subr.bf16.mxu1 %v9075_v29  ;;  %v7659_v1 = vrot.slane %v7654_v4, %v12952_v8  ;;  %v9732_v53 = vld [vmem:[#allocation9 + $0x194] ss:$8 sps:$4 sm:$0xff]   ;;  %v9730_v29 = vld [vmem:[#allocation9 + $0x190] ss:$8 sps:$4 sm:$0xff]  }
 0x562   :  { %8108 = vmatpush1.bf16.msra.mxu0 %v9667_v38  ;;  %9078 = vmatpush3.bf16.msra.mxu1 %v9077_v14  ;;  %v12953_v38 = vld [vmem:[#allocation24_spill] sm:$0xff] }
 0x563   :  { %8109 = vmatprep.subr.bf16.mxu0 %v9672_v54  ;;  %9080 = vmatprep.subr.bf16.mxu1 %v9079_v46  ;;  %v7667_v54 = vrot.slane %v7654_v4, %v12953_v38  ;;  %v9741_v14 = vld [vmem:[#allocation9 + $0x1c4] ss:$8 sps:$4 sm:$0xff]   ;;  %v9739_v46 = vld [vmem:[#allocation9 + $0x1c0] ss:$8 sps:$4 sm:$0xff]  }
 0x566   :  { %8110 = vmatpush1.bf16.msra.mxu0 %v9670_v50  ;;  %9082 = vmatpush3.bf16.msra.mxu1 %v9081_v59  ;;  %v12954_v50 = vld [vmem:[#allocation25_spill] sm:$0xff] }
 0x567   :  { %8111 = vmatprep.subr.bf16.mxu0 %v9675_v11  ;;  %v7663_v11 = vrot.slane %v7654_v4, %v12954_v50  ;;  %v9747_v59 = vld [vmem:[#allocation9 + $0x1e4] ss:$8 sps:$4 sm:$0xff]  }
 0x56a   :  { %8112 = vmatpush1.bf16.msra.mxu0 %v9673_v63  ;;  %v12955_v63 = vld [vmem:[#allocation26_spill] sm:$0xff] }
 0x56b   :  { %8113 = vmatprep.subr.bf16.mxu0 %v9678_v45  ;;  %v7671_v45 = vrot.slane %v7654_v4, %v12955_v63  ;;  %v9745_v4 = vld [vmem:[#allocation9 + $0x1e0] ss:$8 sps:$4 sm:$0xff]  }
 0x56e   :  { %8114 = vmatpush1.bf16.msra.mxu0 %v9676_v27  ;;  %v7686_v27 = vrot.slane %v8738_v31, %v12952_v8 }
 0x56f   :  { %8115 = vmatprep.subr.bf16.mxu0 %v9681_v9  ;;  %v7694_v9 = vrot.slane %v8738_v31, %v12953_v38 }
 0x572   :  { %8116 = vmatpush1.bf16.msra.mxu0 %v9679_v21 }
 0x573   :  { %8117 = vmatprep.subr.bf16.mxu0 %v9684_v17 }
 0x576   :  { %8118 = vmatpush1.bf16.msra.mxu0 %v9682_v33  ;;  %v7690_v33 = vrot.slane %v8738_v31, %v12954_v50 }
 0x577   :  { %8119 = vmatprep.subr.bf16.mxu0 %v9687_v56  ;;  %v7698_v56 = vrot.slane %v8738_v31, %v12955_v63  ;;  %v9750_v31 = vld [vmem:[#allocation9 + $0x1f4] ss:$8 sps:$4 sm:$0xff]   ;;  %v8241_v63 = vld [vmem:[%s12882_s11 + $0xe8] sm:$0xff] }
 0x57a   :  { %8120 = vmatpush1.bf16.msra.mxu0 %v9685_v6 }
 0x57b   :  { %8121 = vmatprep.subr.bf16.mxu0 %v9690_v58 }
 0x57e   :  { %8122 = vmatpush1.bf16.msra.mxu0 %v9688_v5 }
 0x57f   :  { %8123 = vmatprep.subr.bf16.mxu0 %v9693_v44 }
 0x582   :  { %8124 = vmatpush1.bf16.msra.mxu0 %v9691_v43 }
 0x583   :  { %8125 = vmatprep.subr.bf16.mxu0 %v9696_v52 }
 0x586   :  { %8126 = vmatpush1.bf16.msra.mxu0 %v9694_v12 }
 0x587   :  { %8127 = vmatprep.subr.bf16.mxu0 %v9699_v61 }
 0x58a   :  { %8128 = vmatpush1.bf16.msra.mxu0 %v9697_v22 }
 0x58b   :  { %8129 = vmatprep.subr.bf16.mxu0 %v9702_v34 }
 0x58e   :  { %8130 = vmatpush1.bf16.msra.mxu0 %v9700_v24 }
 0x58f   :  { %8140 = vmatprep.subr.bf16.mxu0 %v9705_v35 }
 0x624   :  { %v7602_v21 = vpop.f32.mrb[40].mxu0  ;;  %v7643_v17 = vpop.f32.mrb[88].mxu1 }
 0x625   :  { %v7676_v6 = vmul.f32 %v7659_v1, %v7602_v21  ;;  %v7678_v58 = vmul.f32 %v7667_v54, %v7643_v17  ;;  %v7604_v5 = vpop.f32.mrb[41].mxu0  ;;  %v7645_v44 = vpop.f32.mrb[89].mxu1  ;;  %v9748_v1 = vld [vmem:[#allocation9 + $0x1f0] ss:$8 sps:$4 sm:$0xff]  }
 0x626   :  { %v7677_v43 = vmul.f32 %v7663_v11, %v7604_v5  ;;  %v7679_v52 = vmul.f32 %v7671_v45, %v7645_v44  ;;  %v7606_v12 = vpop.f32.mrb[42].mxu0  ;;  %v7647_v22 = vpop.f32.mrb[90].mxu1  ;;  %v8240_v11 = vld [vmem:[%s12882_s11 + $0xe0] sm:$0xff]  ;;  %v8242_v21 = vld [vmem:[%s12882_s11 + $0xf0] sm:$0xff]  ;;  %v8243_v17 = vld [vmem:[%s12882_s11 + $0xf8] sm:$0xff] }
 0x627   :  { %v7703_v61 = vadd.f32 %v7686_v27, %v7676_v6  ;;  %v12819_v34 = vadd.f32 %v7694_v9, %v7678_v58  ;;  %v7607_v24 = vpop.f32.mrb[43].mxu0  ;;  %v7648_v35 = vpop.f32.mrb[91].mxu1  ;;  %v8224_v45 = vld [vmem:[%s12882_s11 + $0x60] sm:$0xff]  ;;  %v9083_v27 = vpack.c.bf16 %v8241_v63, %v8240_v11  ;;  %v8225_v9 = vld [vmem:[%s12882_s11 + $0x68] sm:$0xff]  ;;  %v8226_v6 = vld [vmem:[%s12882_s11 + $0x70] sm:$0xff] }
 0x628   :  { %v7704_v32 = vadd.f32 %v7690_v33, %v7677_v43  ;;  %v7706_v26 = vadd.f32 %v7698_v56, %v7679_v52  ;;  %v9085_v33 = vpack.c.bf16 %v8225_v9, %v8224_v45  ;;  %v9087_v56 = vpack.c.bf16 %v8243_v17, %v8242_v21  ;;  %v8227_v58 = vld [vmem:[%s12882_s11 + $0x78] sm:$0xff]  ;;  %v8181_v44 = vld [vmem:[%s12881_s10] ss:$2 sm:$0x3] }
 0x629   :  { %v7707_v19 = vmax.f32 %v7703_v61, 0.0  ;;  %v7709_v38 = vmax.f32 %v12819_v34, 0.0  ;;  %9084 = vmatprep.subr.bf16.mxu1 %v9083_v27  ;;  %v9089_v5 = vpack.c.bf16 %v8227_v58, %v8226_v6  ;;  %v8803_v43 = vld [vmem:[%s12881_s10 + $0x1] ss:$2 sm:$0x3]  ;;  %v8186_v52 = vrot.slane %v8181_v44, %v12952_v8 }
 0x62a   :  { %v7708_v15 = vmax.f32 %v7704_v32, 0.0  ;;  %v7710_v23 = vmax.f32 %v7706_v26, 0.0  ;;  %9086 = vmatpush3.bf16.msra.mxu1 %v9085_v33  ;;  %v8190_v12 = vrot.slane %v8181_v44, %v12954_v50  ;;  %v8201_v22 = vrot.slane %v8803_v43, %v12952_v8 }
 0x62b   :  { %v7711_v7 = vpack.c.bf16 %v7707_v19, %v7707_v19  ;;  %v7713_v54 = vpack.c.bf16 %v7709_v38, %v7709_v38  ;;  %9088 = vmatprep.subr.bf16.mxu1 %v9087_v56  ;;  %v8205_v34 = vrot.slane %v8803_v43, %v12954_v50 }
 0x62c   :  { %v7712_v36 = vpack.c.bf16 %v7708_v15, %v7708_v15  ;;  %v7714_v55 = vpack.c.bf16 %v7710_v23, %v7710_v23 }
 0x62e   :  { %8131 = vmatprep.mubr.bf16.mxu0 %v7712_v36  ;;  %9090 = vmatpush3.bf16.msra.mxu1 %v9089_v5 }
 0x62f   :  { %8132 = vmatmul.mubr.bf16.vlgmr.msra.gmra.mrb[44].mxu0 %v7711_v7 }
 0x630   :  { %8141 = vmatpush1.bf16.msra.mxu0 %v9703_v57  ;;  %8172 = vmatprep.mubr.bf16.mxu0 %v7714_v55 }
 0x631   :  { %8142 = vmatprep.subr.bf16.mxu0 %v9708_v3  ;;  %v8804_v3 = vld [vmem:[%s12883_s12] ss:$0 sm:$0xff] }
 0x634   :  { %8143 = vmatpush1.bf16.msra.mxu0 %v9706_v42 }
 0x635   :  { %8144 = vmatprep.subr.bf16.mxu0 %v9711_v47 }
 0x638   :  { %8145 = vmatpush1.bf16.msra.mxu0 %v9709_v40 }
 0x639   :  { %8146 = vmatprep.subr.bf16.mxu0 %v9714_v37 }
 0x63c   :  { %8147 = vmatpush1.bf16.msra.mxu0 %v9712_v60 }
 0x63d   :  { %8148 = vmatprep.subr.bf16.mxu0 %v9717_v48 }
 0x640   :  { %8149 = vmatpush1.bf16.msra.mxu0 %v9715_v0 }
 0x641   :  { %8150 = vmatprep.subr.bf16.mxu0 %v9720_v18 }
 0x644   :  { %8151 = vmatpush1.bf16.msra.mxu0 %v9718_v20 }
 0x645   :  { %8152 = vmatprep.subr.bf16.mxu0 %v9723_v30 }
 0x648   :  { %8153 = vmatpush1.bf16.msra.mxu0 %v9721_v62 }
 0x649   :  { %8154 = vmatprep.subr.bf16.mxu0 %v9726_v28 }
 0x64c   :  { %8155 = vmatpush1.bf16.msra.mxu0 %v9724_v39 }
 0x64d   :  { %8156 = vmatprep.subr.bf16.mxu0 %v9729_v41 }
 0x650   :  { %8157 = vmatpush1.bf16.msra.mxu0 %v9727_v2 }
 0x651   :  { %8158 = vmatprep.subr.bf16.mxu0 %v9732_v53 }
 0x654   :  { %8159 = vmatpush1.bf16.msra.mxu0 %v9730_v29 }
 0x655   :  { %8160 = vmatprep.subr.bf16.mxu0 %v9735_v10 }
 0x658   :  { %8161 = vmatpush1.bf16.msra.mxu0 %v9733_v51 }
 0x659   :  { %8162 = vmatprep.subr.bf16.mxu0 %v9738_v13 }
 0x65c   :  { %8163 = vmatpush1.bf16.msra.mxu0 %v9736_v25 }
 0x65d   :  { %8164 = vmatprep.subr.bf16.mxu0 %v9741_v14 }
 0x660   :  { %8165 = vmatpush1.bf16.msra.mxu0 %v9739_v46 }
 0x661   :  { %8166 = vmatprep.subr.bf16.mxu0 %v9744_v16 }
 0x664   :  { %8167 = vmatpush1.bf16.msra.mxu0 %v9742_v49 }
 0x665   :  { %8168 = vmatprep.subr.bf16.mxu0 %v9747_v59 }
 0x668   :  { %8169 = vmatpush1.bf16.msra.mxu0 %v9745_v4 }
 0x669   :  { %8170 = vmatprep.subr.bf16.mxu0 %v9750_v31 }
 0x66c   :  { %8171 = vmatpush1.bf16.msra.mxu0 %v9748_v1 }
 0x66f   :  { %8173 = vmatmul.mubr.bf16.vlgmr.msra.gmra.mrb[44].mxu0 %v7713_v54 }
 0x742   :  { %v8174_v61 = vpop.f32.mrb[44].mxu0 }
 0x743   :  { %v8193_v24 = vmul.f32 %v8186_v52, %v8174_v61  ;;  %v8176_v35 = vpop.f32.mrb[45].mxu0 }
 0x744   :  { %v8194_v32 = vmul.f32 %v8190_v12, %v8176_v35  ;;  %v8178_v26 = vpop.f32.mrb[46].mxu0 }
 0x745   :  { %v8208_v19 = vadd.f32 %v8201_v22, %v8193_v24  ;;  %v8179_v15 = vpop.f32.mrb[47].mxu0 }
 0x746   :  { %v8209_v23 = vadd.f32 %v8205_v34, %v8194_v32 }
 0x747   :  { %v8210_v57 = vmax.f32 %v8208_v19, 0.0 }
 0x748   :  { %v8211_v36 = vmax.f32 %v8209_v23, 0.0 }
 0x74a   :  { %8315 = vmatprep.mubr.f32.mxu1 %v8211_v36 }
 0x74b   :  { %8316 = vmatmul.mubr.f32.vlgmr.msra.gmra.mrb[92].mxu1 %v8210_v57 }
 0x81e   :  { %v8910_v7 = vpop.f32.mrb[92].mxu1 }
 0x81f   :  { %v8911_v8 = vpop.f32.mrb[93].mxu1 }
 0x820   :  { %v8912_v50 = vadd.f32 %v8911_v8, %v8910_v7 }
 0x822   :  { %v8318_v55 = vadd.f32 %v8912_v50, %v8804_v3 }
 0x824   :  { %8321 = vst [vmem:[#allocation11] sm:$0x3] %v8318_v55 }
 0x825   :  { %9850 = shalt.err (!%p9847_p8)
}
 0x826   :  { %s9851_s16 = scalar_lea.hbm %s12884_s13, 32 }
 0x827   :  { %p9852_p9 = scmp.ne.s32.totalorder %s12884_s13, %s9851_s16  ;;  %p9855_p10 = scmp.lt.u32.totalorder %s9851_s16, %s12884_s13 }
 0x829   :  { %p9857_p11 = pnand %p9855_p10, %p9852_p9 }
 0x82b   :  { %9860 = shalt.err (!%p9857_p11)
}
 0x82c   :  { %8331 = dma.vmem_to_hbm [thread:$0]  %s8329_s15, 32, %s12884_s13, [#allocation5]  }
 0x82d   :  { %9867 = dma.done.wait [#allocation5], 32  }
 0x82e   :  { %9868 = vsyncadd [#allocation5], 4294967264 }
 0x82f   :  { %8335 = vsyncpa [#allocation4], 1 }
 0x830   :  { %8336 = vsyncpa [#allocation7], 1 }
 0x831   :  { %8337 = vsyncpa [#allocation10], 1 }
 0x832   :  { %8338 = vsyncpa [#allocation5], 1 }

</bundles_post_ra>
